<compile_context>
chip_gen: v7x
topology: tpu7x:2x2x1
jax: 0.10.0
libtpu: 0.0.40
codegen_flags: <defaults>
</compile_context>

<pallas_src>
import functools

import jax
import jax.numpy as jnp
from jax import lax
from jax.experimental import pallas as pl
from jax.experimental.pallas import tpu as pltpu

NEG_FILL = -9999999.0


def _round_up(x, m):
    return ((x + m - 1) // m) * m


# ---------------- Pallas kernel 1: fused 1x1-conv stack (3->18->36->36->1) -----
# Channels on sublanes, points on lanes.  Weights are tiny, so each layer is an
# unrolled broadcast-FMA on the VPU; the output store is lane-dense (1, tk).
def _mlp_kernel(x_ref, w1_ref, b1_ref, w2_ref, b2_ref, w3_ref, b3_ref,
                w4_ref, b4_ref, o_ref):
    def dense(h, w_ref, b_ref, relu):
        w = w_ref[...]                              # (cout, cin)
        b = b_ref[...]                              # (cout, 1)
        cin = w.shape[1]
        acc = w[:, 0:1] * h[0:1, :] + b             # (cout, tk) via broadcast
        for c in range(1, cin):                     # unrolled: cin in {3,18,36}
            acc = acc + w[:, c:c + 1] * h[c:c + 1, :]
        return jnp.maximum(acc, 0.0) if relu else acc

    h = dense(x_ref[...], w1_ref, b1_ref, True)
    h = dense(h, w2_ref, b2_ref, True)
    h = dense(h, w3_ref, b3_ref, True)
    h = dense(h, w4_ref, b4_ref, False)
    o_ref[...] = h.astype(o_ref.dtype)


def mlp_pallas(x_cm, params, tk=512):
    """x_cm: (3, K) channel-major points -> (K,) fuse_2d_3d outputs (channel 0)."""
    C, K = x_cm.shape
    tk = min(tk, _round_up(K, 128))
    Kpad = _round_up(K, tk)
    if Kpad != K:
        x_cm = jnp.pad(x_cm, ((0, 0), (0, Kpad - K)))   # padded points sliced off
    (w1, b1), (w2, b2), (w3, b3), (w4, b4) = params

    def full(shape):                                    # whole-array block
        return pl.BlockSpec(shape, lambda i: (0, 0))

    out = pl.pallas_call(
        _mlp_kernel,
        out_shape=jax.ShapeDtypeStruct((1, Kpad), jnp.float32),
        grid=(Kpad // tk,),
        in_specs=[
            pl.BlockSpec((C, tk), lambda i: (0, i)),
            full(w1.shape), full(b1.shape),
            full(w2.shape), full(b2.shape),
            full(w3.shape), full(b3.shape),
            full(w4.shape), full(b4.shape),
        ],
        out_specs=pl.BlockSpec((1, tk), lambda i: (0, i)),
        compiler_params=pltpu.CompilerParams(dimension_semantics=("parallel",)),
    )(x_cm, w1, b1, w2, b2, w3, b3, w4, b4)
    return out[0, :K]


# ---------------- Pallas kernel 2: row-max reduction (the MaxPool2d([H,1],1)) --
def _rowmax_kernel(g_ref, o_ref):
    o_ref[...] = jnp.max(g_ref[...], axis=0, keepdims=True)


def rowmax_pallas(buf, tw):
    """buf: (8, Wpad) -> (1, Wpad) column-wise max.  Wpad % tw == 0, tw % 128 == 0."""
    R, Wp = buf.shape
    return pl.pallas_call(
        _rowmax_kernel,
        out_shape=jax.ShapeDtypeStruct((1, Wp), buf.dtype),
        grid=(Wp // tw,),
        in_specs=[pl.BlockSpec((R, tw), lambda j: (0, j))],
        out_specs=pl.BlockSpec((1, tw), lambda j: (0, j)),
        compiler_params=pltpu.CompilerParams(dimension_semantics=("parallel",)),
    )(buf)


# ---------------- parameter init (deterministic, Conv2d-like fan-in uniform) ---
def init_params(key):
    dims = [(3, 18), (18, 36), (36, 36), (36, 1)]
    params = []
    for cin, cout in dims:
        key, kw, kb = jax.random.split(key, 3)
        bound = 1.0 / (cin ** 0.5)
        w = jax.random.uniform(kw, (cout, cin), jnp.float32, -bound, bound)
        b = jax.random.uniform(kb, (cout, 1), jnp.float32, -bound, bound)
        params.append((w, b))
    return params


# ---------------- full forward --------------------------------------------------
@functools.partial(jax.jit, static_argnames=("H", "W"))
def fusion_forward(params, input_1, tensor_index, H=200, W=107136):
    """input_1: (1, 3, 1, K) NCHW float32; tensor_index: (K, 2) int32.

    Returns (x, flag), x: (1, W, 1).  H only influences torch's duplicate-cell
    overwrite semantics and is otherwise unused after fusing scatter + max.
    """
    dtype = input_1.dtype
    K = input_1.shape[-1]
    # Column tile: multiple of 128; 3456 divides the production W = 107136.
    tw = min(3456, _round_up(W, 128))
    Wpad = _round_up(W, tw)

    cond = tensor_index[0, 0] == -1

    def empty_branch(_):
        return jnp.full((Wpad,), NEG_FILL, dtype=dtype)

    def scatter_branch(_):
        vals = mlp_pallas(input_1[0, :, 0, :], params)           # (K,) == x[0,0,0,:]
        # TODO(synk): the data-dependent scatter has no clean blocked-BlockSpec
        # form on TPU; it is done as an XLA scatter-max into a small (8, Wpad)
        # buffer (the (H, W) grid never exists).  This equals the torch result
        # unless duplicate (row, col) pairs carry different values (torch keeps
        # the last write per cell; we keep the per-column max).
        cols = tensor_index[:, 1]
        rows8 = jnp.arange(K, dtype=jnp.int32) & 7               # spread updates
        buf = jnp.full((8, Wpad), NEG_FILL, dtype=dtype)
        buf = buf.at[rows8, cols].max(vals.astype(dtype))
        return rowmax_pallas(buf, tw)[0]                         # (Wpad,)

    col_max = lax.cond(cond, empty_branch, scatter_branch, operand=None)
    flag = jnp.where(cond, 0, 1)
    x = col_max[:W].reshape(1, W, 1)
    return x, flag


# ---------------- pure-JAX reference for validation -----------------------------
def reference(params, input_1, tensor_index, H, W):
    h = input_1[0, :, 0, :]                      # (3, K)
    for i, (w, b) in enumerate(params):
        h = w @ h + b
        if i < 3:
            h = jnp.maximum(h, 0.0)
    vals = h[0]
    if int(tensor_index[0, 0]) == -1:
        return jnp.full((1, W, 1), NEG_FILL, jnp.float32), 0
    base = jnp.full((H, W), NEG_FILL, jnp.float32)
    grid = base.at[tensor_index[:, 0], tensor_index[:, 1]].set(vals)
    return jnp.max(grid, axis=0).reshape(1, W, 1), 1


if __name__ == "__main__":
    # Small shapes consistent with the module; K deliberately NOT a multiple of 128
    # to exercise the padding path.
    H, W, K = 200, 2048, 1000

    key = jax.random.PRNGKey(0)
    kp, kx, kr = jax.random.split(key, 3)
    params = init_params(kp)

    input_1 = jax.random.normal(kx, (1, 3, 1, K), jnp.float32)
    rows = jax.random.randint(kr, (K,), 0, H, dtype=jnp.int32)
    cols = jnp.arange(K, dtype=jnp.int32) * (W // K)     # distinct -> unambiguous scatter
    tensor_index = jnp.stack([rows, cols], axis=1)

    # Scatter path (flag == 1)
    x, flag = fusion_forward(params, input_1, tensor_index, H=H, W=W)
    jax.block_until_ready(x)
    x_ref, flag_ref = reference(params, input_1, tensor_index, H, W)
    assert x.shape == (1, W, 1)
    assert int(flag) == flag_ref == 1
    assert jnp.allclose(x, x_ref, atol=1e-4, rtol=1e-4)

    # Empty path (tensor_index[0, 0] == -1 -> flag == 0, all -9999999)
    ti_empty = tensor_index.at[0, 0].set(-1)
    x2, flag2 = fusion_forward(params, input_1, ti_empty, H=H, W=W)
    jax.block_until_ready(x2)
    assert x2.shape == (1, W, 1)
    assert int(flag2) == 0
    assert float(jnp.max(x2)) == NEG_FILL

    print("KERNEL_OK")
</pallas_src>

<mosaic_0001>
module attributes {stable_mosaic.version = 11 : i64} {
  func.func @_rowmax_kernel(%arg0: i32, %arg1: memref<8x2048xf32, #tpu.memory_space<vmem>>, %arg2: memref<1x2048xf32, #tpu.memory_space<vmem>>) attributes {dimension_semantics = [#tpu.dimension_semantics<parallel>], iteration_bounds = array<i64: 1>, scalar_prefetch = 0 : i64, scratch_operands = 0 : i64, tpu.core_type = #tpu.core_type<tc>, window_params = [{transform_indices = @transform_0, window_bounds = array<i64: 8, 2048>}, {transform_indices = @transform_1, window_bounds = array<i64: 1, 2048>}]} {
    %c0 = arith.constant 0 : index
    %c0_0 = arith.constant 0 : index
    %0 = vector.load %arg1[%c0, %c0_0] : memref<8x2048xf32, #tpu.memory_space<vmem>>, vector<8x2048xf32>
    %cst = arith.constant dense<0xFF800000> : vector<2048xf32>
    %1 = vector.multi_reduction <maximumf>, %0, %cst [0] : vector<8x2048xf32> to vector<2048xf32>
    %2 = vector.shape_cast %1 : vector<2048xf32> to vector<1x2048xf32>
    %c0_1 = arith.constant 0 : index
    %c0_2 = arith.constant 0 : index
    %3 = vector.load %arg2[%c0_1, %c0_2] : memref<1x2048xf32, #tpu.memory_space<vmem>>, vector<1x2048xf32>
    tpu.vector_store %arg2[%c0_1, %c0_2], %2 {strides = array<i32>} : memref<1x2048xf32, #tpu.memory_space<vmem>>, vector<1x2048xf32>,
    return
  }
  func.func @transform_0(%arg0: i32) -> (i32, i32) {
    %c0_i32 = arith.constant 0 : i32
    %c0_i32_0 = arith.constant 0 : i32
    return %c0_i32, %arg0 : i32, i32
  }
  func.func @transform_1(%arg0: i32) -> (i32, i32) {
    %c0_i32 = arith.constant 0 : i32
    %c0_i32_0 = arith.constant 0 : i32
    return %c0_i32, %arg0 : i32, i32
  }
}

module attributes {stable_mosaic.version = 11 : i64} {
  func.func @_mlp_kernel(%arg0: i32, %arg1: memref<3x512xf32, #tpu.memory_space<vmem>>, %arg2: memref<18x3xf32, #tpu.memory_space<vmem>>, %arg3: memref<18x1xf32, #tpu.memory_space<vmem>>, %arg4: memref<36x18xf32, #tpu.memory_space<vmem>>, %arg5: memref<36x1xf32, #tpu.memory_space<vmem>>, %arg6: memref<36x36xf32, #tpu.memory_space<vmem>>, %arg7: memref<36x1xf32, #tpu.memory_space<vmem>>, %arg8: memref<1x36xf32, #tpu.memory_space<vmem>>, %arg9: memref<1x1xf32, #tpu.memory_space<vmem>>, %arg10: memref<1x512xf32, #tpu.memory_space<vmem>>) attributes {dimension_semantics = [#tpu.dimension_semantics<parallel>], iteration_bounds = array<i64: 2>, scalar_prefetch = 0 : i64, scratch_operands = 0 : i64, tpu.core_type = #tpu.core_type<tc>, window_params = [{transform_indices = @transform_0, window_bounds = array<i64: 3, 512>}, {pipeline_mode = #tpu.pipeline_mode<synchronous>, transform_indices = @transform_1, window_bounds = array<i64: 18, 3>}, {pipeline_mode = #tpu.pipeline_mode<synchronous>, transform_indices = @transform_2, window_bounds = array<i64: 18, 1>}, {pipeline_mode = #tpu.pipeline_mode<synchronous>, transform_indices = @transform_3, window_bounds = array<i64: 36, 18>}, {pipeline_mode = #tpu.pipeline_mode<synchronous>, transform_indices = @transform_4, window_bounds = array<i64: 36, 1>}, {pipeline_mode = #tpu.pipeline_mode<synchronous>, transform_indices = @transform_5, window_bounds = array<i64: 36, 36>}, {pipeline_mode = #tpu.pipeline_mode<synchronous>, transform_indices = @transform_6, window_bounds = array<i64: 36, 1>}, {pipeline_mode = #tpu.pipeline_mode<synchronous>, transform_indices = @transform_7, window_bounds = array<i64: 1, 36>}, {pipeline_mode = #tpu.pipeline_mode<synchronous>, transform_indices = @transform_8, window_bounds = array<i64: 1, 1>}, {transform_indices = @transform_9, window_bounds = array<i64: 1, 512>}]} {
    %c0 = arith.constant 0 : index
    %c0_0 = arith.constant 0 : index
    %0 = vector.load %arg1[%c0, %c0_0] : memref<3x512xf32, #tpu.memory_space<vmem>>, vector<3x512xf32>
    %c0_1 = arith.constant 0 : index
    %c0_2 = arith.constant 0 : index
    %1 = vector.load %arg2[%c0_1, %c0_2] : memref<18x3xf32, #tpu.memory_space<vmem>>, vector<18x3xf32>
    %c0_3 = arith.constant 0 : index
    %c0_4 = arith.constant 0 : index
    %2 = vector.load %arg3[%c0_3, %c0_4] : memref<18x1xf32, #tpu.memory_space<vmem>>, vector<18x1xf32>
    %3 = vector.extract_strided_slice %1 {offsets = [0, 0], sizes = [18, 1], strides = [1, 1]} : vector<18x3xf32> to vector<18x1xf32>
    %4 = vector.extract_strided_slice %0 {offsets = [0, 0], sizes = [1, 512], strides = [1, 1]} : vector<3x512xf32> to vector<1x512xf32>
    %5 = vector.broadcast %3 : vector<18x1xf32> to vector<18x512xf32>
    %6 = vector.broadcast %4 : vector<1x512xf32> to vector<18x512xf32>
    %7 = arith.mulf %5, %6 : vector<18x512xf32>
    %8 = vector.broadcast %2 : vector<18x1xf32> to vector<18x512xf32>
    %9 = arith.addf %7, %8 : vector<18x512xf32>
    %10 = vector.extract_strided_slice %1 {offsets = [0, 1], sizes = [18, 1], strides = [1, 1]} : vector<18x3xf32> to vector<18x1xf32>
    %11 = vector.extract_strided_slice %0 {offsets = [1, 0], sizes = [1, 512], strides = [1, 1]} : vector<3x512xf32> to vector<1x512xf32>
    %12 = vector.broadcast %10 : vector<18x1xf32> to vector<18x512xf32>
    %13 = vector.broadcast %11 : vector<1x512xf32> to vector<18x512xf32>
    %14 = arith.mulf %12, %13 : vector<18x512xf32>
    %15 = arith.addf %9, %14 : vector<18x512xf32>
    %16 = vector.extract_strided_slice %1 {offsets = [0, 2], sizes = [18, 1], strides = [1, 1]} : vector<18x3xf32> to vector<18x1xf32>
    %17 = vector.extract_strided_slice %0 {offsets = [2, 0], sizes = [1, 512], strides = [1, 1]} : vector<3x512xf32> to vector<1x512xf32>
    %18 = vector.broadcast %16 : vector<18x1xf32> to vector<18x512xf32>
    %19 = vector.broadcast %17 : vector<1x512xf32> to vector<18x512xf32>
    %20 = arith.mulf %18, %19 : vector<18x512xf32>
    %21 = arith.addf %15, %20 : vector<18x512xf32>
    %cst = arith.constant 0.000000e+00 : f32
    %22 = vector.broadcast %cst : f32 to vector<18x512xf32>
    %23 = arith.maximumf %21, %22 : vector<18x512xf32>
    %c0_5 = arith.constant 0 : index
    %c0_6 = arith.constant 0 : index
    %24 = vector.load %arg4[%c0_5, %c0_6] : memref<36x18xf32, #tpu.memory_space<vmem>>, vector<36x18xf32>
    %c0_7 = arith.constant 0 : index
    %c0_8 = arith.constant 0 : index
    %25 = vector.load %arg5[%c0_7, %c0_8] : memref<36x1xf32, #tpu.memory_space<vmem>>, vector<36x1xf32>
    %26 = vector.extract_strided_slice %24 {offsets = [0, 0], sizes = [36, 1], strides = [1, 1]} : vector<36x18xf32> to vector<36x1xf32>
    %27 = vector.extract_strided_slice %23 {offsets = [0, 0], sizes = [1, 512], strides = [1, 1]} : vector<18x512xf32> to vector<1x512xf32>
    %28 = vector.broadcast %26 : vector<36x1xf32> to vector<36x512xf32>
    %29 = vector.broadcast %27 : vector<1x512xf32> to vector<36x512xf32>
    %30 = arith.mulf %28, %29 : vector<36x512xf32>
    %31 = vector.broadcast %25 : vector<36x1xf32> to vector<36x512xf32>
    %32 = arith.addf %30, %31 : vector<36x512xf32>
    %33 = vector.extract_strided_slice %24 {offsets = [0, 1], sizes = [36, 1], strides = [1, 1]} : vector<36x18xf32> to vector<36x1xf32>
    %34 = vector.extract_strided_slice %23 {offsets = [1, 0], sizes = [1, 512], strides = [1, 1]} : vector<18x512xf32> to vector<1x512xf32>
    %35 = vector.broadcast %33 : vector<36x1xf32> to vector<36x512xf32>
    %36 = vector.broadcast %34 : vector<1x512xf32> to vector<36x512xf32>
    %37 = arith.mulf %35, %36 : vector<36x512xf32>
    %38 = arith.addf %32, %37 : vector<36x512xf32>
    %39 = vector.extract_strided_slice %24 {offsets = [0, 2], sizes = [36, 1], strides = [1, 1]} : vector<36x18xf32> to vector<36x1xf32>
    %40 = vector.extract_strided_slice %23 {offsets = [2, 0], sizes = [1, 512], strides = [1, 1]} : vector<18x512xf32> to vector<1x512xf32>
    %41 = vector.broadcast %39 : vector<36x1xf32> to vector<36x512xf32>
    %42 = vector.broadcast %40 : vector<1x512xf32> to vector<36x512xf32>
    %43 = arith.mulf %41, %42 : vector<36x512xf32>
    %44 = arith.addf %38, %43 : vector<36x512xf32>
    %45 = vector.extract_strided_slice %24 {offsets = [0, 3], sizes = [36, 1], strides = [1, 1]} : vector<36x18xf32> to vector<36x1xf32>
    %46 = vector.extract_strided_slice %23 {offsets = [3, 0], sizes = [1, 512], strides = [1, 1]} : vector<18x512xf32> to vector<1x512xf32>
    %47 = vector.broadcast %45 : vector<36x1xf32> to vector<36x512xf32>
    %48 = vector.broadcast %46 : vector<1x512xf32> to vector<36x512xf32>
    %49 = arith.mulf %47, %48 : vector<36x512xf32>
    %50 = arith.addf %44, %49 : vector<36x512xf32>
    %51 = vector.extract_strided_slice %24 {offsets = [0, 4], sizes = [36, 1], strides = [1, 1]} : vector<36x18xf32> to vector<36x1xf32>
    %52 = vector.extract_strided_slice %23 {offsets = [4, 0], sizes = [1, 512], strides = [1, 1]} : vector<18x512xf32> to vector<1x512xf32>
    %53 = vector.broadcast %51 : vector<36x1xf32> to vector<36x512xf32>
    %54 = vector.broadcast %52 : vector<1x512xf32> to vector<36x512xf32>
    %55 = arith.mulf %53, %54 : vector<36x512xf32>
    %56 = arith.addf %50, %55 : vector<36x512xf32>
    %57 = vector.extract_strided_slice %24 {offsets = [0, 5], sizes = [36, 1], strides = [1, 1]} : vector<36x18xf32> to vector<36x1xf32>
    %58 = vector.extract_strided_slice %23 {offsets = [5, 0], sizes = [1, 512], strides = [1, 1]} : vector<18x512xf32> to vector<1x512xf32>
    %59 = vector.broadcast %57 : vector<36x1xf32> to vector<36x512xf32>
    %60 = vector.broadcast %58 : vector<1x512xf32> to vector<36x512xf32>
    %61 = arith.mulf %59, %60 : vector<36x512xf32>
    %62 = arith.addf %56, %61 : vector<36x512xf32>
    %63 = vector.extract_strided_slice %24 {offsets = [0, 6], sizes = [36, 1], strides = [1, 1]} : vector<36x18xf32> to vector<36x1xf32>
    %64 = vector.extract_strided_slice %23 {offsets = [6, 0], sizes = [1, 512], strides = [1, 1]} : vector<18x512xf32> to vector<1x512xf32>
    %65 = vector.broadcast %63 : vector<36x1xf32> to vector<36x512xf32>
    %66 = vector.broadcast %64 : vector<1x512xf32> to vector<36x512xf32>
    %67 = arith.mulf %65, %66 : vector<36x512xf32>
    %68 = arith.addf %62, %67 : vector<36x512xf32>
    %69 = vector.extract_strided_slice %24 {offsets = [0, 7], sizes = [36, 1], strides = [1, 1]} : vector<36x18xf32> to vector<36x1xf32>
    %70 = vector.extract_strided_slice %23 {offsets = [7, 0], sizes = [1, 512], strides = [1, 1]} : vector<18x512xf32> to vector<1x512xf32>
    %71 = vector.broadcast %69 : vector<36x1xf32> to vector<36x512xf32>
    %72 = vector.broadcast %70 : vector<1x512xf32> to vector<36x512xf32>
    %73 = arith.mulf %71, %72 : vector<36x512xf32>
    %74 = arith.addf %68, %73 : vector<36x512xf32>
    %75 = vector.extract_strided_slice %24 {offsets = [0, 8], sizes = [36, 1], strides = [1, 1]} : vector<36x18xf32> to vector<36x1xf32>
    %76 = vector.extract_strided_slice %23 {offsets = [8, 0], sizes = [1, 512], strides = [1, 1]} : vector<18x512xf32> to vector<1x512xf32>
    %77 = vector.broadcast %75 : vector<36x1xf32> to vector<36x512xf32>
    %78 = vector.broadcast %76 : vector<1x512xf32> to vector<36x512xf32>
    %79 = arith.mulf %77, %78 : vector<36x512xf32>
    %80 = arith.addf %74, %79 : vector<36x512xf32>
    %81 = vector.extract_strided_slice %24 {offsets = [0, 9], sizes = [36, 1], strides = [1, 1]} : vector<36x18xf32> to vector<36x1xf32>
    %82 = vector.extract_strided_slice %23 {offsets = [9, 0], sizes = [1, 512], strides = [1, 1]} : vector<18x512xf32> to vector<1x512xf32>
    %83 = vector.broadcast %81 : vector<36x1xf32> to vector<36x512xf32>
    %84 = vector.broadcast %82 : vector<1x512xf32> to vector<36x512xf32>
    %85 = arith.mulf %83, %84 : vector<36x512xf32>
    %86 = arith.addf %80, %85 : vector<36x512xf32>
    %87 = vector.extract_strided_slice %24 {offsets = [0, 10], sizes = [36, 1], strides = [1, 1]} : vector<36x18xf32> to vector<36x1xf32>
    %88 = vector.extract_strided_slice %23 {offsets = [10, 0], sizes = [1, 512], strides = [1, 1]} : vector<18x512xf32> to vector<1x512xf32>
    %89 = vector.broadcast %87 : vector<36x1xf32> to vector<36x512xf32>
    %90 = vector.broadcast %88 : vector<1x512xf32> to vector<36x512xf32>
    %91 = arith.mulf %89, %90 : vector<36x512xf32>
    %92 = arith.addf %86, %91 : vector<36x512xf32>
    %93 = vector.extract_strided_slice %24 {offsets = [0, 11], sizes = [36, 1], strides = [1, 1]} : vector<36x18xf32> to vector<36x1xf32>
    %94 = vector.extract_strided_slice %23 {offsets = [11, 0], sizes = [1, 512], strides = [1, 1]} : vector<18x512xf32> to vector<1x512xf32>
    %95 = vector.broadcast %93 : vector<36x1xf32> to vector<36x512xf32>
    %96 = vector.broadcast %94 : vector<1x512xf32> to vector<36x512xf32>
    %97 = arith.mulf %95, %96 : vector<36x512xf32>
    %98 = arith.addf %92, %97 : vector<36x512xf32>
    %99 = vector.extract_strided_slice %24 {offsets = [0, 12], sizes = [36, 1], strides = [1, 1]} : vector<36x18xf32> to vector<36x1xf32>
    %100 = vector.extract_strided_slice %23 {offsets = [12, 0], sizes = [1, 512], strides = [1, 1]} : vector<18x512xf32> to vector<1x512xf32>
    %101 = vector.broadcast %99 : vector<36x1xf32> to vector<36x512xf32>
    %102 = vector.broadcast %100 : vector<1x512xf32> to vector<36x512xf32>
    %103 = arith.mulf %101, %102 : vector<36x512xf32>
    %104 = arith.addf %98, %103 : vector<36x512xf32>
    %105 = vector.extract_strided_slice %24 {offsets = [0, 13], sizes = [36, 1], strides = [1, 1]} : vector<36x18xf32> to vector<36x1xf32>
    %106 = vector.extract_strided_slice %23 {offsets = [13, 0], sizes = [1, 512], strides = [1, 1]} : vector<18x512xf32> to vector<1x512xf32>
    %107 = vector.broadcast %105 : vector<36x1xf32> to vector<36x512xf32>
    %108 = vector.broadcast %106 : vector<1x512xf32> to vector<36x512xf32>
    %109 = arith.mulf %107, %108 : vector<36x512xf32>
    %110 = arith.addf %104, %109 : vector<36x512xf32>
    %111 = vector.extract_strided_slice %24 {offsets = [0, 14], sizes = [36, 1], strides = [1, 1]} : vector<36x18xf32> to vector<36x1xf32>
    %112 = vector.extract_strided_slice %23 {offsets = [14, 0], sizes = [1, 512], strides = [1, 1]} : vector<18x512xf32> to vector<1x512xf32>
    %113 = vector.broadcast %111 : vector<36x1xf32> to vector<36x512xf32>
    %114 = vector.broadcast %112 : vector<1x512xf32> to vector<36x512xf32>
    %115 = arith.mulf %113, %114 : vector<36x512xf32>
    %116 = arith.addf %110, %115 : vector<36x512xf32>
    %117 = vector.extract_strided_slice %24 {offsets = [0, 15], sizes = [36, 1], strides = [1, 1]} : vector<36x18xf32> to vector<36x1xf32>
    %118 = vector.extract_strided_slice %23 {offsets = [15, 0], sizes = [1, 512], strides = [1, 1]} : vector<18x512xf32> to vector<1x512xf32>
    %119 = vector.broadcast %117 : vector<36x1xf32> to vector<36x512xf32>
    %120 = vector.broadcast %118 : vector<1x512xf32> to vector<36x512xf32>
    %121 = arith.mulf %119, %120 : vector<36x512xf32>
    %122 = arith.addf %116, %121 : vector<36x512xf32>
    %123 = vector.extract_strided_slice %24 {offsets = [0, 16], sizes = [36, 1], strides = [1, 1]} : vector<36x18xf32> to vector<36x1xf32>
    %124 = vector.extract_strided_slice %23 {offsets = [16, 0], sizes = [1, 512], strides = [1, 1]} : vector<18x512xf32> to vector<1x512xf32>
    %125 = vector.broadcast %123 : vector<36x1xf32> to vector<36x512xf32>
    %126 = vector.broadcast %124 : vector<1x512xf32> to vector<36x512xf32>
    %127 = arith.mulf %125, %126 : vector<36x512xf32>
    %128 = arith.addf %122, %127 : vector<36x512xf32>
    %129 = vector.extract_strided_slice %24 {offsets = [0, 17], sizes = [36, 1], strides = [1, 1]} : vector<36x18xf32> to vector<36x1xf32>
    %130 = vector.extract_strided_slice %23 {offsets = [17, 0], sizes = [1, 512], strides = [1, 1]} : vector<18x512xf32> to vector<1x512xf32>
    %131 = vector.broadcast %129 : vector<36x1xf32> to vector<36x512xf32>
    %132 = vector.broadcast %130 : vector<1x512xf32> to vector<36x512xf32>
    %133 = arith.mulf %131, %132 : vector<36x512xf32>
    %134 = arith.addf %128, %133 : vector<36x512xf32>
    %cst_9 = arith.constant 0.000000e+00 : f32
    %135 = vector.broadcast %cst_9 : f32 to vector<36x512xf32>
    %136 = arith.maximumf %134, %135 : vector<36x512xf32>
    %c0_10 = arith.constant 0 : index
    %c0_11 = arith.constant 0 : index
    %137 = vector.load %arg6[%c0_10, %c0_11] : memref<36x36xf32, #tpu.memory_space<vmem>>, vector<36x36xf32>
    %c0_12 = arith.constant 0 : index
    %c0_13 = arith.constant 0 : index
    %138 = vector.load %arg7[%c0_12, %c0_13] : memref<36x1xf32, #tpu.memory_space<vmem>>, vector<36x1xf32>
    %139 = vector.extract_strided_slice %137 {offsets = [0, 0], sizes = [36, 1], strides = [1, 1]} : vector<36x36xf32> to vector<36x1xf32>
    %140 = vector.extract_strided_slice %136 {offsets = [0, 0], sizes = [1, 512], strides = [1, 1]} : vector<36x512xf32> to vector<1x512xf32>
    %141 = vector.broadcast %139 : vector<36x1xf32> to vector<36x512xf32>
    %142 = vector.broadcast %140 : vector<1x512xf32> to vector<36x512xf32>
    %143 = arith.mulf %141, %142 : vector<36x512xf32>
    %144 = vector.broadcast %138 : vector<36x1xf32> to vector<36x512xf32>
    %145 = arith.addf %143, %144 : vector<36x512xf32>
    %146 = vector.extract_strided_slice %137 {offsets = [0, 1], sizes = [36, 1], strides = [1, 1]} : vector<36x36xf32> to vector<36x1xf32>
    %147 = vector.extract_strided_slice %136 {offsets = [1, 0], sizes = [1, 512], strides = [1, 1]} : vector<36x512xf32> to vector<1x512xf32>
    %148 = vector.broadcast %146 : vector<36x1xf32> to vector<36x512xf32>
    %149 = vector.broadcast %147 : vector<1x512xf32> to vector<36x512xf32>
    %150 = arith.mulf %148, %149 : vector<36x512xf32>
    %151 = arith.addf %145, %150 : vector<36x512xf32>
    %152 = vector.extract_strided_slice %137 {offsets = [0, 2], sizes = [36, 1], strides = [1, 1]} : vector<36x36xf32> to vector<36x1xf32>
    %153 = vector.extract_strided_slice %136 {offsets = [2, 0], sizes = [1, 512], strides = [1, 1]} : vector<36x512xf32> to vector<1x512xf32>
    %154 = vector.broadcast %152 : vector<36x1xf32> to vector<36x512xf32>
    %155 = vector.broadcast %153 : vector<1x512xf32> to vector<36x512xf32>
    %156 = arith.mulf %154, %155 : vector<36x512xf32>
    %157 = arith.addf %151, %156 : vector<36x512xf32>
    %158 = vector.extract_strided_slice %137 {offsets = [0, 3], sizes = [36, 1], strides = [1, 1]} : vector<36x36xf32> to vector<36x1xf32>
    %159 = vector.extract_strided_slice %136 {offsets = [3, 0], sizes = [1, 512], strides = [1, 1]} : vector<36x512xf32> to vector<1x512xf32>
    %160 = vector.broadcast %158 : vector<36x1xf32> to vector<36x512xf32>
    %161 = vector.broadcast %159 : vector<1x512xf32> to vector<36x512xf32>
    %162 = arith.mulf %160, %161 : vector<36x512xf32>
    %163 = arith.addf %157, %162 : vector<36x512xf32>
    %164 = vector.extract_strided_slice %137 {offsets = [0, 4], sizes = [36, 1], strides = [1, 1]} : vector<36x36xf32> to vector<36x1xf32>
    %165 = vector.extract_strided_slice %136 {offsets = [4, 0], sizes = [1, 512], strides = [1, 1]} : vector<36x512xf32> to vector<1x512xf32>
    %166 = vector.broadcast %164 : vector<36x1xf32> to vector<36x512xf32>
    %167 = vector.broadcast %165 : vector<1x512xf32> to vector<36x512xf32>
    %168 = arith.mulf %166, %167 : vector<36x512xf32>
    %169 = arith.addf %163, %168 : vector<36x512xf32>
    %170 = vector.extract_strided_slice %137 {offsets = [0, 5], sizes = [36, 1], strides = [1, 1]} : vector<36x36xf32> to vector<36x1xf32>
    %171 = vector.extract_strided_slice %136 {offsets = [5, 0], sizes = [1, 512], strides = [1, 1]} : vector<36x512xf32> to vector<1x512xf32>
    %172 = vector.broadcast %170 : vector<36x1xf32> to vector<36x512xf32>
    %173 = vector.broadcast %171 : vector<1x512xf32> to vector<36x512xf32>
    %174 = arith.mulf %172, %173 : vector<36x512xf32>
    %175 = arith.addf %169, %174 : vector<36x512xf32>
    %176 = vector.extract_strided_slice %137 {offsets = [0, 6], sizes = [36, 1], strides = [1, 1]} : vector<36x36xf32> to vector<36x1xf32>
    %177 = vector.extract_strided_slice %136 {offsets = [6, 0], sizes = [1, 512], strides = [1, 1]} : vector<36x512xf32> to vector<1x512xf32>
    %178 = vector.broadcast %176 : vector<36x1xf32> to vector<36x512xf32>
    %179 = vector.broadcast %177 : vector<1x512xf32> to vector<36x512xf32>
    %180 = arith.mulf %178, %179 : vector<36x512xf32>
    %181 = arith.addf %175, %180 : vector<36x512xf32>
    %182 = vector.extract_strided_slice %137 {offsets = [0, 7], sizes = [36, 1], strides = [1, 1]} : vector<36x36xf32> to vector<36x1xf32>
    %183 = vector.extract_strided_slice %136 {offsets = [7, 0], sizes = [1, 512], strides = [1, 1]} : vector<36x512xf32> to vector<1x512xf32>
    %184 = vector.broadcast %182 : vector<36x1xf32> to vector<36x512xf32>
    %185 = vector.broadcast %183 : vector<1x512xf32> to vector<36x512xf32>
    %186 = arith.mulf %184, %185 : vector<36x512xf32>
    %187 = arith.addf %181, %186 : vector<36x512xf32>
    %188 = vector.extract_strided_slice %137 {offsets = [0, 8], sizes = [36, 1], strides = [1, 1]} : vector<36x36xf32> to vector<36x1xf32>
    %189 = vector.extract_strided_slice %136 {offsets = [8, 0], sizes = [1, 512], strides = [1, 1]} : vector<36x512xf32> to vector<1x512xf32>
    %190 = vector.broadcast %188 : vector<36x1xf32> to vector<36x512xf32>
    %191 = vector.broadcast %189 : vector<1x512xf32> to vector<36x512xf32>
    %192 = arith.mulf %190, %191 : vector<36x512xf32>
    %193 = arith.addf %187, %192 : vector<36x512xf32>
    %194 = vector.extract_strided_slice %137 {offsets = [0, 9], sizes = [36, 1], strides = [1, 1]} : vector<36x36xf32> to vector<36x1xf32>
    %195 = vector.extract_strided_slice %136 {offsets = [9, 0], sizes = [1, 512], strides = [1, 1]} : vector<36x512xf32> to vector<1x512xf32>
    %196 = vector.broadcast %194 : vector<36x1xf32> to vector<36x512xf32>
    %197 = vector.broadcast %195 : vector<1x512xf32> to vector<36x512xf32>
    %198 = arith.mulf %196, %197 : vector<36x512xf32>
    %199 = arith.addf %193, %198 : vector<36x512xf32>
    %200 = vector.extract_strided_slice %137 {offsets = [0, 10], sizes = [36, 1], strides = [1, 1]} : vector<36x36xf32> to vector<36x1xf32>
    %201 = vector.extract_strided_slice %136 {offsets = [10, 0], sizes = [1, 512], strides = [1, 1]} : vector<36x512xf32> to vector<1x512xf32>
    %202 = vector.broadcast %200 : vector<36x1xf32> to vector<36x512xf32>
    %203 = vector.broadcast %201 : vector<1x512xf32> to vector<36x512xf32>
    %204 = arith.mulf %202, %203 : vector<36x512xf32>
    %205 = arith.addf %199, %204 : vector<36x512xf32>
    %206 = vector.extract_strided_slice %137 {offsets = [0, 11], sizes = [36, 1], strides = [1, 1]} : vector<36x36xf32> to vector<36x1xf32>
    %207 = vector.extract_strided_slice %136 {offsets = [11, 0], sizes = [1, 512], strides = [1, 1]} : vector<36x512xf32> to vector<1x512xf32>
    %208 = vector.broadcast %206 : vector<36x1xf32> to vector<36x512xf32>
    %209 = vector.broadcast %207 : vector<1x512xf32> to vector<36x512xf32>
    %210 = arith.mulf %208, %209 : vector<36x512xf32>
    %211 = arith.addf %205, %210 : vector<36x512xf32>
    %212 = vector.extract_strided_slice %137 {offsets = [0, 12], sizes = [36, 1], strides = [1, 1]} : vector<36x36xf32> to vector<36x1xf32>
    %213 = vector.extract_strided_slice %136 {offsets = [12, 0], sizes = [1, 512], strides = [1, 1]} : vector<36x512xf32> to vector<1x512xf32>
    %214 = vector.broadcast %212 : vector<36x1xf32> to vector<36x512xf32>
    %215 = vector.broadcast %213 : vector<1x512xf32> to vector<36x512xf32>
    %216 = arith.mulf %214, %215 : vector<36x512xf32>
    %217 = arith.addf %211, %216 : vector<36x512xf32>
    %218 = vector.extract_strided_slice %137 {offsets = [0, 13], sizes = [36, 1], strides = [1, 1]} : vector<36x36xf32> to vector<36x1xf32>
    %219 = vector.extract_strided_slice %136 {offsets = [13, 0], sizes = [1, 512], strides = [1, 1]} : vector<36x512xf32> to vector<1x512xf32>
    %220 = vector.broadcast %218 : vector<36x1xf32> to vector<36x512xf32>
    %221 = vector.broadcast %219 : vector<1x512xf32> to vector<36x512xf32>
    %222 = arith.mulf %220, %221 : vector<36x512xf32>
    %223 = arith.addf %217, %222 : vector<36x512xf32>
    %224 = vector.extract_strided_slice %137 {offsets = [0, 14], sizes = [36, 1], strides = [1, 1]} : vector<36x36xf32> to vector<36x1xf32>
    %225 = vector.extract_strided_slice %136 {offsets = [14, 0], sizes = [1, 512], strides = [1, 1]} : vector<36x512xf32> to vector<1x512xf32>
    %226 = vector.broadcast %224 : vector<36x1xf32> to vector<36x512xf32>
    %227 = vector.broadcast %225 : vector<1x512xf32> to vector<36x512xf32>
    %228 = arith.mulf %226, %227 : vector<36x512xf32>
    %229 = arith.addf %223, %228 : vector<36x512xf32>
    %230 = vector.extract_strided_slice %137 {offsets = [0, 15], sizes = [36, 1], strides = [1, 1]} : vector<36x36xf32> to vector<36x1xf32>
    %231 = vector.extract_strided_slice %136 {offsets = [15, 0], sizes = [1, 512], strides = [1, 1]} : vector<36x512xf32> to vector<1x512xf32>
    %232 = vector.broadcast %230 : vector<36x1xf32> to vector<36x512xf32>
    %233 = vector.broadcast %231 : vector<1x512xf32> to vector<36x512xf32>
    %234 = arith.mulf %232, %233 : vector<36x512xf32>
    %235 = arith.addf %229, %234 : vector<36x512xf32>
    %236 = vector.extract_strided_slice %137 {offsets = [0, 16], sizes = [36, 1], strides = [1, 1]} : vector<36x36xf32> to vector<36x1xf32>
    %237 = vector.extract_strided_slice %136 {offsets = [16, 0], sizes = [1, 512], strides = [1, 1]} : vector<36x512xf32> to vector<1x512xf32>
    %238 = vector.broadcast %236 : vector<36x1xf32> to vector<36x512xf32>
    %239 = vector.broadcast %237 : vector<1x512xf32> to vector<36x512xf32>
    %240 = arith.mulf %238, %239 : vector<36x512xf32>
    %241 = arith.addf %235, %240 : vector<36x512xf32>
    %242 = vector.extract_strided_slice %137 {offsets = [0, 17], sizes = [36, 1], strides = [1, 1]} : vector<36x36xf32> to vector<36x1xf32>
    %243 = vector.extract_strided_slice %136 {offsets = [17, 0], sizes = [1, 512], strides = [1, 1]} : vector<36x512xf32> to vector<1x512xf32>
    %244 = vector.broadcast %242 : vector<36x1xf32> to vector<36x512xf32>
    %245 = vector.broadcast %243 : vector<1x512xf32> to vector<36x512xf32>
    %246 = arith.mulf %244, %245 : vector<36x512xf32>
    %247 = arith.addf %241, %246 : vector<36x512xf32>
    %248 = vector.extract_strided_slice %137 {offsets = [0, 18], sizes = [36, 1], strides = [1, 1]} : vector<36x36xf32> to vector<36x1xf32>
    %249 = vector.extract_strided_slice %136 {offsets = [18, 0], sizes = [1, 512], strides = [1, 1]} : vector<36x512xf32> to vector<1x512xf32>
    %250 = vector.broadcast %248 : vector<36x1xf32> to vector<36x512xf32>
    %251 = vector.broadcast %249 : vector<1x512xf32> to vector<36x512xf32>
    %252 = arith.mulf %250, %251 : vector<36x512xf32>
    %253 = arith.addf %247, %252 : vector<36x512xf32>
    %254 = vector.extract_strided_slice %137 {offsets = [0, 19], sizes = [36, 1], strides = [1, 1]} : vector<36x36xf32> to vector<36x1xf32>
    %255 = vector.extract_strided_slice %136 {offsets = [19, 0], sizes = [1, 512], strides = [1, 1]} : vector<36x512xf32> to vector<1x512xf32>
    %256 = vector.broadcast %254 : vector<36x1xf32> to vector<36x512xf32>
    %257 = vector.broadcast %255 : vector<1x512xf32> to vector<36x512xf32>
    %258 = arith.mulf %256, %257 : vector<36x512xf32>
    %259 = arith.addf %253, %258 : vector<36x512xf32>
    %260 = vector.extract_strided_slice %137 {offsets = [0, 20], sizes = [36, 1], strides = [1, 1]} : vector<36x36xf32> to vector<36x1xf32>
    %261 = vector.extract_strided_slice %136 {offsets = [20, 0], sizes = [1, 512], strides = [1, 1]} : vector<36x512xf32> to vector<1x512xf32>
    %262 = vector.broadcast %260 : vector<36x1xf32> to vector<36x512xf32>
    %263 = vector.broadcast %261 : vector<1x512xf32> to vector<36x512xf32>
    %264 = arith.mulf %262, %263 : vector<36x512xf32>
    %265 = arith.addf %259, %264 : vector<36x512xf32>
    %266 = vector.extract_strided_slice %137 {offsets = [0, 21], sizes = [36, 1], strides = [1, 1]} : vector<36x36xf32> to vector<36x1xf32>
    %267 = vector.extract_strided_slice %136 {offsets = [21, 0], sizes = [1, 512], strides = [1, 1]} : vector<36x512xf32> to vector<1x512xf32>
    %268 = vector.broadcast %266 : vector<36x1xf32> to vector<36x512xf32>
    %269 = vector.broadcast %267 : vector<1x512xf32> to vector<36x512xf32>
    %270 = arith.mulf %268, %269 : vector<36x512xf32>
    %271 = arith.addf %265, %270 : vector<36x512xf32>
    %272 = vector.extract_strided_slice %137 {offsets = [0, 22], sizes = [36, 1], strides = [1, 1]} : vector<36x36xf32> to vector<36x1xf32>
    %273 = vector.extract_strided_slice %136 {offsets = [22, 0], sizes = [1, 512], strides = [1, 1]} : vector<36x512xf32> to vector<1x512xf32>
    %274 = vector.broadcast %272 : vector<36x1xf32> to vector<36x512xf32>
    %275 = vector.broadcast %273 : vector<1x512xf32> to vector<36x512xf32>
    %276 = arith.mulf %274, %275 : vector<36x512xf32>
    %277 = arith.addf %271, %276 : vector<36x512xf32>
    %278 = vector.extract_strided_slice %137 {offsets = [0, 23], sizes = [36, 1], strides = [1, 1]} : vector<36x36xf32> to vector<36x1xf32>
    %279 = vector.extract_strided_slice %136 {offsets = [23, 0], sizes = [1, 512], strides = [1, 1]} : vector<36x512xf32> to vector<1x512xf32>
    %280 = vector.broadcast %278 : vector<36x1xf32> to vector<36x512xf32>
    %281 = vector.broadcast %279 : vector<1x512xf32> to vector<36x512xf32>
    %282 = arith.mulf %280, %281 : vector<36x512xf32>
    %283 = arith.addf %277, %282 : vector<36x512xf32>
    %284 = vector.extract_strided_slice %137 {offsets = [0, 24], sizes = [36, 1], strides = [1, 1]} : vector<36x36xf32> to vector<36x1xf32>
    %285 = vector.extract_strided_slice %136 {offsets = [24, 0], sizes = [1, 512], strides = [1, 1]} : vector<36x512xf32> to vector<1x512xf32>
    %286 = vector.broadcast %284 : vector<36x1xf32> to vector<36x512xf32>
    %287 = vector.broadcast %285 : vector<1x512xf32> to vector<36x512xf32>
    %288 = arith.mulf %286, %287 : vector<36x512xf32>
    %289 = arith.addf %283, %288 : vector<36x512xf32>
    %290 = vector.extract_strided_slice %137 {offsets = [0, 25], sizes = [36, 1], strides = [1, 1]} : vector<36x36xf32> to vector<36x1xf32>
    %291 = vector.extract_strided_slice %136 {offsets = [25, 0], sizes = [1, 512], strides = [1, 1]} : vector<36x512xf32> to vector<1x512xf32>
    %292 = vector.broadcast %290 : vector<36x1xf32> to vector<36x512xf32>
    %293 = vector.broadcast %291 : vector<1x512xf32> to vector<36x512xf32>
    %294 = arith.mulf %292, %293 : vector<36x512xf32>
    %295 = arith.addf %289, %294 : vector<36x512xf32>
    %296 = vector.extract_strided_slice %137 {offsets = [0, 26], sizes = [36, 1], strides = [1, 1]} : vector<36x36xf32> to vector<36x1xf32>
    %297 = vector.extract_strided_slice %136 {offsets = [26, 0], sizes = [1, 512], strides = [1, 1]} : vector<36x512xf32> to vector<1x512xf32>
    %298 = vector.broadcast %296 : vector<36x1xf32> to vector<36x512xf32>
    %299 = vector.broadcast %297 : vector<1x512xf32> to vector<36x512xf32>
    %300 = arith.mulf %298, %299 : vector<36x512xf32>
    %301 = arith.addf %295, %300 : vector<36x512xf32>
    %302 = vector.extract_strided_slice %137 {offsets = [0, 27], sizes = [36, 1], strides = [1, 1]} : vector<36x36xf32> to vector<36x1xf32>
    %303 = vector.extract_strided_slice %136 {offsets = [27, 0], sizes = [1, 512], strides = [1, 1]} : vector<36x512xf32> to vector<1x512xf32>
    %304 = vector.broadcast %302 : vector<36x1xf32> to vector<36x512xf32>
    %305 = vector.broadcast %303 : vector<1x512xf32> to vector<36x512xf32>
    %306 = arith.mulf %304, %305 : vector<36x512xf32>
    %307 = arith.addf %301, %306 : vector<36x512xf32>
    %308 = vector.extract_strided_slice %137 {offsets = [0, 28], sizes = [36, 1], strides = [1, 1]} : vector<36x36xf32> to vector<36x1xf32>
    %309 = vector.extract_strided_slice %136 {offsets = [28, 0], sizes = [1, 512], strides = [1, 1]} : vector<36x512xf32> to vector<1x512xf32>
    %310 = vector.broadcast %308 : vector<36x1xf32> to vector<36x512xf32>
    %311 = vector.broadcast %309 : vector<1x512xf32> to vector<36x512xf32>
    %312 = arith.mulf %310, %311 : vector<36x512xf32>
    %313 = arith.addf %307, %312 : vector<36x512xf32>
    %314 = vector.extract_strided_slice %137 {offsets = [0, 29], sizes = [36, 1], strides = [1, 1]} : vector<36x36xf32> to vector<36x1xf32>
    %315 = vector.extract_strided_slice %136 {offsets = [29, 0], sizes = [1, 512], strides = [1, 1]} : vector<36x512xf32> to vector<1x512xf32>
    %316 = vector.broadcast %314 : vector<36x1xf32> to vector<36x512xf32>
    %317 = vector.broadcast %315 : vector<1x512xf32> to vector<36x512xf32>
    %318 = arith.mulf %316, %317 : vector<36x512xf32>
    %319 = arith.addf %313, %318 : vector<36x512xf32>
    %320 = vector.extract_strided_slice %137 {offsets = [0, 30], sizes = [36, 1], strides = [1, 1]} : vector<36x36xf32> to vector<36x1xf32>
    %321 = vector.extract_strided_slice %136 {offsets = [30, 0], sizes = [1, 512], strides = [1, 1]} : vector<36x512xf32> to vector<1x512xf32>
    %322 = vector.broadcast %320 : vector<36x1xf32> to vector<36x512xf32>
    %323 = vector.broadcast %321 : vector<1x512xf32> to vector<36x512xf32>
    %324 = arith.mulf %322, %323 : vector<36x512xf32>
    %325 = arith.addf %319, %324 : vector<36x512xf32>
    %326 = vector.extract_strided_slice %137 {offsets = [0, 31], sizes = [36, 1], strides = [1, 1]} : vector<36x36xf32> to vector<36x1xf32>
    %327 = vector.extract_strided_slice %136 {offsets = [31, 0], sizes = [1, 512], strides = [1, 1]} : vector<36x512xf32> to vector<1x512xf32>
    %328 = vector.broadcast %326 : vector<36x1xf32> to vector<36x512xf32>
    %329 = vector.broadcast %327 : vector<1x512xf32> to vector<36x512xf32>
    %330 = arith.mulf %328, %329 : vector<36x512xf32>
    %331 = arith.addf %325, %330 : vector<36x512xf32>
    %332 = vector.extract_strided_slice %137 {offsets = [0, 32], sizes = [36, 1], strides = [1, 1]} : vector<36x36xf32> to vector<36x1xf32>
    %333 = vector.extract_strided_slice %136 {offsets = [32, 0], sizes = [1, 512], strides = [1, 1]} : vector<36x512xf32> to vector<1x512xf32>
    %334 = vector.broadcast %332 : vector<36x1xf32> to vector<36x512xf32>
    %335 = vector.broadcast %333 : vector<1x512xf32> to vector<36x512xf32>
    %336 = arith.mulf %334, %335 : vector<36x512xf32>
    %337 = arith.addf %331, %336 : vector<36x512xf32>
    %338 = vector.extract_strided_slice %137 {offsets = [0, 33], sizes = [36, 1], strides = [1, 1]} : vector<36x36xf32> to vector<36x1xf32>
    %339 = vector.extract_strided_slice %136 {offsets = [33, 0], sizes = [1, 512], strides = [1, 1]} : vector<36x512xf32> to vector<1x512xf32>
    %340 = vector.broadcast %338 : vector<36x1xf32> to vector<36x512xf32>
    %341 = vector.broadcast %339 : vector<1x512xf32> to vector<36x512xf32>
    %342 = arith.mulf %340, %341 : vector<36x512xf32>
    %343 = arith.addf %337, %342 : vector<36x512xf32>
    %344 = vector.extract_strided_slice %137 {offsets = [0, 34], sizes = [36, 1], strides = [1, 1]} : vector<36x36xf32> to vector<36x1xf32>
    %345 = vector.extract_strided_slice %136 {offsets = [34, 0], sizes = [1, 512], strides = [1, 1]} : vector<36x512xf32> to vector<1x512xf32>
    %346 = vector.broadcast %344 : vector<36x1xf32> to vector<36x512xf32>
    %347 = vector.broadcast %345 : vector<1x512xf32> to vector<36x512xf32>
    %348 = arith.mulf %346, %347 : vector<36x512xf32>
    %349 = arith.addf %343, %348 : vector<36x512xf32>
    %350 = vector.extract_strided_slice %137 {offsets = [0, 35], sizes = [36, 1], strides = [1, 1]} : vector<36x36xf32> to vector<36x1xf32>
    %351 = vector.extract_strided_slice %136 {offsets = [35, 0], sizes = [1, 512], strides = [1, 1]} : vector<36x512xf32> to vector<1x512xf32>
    %352 = vector.broadcast %350 : vector<36x1xf32> to vector<36x512xf32>
    %353 = vector.broadcast %351 : vector<1x512xf32> to vector<36x512xf32>
    %354 = arith.mulf %352, %353 : vector<36x512xf32>
    %355 = arith.addf %349, %354 : vector<36x512xf32>
    %cst_14 = arith.constant 0.000000e+00 : f32
    %356 = vector.broadcast %cst_14 : f32 to vector<36x512xf32>
    %357 = arith.maximumf %355, %356 : vector<36x512xf32>
    %c0_15 = arith.constant 0 : index
    %c0_16 = arith.constant 0 : index
    %358 = vector.load %arg8[%c0_15, %c0_16] : memref<1x36xf32, #tpu.memory_space<vmem>>, vector<1x36xf32>
    %c0_17 = arith.constant 0 : index
    %c0_18 = arith.constant 0 : index
    %359 = vector.load %arg9[%c0_17, %c0_18] : memref<1x1xf32, #tpu.memory_space<vmem>>, vector<1x1xf32>
    %360 = vector.extract_strided_slice %358 {offsets = [0, 0], sizes = [1, 1], strides = [1, 1]} : vector<1x36xf32> to vector<1x1xf32>
    %361 = vector.extract_strided_slice %357 {offsets = [0, 0], sizes = [1, 512], strides = [1, 1]} : vector<36x512xf32> to vector<1x512xf32>
    %362 = vector.broadcast %360 : vector<1x1xf32> to vector<1x512xf32>
    %363 = arith.mulf %362, %361 : vector<1x512xf32>
    %364 = vector.broadcast %359 : vector<1x1xf32> to vector<1x512xf32>
    %365 = arith.addf %363, %364 : vector<1x512xf32>
    %366 = vector.extract_strided_slice %358 {offsets = [0, 1], sizes = [1, 1], strides = [1, 1]} : vector<1x36xf32> to vector<1x1xf32>
    %367 = vector.extract_strided_slice %357 {offsets = [1, 0], sizes = [1, 512], strides = [1, 1]} : vector<36x512xf32> to vector<1x512xf32>
    %368 = vector.broadcast %366 : vector<1x1xf32> to vector<1x512xf32>
    %369 = arith.mulf %368, %367 : vector<1x512xf32>
    %370 = arith.addf %365, %369 : vector<1x512xf32>
    %371 = vector.extract_strided_slice %358 {offsets = [0, 2], sizes = [1, 1], strides = [1, 1]} : vector<1x36xf32> to vector<1x1xf32>
    %372 = vector.extract_strided_slice %357 {offsets = [2, 0], sizes = [1, 512], strides = [1, 1]} : vector<36x512xf32> to vector<1x512xf32>
    %373 = vector.broadcast %371 : vector<1x1xf32> to vector<1x512xf32>
    %374 = arith.mulf %373, %372 : vector<1x512xf32>
    %375 = arith.addf %370, %374 : vector<1x512xf32>
    %376 = vector.extract_strided_slice %358 {offsets = [0, 3], sizes = [1, 1], strides = [1, 1]} : vector<1x36xf32> to vector<1x1xf32>
    %377 = vector.extract_strided_slice %357 {offsets = [3, 0], sizes = [1, 512], strides = [1, 1]} : vector<36x512xf32> to vector<1x512xf32>
    %378 = vector.broadcast %376 : vector<1x1xf32> to vector<1x512xf32>
    %379 = arith.mulf %378, %377 : vector<1x512xf32>
    %380 = arith.addf %375, %379 : vector<1x512xf32>
    %381 = vector.extract_strided_slice %358 {offsets = [0, 4], sizes = [1, 1], strides = [1, 1]} : vector<1x36xf32> to vector<1x1xf32>
    %382 = vector.extract_strided_slice %357 {offsets = [4, 0], sizes = [1, 512], strides = [1, 1]} : vector<36x512xf32> to vector<1x512xf32>
    %383 = vector.broadcast %381 : vector<1x1xf32> to vector<1x512xf32>
    %384 = arith.mulf %383, %382 : vector<1x512xf32>
    %385 = arith.addf %380, %384 : vector<1x512xf32>
    %386 = vector.extract_strided_slice %358 {offsets = [0, 5], sizes = [1, 1], strides = [1, 1]} : vector<1x36xf32> to vector<1x1xf32>
    %387 = vector.extract_strided_slice %357 {offsets = [5, 0], sizes = [1, 512], strides = [1, 1]} : vector<36x512xf32> to vector<1x512xf32>
    %388 = vector.broadcast %386 : vector<1x1xf32> to vector<1x512xf32>
    %389 = arith.mulf %388, %387 : vector<1x512xf32>
    %390 = arith.addf %385, %389 : vector<1x512xf32>
    %391 = vector.extract_strided_slice %358 {offsets = [0, 6], sizes = [1, 1], strides = [1, 1]} : vector<1x36xf32> to vector<1x1xf32>
    %392 = vector.extract_strided_slice %357 {offsets = [6, 0], sizes = [1, 512], strides = [1, 1]} : vector<36x512xf32> to vector<1x512xf32>
    %393 = vector.broadcast %391 : vector<1x1xf32> to vector<1x512xf32>
    %394 = arith.mulf %393, %392 : vector<1x512xf32>
    %395 = arith.addf %390, %394 : vector<1x512xf32>
    %396 = vector.extract_strided_slice %358 {offsets = [0, 7], sizes = [1, 1], strides = [1, 1]} : vector<1x36xf32> to vector<1x1xf32>
    %397 = vector.extract_strided_slice %357 {offsets = [7, 0], sizes = [1, 512], strides = [1, 1]} : vector<36x512xf32> to vector<1x512xf32>
    %398 = vector.broadcast %396 : vector<1x1xf32> to vector<1x512xf32>
    %399 = arith.mulf %398, %397 : vector<1x512xf32>
    %400 = arith.addf %395, %399 : vector<1x512xf32>
    %401 = vector.extract_strided_slice %358 {offsets = [0, 8], sizes = [1, 1], strides = [1, 1]} : vector<1x36xf32> to vector<1x1xf32>
    %402 = vector.extract_strided_slice %357 {offsets = [8, 0], sizes = [1, 512], strides = [1, 1]} : vector<36x512xf32> to vector<1x512xf32>
    %403 = vector.broadcast %401 : vector<1x1xf32> to vector<1x512xf32>
    %404 = arith.mulf %403, %402 : vector<1x512xf32>
    %405 = arith.addf %400, %404 : vector<1x512xf32>
    %406 = vector.extract_strided_slice %358 {offsets = [0, 9], sizes = [1, 1], strides = [1, 1]} : vector<1x36xf32> to vector<1x1xf32>
    %407 = vector.extract_strided_slice %357 {offsets = [9, 0], sizes = [1, 512], strides = [1, 1]} : vector<36x512xf32> to vector<1x512xf32>
    %408 = vector.broadcast %406 : vector<1x1xf32> to vector<1x512xf32>
    %409 = arith.mulf %408, %407 : vector<1x512xf32>
    %410 = arith.addf %405, %409 : vector<1x512xf32>
    %411 = vector.extract_strided_slice %358 {offsets = [0, 10], sizes = [1, 1], strides = [1, 1]} : vector<1x36xf32> to vector<1x1xf32>
    %412 = vector.extract_strided_slice %357 {offsets = [10, 0], sizes = [1, 512], strides = [1, 1]} : vector<36x512xf32> to vector<1x512xf32>
    %413 = vector.broadcast %411 : vector<1x1xf32> to vector<1x512xf32>
    %414 = arith.mulf %413, %412 : vector<1x512xf32>
    %415 = arith.addf %410, %414 : vector<1x512xf32>
    %416 = vector.extract_strided_slice %358 {offsets = [0, 11], sizes = [1, 1], strides = [1, 1]} : vector<1x36xf32> to vector<1x1xf32>
    %417 = vector.extract_strided_slice %357 {offsets = [11, 0], sizes = [1, 512], strides = [1, 1]} : vector<36x512xf32> to vector<1x512xf32>
    %418 = vector.broadcast %416 : vector<1x1xf32> to vector<1x512xf32>
    %419 = arith.mulf %418, %417 : vector<1x512xf32>
    %420 = arith.addf %415, %419 : vector<1x512xf32>
    %421 = vector.extract_strided_slice %358 {offsets = [0, 12], sizes = [1, 1], strides = [1, 1]} : vector<1x36xf32> to vector<1x1xf32>
    %422 = vector.extract_strided_slice %357 {offsets = [12, 0], sizes = [1, 512], strides = [1, 1]} : vector<36x512xf32> to vector<1x512xf32>
    %423 = vector.broadcast %421 : vector<1x1xf32> to vector<1x512xf32>
    %424 = arith.mulf %423, %422 : vector<1x512xf32>
    %425 = arith.addf %420, %424 : vector<1x512xf32>
    %426 = vector.extract_strided_slice %358 {offsets = [0, 13], sizes = [1, 1], strides = [1, 1]} : vector<1x36xf32> to vector<1x1xf32>
    %427 = vector.extract_strided_slice %357 {offsets = [13, 0], sizes = [1, 512], strides = [1, 1]} : vector<36x512xf32> to vector<1x512xf32>
    %428 = vector.broadcast %426 : vector<1x1xf32> to vector<1x512xf32>
    %429 = arith.mulf %428, %427 : vector<1x512xf32>
    %430 = arith.addf %425, %429 : vector<1x512xf32>
    %431 = vector.extract_strided_slice %358 {offsets = [0, 14], sizes = [1, 1], strides = [1, 1]} : vector<1x36xf32> to vector<1x1xf32>
    %432 = vector.extract_strided_slice %357 {offsets = [14, 0], sizes = [1, 512], strides = [1, 1]} : vector<36x512xf32> to vector<1x512xf32>
    %433 = vector.broadcast %431 : vector<1x1xf32> to vector<1x512xf32>
    %434 = arith.mulf %433, %432 : vector<1x512xf32>
    %435 = arith.addf %430, %434 : vector<1x512xf32>
    %436 = vector.extract_strided_slice %358 {offsets = [0, 15], sizes = [1, 1], strides = [1, 1]} : vector<1x36xf32> to vector<1x1xf32>
    %437 = vector.extract_strided_slice %357 {offsets = [15, 0], sizes = [1, 512], strides = [1, 1]} : vector<36x512xf32> to vector<1x512xf32>
    %438 = vector.broadcast %436 : vector<1x1xf32> to vector<1x512xf32>
    %439 = arith.mulf %438, %437 : vector<1x512xf32>
    %440 = arith.addf %435, %439 : vector<1x512xf32>
    %441 = vector.extract_strided_slice %358 {offsets = [0, 16], sizes = [1, 1], strides = [1, 1]} : vector<1x36xf32> to vector<1x1xf32>
    %442 = vector.extract_strided_slice %357 {offsets = [16, 0], sizes = [1, 512], strides = [1, 1]} : vector<36x512xf32> to vector<1x512xf32>
    %443 = vector.broadcast %441 : vector<1x1xf32> to vector<1x512xf32>
    %444 = arith.mulf %443, %442 : vector<1x512xf32>
    %445 = arith.addf %440, %444 : vector<1x512xf32>
    %446 = vector.extract_strided_slice %358 {offsets = [0, 17], sizes = [1, 1], strides = [1, 1]} : vector<1x36xf32> to vector<1x1xf32>
    %447 = vector.extract_strided_slice %357 {offsets = [17, 0], sizes = [1, 512], strides = [1, 1]} : vector<36x512xf32> to vector<1x512xf32>
    %448 = vector.broadcast %446 : vector<1x1xf32> to vector<1x512xf32>
    %449 = arith.mulf %448, %447 : vector<1x512xf32>
    %450 = arith.addf %445, %449 : vector<1x512xf32>
    %451 = vector.extract_strided_slice %358 {offsets = [0, 18], sizes = [1, 1], strides = [1, 1]} : vector<1x36xf32> to vector<1x1xf32>
    %452 = vector.extract_strided_slice %357 {offsets = [18, 0], sizes = [1, 512], strides = [1, 1]} : vector<36x512xf32> to vector<1x512xf32>
    %453 = vector.broadcast %451 : vector<1x1xf32> to vector<1x512xf32>
    %454 = arith.mulf %453, %452 : vector<1x512xf32>
    %455 = arith.addf %450, %454 : vector<1x512xf32>
    %456 = vector.extract_strided_slice %358 {offsets = [0, 19], sizes = [1, 1], strides = [1, 1]} : vector<1x36xf32> to vector<1x1xf32>
    %457 = vector.extract_strided_slice %357 {offsets = [19, 0], sizes = [1, 512], strides = [1, 1]} : vector<36x512xf32> to vector<1x512xf32>
    %458 = vector.broadcast %456 : vector<1x1xf32> to vector<1x512xf32>
    %459 = arith.mulf %458, %457 : vector<1x512xf32>
    %460 = arith.addf %455, %459 : vector<1x512xf32>
    %461 = vector.extract_strided_slice %358 {offsets = [0, 20], sizes = [1, 1], strides = [1, 1]} : vector<1x36xf32> to vector<1x1xf32>
    %462 = vector.extract_strided_slice %357 {offsets = [20, 0], sizes = [1, 512], strides = [1, 1]} : vector<36x512xf32> to vector<1x512xf32>
    %463 = vector.broadcast %461 : vector<1x1xf32> to vector<1x512xf32>
    %464 = arith.mulf %463, %462 : vector<1x512xf32>
    %465 = arith.addf %460, %464 : vector<1x512xf32>
    %466 = vector.extract_strided_slice %358 {offsets = [0, 21], sizes = [1, 1], strides = [1, 1]} : vector<1x36xf32> to vector<1x1xf32>
    %467 = vector.extract_strided_slice %357 {offsets = [21, 0], sizes = [1, 512], strides = [1, 1]} : vector<36x512xf32> to vector<1x512xf32>
    %468 = vector.broadcast %466 : vector<1x1xf32> to vector<1x512xf32>
    %469 = arith.mulf %468, %467 : vector<1x512xf32>
    %470 = arith.addf %465, %469 : vector<1x512xf32>
    %471 = vector.extract_strided_slice %358 {offsets = [0, 22], sizes = [1, 1], strides = [1, 1]} : vector<1x36xf32> to vector<1x1xf32>
    %472 = vector.extract_strided_slice %357 {offsets = [22, 0], sizes = [1, 512], strides = [1, 1]} : vector<36x512xf32> to vector<1x512xf32>
    %473 = vector.broadcast %471 : vector<1x1xf32> to vector<1x512xf32>
    %474 = arith.mulf %473, %472 : vector<1x512xf32>
    %475 = arith.addf %470, %474 : vector<1x512xf32>
    %476 = vector.extract_strided_slice %358 {offsets = [0, 23], sizes = [1, 1], strides = [1, 1]} : vector<1x36xf32> to vector<1x1xf32>
    %477 = vector.extract_strided_slice %357 {offsets = [23, 0], sizes = [1, 512], strides = [1, 1]} : vector<36x512xf32> to vector<1x512xf32>
    %478 = vector.broadcast %476 : vector<1x1xf32> to vector<1x512xf32>
    %479 = arith.mulf %478, %477 : vector<1x512xf32>
    %480 = arith.addf %475, %479 : vector<1x512xf32>
    %481 = vector.extract_strided_slice %358 {offsets = [0, 24], sizes = [1, 1], strides = [1, 1]} : vector<1x36xf32> to vector<1x1xf32>
    %482 = vector.extract_strided_slice %357 {offsets = [24, 0], sizes = [1, 512], strides = [1, 1]} : vector<36x512xf32> to vector<1x512xf32>
    %483 = vector.broadcast %481 : vector<1x1xf32> to vector<1x512xf32>
    %484 = arith.mulf %483, %482 : vector<1x512xf32>
    %485 = arith.addf %480, %484 : vector<1x512xf32>
    %486 = vector.extract_strided_slice %358 {offsets = [0, 25], sizes = [1, 1], strides = [1, 1]} : vector<1x36xf32> to vector<1x1xf32>
    %487 = vector.extract_strided_slice %357 {offsets = [25, 0], sizes = [1, 512], strides = [1, 1]} : vector<36x512xf32> to vector<1x512xf32>
    %488 = vector.broadcast %486 : vector<1x1xf32> to vector<1x512xf32>
    %489 = arith.mulf %488, %487 : vector<1x512xf32>
    %490 = arith.addf %485, %489 : vector<1x512xf32>
    %491 = vector.extract_strided_slice %358 {offsets = [0, 26], sizes = [1, 1], strides = [1, 1]} : vector<1x36xf32> to vector<1x1xf32>
    %492 = vector.extract_strided_slice %357 {offsets = [26, 0], sizes = [1, 512], strides = [1, 1]} : vector<36x512xf32> to vector<1x512xf32>
    %493 = vector.broadcast %491 : vector<1x1xf32> to vector<1x512xf32>
    %494 = arith.mulf %493, %492 : vector<1x512xf32>
    %495 = arith.addf %490, %494 : vector<1x512xf32>
    %496 = vector.extract_strided_slice %358 {offsets = [0, 27], sizes = [1, 1], strides = [1, 1]} : vector<1x36xf32> to vector<1x1xf32>
    %497 = vector.extract_strided_slice %357 {offsets = [27, 0], sizes = [1, 512], strides = [1, 1]} : vector<36x512xf32> to vector<1x512xf32>
    %498 = vector.broadcast %496 : vector<1x1xf32> to vector<1x512xf32>
    %499 = arith.mulf %498, %497 : vector<1x512xf32>
    %500 = arith.addf %495, %499 : vector<1x512xf32>
    %501 = vector.extract_strided_slice %358 {offsets = [0, 28], sizes = [1, 1], strides = [1, 1]} : vector<1x36xf32> to vector<1x1xf32>
    %502 = vector.extract_strided_slice %357 {offsets = [28, 0], sizes = [1, 512], strides = [1, 1]} : vector<36x512xf32> to vector<1x512xf32>
    %503 = vector.broadcast %501 : vector<1x1xf32> to vector<1x512xf32>
    %504 = arith.mulf %503, %502 : vector<1x512xf32>
    %505 = arith.addf %500, %504 : vector<1x512xf32>
    %506 = vector.extract_strided_slice %358 {offsets = [0, 29], sizes = [1, 1], strides = [1, 1]} : vector<1x36xf32> to vector<1x1xf32>
    %507 = vector.extract_strided_slice %357 {offsets = [29, 0], sizes = [1, 512], strides = [1, 1]} : vector<36x512xf32> to vector<1x512xf32>
    %508 = vector.broadcast %506 : vector<1x1xf32> to vector<1x512xf32>
    %509 = arith.mulf %508, %507 : vector<1x512xf32>
    %510 = arith.addf %505, %509 : vector<1x512xf32>
    %511 = vector.extract_strided_slice %358 {offsets = [0, 30], sizes = [1, 1], strides = [1, 1]} : vector<1x36xf32> to vector<1x1xf32>
    %512 = vector.extract_strided_slice %357 {offsets = [30, 0], sizes = [1, 512], strides = [1, 1]} : vector<36x512xf32> to vector<1x512xf32>
    %513 = vector.broadcast %511 : vector<1x1xf32> to vector<1x512xf32>
    %514 = arith.mulf %513, %512 : vector<1x512xf32>
    %515 = arith.addf %510, %514 : vector<1x512xf32>
    %516 = vector.extract_strided_slice %358 {offsets = [0, 31], sizes = [1, 1], strides = [1, 1]} : vector<1x36xf32> to vector<1x1xf32>
    %517 = vector.extract_strided_slice %357 {offsets = [31, 0], sizes = [1, 512], strides = [1, 1]} : vector<36x512xf32> to vector<1x512xf32>
    %518 = vector.broadcast %516 : vector<1x1xf32> to vector<1x512xf32>
    %519 = arith.mulf %518, %517 : vector<1x512xf32>
    %520 = arith.addf %515, %519 : vector<1x512xf32>
    %521 = vector.extract_strided_slice %358 {offsets = [0, 32], sizes = [1, 1], strides = [1, 1]} : vector<1x36xf32> to vector<1x1xf32>
    %522 = vector.extract_strided_slice %357 {offsets = [32, 0], sizes = [1, 512], strides = [1, 1]} : vector<36x512xf32> to vector<1x512xf32>
    %523 = vector.broadcast %521 : vector<1x1xf32> to vector<1x512xf32>
    %524 = arith.mulf %523, %522 : vector<1x512xf32>
    %525 = arith.addf %520, %524 : vector<1x512xf32>
    %526 = vector.extract_strided_slice %358 {offsets = [0, 33], sizes = [1, 1], strides = [1, 1]} : vector<1x36xf32> to vector<1x1xf32>
    %527 = vector.extract_strided_slice %357 {offsets = [33, 0], sizes = [1, 512], strides = [1, 1]} : vector<36x512xf32> to vector<1x512xf32>
    %528 = vector.broadcast %526 : vector<1x1xf32> to vector<1x512xf32>
    %529 = arith.mulf %528, %527 : vector<1x512xf32>
    %530 = arith.addf %525, %529 : vector<1x512xf32>
    %531 = vector.extract_strided_slice %358 {offsets = [0, 34], sizes = [1, 1], strides = [1, 1]} : vector<1x36xf32> to vector<1x1xf32>
    %532 = vector.extract_strided_slice %357 {offsets = [34, 0], sizes = [1, 512], strides = [1, 1]} : vector<36x512xf32> to vector<1x512xf32>
    %533 = vector.broadcast %531 : vector<1x1xf32> to vector<1x512xf32>
    %534 = arith.mulf %533, %532 : vector<1x512xf32>
    %535 = arith.addf %530, %534 : vector<1x512xf32>
    %536 = vector.extract_strided_slice %358 {offsets = [0, 35], sizes = [1, 1], strides = [1, 1]} : vector<1x36xf32> to vector<1x1xf32>
    %537 = vector.extract_strided_slice %357 {offsets = [35, 0], sizes = [1, 512], strides = [1, 1]} : vector<36x512xf32> to vector<1x512xf32>
    %538 = vector.broadcast %536 : vector<1x1xf32> to vector<1x512xf32>
    %539 = arith.mulf %538, %537 : vector<1x512xf32>
    %540 = arith.addf %535, %539 : vector<1x512xf32>
    %c0_19 = arith.constant 0 : index
    %c0_20 = arith.constant 0 : index
    %541 = vector.load %arg10[%c0_19, %c0_20] : memref<1x512xf32, #tpu.memory_space<vmem>>, vector<1x512xf32>
    tpu.vector_store %arg10[%c0_19, %c0_20], %540 {strides = array<i32>} : memref<1x512xf32, #tpu.memory_space<vmem>>, vector<1x512xf32>,
    return
  }
  func.func @transform_0(%arg0: i32) -> (i32, i32) {
    %c0_i32 = arith.constant 0 : i32
    %c0_i32_0 = arith.constant 0 : i32
    return %c0_i32, %arg0 : i32, i32
  }
  func.func @transform_1(%arg0: i32) -> (i32, i32) {
    %c0_i32 = arith.constant 0 : i32
    %c0_i32_0 = arith.constant 0 : i32
    %c0_i32_1 = arith.constant 0 : i32
    return %c0_i32, %c0_i32_0 : i32, i32
  }
  func.func @transform_2(%arg0: i32) -> (i32, i32) {
    %c0_i32 = arith.constant 0 : i32
    %c0_i32_0 = arith.constant 0 : i32
    %c0_i32_1 = arith.constant 0 : i32
    return %c0_i32, %c0_i32_0 : i32, i32
  }
  func.func @transform_3(%arg0: i32) -> (i32, i32) {
    %c0_i32 = arith.constant 0 : i32
    %c0_i32_0 = arith.constant 0 : i32
    %c0_i32_1 = arith.constant 0 : i32
    return %c0_i32, %c0_i32_0 : i32, i32
  }
  func.func @transform_4(%arg0: i32) -> (i32, i32) {
    %c0_i32 = arith.constant 0 : i32
    %c0_i32_0 = arith.constant 0 : i32
    %c0_i32_1 = arith.constant 0 : i32
    return %c0_i32, %c0_i32_0 : i32, i32
  }
  func.func @transform_5(%arg0: i32) -> (i32, i32) {
    %c0_i32 = arith.constant 0 : i32
    %c0_i32_0 = arith.constant 0 : i32
    %c0_i32_1 = arith.constant 0 : i32
    return %c0_i32, %c0_i32_0 : i32, i32
  }
  func.func @transform_6(%arg0: i32) -> (i32, i32) {
    %c0_i32 = arith.constant 0 : i32
    %c0_i32_0 = arith.constant 0 : i32
    %c0_i32_1 = arith.constant 0 : i32
    return %c0_i32, %c0_i32_0 : i32, i32
  }
  func.func @transform_7(%arg0: i32) -> (i32, i32) {
    %c0_i32 = arith.constant 0 : i32
    %c0_i32_0 = arith.constant 0 : i32
    %c0_i32_1 = arith.constant 0 : i32
    return %c0_i32, %c0_i32_0 : i32, i32
  }
  func.func @transform_8(%arg0: i32) -> (i32, i32) {
    %c0_i32 = arith.constant 0 : i32
    %c0_i32_0 = arith.constant 0 : i32
    %c0_i32_1 = arith.constant 0 : i32
    return %c0_i32, %c0_i32_0 : i32, i32
  }
  func.func @transform_9(%arg0: i32) -> (i32, i32) {
    %c0_i32 = arith.constant 0 : i32
    %c0_i32_0 = arith.constant 0 : i32
    return %c0_i32, %arg0 : i32, i32
  }
}

</mosaic_0001>

<bundles_post_ra>
// kernel: branch_0_fun.3
= control target key start
LH: loop header
LB: loop body
LE: loop exit
PB: predicated region body
PF: predicated region fallthrough
CT: control target
= control target key end

     0   :  { %v144_v3 = vlaneseq  ;;  %v279_v10 = vmov 1966171168   ;;  %s368_s0 = inlined_call_operand.vmem [shape: f32[8,2048], index: 0, kind: input, shape index: {}]   ;;  %s369_s1 = inlined_call_operand.hbm [shape: f32[1,2048], index: 1, kind: output, shape index: {}]  }
   0x1   :  { %v9_v0 = vld [vmem:[%s368_s0] sm:$0xff]  ;;  %v10_v1 = vld [vmem:[%s368_s0 + $0x8] sm:$0xff]  ;;  %v11_v2 = vld [vmem:[%s368_s0 + $0x10] sm:$0xff]  ;;  %v309_v11 = vunpack.c.l.s4 %v279_v10 }
   0x2   :  { %v12_v4 = vld [vmem:[%s368_s0 + $0x18] sm:$0xff]  ;;  %v13_v5 = vld [vmem:[%s368_s0 + $0x20] sm:$0xff]  ;;  %v14_v6 = vld [vmem:[%s368_s0 + $0x28] sm:$0xff]  ;;  %v25_v7 = vrot.slane %v9_v0, 4  ;;  %v31_v8 = vrot.slane %v10_v1, 4  ;;  %v37_v9 = vrot.slane %v11_v2, 4 }
   0x3   :  { %v15_v12 = vld [vmem:[%s368_s0 + $0x30] sm:$0xff]  ;;  %v16_v13 = vld [vmem:[%s368_s0 + $0x38] sm:$0xff]  ;;  %v43_v14 = vrot.slane %v12_v4, 4  ;;  %v49_v15 = vrot.slane %v13_v5, 4  ;;  %v55_v16 = vrot.slane %v14_v6, 4  ;;  %v145_v17 = vshrl.u32 %v144_v3, 7 }
   0x4   :  { %v26_v18 = vmax.f32 %v9_v0, %v25_v7  ;;  %v32_v19 = vmax.f32 %v10_v1, %v31_v8  ;;  %v38_v20 = vmax.f32 %v11_v2, %v37_v9  ;;  %v61_v21 = vrot.slane %v15_v12, 4 }
   0x5   :  { %v44_v22 = vmax.f32 %v12_v4, %v43_v14  ;;  %v50_v23 = vmax.f32 %v13_v5, %v49_v15  ;;  %v56_v24 = vmax.f32 %v14_v6, %v55_v16  ;;  %v67_v25 = vrot.slane %v16_v13, 4 }
   0x6   :  { %v27_v26 = vrot.slane %v26_v18, 2  ;;  %v33_v27 = vrot.slane %v32_v19, 2  ;;  %v39_v28 = vrot.slane %v38_v20, 2  ;;  %v62_v29 = vmax.f32 %v15_v12, %v61_v21 }
   0x7   :  { %v45_v30 = vrot.slane %v44_v22, 2  ;;  %v51_v31 = vrot.slane %v50_v23, 2  ;;  %v57_v32 = vrot.slane %v56_v24, 2  ;;  %v68_v33 = vmax.f32 %v16_v13, %v67_v25 }
   0x8   :  { %6 = vsyncpa [#allocation3], 0  ;;  %v28_v34 = vmax.f32 %v26_v18, %v27_v26  ;;  %v34_v35 = vmax.f32 %v32_v19, %v33_v27  ;;  %v40_v36 = vmax.f32 %v38_v20, %v39_v28  ;;  %v63_v37 = vrot.slane %v62_v29, 2  ;;  %v17_v50 = vld [vmem:[%s368_s0 + $0x40] sm:$0xff]  ;;  %v18_v55 = vld [vmem:[%s368_s0 + $0x48] sm:$0xff] }
   0x9   :  { %v46_v38 = vmax.f32 %v44_v22, %v45_v30  ;;  %v52_v39 = vmax.f32 %v50_v23, %v51_v31  ;;  %v58_v40 = vmax.f32 %v56_v24, %v57_v32  ;;  %v69_v41 = vrot.slane %v68_v33, 2  ;;  %v19_v60 = vld [vmem:[%s368_s0 + $0x50] sm:$0xff]  ;;  %v20_v61 = vld [vmem:[%s368_s0 + $0x58] sm:$0xff]  ;;  %v21_v1 = vld [vmem:[%s368_s0 + $0x60] sm:$0xff] }
   0xa   :  { %v29_v42 = vrot.slane %v28_v34, 1  ;;  %v35_v43 = vrot.slane %v34_v35, 1  ;;  %v41_v44 = vrot.slane %v40_v36, 1  ;;  %v64_v45 = vmax.f32 %v62_v29, %v63_v37  ;;  %v22_v2 = vld [vmem:[%s368_s0 + $0x68] sm:$0xff]  ;;  %v23_v29 = vld [vmem:[%s368_s0 + $0x70] sm:$0xff] }
   0xb   :  { %v47_v46 = vrot.slane %v46_v38, 1  ;;  %v53_v47 = vrot.slane %v52_v39, 1  ;;  %v59_v48 = vrot.slane %v58_v40, 1  ;;  %v70_v49 = vmax.f32 %v68_v33, %v69_v41 }
   0xc   :  { %v30_v51 = vmax.f32 %v28_v34, %v29_v42  ;;  %v36_v52 = vmax.f32 %v34_v35, %v35_v43  ;;  %v42_v53 = vmax.f32 %v40_v36, %v41_v44  ;;  %v65_v54 = vrot.slane %v64_v45, 1 }
   0xd   :  { %v48_v56 = vmax.f32 %v46_v38, %v47_v46  ;;  %v54_v57 = vmax.f32 %v52_v39, %v53_v47  ;;  %v60_v58 = vmax.f32 %v58_v40, %v59_v48  ;;  %v71_v59 = vrot.slane %v70_v49, 1  ;;  %v24_v38 = vld [vmem:[%s368_s0 + $0x78] sm:$0xff]  ;;  %s280_s0 = smov [#allocation2]  }
   0xe   :  { %v66_v62 = vmax.f32 %v64_v45, %v65_v54  ;;  %v137_v63 = vcombine.low %v30_v51, %v36_v52  ;;  %v143_v0 = vunpack.c.0.s8 %v309_v11  ;;  %v73_v3 = vrot.slane %v17_v50, 4  ;;  %s245_s9 = sshll.u32 %s280_s0, 4  ;;  %s246_s9 = int_to_ptr.vmem [resolvable:$true] %s245_s9 }
   0xf   :  { %v72_v4 = vmax.f32 %v70_v49, %v71_v59  ;;  %v138_v5 = vcombine.low %v42_v53, %v48_v56  ;;  %v139_v6 = vcombine.low %v54_v57, %v60_v58  ;;  %v79_v7 = vrot.slane %v18_v55, 4  ;;  %s255_s10 = scalar_lea.vmem %s246_s9, 256  ;;  %p260_p1 = scmp.lt.s32.totalorder %s246_s9, %s246_s9 }
  0x10   :  { %v336_v8 = vsub.s32 %v143_v0, %v145_v17  ;;  %v74_v9 = vmax.f32 %v17_v50, %v73_v3  ;;  %v85_v10 = vrot.slane %v19_v60, 4  ;;  %v91_v12 = vrot.slane %v20_v61, 4  ;;  %p256_p0 = scmp.ne.s32.totalorder %s246_s9, %s255_s10  ;;  %p261_p2 = scmp.lt.s32.totalorder %s255_s10, %s255_s10 }
  0x11   :  { %v140_v13 = vcombine.low %v66_v62, %v72_v4  ;;  %v80_v11 = vmax.f32 %v18_v55, %v79_v7  ;;  %v97_v14 = vrot.slane %v21_v1, 4  ;;  %v103_v15 = vrot.slane %v22_v2, 4 }
  0x12   :  { %v147_v16 = vrot.slane %v137_v63, %v336_v8  ;;  %v154_v18 = vrot.slane %v138_v5, %v336_v8  ;;  %v161_v19 = vrot.slane %v139_v6, %v336_v8  ;;  %v75_v20 = vrot.slane %v74_v9, 2  ;;  %p262_p3 = por %p261_p2, %p260_p1 }
  0x13   :  { %v168_v21 = vrot.slane %v140_v13, %v336_v8  ;;  %v81_v22 = vrot.slane %v80_v11, 2  ;;  %v86_v23 = vmax.f32 %v19_v60, %v85_v10  ;;  %v92_v17 = vmax.f32 %v20_v61, %v91_v12 }
  0x14   :  { %v169_v24 = vcombine.low %v147_v16, %v154_v18  ;;  %v76_v25 = vmax.f32 %v74_v9, %v75_v20  ;;  %v98_v26 = vmax.f32 %v21_v1, %v97_v14  ;;  %v104_v27 = vmax.f32 %v22_v2, %v103_v15  ;;  %p263_p4 = pnand %p262_p3, %p256_p0 }
  0x15   :  { %v170_v28 = vcombine.low %v161_v19, %v168_v21  ;;  %v82_v30 = vmax.f32 %v80_v11, %v81_v22  ;;  %v87_v31 = vrot.slane %v86_v23, 2  ;;  %v93_v32 = vrot.slane %v92_v17, 2 }
  0x16   :  { %v177_v33 = vrot.slane %v169_v24, %v336_v8  ;;  %v77_v34 = vrot.slane %v76_v25, 1  ;;  %v99_v35 = vrot.slane %v98_v26, 2  ;;  %v105_v36 = vrot.slane %v104_v27, 2 }
  0x17   :  { %v184_v37 = vrot.slane %v170_v28, %v336_v8  ;;  %v83_v39 = vrot.slane %v82_v30, 1  ;;  %v88_v40 = vmax.f32 %v86_v23, %v87_v31  ;;  %v94_v41 = vmax.f32 %v92_v17, %v93_v32 }
  0x18   :  { %v78_v42 = vmax.f32 %v76_v25, %v77_v34  ;;  %v100_v43 = vmax.f32 %v98_v26, %v99_v35  ;;  %v106_v44 = vmax.f32 %v104_v27, %v105_v36  ;;  %v109_v45 = vrot.slane %v23_v29, 4 }
  0x19   :  { %v185_v46 = vcombine.low %v177_v33, %v184_v37  ;;  %v84_v47 = vmax.f32 %v82_v30, %v83_v39  ;;  %v89_v48 = vrot.slane %v88_v40, 1  ;;  %v95_v49 = vrot.slane %v94_v41, 1 }
  0x1a   :  { %v101_v50 = vrot.slane %v100_v43, 1  ;;  %v107_v51 = vrot.slane %v106_v44, 1  ;;  %v110_v52 = vmax.f32 %v23_v29, %v109_v45  ;;  %v115_v53 = vrot.slane %v24_v38, 4 }
  0x1b   :  { %237 = vst [vmem:[#allocation2] sm:$0xff] %v185_v46  ;;  %v90_v54 = vmax.f32 %v88_v40, %v89_v48  ;;  %v96_v55 = vmax.f32 %v94_v41, %v95_v49  ;;  %v186_v59 = vcombine.low %v78_v42, %v84_v47 }
  0x1c   :  { %v111_v56 = vrot.slane %v110_v52, 2  ;;  %v116_v57 = vmax.f32 %v24_v38, %v115_v53  ;;  %v102_v58 = vmax.f32 %v100_v43, %v101_v50  ;;  %v108_v60 = vmax.f32 %v106_v44, %v107_v51 }
  0x1d   :  { %v187_v63 = vcombine.low %v90_v54, %v96_v55  ;;  %v196_v2 = vrot.slane %v186_v59, %v336_v8 }
  0x1e   :  { %v112_v61 = vmax.f32 %v110_v52, %v111_v56  ;;  %v117_v62 = vrot.slane %v116_v57, 2  ;;  %v188_v5 = vcombine.low %v102_v58, %v108_v60 }
  0x1f   :  { %v203_v6 = vrot.slane %v187_v63, %v336_v8 }
  0x20   :  { %v113_v0 = vrot.slane %v112_v61, 1  ;;  %v118_v1 = vmax.f32 %v116_v57, %v117_v62  ;;  %v210_v10 = vrot.slane %v188_v5, %v336_v8 }
  0x21   :  { %v218_v12 = vcombine.low %v196_v2, %v203_v6 }
  0x22   :  { %v114_v3 = vmax.f32 %v112_v61, %v113_v0  ;;  %v119_v4 = vrot.slane %v118_v1, 1 }
  0x23   :  { %v226_v14 = vrot.slane %v218_v12, %v336_v8 }
  0x24   :  { %v120_v7 = vmax.f32 %v118_v1, %v119_v4 }
  0x26   :  { %v189_v9 = vcombine.low %v114_v3, %v120_v7 }
  0x28   :  { %v217_v13 = vrot.slane %v189_v9, %v336_v8 }
  0x2a   :  { %v219_v11 = vcombine.low %v210_v10, %v217_v13 }
  0x2c   :  { %v233_v15 = vrot.slane %v219_v11, %v336_v8 }
  0x2e   :  { %v234_v16 = vcombine.low %v226_v14, %v233_v15 }
  0x30   :  { %238 = vst [vmem:[#allocation2 + $0x8] sm:$0xff] %v234_v16 }
  0x31   :  { %266 = shalt.err (!%p263_p4)
}
  0x32   :  { %s267_s13 = scalar_lea.hbm %s369_s1, 256 }
  0x33   :  { %p268_p5 = scmp.ne.s32.totalorder %s369_s1, %s267_s13  ;;  %p271_p6 = scmp.lt.u32.totalorder %s267_s13, %s369_s1 }
  0x35   :  { %p273_p7 = pnand %p271_p6, %p268_p5 }
  0x37   :  { %276 = shalt.err (!%p273_p7)
}
  0x38   :  { %248 = dma.vmem_to_hbm [thread:$0]  %s246_s9, 256, %s369_s1, [#allocation3]  }
  0x39   :  { %277 = dma.done.wait [#allocation3], 256  }
  0x3a   :  { %278 = vsyncadd [#allocation3], 4294967040 }
  0x3b   :  { %252 = vsyncpa [#allocation3], 1 }

// kernel: branch_0_fun.2
= control target key start
LH: loop header
LB: loop body
LE: loop exit
PB: predicated region body
PF: predicated region fallthrough
CT: control target
= control target key end

     0   :  { %s6165_s11 = smov 0   ;;  %s11530_s0 = inlined_call_operand.vmem [shape: f32[3,1024], index: 0, kind: input, shape index: {}]   ;;  %s11531_s1 = inlined_call_operand.vmem [shape: f32[18,3], index: 1, kind: input, shape index: {}]   ;;  %s11532_s2 = inlined_call_operand.vmem [shape: f32[18,1], index: 2, kind: input, shape index: {}]   ;;  %s11533_s3 = inlined_call_operand.vmem [shape: f32[36,18], index: 3, kind: input, shape index: {}]   ;;  %s11534_s4 = inlined_call_operand.vmem [shape: f32[36,1], index: 4, kind: input, shape index: {}]   ;;  %s11535_s5 = inlined_call_operand.vmem [shape: f32[36,36], index: 5, kind: input, shape index: {}]   ;;  %s11536_s6 = inlined_call_operand.vmem [shape: f32[36,1], index: 6, kind: input, shape index: {}]   ;;  %s11537_s7 = inlined_call_operand.vmem [shape: f32[1,36], index: 7, kind: input, shape index: {}]   ;;  %s11538_s8 = inlined_call_operand.<no memory space> [shape: f32[1,1], index: 8, kind: input, shape index: {}]   ;;  %s11539_s9 = inlined_call_operand.vmem [shape: f32[1,1024], index: 9, kind: output, shape index: {}]  }
   0x1   :  { %v14_v0 = vstv %s11538_s8 }
   0x2   :  { %15 = vst [vmem:[#allocation2] sm:$0x1] %v14_v0 }
   0x3 LB: > { %s5860_s12 = sadd.s32 4294967295, %s6073_s11   ;;  %p5864_p0 = scmp.ge.s32.totalorder %s6073_s11, 1  ;;  %s6073_s11 = sphi %s6165_s11, %s21_s11  }
   0x4   : > { %p290_p1 = scmp.lt.s32.totalorder %s6073_s11, 3 }
   0x6   : > { %p291_p2 = pnand %p5864_p0, %p290_p1 }
   0x8   : > { %294 = sbr.rel (%p291_p2) target bundleno = 1089 (0x441), region = 56 }
   0xf   : > { %v340_v1 = vld [vmem:[%s11531_s1 + $0x10] sm:$0x3]  ;;  %v6179_v2 = vld [vmem:[%s11531_s1] sm:$0xff]  ;;  %v11559_v3 = vmov 0   ;;  %v339_v5 = vld [vmem:[%s11531_s1 + $0x8] sm:$0xff]  ;;  %v11557_v9 = vmov 1   ;;  %v11540_v59 = vlaneseq }
  0x10   : > { %5916 = vset.pattern.permute.xlu1 %v11559_v3  ;;  %5915 = vset.pattern.permute.xlu0 %v11559_v3  ;;  %v341_v4 = vld [vmem:[%s11532_s2] sm:$0xff]  ;;  %v343_v6 = vld [vmem:[%s11532_s2 + $0x10] sm:$0x3]  ;;  %v342_v7 = vld [vmem:[%s11532_s2 + $0x8] sm:$0xff]  ;;  %v11555_v12 = vmov 2   ;;  %v11553_v25 = vmov 3  }
  0x11   : > { %356 = vperm.xlu1 %5916, %v340_v1   ;;  %346 = vperm.xlu0 %5915, %v6179_v2   ;;  %v6199_v8 = vld [vmem:[%s11533_s3] sm:$0xff]  ;;  %v6206_v10 = vld [vmem:[%s11533_s3 + $0x18] sm:$0xff]  ;;  %v599_v13 = vld [vmem:[%s11534_s4 + $0x10] sm:$0xff]  ;;  %v11551_v26 = vmov 4   ;;  %v11549_v27 = vmov 5   ;;  %v11547_v28 = vmov 6  }
  0x12   : > { %v597_v11 = vld [vmem:[%s11534_s4] sm:$0xff]  ;;  %v6222_v15 = vld [vmem:[%s11533_s3 + $0x8] sm:$0xff]  ;;  %v6232_v17 = vld [vmem:[%s11533_s3 + $0x10] sm:$0xff]  ;;  %v11545_v31 = vmov 7   ;;  %v11543_v38 = vmov 8   ;;  %v11541_v46 = vmov 9  }
  0x13   : > { %v601_v14 = vld [vmem:[%s11534_s4 + $0x20] sm:$0xf]  ;;  %v2021_v16 = vld [vmem:[%s11535_s5 + $0x8] sm:$0xff]  ;;  %v600_v22 = vld [vmem:[%s11534_s4 + $0x18] sm:$0xff]  ;;  %v11563_v53 = vmov 10   ;;  %s5865_s8 = sshll.u32 %s5860_s12, 2 }
  0x14   : > { %v2024_v18 = vld [vmem:[%s11535_s5 + $0x20] sm:$0xf]  ;;  %v2026_v20 = vld [vmem:[%s11536_s6 + $0x8] sm:$0xff]  ;;  %v6269_v24 = vld [vmem:[%s11535_s5 + $0x18] sm:$0xff]  ;;  %p326_p3 = scmp.lt.s32.totalorder %s5865_s8, 7  ;;  %v11561_v61 = vmov 11  }
  0x15   : > { %411 = vperm.xlu1 %5916, %v341_v4   ;;  %351 = vperm.xlu0 %5915, %v339_v5   ;;  %v6241_v19 = vld [vmem:[%s11533_s3 + $0x20] sm:$0xf]  ;;  %v598_v21 = vld [vmem:[%s11534_s4 + $0x8] sm:$0xff]  ;;  %v6408_v63 = vshrl.u32 %v11540_v59, 7 }
  0x16   : > { %v6262_v23 = vld [vmem:[%s11535_s5] sm:$0xff]  ;;  %s13473_s8 = smov (!%p326_p3, %s5865_s8), 7 }
  0x17   : > { %s5866_s12 = sshll.u32 %s13473_s8, 2  ;;  %12249 = vst [vmem:[#allocation16_spill] sm:$0xff] %v6408_v63  ;;  %v6423_v4 = vsub.s32 4, %v6408_v63  ;;  %v6446_v59 = vsub.s32 6, %v6408_v63  ;;  %s334_s16 = scalar_lea.vmem %s11539_s9, %s13473_s8 }
  0x18   : > { %s329_s17 = scalar_lea.vmem %s11530_s0, %s5866_s12 }
  0x19   : > { %421 = vperm.xlu1 %5916, %v343_v6   ;;  %416 = vperm.xlu0 %5915, %v342_v7   ;;  %12253 = vst [vmem:[#allocation20_spill] sm:$0xff] %v6423_v4  ;;  %v336_v6 = vld [vmem:[%s329_s17] sm:$0x77]  ;;  %v337_v7 = vld [vmem:[%s329_s17 + $0x8] sm:$0x77]  ;;  %12259 = vst [vmem:[#allocation26_spill] sm:$0xff] %v6446_v59 }
  0x1d   : > { %5917 = vset.pattern.permute.xlu1 %v11557_v9  ;;  %604 = vperm.xlu0 %5915, %v6199_v8  }
  0x1e   : > { %441 = vperm.xlu1 %5917, %v339_v5  }
  0x21   : > { %619 = vperm.xlu0 %5915, %v6206_v10  }
  0x22   : > { %445 = vperm.xlu1 %5917, %v340_v1  }
  0x25   : > { %665 = vperm.xlu0 %5915, %v597_v11   ;;  %v6429_v11 = vsub.s32 1, %v6408_v63 }
  0x26   : > { %5918 = vset.pattern.permute.xlu1 %v11555_v12 }
  0x27   : > { %513 = vperm.xlu1 %5918, %v339_v5   ;;  %12255 = vst [vmem:[#allocation22_spill] sm:$0xff] %v6429_v11 }
  0x29   : > { %675 = vperm.xlu0 %5915, %v599_v13   ;;  %v6432_v13 = vsub.s32 5, %v6408_v63 }
  0x2b   : > { %517 = vperm.xlu1 %5918, %v340_v1   ;;  %12256 = vst [vmem:[#allocation23_spill] sm:$0xff] %v6432_v13 }
  0x2d   : > { %685 = vperm.xlu0 %5915, %v601_v14  }
  0x2f   : > { %5919 = vset.pattern.permute.xlu1 %v11559_v3  ;;  %v11566_v3 = vmov 12  }
  0x30   : > { %609 = vperm.xlu1 %5919, %v6222_v15  }
  0x31   : > { %2037 = vperm.xlu0 %5915, %v2021_v16   ;;  %v368_v16 = vrot.slane %v336_v6, %v6423_v4 }
  0x34   : > { %614 = vperm.xlu1 %5919, %v6232_v17  }
  0x35   : > { %2052 = vperm.xlu0 %5915, %v2024_v18  }
  0x38   : > { %624 = vperm.xlu1 %5919, %v6241_v19  }
  0x39   : > { %2098 = vperm.xlu0 %5915, %v2026_v20   ;;  %v376_v20 = vrot.slane %v337_v7, %v6423_v4 }
  0x3c   : > { %670 = vperm.xlu1 %5919, %v598_v21  }
  0x3d   : > { %5938 = vset.pattern.permute.xlu0 %v11557_v9 }
  0x3e   : > { %437 = vperm.xlu0 %5938, %v6179_v2  }
  0x40   : > { %680 = vperm.xlu1 %5919, %v600_v22   ;;  %v6443_v22 = vsub.s32 2, %v6408_v63 }
  0x42   : > { %713 = vperm.xlu0 %5938, %v6222_v15   ;;  %12258 = vst [vmem:[#allocation25_spill] sm:$0xff] %v6443_v22 }
  0x44   : > { %5920 = vset.pattern.permute.xlu1 %v11557_v9 }
  0x45   : > { %709 = vperm.xlu1 %5920, %v6199_v8  }
  0x46   : > { %725 = vperm.xlu0 %5938, %v6241_v19  }
  0x49   : > { %717 = vperm.xlu1 %5920, %v6232_v17  }
  0x4a   : > { %2137 = vperm.xlu0 %5938, %v6262_v23  }
  0x4d   : > { %721 = vperm.xlu1 %5920, %v6206_v10  }
  0x4e   : > { %2149 = vperm.xlu0 %5938, %v6269_v24  }
  0x51   : > { %5921 = vset.pattern.permute.xlu1 %v11555_v12 }
  0x52   : > { %785 = vperm.xlu1 %5921, %v6199_v8   ;;  %5940 = vset.pattern.permute.xlu0 %v11555_v12 }
  0x53   : > { %509 = vperm.xlu0 %5940, %v6179_v2   ;;  %v6420_v2 = vsub.s32 0, %v6408_v63 }
  0x55   : > { %12252 = vst [vmem:[#allocation19_spill] sm:$0xff] %v6420_v2  ;;  %v364_v14 = vrot.slane %v336_v6, %v6420_v2  ;;  %v372_v18 = vrot.slane %v337_v7, %v6420_v2  ;;  %v6463_v9 = vrot.slane %v376_v20, %v6420_v2 }
  0x56   : > { %793 = vperm.xlu1 %5921, %v6232_v17  }
  0x57   : > { %789 = vperm.xlu0 %5940, %v6222_v15   ;;  %v6460_v12 = vrot.slane %v372_v18, %v6420_v2 }
  0x5a   : > { %797 = vperm.xlu1 %5921, %v6206_v10  }
  0x5b   : > { %801 = vperm.xlu0 %5940, %v6241_v19  }
  0x5e   : > { %5922 = vset.pattern.permute.xlu1 %v11553_v25 }
  0x5f   : > { %861 = vperm.xlu1 %5922, %v6199_v8   ;;  %2213 = vperm.xlu0 %5940, %v6262_v23  }
  0x63   : > { %869 = vperm.xlu1 %5922, %v6232_v17   ;;  %5941 = vset.pattern.permute.xlu0 %v11553_v25  ;;  %v6457_v25 = vrot.slane %v368_v16, %v6420_v2  ;;  %v535_v16 = vrot.slane %v337_v7, %v6446_v59 }
  0x64   : > { %865 = vperm.xlu0 %5941, %v6222_v15  }
  0x67   : > { %873 = vperm.xlu1 %5922, %v6206_v10  }
  0x68   : > { %877 = vperm.xlu0 %5941, %v6241_v19  }
  0x6b   : > { %5923 = vset.pattern.permute.xlu1 %v11551_v26 }
  0x6c   : > { %937 = vperm.xlu1 %5923, %v6199_v8   ;;  %2289 = vperm.xlu0 %5941, %v6262_v23  }
  0x70   : > { %945 = vperm.xlu1 %5923, %v6232_v17   ;;  %2301 = vperm.xlu0 %5941, %v6269_v24  }
  0x74   : > { %949 = vperm.xlu1 %5923, %v6206_v10   ;;  %5944 = vset.pattern.permute.xlu0 %v11551_v26  ;;  %v6454_v26 = vrot.slane %v364_v14, %v6420_v2  ;;  %v531_v14 = vrot.slane %v337_v7, %v6443_v22 }
  0x75   : > { %941 = vperm.xlu0 %5944, %v6222_v15  }
  0x78   : > { %5924 = vset.pattern.permute.xlu1 %v11549_v27 }
  0x79   : > { %1013 = vperm.xlu1 %5924, %v6199_v8   ;;  %953 = vperm.xlu0 %5944, %v6241_v19  }
  0x7d   : > { %1021 = vperm.xlu1 %5924, %v6232_v17   ;;  %2365 = vperm.xlu0 %5944, %v6262_v23  }
  0x81   : > { %1025 = vperm.xlu1 %5924, %v6206_v10   ;;  %2377 = vperm.xlu0 %5944, %v6269_v24  }
  0x85   : > { %5925 = vset.pattern.permute.xlu1 %v11547_v28  ;;  %5946 = vset.pattern.permute.xlu0 %v11549_v27  ;;  %v463_v27 = vrot.slane %v337_v7, %v6432_v13 }
  0x86   : > { %1089 = vperm.xlu1 %5925, %v6199_v8   ;;  %1017 = vperm.xlu0 %5946, %v6222_v15  }
  0x8a   : > { %1097 = vperm.xlu1 %5925, %v6232_v17   ;;  %1029 = vperm.xlu0 %5946, %v6241_v19  }
  0x8e   : > { %1101 = vperm.xlu1 %5925, %v6206_v10   ;;  %2441 = vperm.xlu0 %5946, %v6262_v23  }
  0x90   : > { %v6312_v29 = vpop.permute.xlu1 %356  ;;  %v6314_v30 = vpop.permute.xlu0 %346 }
  0x91   : > { %v397_v20 = vmul.f32 %v6454_v26, %v6314_v30 }
  0x92   : > { %5926 = vset.pattern.permute.xlu1 %v11545_v31  ;;  %5947 = vset.pattern.permute.xlu0 %v11547_v28  ;;  %v459_v28 = vrot.slane %v337_v7, %v6429_v11 }
  0x93   : > { %1165 = vperm.xlu1 %5926, %v6199_v8   ;;  %1093 = vperm.xlu0 %5947, %v6222_v15  }
  0x94   : > { %v6320_v32 = vpop.permute.xlu1 %411  ;;  %v6322_v33 = vpop.permute.xlu0 %351 }
  0x97   : > { %1173 = vperm.xlu1 %5926, %v6232_v17   ;;  %1105 = vperm.xlu0 %5947, %v6241_v19  }
  0x98   : > { %v6326_v34 = vpop.permute.xlu1 %421  ;;  %v6328_v35 = vpop.permute.xlu0 %416 }
  0x9b   : > { %1177 = vperm.xlu1 %5926, %v6206_v10   ;;  %2517 = vperm.xlu0 %5947, %v6262_v23  }
  0x9c   : > { %v6332_v36 = vpop.permute.xlu0 %604 }
  0x9d   : > { %12236 = vst [vmem:[#allocation3_spill] sm:$0xff] %v6332_v36  ;;  %v6334_v37 = vpop.permute.xlu1 %441 }
  0x9f   : > { %5927 = vset.pattern.permute.xlu1 %v11543_v38  ;;  %2529 = vperm.xlu0 %5947, %v6269_v24  }
  0xa0   : > { %v6338_v39 = vpop.permute.xlu0 %619  ;;  %1241 = vperm.xlu1 %5927, %v6199_v8  }
  0xa1   : > { %12237 = vst [vmem:[#allocation4_spill] sm:$0xff] %v6338_v39  ;;  %v6341_v40 = vpop.permute.xlu1 %445 }
  0xa3   : > { %5950 = vset.pattern.permute.xlu0 %v11545_v31  ;;  %v455_v31 = vrot.slane %v336_v6, %v6432_v13 }
  0xa4   : > { %v6344_v41 = vpop.permute.xlu0 %665  ;;  %1249 = vperm.xlu1 %5927, %v6232_v17   ;;  %1169 = vperm.xlu0 %5950, %v6222_v15  }
  0xa5   : > { %12238 = vst [vmem:[#allocation5_spill] sm:$0xff] %v6344_v41  ;;  %v424_v41 = vadd.f32 %v6320_v32, %v397_v20 }
  0xa6   : > { %v6348_v42 = vpop.permute.xlu1 %513 }
  0xa8   : > { %v6350_v43 = vpop.permute.xlu0 %675  ;;  %1253 = vperm.xlu1 %5927, %v6206_v10   ;;  %1181 = vperm.xlu0 %5950, %v6241_v19  }
  0xa9   : > { %12239 = vst [vmem:[#allocation6_spill] sm:$0xff] %v6350_v43 }
  0xaa   : > { %v6354_v44 = vpop.permute.xlu1 %517 }
  0xac   : > { %v6356_v45 = vpop.permute.xlu0 %685  ;;  %5928 = vset.pattern.permute.xlu1 %v11541_v46  ;;  %2593 = vperm.xlu0 %5950, %v6262_v23  }
  0xad   : > { %1317 = vperm.xlu1 %5928, %v6199_v8  }
  0xaf   : > { %v6361_v47 = vpop.permute.xlu1 %609 }
  0xb0   : > { %12240 = vst [vmem:[#allocation7_spill] sm:$0xff] %v6361_v47  ;;  %v6363_v48 = vpop.permute.xlu0 %2037  ;;  %2605 = vperm.xlu0 %5950, %v6269_v24  }
  0xb1   : > { %12241 = vst [vmem:[#allocation8_spill] sm:$0xff] %v6363_v48  ;;  %1325 = vperm.xlu1 %5928, %v6232_v17   ;;  %v12262_v48 = vmov 10  }
  0xb3   : > { %v6367_v49 = vpop.permute.xlu1 %614 }
  0xb4   : > { %v6369_v50 = vpop.permute.xlu0 %2052  ;;  %5952 = vset.pattern.permute.xlu0 %v11543_v38  ;;  %v451_v38 = vrot.slane %v336_v6, %v6429_v11 }
  0xb5   : > { %12242 = vst [vmem:[#allocation9_spill] sm:$0xff] %v6369_v50  ;;  %1329 = vperm.xlu1 %5928, %v6206_v10   ;;  %1245 = vperm.xlu0 %5952, %v6222_v15   ;;  %v6488_v50 = vrot.slane %v455_v31, %v6429_v11  ;;  %v6509_v31 = vrot.slane %v535_v16, %v6443_v22 }
  0xb6   : > { %v6485_v7 = vrot.slane %v451_v38, %v6429_v11  ;;  %v6506_v38 = vrot.slane %v531_v14, %v6443_v22 }
  0xb7   : > { %v6374_v51 = vpop.permute.xlu1 %624 }
  0xb8   : > { %v6376_v52 = vpop.permute.xlu0 %2098 }
  0xb9   : > { %12243 = vst [vmem:[#allocation10_spill] sm:$0xff] %v6376_v52  ;;  %5929 = vset.pattern.permute.xlu1 %v11563_v53  ;;  %1257 = vperm.xlu0 %5952, %v6241_v19   ;;  %v523_v53 = vrot.slane %v336_v6, %v6443_v22  ;;  %v399_v52 = vmul.f32 %v6460_v12, %v6314_v30 }
  0xba   : > { %1393 = vperm.xlu1 %5929, %v6199_v8  }
  0xbb   : > { %v6380_v54 = vpop.permute.xlu1 %670 }
  0xbc   : > { %12244 = vst [vmem:[#allocation11_spill] sm:$0xff] %v6380_v54 }
  0xbd   : > { %v6385_v55 = vpop.permute.xlu0 %437  ;;  %2669 = vperm.xlu0 %5952, %v6262_v23  }
  0xbe   : > { %1401 = vperm.xlu1 %5929, %v6232_v17  }
  0xbf   : > { %v6388_v56 = vpop.permute.xlu1 %680 }
  0xc0   : > { %12245 = vst [vmem:[#allocation12_spill] sm:$0xff] %v6388_v56 }
  0xc1   : > { %v6391_v57 = vpop.permute.xlu0 %713  ;;  %2681 = vperm.xlu0 %5952, %v6269_v24  }
  0xc2   : > { %12246 = vst [vmem:[#allocation13_spill] sm:$0xff] %v6391_v57  ;;  %1405 = vperm.xlu1 %5929, %v6206_v10  }
  0xc4   : > { %v6397_v58 = vpop.permute.xlu1 %709 }
  0xc5   : > { %12247 = vst [vmem:[#allocation14_spill] sm:$0xff] %v6397_v58  ;;  %v6399_v60 = vpop.permute.xlu0 %725  ;;  %5954 = vset.pattern.permute.xlu0 %v11541_v46 }
  0xc6   : > { %5930 = vset.pattern.permute.xlu1 %v11561_v61  ;;  %1321 = vperm.xlu0 %5954, %v6222_v15  }
  0xc7   : > { %1469 = vperm.xlu1 %5930, %v6199_v8  }
  0xc8   : > { %v6405_v62 = vpop.permute.xlu1 %717 }
  0xc9   : > { %12248 = vst [vmem:[#allocation15_spill] sm:$0xff] %v6405_v62  ;;  %v6411_v0 = vpop.permute.xlu0 %2137  ;;  %v11588_v62 = vmov 13  }
  0xca   : > { %12250 = vst [vmem:[#allocation17_spill] sm:$0xff] %v6411_v0  ;;  %1333 = vperm.xlu0 %5954, %v6241_v19   ;;  %v6491_v0 = vrot.slane %v459_v28, %v6429_v11  ;;  %v484_v28 = vmul.f32 %v6485_v7, %v6385_v55 }
  0xcb   : > { %1477 = vperm.xlu1 %5930, %v6232_v17  }
  0xcc   : > { %v6417_v1 = vpop.permute.xlu1 %721 }
  0xcd   : > { %12251 = vst [vmem:[#allocation18_spill] sm:$0xff] %v6417_v1  ;;  %v6426_v5 = vpop.permute.xlu0 %2149 }
  0xce   : > { %12254 = vst [vmem:[#allocation21_spill] sm:$0xff] %v6426_v5  ;;  %2745 = vperm.xlu0 %5954, %v6262_v23   ;;  %v527_v5 = vrot.slane %v336_v6, %v6446_v59  ;;  %v400_v6 = vmul.f32 %v6463_v9, %v6314_v30  ;;  %v11604_v59 = vmov 14  }
  0xcf   : > { %1481 = vperm.xlu1 %5930, %v6206_v10  }
  0xd0   : > { %v427_v1 = vadd.f32 %v6320_v32, %v400_v6 }
  0xd1   : > { %v6440_v21 = vpop.permute.xlu1 %785 }
  0xd2   : > { %12257 = vst [vmem:[#allocation24_spill] sm:$0xff] %v6440_v21  ;;  %v510_v46 = vpop.permute.xlu0 %509  ;;  %2757 = vperm.xlu0 %5954, %v6269_v24   ;;  %v6494_v21 = vrot.slane %v463_v27, %v6429_v11 }
  0xd3   : > { %5931 = vset.pattern.permute.xlu1 %v11566_v3  ;;  %v398_v3 = vmul.f32 %v6457_v25, %v6314_v30  ;;  %v6500_v30 = vrot.slane %v523_v53, %v6443_v22  ;;  %v485_v53 = vmul.f32 %v6488_v50, %v6385_v55  ;;  %v558_v39 = vmul.f32 %v6506_v38, %v510_v46 }
  0xd4   : > { %1545 = vperm.xlu1 %5931, %v6199_v8   ;;  %v487_v14 = vmul.f32 %v6494_v21, %v6385_v55 }
  0xd5   : > { %v6466_v61 = vpop.permute.xlu1 %793  ;;  %v425_v16 = vadd.f32 %v6320_v32, %v398_v3  ;;  %v556_v56 = vmul.f32 %v6500_v30, %v510_v46  ;;  %v496_v3 = vadd.f32 %v484_v28, %v424_v41 }
  0xd6   : > { %12260 = vst [vmem:[#allocation27_spill] sm:$0xff] %v6466_v61  ;;  %v6473_v18 = vpop.permute.xlu0 %789  ;;  %5956 = vset.pattern.permute.xlu0 %v12262_v48  ;;  %v6503_v48 = vrot.slane %v527_v5, %v6443_v22  ;;  %v486_v5 = vmul.f32 %v6491_v0, %v6385_v55 }
  0xd7   : > { %12261 = vst [vmem:[#allocation28_spill] sm:$0xff] %v6473_v18  ;;  %1397 = vperm.xlu0 %5956, %v6222_v15   ;;  %v559_v18 = vmul.f32 %v6509_v31, %v510_v46  ;;  %v568_v6 = vadd.f32 %v556_v56, %v496_v3 }
  0xd8   : > { %1553 = vperm.xlu1 %5931, %v6232_v17   ;;  %v557_v36 = vmul.f32 %v6503_v48, %v510_v46 }
  0xd9   : > { %v6497_v58 = vpop.permute.xlu1 %797 }
  0xda   : > { %12263 = vst [vmem:[#allocation29_spill] sm:$0xff] %v6497_v58  ;;  %v6512_v27 = vpop.permute.xlu0 %801  ;;  %v426_v58 = vadd.f32 %v6320_v32, %v399_v52  ;;  %v497_v52 = vadd.f32 %v485_v53, %v425_v16  ;;  %v499_v32 = vadd.f32 %v487_v14, %v427_v1  ;;  %v12271_v1 = vmov 11  }
  0xdb   : > { %1409 = vperm.xlu0 %5956, %v6241_v19  }
  0xdc   : > { %1557 = vperm.xlu1 %5931, %v6206_v10   ;;  %v498_v57 = vadd.f32 %v486_v5, %v426_v58  ;;  %v569_v54 = vadd.f32 %v557_v36, %v497_v52  ;;  %v571_v47 = vadd.f32 %v559_v18, %v499_v32 }
  0xde   : > { %v6532_v55 = vpop.permute.xlu1 %861  ;;  %v6534_v20 = vpop.permute.xlu0 %2213  ;;  %v570_v61 = vadd.f32 %v558_v39, %v498_v57  ;;  %v6545_v41 = vmax.f32 %v569_v54, 0.0  ;;  %v6549_v36 = vmax.f32 %v571_v47, 0.0 }
  0xdf   : > { %12264 = vst [vmem:[#allocation30_spill] sm:$0xff] %v6532_v55  ;;  %12265 = vst [vmem:[#allocation31_spill] sm:$0xff] %v6534_v20  ;;  %2821 = vperm.xlu0 %5956, %v6262_v23   ;;  %v6543_v20 = vmax.f32 %v568_v6, 0.0 }
  0xe0   : > { %5932 = vset.pattern.permute.xlu1 %v11588_v62  ;;  %v6547_v58 = vmax.f32 %v570_v61, 0.0  ;;  %v6563_v54 = vrot.slane %v6545_v41, %v6420_v2  ;;  %v6571_v61 = vrot.slane %v6549_v36, %v6420_v2  ;;  %v6581_v28 = vrot.slane %v6545_v41, %v6429_v11 }
  0xe1   : > { %1621 = vperm.xlu1 %5932, %v6199_v8   ;;  %v6559_v57 = vrot.slane %v6543_v20, %v6420_v2  ;;  %v6577_v18 = vrot.slane %v6543_v20, %v6429_v11  ;;  %v6589_v5 = vrot.slane %v6549_v36, %v6429_v11  ;;  %v6598_v3 = vrot.slane %v6543_v20, %v6443_v22 }
  0xe2   : > { %v6538_v46 = vpop.permute.xlu1 %869  ;;  %12269 = vst [vmem:[#allocation35_spill] sm:$0xff] %v6563_v54  ;;  %v6567_v47 = vrot.slane %v6547_v58, %v6420_v2  ;;  %12270 = vst [vmem:[#allocation36_spill] sm:$0xff] %v6571_v61  ;;  %v6585_v53 = vrot.slane %v6547_v58, %v6429_v11  ;;  %v6602_v52 = vrot.slane %v6545_v41, %v6443_v22 }
  0xe3   : > { %12266 = vst [vmem:[#allocation32_spill] sm:$0xff] %v6538_v46  ;;  %v6541_v55 = vpop.permute.xlu0 %865  ;;  %2833 = vperm.xlu0 %5956, %v6269_v24   ;;  %12272 = vst [vmem:[#allocation37_spill] sm:$0xff] %v6577_v18  ;;  %v6606_v32 = vrot.slane %v6547_v58, %v6443_v22  ;;  %v6610_v6 = vrot.slane %v6549_v36, %v6443_v22  ;;  %v659_v62 = vmul.f32 %v6559_v57, %v6374_v51 }
  0xe4   : > { %12267 = vst [vmem:[#allocation33_spill] sm:$0xff] %v6541_v55  ;;  %12273 = vst [vmem:[#allocation38_spill] sm:$0xff] %v6581_v28 }
  0xe5   : > { %1629 = vperm.xlu1 %5932, %v6232_v17   ;;  %12274 = vst [vmem:[#allocation39_spill] sm:$0xff] %v6585_v53  ;;  %12275 = vst [vmem:[#allocation40_spill] sm:$0xff] %v6589_v5 }
  0xe6   : > { %v6552_v39 = vpop.permute.xlu1 %873  ;;  %12278 = vst [vmem:[#allocation43_spill] sm:$0xff] %v6598_v3  ;;  %12279 = vst [vmem:[#allocation44_spill] sm:$0xff] %v6602_v52 }
  0xe7   : > { %12268 = vst [vmem:[#allocation34_spill] sm:$0xff] %v6552_v39  ;;  %v6555_v56 = vpop.permute.xlu0 %877  ;;  %5958 = vset.pattern.permute.xlu0 %v12271_v1  ;;  %12280 = vst [vmem:[#allocation45_spill] sm:$0xff] %v6606_v32  ;;  %v661_v1 = vmul.f32 %v6567_v47, %v6374_v51  ;;  %v704_v39 = vadd.f32 %v6356_v45, %v659_v62  ;;  %v762_v62 = vmul.f32 %v6585_v53, %v6399_v60 }
  0xe8   : > { %1473 = vperm.xlu0 %5958, %v6222_v15  }
  0xe9   : > { %1633 = vperm.xlu1 %5932, %v6206_v10   ;;  %v706_v46 = vadd.f32 %v6356_v45, %v661_v1  ;;  %v763_v1 = vmul.f32 %v6589_v5, %v6399_v60 }
  0xeb   : > { %v6592_v14 = vpop.permute.xlu1 %937  ;;  %v6594_v16 = vpop.permute.xlu0 %2289  ;;  %v782_v53 = vadd.f32 %v762_v62, %v706_v46  ;;  %v12286_v62 = vmov 12  }
  0xec   : > { %12276 = vst [vmem:[#allocation41_spill] sm:$0xff] %v6592_v14  ;;  %12277 = vst [vmem:[#allocation42_spill] sm:$0xff] %v6594_v16  ;;  %v660_v16 = vmul.f32 %v6563_v54, %v6374_v51  ;;  %v662_v14 = vmul.f32 %v6571_v61, %v6374_v51  ;;  %1485 = vperm.xlu0 %5958, %v6241_v19   ;;  %v760_v51 = vmul.f32 %v6577_v18, %v6399_v60 }
  0xed   : > { %5933 = vset.pattern.permute.xlu1 %v11604_v59  ;;  %v761_v61 = vmul.f32 %v6581_v28, %v6399_v60  ;;  %v839_v59 = vmul.f32 %v6610_v6, %v6512_v27 }
  0xee   : > { %v705_v55 = vadd.f32 %v6356_v45, %v660_v16  ;;  %v707_v43 = vadd.f32 %v6356_v45, %v662_v14  ;;  %1697 = vperm.xlu1 %5933, %v6199_v8   ;;  %v836_v45 = vmul.f32 %v6598_v3, %v6512_v27  ;;  %v837_v14 = vmul.f32 %v6602_v52, %v6512_v27 }
  0xef   : > { %v6626_v13 = vpop.permute.xlu1 %945  ;;  %v6628_v54 = vpop.permute.xlu0 %2301  ;;  %v838_v16 = vmul.f32 %v6606_v32, %v6512_v27  ;;  %v401_v27 = vmul.f32 %v6454_v26, %v6322_v33 }
  0xf0   : > { %12281 = vst [vmem:[#allocation46_spill] sm:$0xff] %v6626_v13  ;;  %12282 = vst [vmem:[#allocation47_spill] sm:$0xff] %v6628_v54  ;;  %v780_v54 = vadd.f32 %v760_v51, %v704_v39  ;;  %v781_v13 = vadd.f32 %v761_v61, %v705_v55  ;;  %v783_v28 = vadd.f32 %v763_v1, %v707_v43  ;;  %2897 = vperm.xlu0 %5958, %v6262_v23  }
  0xf1   : > { %v6654_v18 = vadd.f32 %v838_v16, %v782_v53  ;;  %v402_v43 = vmul.f32 %v6457_v25, %v6322_v33  ;;  %v403_v55 = vmul.f32 %v6460_v12, %v6322_v33  ;;  %v407_v61 = vmul.f32 %v6460_v12, %v6312_v29 }
  0xf2   : > { %v6650_v5 = vadd.f32 %v836_v45, %v780_v54  ;;  %v6652_v3 = vadd.f32 %v837_v14, %v781_v13  ;;  %v6656_v52 = vadd.f32 %v839_v59, %v783_v28  ;;  %1705 = vperm.xlu1 %5933, %v6232_v17   ;;  %v404_v13 = vmul.f32 %v6463_v9, %v6322_v33 }
  0xf3   : > { %v6648_v60 = vpop.permute.xlu1 %949  ;;  %v405_v59 = vmul.f32 %v6454_v26, %v6312_v29  ;;  %v406_v54 = vmul.f32 %v6457_v25, %v6312_v29  ;;  %v408_v33 = vmul.f32 %v6463_v9, %v6312_v29  ;;  %v428_v28 = vadd.f32 %v6328_v35, %v401_v27 }
  0xf4   : > { %12283 = vst [vmem:[#allocation48_spill] sm:$0xff] %v6648_v60  ;;  %v6659_v32 = vpop.permute.xlu0 %941  ;;  %2909 = vperm.xlu0 %5958, %v6269_v24   ;;  %v429_v53 = vadd.f32 %v6328_v35, %v402_v43  ;;  %v430_v26 = vadd.f32 %v6328_v35, %v403_v55  ;;  %v431_v51 = vadd.f32 %v6328_v35, %v404_v13  ;;  %v6699_v35 = vsub.s32 3, %v6408_v63 }
  0xf5   : > { %12284 = vst [vmem:[#allocation49_spill] sm:$0xff] %v6659_v32  ;;  %v488_v1 = vmul.f32 %v6485_v7, %v6334_v37  ;;  %v489_v25 = vmul.f32 %v6488_v50, %v6334_v37  ;;  %v490_v12 = vmul.f32 %v6491_v0, %v6334_v37  ;;  %v491_v9 = vmul.f32 %v6494_v21, %v6334_v37 }
  0xf6   : > { %1709 = vperm.xlu1 %5933, %v6206_v10   ;;  %v432_v29 = vadd.f32 %v6326_v34, %v405_v59  ;;  %12287 = vst [vmem:[#allocation51_spill] sm:$0xff] %v6699_v35  ;;  %v11622_v45 = vmov 15   ;;  %v433_v27 = vadd.f32 %v6326_v34, %v406_v54  ;;  %v434_v43 = vadd.f32 %v6326_v34, %v407_v61 }
  0xf7   : > { %v435_v37 = vadd.f32 %v6326_v34, %v408_v33  ;;  %v560_v55 = vmul.f32 %v6500_v30, %v6348_v42  ;;  %v561_v13 = vmul.f32 %v6503_v48, %v6348_v42  ;;  %v562_v59 = vmul.f32 %v6506_v38, %v6348_v42 }
  0xf8   : > { %v6673_v46 = vpop.permute.xlu1 %1013  ;;  %v6675_v39 = vpop.permute.xlu0 %953  ;;  %5960 = vset.pattern.permute.xlu0 %v12286_v62  ;;  %v500_v62 = vadd.f32 %v488_v1, %v428_v28  ;;  %v501_v54 = vadd.f32 %v489_v25, %v429_v53  ;;  %v503_v61 = vadd.f32 %v491_v9, %v431_v51  ;;  %v492_v34 = vmul.f32 %v6485_v7, %v6341_v40 }
  0xf9   : > { %12285 = vst [vmem:[#allocation50_spill] sm:$0xff] %v6673_v46  ;;  %1549 = vperm.xlu0 %5960, %v6222_v15   ;;  %v493_v33 = vmul.f32 %v6488_v50, %v6341_v40  ;;  %v495_v46 = vmul.f32 %v6494_v21, %v6341_v40  ;;  %v6733_v28 = vrot.slane %v6543_v20, %v6699_v35 }
  0xfa   : > { %5934 = vset.pattern.permute.xlu1 %v11622_v45  ;;  %v563_v45 = vmul.f32 %v6509_v31, %v6348_v42  ;;  %v6737_v7 = vrot.slane %v6545_v41, %v6699_v35  ;;  %v6741_v50 = vrot.slane %v6547_v58, %v6699_v35  ;;  %v573_v21 = vadd.f32 %v561_v13, %v501_v54 }
  0xfb   : > { %1773 = vperm.xlu1 %5934, %v6199_v8   ;;  %v912_v51 = vmul.f32 %v6733_v28, %v6555_v56  ;;  %v504_v9 = vadd.f32 %v492_v34, %v432_v29  ;;  %v507_v54 = vadd.f32 %v495_v46, %v435_v37 }
  0xfc   : > { %v6702_v14 = vpop.permute.xlu1 %1021  ;;  %v6704_v16 = vpop.permute.xlu0 %2365  ;;  %v913_v1 = vmul.f32 %v6737_v7, %v6555_v56  ;;  %v914_v25 = vmul.f32 %v6741_v50, %v6555_v56 }
  0xfd   : > { %12288 = vst [vmem:[#allocation52_spill] sm:$0xff] %v6702_v14  ;;  %12289 = vst [vmem:[#allocation53_spill] sm:$0xff] %v6704_v16  ;;  %v502_v16 = vadd.f32 %v490_v12, %v430_v26  ;;  %1561 = vperm.xlu0 %5960, %v6241_v19   ;;  %v494_v14 = vmul.f32 %v6491_v0, %v6341_v40  ;;  %v6745_v0 = vrot.slane %v6549_v36, %v6699_v35 }
  0xfe   : > { %v572_v40 = vadd.f32 %v560_v55, %v500_v62  ;;  %v575_v26 = vadd.f32 %v563_v45, %v503_v61  ;;  %v564_v62 = vmul.f32 %v6500_v30, %v6354_v44  ;;  %v565_v45 = vmul.f32 %v6503_v48, %v6354_v44 }
  0xff   : > { %1781 = vperm.xlu1 %5934, %v6232_v17   ;;  %v574_v53 = vadd.f32 %v562_v59, %v502_v16  ;;  %v915_v12 = vmul.f32 %v6745_v0, %v6555_v56  ;;  %v932_v16 = vadd.f32 %v912_v51, %v6650_v5  ;;  %v933_v55 = vadd.f32 %v913_v1, %v6652_v3 }
 0x100   : > { %v6727_v32 = vpop.permute.xlu1 %1025  ;;  %v6729_v42 = vpop.permute.xlu0 %2377  ;;  %v934_v13 = vadd.f32 %v914_v25, %v6654_v18  ;;  %v6772_v30 = vmax.f32 %v573_v21, 0.0  ;;  %v566_v48 = vmul.f32 %v6506_v38, %v6354_v44  ;;  %v567_v5 = vmul.f32 %v6509_v31, %v6354_v44 }
 0x101   : > { %12290 = vst [vmem:[#allocation54_spill] sm:$0xff] %v6727_v32  ;;  %12291 = vst [vmem:[#allocation55_spill] sm:$0xff] %v6729_v42  ;;  %2973 = vperm.xlu0 %5960, %v6262_v23   ;;  %v505_v42 = vadd.f32 %v493_v33, %v433_v27  ;;  %v935_v59 = vadd.f32 %v915_v12, %v6656_v52  ;;  %v6770_v27 = vmax.f32 %v572_v40, 0.0  ;;  %v6778_v3 = vmax.f32 %v574_v53, 0.0 }
 0x102   : > { %v6780_v18 = vmax.f32 %v575_v26, 0.0  ;;  %v506_v52 = vadd.f32 %v494_v14, %v434_v43  ;;  %v576_v61 = vadd.f32 %v564_v62, %v504_v9  ;;  %v11629_v33 = vmov 16  }
 0x103   : > { %1785 = vperm.xlu1 %5934, %v6206_v10   ;;  %v577_v34 = vadd.f32 %v565_v45, %v505_v42  ;;  %v6789_v38 = vsub.s32 7, %v6408_v63  ;;  %v579_v31 = vadd.f32 %v567_v5, %v507_v54  ;;  %v6794_v14 = vrot.slane %v6770_v27, %v6420_v2 }
 0x104   : > { %v578_v44 = vadd.f32 %v566_v48, %v506_v52  ;;  %v6798_v46 = vrot.slane %v6772_v30, %v6420_v2  ;;  %v12296_v43 = vmov 13   ;;  %v6803_v37 = vrot.slane %v6778_v3, %v6420_v2 }
 0x105   : > { %v6766_v56 = vpop.permute.xlu1 %1089  ;;  %v6768_v29 = vpop.permute.xlu0 %1017  ;;  %2985 = vperm.xlu0 %5960, %v6269_v24   ;;  %12295 = vst [vmem:[#allocation59_spill] sm:$0xff] %v6789_v38  ;;  %v6807_v42 = vrot.slane %v6780_v18, %v6420_v2  ;;  %v6811_v53 = vrot.slane %v6770_v27, %v6429_v11  ;;  %v6815_v26 = vrot.slane %v6772_v30, %v6429_v11  ;;  %v588_v51 = vmax.f32 %v576_v61, 0.0 }
 0x106   : > { %12292 = vst [vmem:[#allocation56_spill] sm:$0xff] %v6766_v56  ;;  %12293 = vst [vmem:[#allocation57_spill] sm:$0xff] %v6768_v29  ;;  %v589_v1 = vmax.f32 %v577_v34, 0.0  ;;  %v6820_v25 = vrot.slane %v6778_v3, %v6429_v11  ;;  %v6824_v12 = vrot.slane %v6780_v18, %v6429_v11  ;;  %v6828_v9 = vrot.slane %v6543_v20, %v6423_v4 }
 0x107   : > { %5935 = vset.pattern.permute.xlu1 %v11629_v33  ;;  %12297 = vst [vmem:[#allocation60_spill] sm:$0xff] %v6803_v37  ;;  %12298 = vst [vmem:[#allocation61_spill] sm:$0xff] %v6807_v42  ;;  %v6832_v62 = vrot.slane %v6545_v41, %v6423_v4  ;;  %v6836_v45 = vrot.slane %v6547_v58, %v6423_v4  ;;  %v6840_v48 = vrot.slane %v6549_v36, %v6423_v4 }
 0x108   : > { %1849 = vperm.xlu1 %5935, %v6199_v8   ;;  %12299 = vst [vmem:[#allocation62_spill] sm:$0xff] %v6811_v53  ;;  %12300 = vst [vmem:[#allocation63_spill] sm:$0xff] %v6815_v26  ;;  %v590_v54 = vmax.f32 %v578_v44, 0.0  ;;  %v591_v61 = vmax.f32 %v579_v31, 0.0  ;;  %v6849_v34 = vrot.slane %v6770_v27, %v6443_v22  ;;  %v6853_v33 = vrot.slane %v6772_v30, %v6443_v22 }
 0x109   : > { %v6784_v40 = vpop.permute.xlu1 %1097  ;;  %v6786_v21 = vpop.permute.xlu0 %1029  ;;  %5962 = vset.pattern.permute.xlu0 %v12296_v43  ;;  %12301 = vst [vmem:[#allocation64_spill] sm:$0xff] %v6820_v25  ;;  %12302 = vst [vmem:[#allocation65_spill] sm:$0xff] %v6824_v12  ;;  %v988_v63 = vmul.f32 %v6828_v9, %v6675_v39  ;;  %v989_v43 = vmul.f32 %v6832_v62, %v6675_v39  ;;  %v990_v44 = vmul.f32 %v6836_v45, %v6675_v39  ;;  %v12359_v12 = vmov 14  }
 0x10a   : > { %12294 = vst [vmem:[#allocation58_spill] sm:$0xff] %v6784_v40  ;;  %1625 = vperm.xlu0 %5962, %v6222_v15   ;;  %12303 = vst [vmem:[#allocation66_spill] sm:$0xff] %v6828_v9  ;;  %v991_v31 = vmul.f32 %v6840_v48, %v6675_v39  ;;  %v6890_v29 = vrot.slane %v591_v61, %v6420_v2 }
 0x10b   : > { %12304 = vst [vmem:[#allocation67_spill] sm:$0xff] %v6832_v62  ;;  %12305 = vst [vmem:[#allocation68_spill] sm:$0xff] %v6836_v45  ;;  %v6878_v40 = vadd.f32 %v988_v63, %v932_v16  ;;  %v6880_v56 = vadd.f32 %v989_v43, %v933_v55  ;;  %v6882_v39 = vadd.f32 %v990_v44, %v934_v13  ;;  %v12388_v62 = vld [vmem:[#allocation14_spill] sm:$0xff] }
 0x10c   : > { %12306 = vst [vmem:[#allocation69_spill] sm:$0xff] %v6840_v48  ;;  %1857 = vperm.xlu1 %5935, %v6232_v17   ;;  %12309 = vst [vmem:[#allocation72_spill] sm:$0xff] %v6849_v34  ;;  %v6867_v34 = vrot.slane %v589_v1, %v6420_v2  ;;  %v6902_v16 = vrot.slane %v590_v54, %v6429_v11  ;;  %v6905_v55 = vrot.slane %v591_v61, %v6429_v11 }
 0x10d   : > { %v6842_v5 = vpop.permute.xlu1 %1101  ;;  %v6844_v52 = vpop.permute.xlu0 %2441  ;;  %12310 = vst [vmem:[#allocation73_spill] sm:$0xff] %v6853_v33  ;;  %v6872_v33 = vrot.slane %v6778_v3, %v6443_v22  ;;  %12316 = vst [vmem:[#allocation79_spill] sm:$0xff] %v6890_v29  ;;  %v6915_v43 = vrot.slane %v6772_v30, %v6699_v35  ;;  %v6924_v61 = vrot.slane %v6778_v3, %v6699_v35 }
 0x10e   : > { %12307 = vst [vmem:[#allocation70_spill] sm:$0xff] %v6842_v5  ;;  %12308 = vst [vmem:[#allocation71_spill] sm:$0xff] %v6844_v52  ;;  %v6864_v52 = vrot.slane %v588_v51, %v6420_v2  ;;  %1637 = vperm.xlu0 %5962, %v6241_v19   ;;  %v6876_v5 = vrot.slane %v6780_v18, %v6443_v22  ;;  %v6896_v22 = vrot.slane %v589_v1, %v6429_v11  ;;  %v12325_v1 = vld [vmem:[#allocation35_spill] sm:$0xff] }
 0x10f   : > { %12312 = vst [vmem:[#allocation75_spill] sm:$0xff] %v6867_v34  ;;  %12313 = vst [vmem:[#allocation76_spill] sm:$0xff] %v6872_v33  ;;  %v6887_v34 = vrot.slane %v590_v54, %v6420_v2  ;;  %v6893_v33 = vrot.slane %v588_v51, %v6429_v11  ;;  %v651_v51 = vmul.f32 %v6559_v57, %v6367_v49 }
 0x110   : > { %12311 = vst [vmem:[#allocation74_spill] sm:$0xff] %v6864_v52  ;;  %12314 = vst [vmem:[#allocation77_spill] sm:$0xff] %v6876_v5  ;;  %v6884_v52 = vadd.f32 %v991_v31, %v935_v59  ;;  %1861 = vperm.xlu1 %5935, %v6206_v10   ;;  %v6911_v59 = vrot.slane %v6770_v27, %v6699_v35  ;;  %v652_v54 = vmul.f32 %v12325_v1, %v6367_v49  ;;  %v12351_v5 = vld [vmem:[#allocation40_spill] sm:$0xff] }
 0x111   : > { %12315 = vst [vmem:[#allocation78_spill] sm:$0xff] %v6887_v34  ;;  %12317 = vst [vmem:[#allocation80_spill] sm:$0xff] %v6893_v33  ;;  %v6928_v44 = vrot.slane %v6780_v18, %v6699_v35  ;;  %v6932_v31 = vrot.slane %v6770_v27, %v6423_v4  ;;  %v6936_v2 = vrot.slane %v6772_v30, %v6423_v4  ;;  %v11660_v33 = vmov 17   ;;  %v12334_v34 = vld [vmem:[#allocation23_spill] sm:$0xff] }
 0x112   : > { %12318 = vst [vmem:[#allocation81_spill] sm:$0xff] %v6896_v22  ;;  %v6899_v63 = vpop.permute.xlu1 %1165  ;;  %12320 = vst [vmem:[#allocation83_spill] sm:$0xff] %v6902_v16  ;;  %v6907_v13 = vpop.permute.xlu0 %1093  ;;  %3049 = vperm.xlu0 %5962, %v6262_v23   ;;  %v6940_v11 = vrot.slane %v6778_v3, %v6423_v4  ;;  %v653_v35 = vmul.f32 %v6567_v47, %v6367_v49  ;;  %v12332_v16 = vld [vmem:[#allocation36_spill] sm:$0xff] }
 0x113   : > { %12319 = vst [vmem:[#allocation82_spill] sm:$0xff] %v6899_v63  ;;  %12321 = vst [vmem:[#allocation84_spill] sm:$0xff] %v6905_v55  ;;  %v6944_v55 = vrot.slane %v6780_v18, %v6423_v4  ;;  %v654_v22 = vmul.f32 %v12332_v16, %v6367_v49  ;;  %v6966_v49 = vrot.slane %v6778_v3, %v12334_v34 }
 0x114   : > { %12322 = vst [vmem:[#allocation85_spill] sm:$0xff] %v6907_v13  ;;  %12323 = vst [vmem:[#allocation86_spill] sm:$0xff] %v6911_v59  ;;  %5936 = vset.pattern.permute.xlu1 %v11660_v33  ;;  %v6970_v33 = vrot.slane %v6780_v18, %v12334_v34  ;;  %v12347_v59 = vld [vmem:[#allocation38_spill] sm:$0xff] }
 0x115   : > { %12324 = vst [vmem:[#allocation87_spill] sm:$0xff] %v6915_v43  ;;  %12326 = vst [vmem:[#allocation35_spill] sm:$0xff] %v6924_v61  ;;  %1925 = vperm.xlu1 %5936, %v6199_v8   ;;  %v12345_v61 = vld [vmem:[#allocation15_spill] sm:$0xff] }
 0x116   : > { %12327 = vst [vmem:[#allocation88_spill] sm:$0xff] %v6928_v44  ;;  %12328 = vst [vmem:[#allocation89_spill] sm:$0xff] %v6932_v31  ;;  %v6951_v29 = vpop.permute.xlu1 %1173  ;;  %v6962_v4 = vpop.permute.xlu0 %1105  ;;  %3061 = vperm.xlu0 %5962, %v6269_v24   ;;  %v7001_v24 = vrot.slane %v6772_v30, %v6789_v38  ;;  %v755_v13 = vmul.f32 %v12351_v5, %v12345_v61 }
 0x117   : > { %12329 = vst [vmem:[#allocation90_spill] sm:$0xff] %v6936_v2  ;;  %12330 = vst [vmem:[#allocation91_spill] sm:$0xff] %v6940_v11  ;;  %v6955_v2 = vrot.slane %v6770_v27, %v12334_v34  ;;  %v6959_v11 = vrot.slane %v6772_v30, %v12334_v34 }
 0x118   : > { %12331 = vst [vmem:[#allocation92_spill] sm:$0xff] %v6944_v55  ;;  %12333 = vst [vmem:[#allocation36_spill] sm:$0xff] %v6951_v29  ;;  %v12339_v55 = vld [vmem:[#allocation26_spill] sm:$0xff] }
 0x119   : > { %12335 = vst [vmem:[#allocation93_spill] sm:$0xff] %v6955_v2  ;;  %12336 = vst [vmem:[#allocation94_spill] sm:$0xff] %v6959_v11  ;;  %v6974_v31 = vrot.slane %v6770_v27, %v12339_v55  ;;  %v6978_v2 = vrot.slane %v6772_v30, %v12339_v55  ;;  %v12342_v11 = vld [vmem:[#allocation6_spill] sm:$0xff]  ;;  %v7017_v30 = vrot.slane %v6545_v41, %v12334_v34  ;;  %1933 = vperm.xlu1 %5936, %v6232_v17  }
 0x11a   : > { %12337 = vst [vmem:[#allocation95_spill] sm:$0xff] %v6966_v49  ;;  %12338 = vst [vmem:[#allocation96_spill] sm:$0xff] %v6970_v33  ;;  %v696_v8 = vadd.f32 %v12342_v11, %v651_v51  ;;  %v697_v44 = vadd.f32 %v12342_v11, %v652_v54  ;;  %v6985_v49 = vrot.slane %v6778_v3, %v12339_v55  ;;  %v7009_v63 = vpop.permute.xlu1 %1177  ;;  %5964 = vset.pattern.permute.xlu0 %v12359_v12 }
 0x11b   : > { %12340 = vst [vmem:[#allocation97_spill] sm:$0xff] %v6974_v31  ;;  %12341 = vst [vmem:[#allocation98_spill] sm:$0xff] %v6978_v2  ;;  %v6989_v33 = vrot.slane %v6780_v18, %v12339_v55  ;;  %v12346_v31 = vld [vmem:[#allocation37_spill] sm:$0xff]  ;;  %v753_v2 = vmul.f32 %v12347_v59, %v12345_v61  ;;  %v6997_v51 = vrot.slane %v6770_v27, %v6789_v38  ;;  %1701 = vperm.xlu0 %5964, %v6222_v15   ;;  %v12361_v15 = vld [vmem:[#allocation27_spill] sm:$0xff] }
 0x11c   : > { %12343 = vst [vmem:[#allocation6_spill] sm:$0xff] %v6985_v49  ;;  %v752_v43 = vmul.f32 %v12346_v31, %v12345_v61  ;;  %12349 = vst [vmem:[#allocation37_spill] sm:$0xff] %v7001_v24  ;;  %v698_v54 = vadd.f32 %v12342_v11, %v653_v35  ;;  %v699_v49 = vadd.f32 %v12342_v11, %v654_v22  ;;  %v7028_v22 = vpop.permute.xlu0 %2517 }
 0x11d   : > { %12344 = vst [vmem:[#allocation99_spill] sm:$0xff] %v6989_v33  ;;  %12348 = vst [vmem:[#allocation15_spill] sm:$0xff] %v6997_v51  ;;  %v12350_v33 = vld [vmem:[#allocation39_spill] sm:$0xff]  ;;  %v7013_v27 = vrot.slane %v6543_v20, %v12334_v34  ;;  %v7021_v35 = vrot.slane %v6547_v58, %v12334_v34  ;;  %v7025_v11 = vrot.slane %v6549_v36, %v12334_v34  ;;  %1937 = vperm.xlu1 %5936, %v6206_v10  }
 0x11e   : > { %v754_v29 = vmul.f32 %v12350_v33, %v12345_v61  ;;  %12352 = vst [vmem:[#allocation38_spill] sm:$0xff] %v7009_v63  ;;  %12354 = vst [vmem:[#allocation40_spill] sm:$0xff] %v7017_v30  ;;  %v772_v61 = vadd.f32 %v752_v43, %v696_v8  ;;  %v773_v24 = vadd.f32 %v753_v2, %v697_v44  ;;  %v12358_v51 = vld [vmem:[#allocation7_spill] sm:$0xff] }
 0x11f   : > { %12353 = vst [vmem:[#allocation39_spill] sm:$0xff] %v7013_v27  ;;  %12355 = vst [vmem:[#allocation100_spill] sm:$0xff] %v7021_v35  ;;  %v647_v63 = vmul.f32 %v6559_v57, %v12358_v51  ;;  %v648_v32 = vmul.f32 %v12325_v1, %v12358_v51  ;;  %v1064_v25 = vmul.f32 %v7013_v27, %v6786_v21  ;;  %1713 = vperm.xlu0 %5964, %v6241_v19  }
 0x120   : > { %12356 = vst [vmem:[#allocation101_spill] sm:$0xff] %v7025_v11  ;;  %12357 = vst [vmem:[#allocation102_spill] sm:$0xff] %v7028_v22  ;;  %v1065_v34 = vmul.f32 %v7017_v30, %v6786_v21  ;;  %v1066_v17 = vmul.f32 %v7021_v35, %v6786_v21  ;;  %v1067_v2 = vmul.f32 %v7025_v11, %v6786_v21  ;;  %v7053_v21 = vpop.permute.xlu0 %2529 }
 0x121   : > { %v774_v43 = vadd.f32 %v754_v29, %v698_v54  ;;  %v775_v44 = vadd.f32 %v755_v13, %v699_v49  ;;  %v649_v8 = vmul.f32 %v6567_v47, %v12358_v51  ;;  %v650_v12 = vmul.f32 %v12332_v16, %v12358_v51  ;;  %12360 = vst [vmem:[#allocation7_spill] sm:$0xff] %v7053_v21  ;;  %v12362_v29 = vld [vmem:[#allocation43_spill] sm:$0xff]  ;;  %v12363_v49 = vld [vmem:[#allocation44_spill] sm:$0xff]  ;;  %v12364_v51 = vld [vmem:[#allocation45_spill] sm:$0xff] }
 0x122   : > { %v1084_v22 = vadd.f32 %v1064_v25, %v6878_v40  ;;  %v1085_v26 = vadd.f32 %v1065_v34, %v6880_v56  ;;  %v1086_v53 = vadd.f32 %v1066_v17, %v6882_v39  ;;  %v1087_v35 = vadd.f32 %v1067_v2, %v6884_v52  ;;  %v7063_v40 = vpop.permute.xlu1 %1241  ;;  %v12366_v25 = vld [vmem:[#allocation11_spill] sm:$0xff] }
 0x123   : > { %v828_v13 = vmul.f32 %v12362_v29, %v12361_v15  ;;  %v829_v54 = vmul.f32 %v12363_v49, %v12361_v15  ;;  %v830_v11 = vmul.f32 %v12364_v51, %v12361_v15  ;;  %v831_v56 = vmul.f32 %v6610_v6, %v12361_v15  ;;  %12365 = vst [vmem:[#allocation27_spill] sm:$0xff] %v7063_v40 }
 0x124   : > { %v692_v52 = vadd.f32 %v12366_v25, %v647_v63  ;;  %v693_v10 = vadd.f32 %v12366_v25, %v648_v32  ;;  %v7070_v34 = vrot.slane %v6778_v3, %v6789_v38  ;;  %v7074_v39 = vrot.slane %v6780_v18, %v6789_v38  ;;  %v12369_v63 = vld [vmem:[#allocation13_spill] sm:$0xff]  ;;  %3125 = vperm.xlu0 %5964, %v6262_v23  }
 0x125   : > { %v7076_v17 = vadd.f32 %v828_v13, %v772_v61  ;;  %v7078_v2 = vadd.f32 %v829_v54, %v773_v24  ;;  %v7080_v15 = vadd.f32 %v830_v11, %v774_v43  ;;  %v7082_v21 = vadd.f32 %v831_v56, %v775_v44  ;;  %v12371_v61 = vld [vmem:[#allocation28_spill] sm:$0xff] }
 0x126   : > { %12367 = vst [vmem:[#allocation43_spill] sm:$0xff] %v7070_v34  ;;  %12368 = vst [vmem:[#allocation44_spill] sm:$0xff] %v7074_v39  ;;  %v694_v32 = vadd.f32 %v12366_v25, %v649_v8  ;;  %v695_v19 = vadd.f32 %v12366_v25, %v650_v12  ;;  %v748_v3 = vmul.f32 %v12346_v31, %v12369_v63  ;;  %v12370_v18 = vmov 0   ;;  %v7100_v44 = vpop.permute.xlu1 %1249  ;;  %v7102_v8 = vpop.permute.xlu0 %1169 }
 0x127   : > { %v749_v34 = vmul.f32 %v12347_v59, %v12369_v63  ;;  %5937 = vset.pattern.permute.xlu1 %v12370_v18  ;;  %v750_v24 = vmul.f32 %v12350_v33, %v12369_v63  ;;  %v751_v11 = vmul.f32 %v12351_v5, %v12369_v63  ;;  %v824_v43 = vmul.f32 %v12362_v29, %v12371_v61  ;;  %v7112_v63 = vld [vmem:[%s11535_s5 + $0x10] sm:$0xff] }
 0x128   : > { %v825_v12 = vmul.f32 %v12363_v49, %v12371_v61  ;;  %2032 = vperm.xlu1 %5937, %v6262_v23   ;;  %12372 = vst [vmem:[#allocation45_spill] sm:$0xff] %v7100_v44  ;;  %12373 = vst [vmem:[#allocation11_spill] sm:$0xff] %v7102_v8  ;;  %v768_v13 = vadd.f32 %v748_v3, %v692_v52  ;;  %v826_v56 = vmul.f32 %v12364_v51, %v12371_v61 }
 0x129   : > { %v769_v54 = vadd.f32 %v749_v34, %v693_v10  ;;  %v827_v25 = vmul.f32 %v6610_v6, %v12371_v61  ;;  %v7116_v18 = vrot.slane %v6543_v20, %v12339_v55  ;;  %v7120_v52 = vrot.slane %v6545_v41, %v12339_v55  ;;  %v12378_v61 = vld [vmem:[#allocation4_spill] sm:$0xff] }
 0x12a   : > { %v7124_v10 = vrot.slane %v6547_v58, %v12339_v55  ;;  %v7128_v23 = vrot.slane %v6549_v36, %v12339_v55  ;;  %v770_v34 = vadd.f32 %v750_v24, %v694_v32  ;;  %v771_v3 = vadd.f32 %v751_v11, %v695_v19  ;;  %v7143_v32 = vpop.permute.xlu1 %1253 }
 0x12b   : > { %12374 = vst [vmem:[#allocation13_spill] sm:$0xff] %v7116_v18  ;;  %12375 = vst [vmem:[#allocation28_spill] sm:$0xff] %v7120_v52  ;;  %v655_v39 = vmul.f32 %v6559_v57, %v12378_v61  ;;  %v656_v8 = vmul.f32 %v12325_v1, %v12378_v61  ;;  %v1140_v44 = vmul.f32 %v7116_v18, %v6962_v4 }
 0x12c   : > { %12376 = vst [vmem:[#allocation103_spill] sm:$0xff] %v7124_v10  ;;  %12377 = vst [vmem:[#allocation104_spill] sm:$0xff] %v7128_v23  ;;  %v1141_v40 = vmul.f32 %v7120_v52, %v6962_v4  ;;  %v1142_v30 = vmul.f32 %v7124_v10, %v6962_v4  ;;  %v1143_v55 = vmul.f32 %v7128_v23, %v6962_v4  ;;  %2042 = vperm.xlu1 %5937, %v7112_v63   ;;  %v7156_v10 = vld [vmem:[%s11535_s5 + $0x18] sm:$0xff]  ;;  %v1182_v4 = vpop.permute.xlu0 %1181 }
 0x12d   : > { %12379 = vst [vmem:[#allocation4_spill] sm:$0xff] %v7143_v32  ;;  %v7145_v19 = vadd.f32 %v824_v43, %v768_v13  ;;  %v7147_v24 = vadd.f32 %v825_v12, %v769_v54  ;;  %v657_v11 = vmul.f32 %v6567_v47, %v12378_v61  ;;  %v658_v52 = vmul.f32 %v12332_v16, %v12378_v61  ;;  %v12380_v54 = vld [vmem:[#allocation3_spill] sm:$0xff] }
 0x12e   : > { %3137 = vperm.xlu0 %5964, %v7156_v10   ;;  %v7159_v23 = vadd.f32 %v1140_v44, %v1084_v22  ;;  %v7161_v43 = vadd.f32 %v1141_v40, %v1085_v26  ;;  %v7163_v12 = vadd.f32 %v1142_v30, %v1086_v53  ;;  %v7165_v13 = vadd.f32 %v1143_v55, %v1087_v35  ;;  %v12381_v53 = vld [vmem:[#allocation12_spill] sm:$0xff]  ;;  %v12382_v35 = vld [vmem:[#allocation18_spill] sm:$0xff] }
 0x12f   : > { %v643_v32 = vmul.f32 %v6559_v57, %v12380_v54  ;;  %v644_v61 = vmul.f32 %v12325_v1, %v12380_v54  ;;  %v645_v18 = vmul.f32 %v6567_v47, %v12380_v54  ;;  %v646_v27 = vmul.f32 %v12332_v16, %v12380_v54  ;;  %v12387_v54 = vld [vmem:[#allocation5_spill] sm:$0xff] }
 0x130   : > { %v7175_v22 = vadd.f32 %v826_v56, %v770_v34  ;;  %v7177_v26 = vadd.f32 %v827_v25, %v771_v3  ;;  %v700_v30 = vadd.f32 %v12381_v53, %v655_v39  ;;  %v701_v55 = vadd.f32 %v12381_v53, %v656_v8  ;;  %2047 = vperm.xlu1 %5937, %v7156_v10   ;;  %v7189_v44 = vpop.permute.xlu0 %2593  ;;  %v2025_v39 = vld [vmem:[%s11536_s6] sm:$0xff]  ;;  %v12385_v25 = vld [vmem:[#allocation29_spill] sm:$0xff]  ;;  %v7202_v3 = vpop.permute.xlu1 %1317 }
 0x131   : > { %v702_v57 = vadd.f32 %v12381_v53, %v657_v11  ;;  %v703_v1 = vadd.f32 %v12381_v53, %v658_v52  ;;  %v756_v47 = vmul.f32 %v12346_v31, %v12382_v35  ;;  %v757_v16 = vmul.f32 %v12347_v59, %v12382_v35  ;;  %12384 = vst [vmem:[#allocation3_spill] sm:$0xff] %v7189_v44  ;;  %v7207_v11 = vld [vmem:[%s11533_s3 + $0x8] sm:$0xff] }
 0x132   : > { %v12383_v40 = vmov 15   ;;  %v758_v8 = vmul.f32 %v12350_v33, %v12382_v35  ;;  %v759_v56 = vmul.f32 %v12351_v5, %v12382_v35  ;;  %v832_v52 = vmul.f32 %v12362_v29, %v12385_v25  ;;  %12386 = vst [vmem:[#allocation12_spill] sm:$0xff] %v7202_v3 }
 0x133   : > { %5966 = vset.pattern.permute.xlu0 %v12383_v40  ;;  %v833_v34 = vmul.f32 %v12363_v49, %v12385_v25  ;;  %v688_v53 = vadd.f32 %v12387_v54, %v643_v32  ;;  %v689_v40 = vadd.f32 %v12387_v54, %v644_v61  ;;  %v690_v35 = vadd.f32 %v12387_v54, %v645_v18 }
 0x134   : > { %1777 = vperm.xlu0 %5966, %v7207_v11   ;;  %v691_v44 = vadd.f32 %v12387_v54, %v646_v27  ;;  %v776_v60 = vadd.f32 %v756_v47, %v700_v30  ;;  %v777_v48 = vadd.f32 %v757_v16, %v701_v55  ;;  %v834_v3 = vmul.f32 %v12364_v51, %v12385_v25  ;;  %v7226_v61 = vpop.permute.xlu0 %2605  ;;  %v2027_v30 = vld [vmem:[%s11536_s6 + $0x10] sm:$0xff] }
 0x135   : > { %v835_v45 = vmul.f32 %v6610_v6, %v12385_v25  ;;  %2093 = vperm.xlu1 %5937, %v2025_v39   ;;  %v744_v9 = vmul.f32 %v12346_v31, %v12388_v62  ;;  %v745_v32 = vmul.f32 %v12347_v59, %v12388_v62  ;;  %v746_v18 = vmul.f32 %v12350_v33, %v12388_v62  ;;  %v7252_v59 = vld [vmem:[%s11533_s3 + $0x20] sm:$0xf]  ;;  %v12391_v54 = vld [vmem:[#allocation24_spill] sm:$0xff] }
 0x136   : > { %v747_v27 = vmul.f32 %v12351_v5, %v12388_v62  ;;  %12389 = vst [vmem:[#allocation18_spill] sm:$0xff] %v7226_v61  ;;  %v7233_v55 = vrot.slane %v6543_v20, %v6789_v38  ;;  %v7237_v31 = vrot.slane %v6545_v41, %v6789_v38  ;;  %v7241_v33 = vrot.slane %v6547_v58, %v6789_v38  ;;  %v7247_v5 = vpop.permute.xlu1 %1325 }
 0x137   : > { %v7245_v62 = vrot.slane %v6549_v36, %v6789_v38  ;;  %12390 = vst [vmem:[#allocation29_spill] sm:$0xff] %v7247_v5  ;;  %v764_v20 = vadd.f32 %v744_v9, %v688_v53  ;;  %v765_v41 = vadd.f32 %v745_v32, %v689_v40  ;;  %v766_v47 = vadd.f32 %v746_v18, %v690_v35 }
 0x138   : > { %1789 = vperm.xlu0 %5966, %v7252_v59   ;;  %v767_v16 = vadd.f32 %v747_v27, %v691_v44  ;;  %v1216_v58 = vmul.f32 %v7233_v55, %v1182_v4  ;;  %v1217_v39 = vmul.f32 %v7237_v31, %v1182_v4  ;;  %v1218_v36 = vmul.f32 %v7241_v33, %v1182_v4  ;;  %v2029_v44 = vld [vmem:[%s11536_s6 + $0x20] sm:$0xf] }
 0x139   : > { %v1219_v25 = vmul.f32 %v7245_v62, %v1182_v4  ;;  %2103 = vperm.xlu1 %5937, %v2027_v30   ;;  %v820_v61 = vmul.f32 %v12362_v29, %v12391_v54  ;;  %v821_v38 = vmul.f32 %v12363_v49, %v12391_v54  ;;  %v822_v9 = vmul.f32 %v12364_v51, %v12391_v54  ;;  %v7279_v49 = vld [vmem:[%s11535_s5] sm:$0xff] }
 0x13a   : > { %v823_v40 = vmul.f32 %v6610_v6, %v12391_v54  ;;  %v1236_v53 = vadd.f32 %v1216_v58, %v7159_v23  ;;  %v1237_v4 = vadd.f32 %v1217_v39, %v7161_v43  ;;  %v1238_v35 = vadd.f32 %v1218_v36, %v7163_v12  ;;  %v7274_v32 = vpop.permute.xlu1 %1329  ;;  %v7282_v6 = vpop.permute.xlu0 %1245  ;;  %v12394_v12 = vld [vmem:[#allocation30_spill] sm:$0xff]  ;;  %v12395_v39 = vld [vmem:[#allocation32_spill] sm:$0xff] }
 0x13b   : > { %v1239_v29 = vadd.f32 %v1219_v25, %v7165_v13  ;;  %12392 = vst [vmem:[#allocation5_spill] sm:$0xff] %v7274_v32  ;;  %12393 = vst [vmem:[#allocation14_spill] sm:$0xff] %v7282_v6  ;;  %v778_v51 = vadd.f32 %v758_v8, %v702_v57  ;;  %v779_v18 = vadd.f32 %v759_v56, %v703_v1 }
 0x13c   : > { %3201 = vperm.xlu0 %5966, %v7279_v49   ;;  %v840_v23 = vadd.f32 %v820_v61, %v764_v20  ;;  %v841_v27 = vadd.f32 %v821_v38, %v765_v41  ;;  %v842_v43 = vadd.f32 %v822_v9, %v766_v47  ;;  %v843_v30 = vadd.f32 %v823_v40, %v767_v16 }
 0x13d   : > { %v896_v13 = vmul.f32 %v6733_v28, %v12394_v12  ;;  %v897_v58 = vmul.f32 %v6737_v7, %v12394_v12  ;;  %2113 = vperm.xlu1 %5937, %v2029_v44   ;;  %v904_v36 = vmul.f32 %v6733_v28, %v12395_v39  ;;  %v905_v25 = vmul.f32 %v6737_v7, %v12395_v39 }
 0x13e   : > { %v906_v57 = vmul.f32 %v6741_v50, %v12395_v39  ;;  %v907_v38 = vmul.f32 %v6745_v0, %v12395_v39  ;;  %v852_v1 = vadd.f32 %v832_v52, %v776_v60  ;;  %v853_v8 = vadd.f32 %v833_v34, %v777_v48  ;;  %v1258_v20 = vpop.permute.xlu0 %1257  ;;  %v7301_v9 = vpop.permute.xlu1 %1393  ;;  %v12397_v39 = vld [vmem:[#allocation33_spill] sm:$0xff] }
 0x13f   : > { %v898_v56 = vmul.f32 %v6741_v50, %v12394_v12  ;;  %v899_v61 = vmul.f32 %v6745_v0, %v12394_v12  ;;  %v854_v41 = vadd.f32 %v834_v3, %v778_v51  ;;  %v855_v47 = vadd.f32 %v835_v45, %v779_v18  ;;  %12396 = vst [vmem:[#allocation24_spill] sm:$0xff] %v7301_v9  ;;  %v7315_v51 = vld [vmem:[%s11535_s5 + $0x8] sm:$0xff] }
 0x140   : > { %3213 = vperm.xlu0 %5966, %v7156_v10   ;;  %v916_v16 = vadd.f32 %v896_v13, %v840_v23  ;;  %v917_v54 = vadd.f32 %v897_v58, %v841_v27  ;;  %v900_v60 = vmul.f32 %v6733_v28, %v12397_v39  ;;  %v901_v48 = vmul.f32 %v6737_v7, %v12397_v39 }
 0x141   : > { %v918_v40 = vadd.f32 %v898_v56, %v842_v43  ;;  %v919_v44 = vadd.f32 %v899_v61, %v843_v30  ;;  %v12398_v52 = vmov 1   ;;  %v924_v34 = vadd.f32 %v904_v36, %v7076_v17  ;;  %v12399_v17 = vld [vmem:[#allocation34_spill] sm:$0xff] }
 0x142   : > { %5939 = vset.pattern.permute.xlu1 %v12398_v52  ;;  %v925_v12 = vadd.f32 %v905_v25, %v7078_v2  ;;  %v926_v45 = vadd.f32 %v906_v57, %v7080_v15  ;;  %v927_v3 = vadd.f32 %v907_v38, %v7082_v21  ;;  %v902_v18 = vmul.f32 %v6741_v50, %v12397_v39  ;;  %v7327_v27 = vpop.permute.xlu0 %2669  ;;  %v7333_v36 = vpop.permute.xlu1 %1401 }
 0x143   : > { %2141 = vperm.xlu1 %5939, %v7315_v51   ;;  %v903_v23 = vmul.f32 %v6745_v0, %v12397_v39  ;;  %v908_v2 = vmul.f32 %v6733_v28, %v12399_v17  ;;  %v909_v15 = vmul.f32 %v6737_v7, %v12399_v17  ;;  %v12400_v21 = vmov 16   ;;  %12401 = vst [vmem:[#allocation30_spill] sm:$0xff] %v7327_v27  ;;  %12402 = vst [vmem:[#allocation32_spill] sm:$0xff] %v7333_v36  ;;  %v12403_v39 = vld [vmem:[#allocation41_spill] sm:$0xff] }
 0x144   : > { %5968 = vset.pattern.permute.xlu0 %v12400_v21  ;;  %v1292_v43 = vmul.f32 %v6794_v14, %v1258_v20  ;;  %v1293_v30 = vmul.f32 %v6798_v46, %v1258_v20  ;;  %v1294_v13 = vmul.f32 %v6803_v37, %v1258_v20  ;;  %v1295_v58 = vmul.f32 %v6807_v42, %v1258_v20 }
 0x145   : > { %1853 = vperm.xlu0 %5968, %v7207_v11   ;;  %v920_v28 = vadd.f32 %v900_v60, %v7145_v19  ;;  %v7338_v7 = vadd.f32 %v901_v48, %v7147_v24  ;;  %v910_v25 = vmul.f32 %v6741_v50, %v12399_v17  ;;  %v911_v57 = vmul.f32 %v6745_v0, %v12399_v17  ;;  %v12404_v60 = vld [vmem:[#allocation66_spill] sm:$0xff]  ;;  %v12408_v17 = vld [vmem:[#allocation69_spill] sm:$0xff] }
 0x146   : > { %v7344_v38 = vadd.f32 %v1292_v43, %v1236_v53  ;;  %v7346_v56 = vadd.f32 %v1293_v30, %v1237_v4  ;;  %v7348_v61 = vadd.f32 %v1294_v13, %v1238_v35  ;;  %v7350_v20 = vadd.f32 %v1295_v58, %v1239_v29  ;;  %v7361_v53 = vpop.permute.xlu0 %2681  ;;  %v12406_v4 = vld [vmem:[#allocation67_spill] sm:$0xff]  ;;  %v12407_v29 = vld [vmem:[#allocation68_spill] sm:$0xff] }
 0x147   : > { %2145 = vperm.xlu1 %5939, %v7112_v63   ;;  %v7354_v19 = vadd.f32 %v902_v18, %v7175_v22  ;;  %v7357_v24 = vadd.f32 %v903_v23, %v7177_v26  ;;  %v928_v50 = vadd.f32 %v908_v2, %v852_v1  ;;  %v972_v0 = vmul.f32 %v12404_v60, %v12403_v39  ;;  %v12409_v22 = vld [vmem:[#allocation46_spill] sm:$0xff]  ;;  %v7371_v26 = vpop.permute.xlu1 %1405 }
 0x148   : > { %12405 = vst [vmem:[#allocation33_spill] sm:$0xff] %v7361_v53  ;;  %v973_v35 = vmul.f32 %v12406_v4, %v12403_v39  ;;  %v974_v48 = vmul.f32 %v12407_v29, %v12403_v39  ;;  %v975_v43 = vmul.f32 %v12408_v17, %v12403_v39  ;;  %v980_v18 = vmul.f32 %v12404_v60, %v12409_v22  ;;  %v12411_v39 = vld [vmem:[#allocation48_spill] sm:$0xff] }
 0x149   : > { %12410 = vst [vmem:[#allocation34_spill] sm:$0xff] %v7371_v26  ;;  %1865 = vperm.xlu0 %5968, %v7252_v59   ;;  %v929_v1 = vadd.f32 %v909_v15, %v853_v8  ;;  %v981_v23 = vmul.f32 %v12406_v4, %v12409_v22  ;;  %v982_v2 = vmul.f32 %v12407_v29, %v12409_v22  ;;  %v7387_v8 = vld [vmem:[%s11535_s5 + $0x20] sm:$0xf] }
 0x14a   : > { %v983_v30 = vmul.f32 %v12408_v17, %v12409_v22  ;;  %v930_v13 = vadd.f32 %v910_v25, %v854_v41  ;;  %v931_v58 = vadd.f32 %v911_v57, %v855_v47  ;;  %v984_v52 = vmul.f32 %v12404_v60, %v12411_v39  ;;  %v12412_v47 = vld [vmem:[#allocation49_spill] sm:$0xff]  ;;  %v7397_v36 = vpop.permute.xlu0 %1321 }
 0x14b   : > { %v985_v53 = vmul.f32 %v12406_v4, %v12411_v39  ;;  %2153 = vperm.xlu1 %5939, %v7387_v8   ;;  %v992_v15 = vadd.f32 %v972_v0, %v916_v16  ;;  %v986_v21 = vmul.f32 %v12407_v29, %v12411_v39  ;;  %v987_v41 = vmul.f32 %v12408_v17, %v12411_v39  ;;  %v7401_v32 = vpop.permute.xlu1 %1469 }
 0x14c   : > { %v976_v25 = vmul.f32 %v12404_v60, %v12412_v47  ;;  %v993_v57 = vadd.f32 %v973_v35, %v917_v54  ;;  %v994_v22 = vadd.f32 %v974_v48, %v918_v40  ;;  %v995_v27 = vadd.f32 %v975_v43, %v919_v44  ;;  %12413 = vst [vmem:[#allocation41_spill] sm:$0xff] %v7397_v36 }
 0x14d   : > { %v1000_v26 = vadd.f32 %v980_v18, %v924_v34  ;;  %3277 = vperm.xlu0 %5968, %v7279_v49   ;;  %v1001_v9 = vadd.f32 %v981_v23, %v925_v12  ;;  %v1002_v6 = vadd.f32 %v982_v2, %v926_v45  ;;  %v1003_v16 = vadd.f32 %v983_v30, %v927_v3  ;;  %v12416_v45 = vld [vmem:[#allocation50_spill] sm:$0xff]  ;;  %v12417_v3 = vld [vmem:[#allocation39_spill] sm:$0xff]  ;;  %v12424_v2 = vld [vmem:[#allocation64_spill] sm:$0xff] }
 0x14e   : > { %v977_v0 = vmul.f32 %v12406_v4, %v12412_v47  ;;  %12414 = vst [vmem:[#allocation66_spill] sm:$0xff] %v7401_v32  ;;  %v1004_v39 = vadd.f32 %v984_v52, %v928_v50  ;;  %v1005_v5 = vadd.f32 %v985_v53, %v929_v1  ;;  %v978_v54 = vmul.f32 %v12407_v29, %v12412_v47  ;;  %v12418_v4 = vld [vmem:[#allocation40_spill] sm:$0xff]  ;;  %v12420_v29 = vld [vmem:[#allocation101_spill] sm:$0xff]  ;;  %v12423_v1 = vld [vmem:[#allocation63_spill] sm:$0xff] }
 0x14f   : > { %v979_v40 = vmul.f32 %v12408_v17, %v12412_v47  ;;  %v12415_v44 = vmov 2   ;;  %v1006_v34 = vadd.f32 %v986_v21, %v930_v13  ;;  %v1007_v60 = vadd.f32 %v987_v41, %v931_v58  ;;  %v12419_v50 = vld [vmem:[#allocation100_spill] sm:$0xff]  ;;  %v1334_v21 = vpop.permute.xlu0 %1333  ;;  %v12425_v13 = vld [vmem:[#allocation65_spill] sm:$0xff]  ;;  %v7424_v41 = vpop.permute.xlu1 %1477 }
 0x150   : > { %5942 = vset.pattern.permute.xlu1 %v12415_v44  ;;  %v996_v12 = vadd.f32 %v976_v25, %v920_v28  ;;  %v1048_v35 = vmul.f32 %v12417_v3, %v12416_v45  ;;  %v1049_v52 = vmul.f32 %v12418_v4, %v12416_v45  ;;  %v1050_v53 = vmul.f32 %v12419_v50, %v12416_v45  ;;  %v12421_v17 = vld [vmem:[#allocation52_spill] sm:$0xff]  ;;  %v12422_v28 = vld [vmem:[#allocation62_spill] sm:$0xff] }
 0x151   : > { %2217 = vperm.xlu1 %5942, %v7315_v51   ;;  %v1051_v48 = vmul.f32 %v12420_v29, %v12416_v45  ;;  %v1056_v43 = vmul.f32 %v12417_v3, %v12421_v17  ;;  %3289 = vperm.xlu0 %5968, %v7156_v10   ;;  %v1368_v18 = vmul.f32 %v12422_v28, %v1334_v21  ;;  %v12427_v44 = vld [vmem:[#allocation54_spill] sm:$0xff] }
 0x152   : > { %v1369_v23 = vmul.f32 %v12423_v1, %v1334_v21  ;;  %v1370_v30 = vmul.f32 %v12424_v2, %v1334_v21  ;;  %v1371_v58 = vmul.f32 %v12425_v13, %v1334_v21  ;;  %12426 = vst [vmem:[#allocation67_spill] sm:$0xff] %v7424_v41  ;;  %v1057_v47 = vmul.f32 %v12418_v4, %v12421_v17 }
 0x153   : > { %v1058_v25 = vmul.f32 %v12419_v50, %v12421_v17  ;;  %v1059_v45 = vmul.f32 %v12420_v29, %v12421_v17  ;;  %v1060_v32 = vmul.f32 %v12417_v3, %v12427_v44  ;;  %v7435_v36 = vadd.f32 %v1368_v18, %v7344_v38  ;;  %v7451_v18 = vpop.permute.xlu0 %2745 }
 0x154   : > { %v7438_v2 = vadd.f32 %v1369_v23, %v7346_v56  ;;  %v7441_v21 = vadd.f32 %v1370_v30, %v7348_v61  ;;  %v7444_v41 = vadd.f32 %v1371_v58, %v7350_v20  ;;  %v997_v13 = vadd.f32 %v977_v0, %v7338_v7  ;;  %12429 = vst [vmem:[#allocation68_spill] sm:$0xff] %v7451_v18  ;;  %v7455_v30 = vpop.permute.xlu1 %1481 }
 0x155   : > { %2221 = vperm.xlu1 %5942, %v7112_v63   ;;  %v998_v17 = vadd.f32 %v978_v54, %v7354_v19  ;;  %v999_v1 = vadd.f32 %v979_v40, %v7357_v24  ;;  %v1068_v28 = vadd.f32 %v1048_v35, %v992_v15  ;;  %v12428_v38 = vmov 17   ;;  %12430 = vst [vmem:[#allocation69_spill] sm:$0xff] %v7455_v30  ;;  %v12432_v40 = vld [vmem:[#allocation56_spill] sm:$0xff]  ;;  %v12433_v35 = vld [vmem:[#allocation13_spill] sm:$0xff] }
 0x156   : > { %5970 = vset.pattern.permute.xlu0 %v12428_v38  ;;  %v1069_v56 = vadd.f32 %v1049_v52, %v993_v57  ;;  %v1070_v23 = vadd.f32 %v1050_v53, %v994_v22  ;;  %v1071_v61 = vadd.f32 %v1051_v48, %v995_v27  ;;  %v1061_v20 = vmul.f32 %v12418_v4, %v12427_v44  ;;  %v12431_v22 = vld [vmem:[#allocation57_spill] sm:$0xff]  ;;  %v12438_v48 = vld [vmem:[#allocation58_spill] sm:$0xff] }
 0x157   : > { %1929 = vperm.xlu0 %5970, %v7207_v11   ;;  %v1076_v7 = vadd.f32 %v1056_v43, %v1000_v26  ;;  %v1077_v0 = vadd.f32 %v1057_v47, %v1001_v9  ;;  %v1062_v19 = vmul.f32 %v12419_v50, %v12427_v44  ;;  %v1063_v24 = vmul.f32 %v12420_v29, %v12427_v44 }
 0x158   : > { %v1078_v15 = vadd.f32 %v1058_v25, %v1002_v6  ;;  %v1079_v54 = vadd.f32 %v1059_v45, %v1003_v16  ;;  %v1080_v57 = vadd.f32 %v1060_v32, %v1004_v39  ;;  %v1052_v27 = vmul.f32 %v12417_v3, %v12431_v22  ;;  %v7473_v6 = vpop.permute.xlu0 %2757  ;;  %v12435_v32 = vld [vmem:[#allocation28_spill] sm:$0xff]  ;;  %v12436_v39 = vld [vmem:[#allocation103_spill] sm:$0xff]  ;;  %v7490_v47 = vpop.permute.xlu1 %1545 }
 0x159   : > { %2229 = vperm.xlu1 %5942, %v7387_v8   ;;  %v1124_v52 = vmul.f32 %v12433_v35, %v12432_v40  ;;  %v1053_v11 = vmul.f32 %v12418_v4, %v12431_v22  ;;  %v1054_v9 = vmul.f32 %v12419_v50, %v12431_v22  ;;  %v1055_v26 = vmul.f32 %v12420_v29, %v12431_v22  ;;  %v12437_v3 = vld [vmem:[#allocation104_spill] sm:$0xff] }
 0x15a   : > { %12434 = vst [vmem:[#allocation46_spill] sm:$0xff] %v7473_v6  ;;  %v1125_v16 = vmul.f32 %v12435_v32, %v12432_v40  ;;  %v1126_v44 = vmul.f32 %v12436_v39, %v12432_v40  ;;  %v1127_v53 = vmul.f32 %v12437_v3, %v12432_v40  ;;  %v1132_v4 = vmul.f32 %v12433_v35, %v12438_v48  ;;  %v12440_v40 = vld [vmem:[#allocation70_spill] sm:$0xff] }
 0x15b   : > { %1941 = vperm.xlu0 %5970, %v7252_v59   ;;  %v1081_v50 = vadd.f32 %v1061_v20, %v1005_v5  ;;  %v1133_v29 = vmul.f32 %v12435_v32, %v12438_v48  ;;  %v1134_v43 = vmul.f32 %v12436_v39, %v12438_v48  ;;  %v1135_v58 = vmul.f32 %v12437_v3, %v12438_v48 }
 0x15c   : > { %12439 = vst [vmem:[#allocation48_spill] sm:$0xff] %v7490_v47  ;;  %v1082_v25 = vadd.f32 %v1062_v19, %v1006_v34  ;;  %v1083_v45 = vadd.f32 %v1063_v24, %v1007_v60  ;;  %v1072_v22 = vadd.f32 %v1052_v27, %v996_v12  ;;  %v1136_v6 = vmul.f32 %v12433_v35, %v12440_v40  ;;  %v7497_v34 = vpop.permute.xlu0 %1397 }
 0x15d   : > { %v12441_v38 = vmov 3   ;;  %v1144_v5 = vadd.f32 %v1124_v52, %v1068_v28  ;;  %v1073_v59 = vadd.f32 %v1053_v11, %v997_v13  ;;  %v1074_v20 = vadd.f32 %v1054_v9, %v998_v17  ;;  %12442 = vst [vmem:[#allocation49_spill] sm:$0xff] %v7497_v34  ;;  %v7501_v28 = vpop.permute.xlu1 %1553  ;;  %v12446_v9 = vld [vmem:[#allocation72_spill] sm:$0xff] }
 0x15e   : > { %5943 = vset.pattern.permute.xlu1 %v12441_v38  ;;  %v1075_v18 = vadd.f32 %v1055_v26, %v999_v1  ;;  %v1145_v30 = vadd.f32 %v1125_v16, %v1069_v56  ;;  %v1146_v42 = vadd.f32 %v1126_v44, %v1070_v23  ;;  %v1147_v37 = vadd.f32 %v1127_v53, %v1071_v61  ;;  %v12444_v56 = vld [vmem:[#allocation82_spill] sm:$0xff]  ;;  %v12448_v44 = vld [vmem:[#allocation76_spill] sm:$0xff]  ;;  %v12449_v53 = vld [vmem:[#allocation77_spill] sm:$0xff] }
 0x15f   : > { %2293 = vperm.xlu1 %5943, %v7315_v51   ;;  %v1152_v48 = vadd.f32 %v1132_v4, %v1076_v7  ;;  %3353 = vperm.xlu0 %5970, %v7279_v49   ;;  %v1153_v60 = vadd.f32 %v1133_v29, %v1077_v0  ;;  %v1154_v12 = vadd.f32 %v1134_v43, %v1078_v15  ;;  %v12445_v15 = vld [vmem:[#allocation85_spill] sm:$0xff]  ;;  %v11750_v47 = vmov 18  }
 0x160   : > { %v1155_v19 = vadd.f32 %v1135_v58, %v1079_v54  ;;  %v1137_v24 = vmul.f32 %v12435_v32, %v12440_v40  ;;  %12443 = vst [vmem:[#allocation50_spill] sm:$0xff] %v7501_v28  ;;  %v1138_v1 = vmul.f32 %v12436_v39, %v12440_v40  ;;  %v1139_v13 = vmul.f32 %v12437_v3, %v12440_v40  ;;  %v1410_v11 = vpop.permute.xlu0 %1409 }
 0x161   : > { %v7507_v17 = vadd.f32 %v1136_v6, %v1080_v57  ;;  %v1200_v23 = vmul.f32 %v7233_v55, %v12444_v56  ;;  %v1201_v61 = vmul.f32 %v7237_v31, %v12444_v56  ;;  %v1202_v7 = vmul.f32 %v7241_v33, %v12444_v56  ;;  %v12447_v6 = vld [vmem:[#allocation73_spill] sm:$0xff]  ;;  %v7531_v29 = vpop.permute.xlu1 %1557 }
 0x162   : > { %v1203_v0 = vmul.f32 %v7245_v62, %v12444_v56  ;;  %v1128_v54 = vmul.f32 %v12433_v35, %v12445_v15  ;;  %v1129_v57 = vmul.f32 %v12435_v32, %v12445_v15  ;;  %v1130_v27 = vmul.f32 %v12436_v39, %v12445_v15  ;;  %12450 = vst [vmem:[#allocation39_spill] sm:$0xff] %v7531_v29  ;;  %v12451_v32 = vld [vmem:[#allocation36_spill] sm:$0xff] }
 0x163   : > { %2297 = vperm.xlu1 %5943, %v7112_v63   ;;  %v1131_v52 = vmul.f32 %v12437_v3, %v12445_v15  ;;  %3365 = vperm.xlu0 %5970, %v7156_v10   ;;  %v1444_v26 = vmul.f32 %v12446_v9, %v1410_v11  ;;  %v1445_v16 = vmul.f32 %v12447_v6, %v1410_v11 }
 0x164   : > { %v1446_v35 = vmul.f32 %v12448_v44, %v1410_v11  ;;  %v1447_v4 = vmul.f32 %v12449_v53, %v1410_v11  ;;  %v1208_v43 = vmul.f32 %v7233_v55, %v12451_v32  ;;  %v1209_v39 = vmul.f32 %v7237_v31, %v12451_v32 }
 0x165   : > { %v1210_v3 = vmul.f32 %v7241_v33, %v12451_v32  ;;  %v1211_v58 = vmul.f32 %v7245_v62, %v12451_v32  ;;  %v7542_v40 = vadd.f32 %v1444_v26, %v7435_v36  ;;  %v7545_v56 = vadd.f32 %v1445_v16, %v7438_v2  ;;  %v7555_v36 = vpop.permute.xlu0 %2821  ;;  %v7558_v53 = vpop.permute.xlu1 %1621 }
 0x166   : > { %v7548_v15 = vadd.f32 %v1446_v35, %v7441_v21  ;;  %v7551_v11 = vadd.f32 %v1447_v4, %v7444_v41  ;;  %v1157_v38 = vadd.f32 %v1137_v24, %v1081_v50  ;;  %v1158_v29 = vadd.f32 %v1138_v1, %v1082_v25  ;;  %12452 = vst [vmem:[#allocation40_spill] sm:$0xff] %v7555_v36 }
 0x167   : > { %2305 = vperm.xlu1 %5943, %v7387_v8   ;;  %v1159_v28 = vadd.f32 %v1139_v13, %v1083_v45  ;;  %v1220_v34 = vadd.f32 %v1200_v23, %v1144_v5  ;;  %5972 = vset.pattern.permute.xlu0 %v11750_v47  ;;  %v1221_v26 = vadd.f32 %v1201_v61, %v1145_v30  ;;  %v12454_v5 = vld [vmem:[#allocation38_spill] sm:$0xff]  ;;  %v12455_v1 = vmov 4   ;;  %v12456_v30 = vld [vmem:[#allocation27_spill] sm:$0xff]  ;;  %v12460_v13 = vld [vmem:[#allocation45_spill] sm:$0xff] }
 0x168   : > { %v1222_v2 = vadd.f32 %v1202_v7, %v1146_v42  ;;  %v1223_v16 = vadd.f32 %v1203_v0, %v1147_v37  ;;  %v1148_v32 = vadd.f32 %v1128_v54, %v1072_v22  ;;  %3429 = vperm.xlu0 %5972, %v7279_v49   ;;  %v1149_v21 = vadd.f32 %v1129_v57, %v1073_v59  ;;  %v12462_v57 = vld [vmem:[#allocation11_spill] sm:$0xff] }
 0x169   : > { %v1150_v41 = vadd.f32 %v1130_v27, %v1074_v20  ;;  %v1151_v35 = vadd.f32 %v1131_v52, %v1075_v18  ;;  %v1228_v4 = vadd.f32 %v1208_v43, %v1152_v48  ;;  %12453 = vst [vmem:[#allocation100_spill] sm:$0xff] %v7558_v53  ;;  %v1229_v50 = vadd.f32 %v1209_v39, %v1153_v60  ;;  %v7572_v59 = vpop.permute.xlu0 %2833  ;;  %v12458_v48 = vld [vmem:[#allocation60_spill] sm:$0xff]  ;;  %v7589_v54 = vpop.permute.xlu1 %1629 }
 0x16a   : > { %v1230_v25 = vadd.f32 %v1210_v3, %v1154_v12  ;;  %v1231_v45 = vadd.f32 %v1211_v58, %v1155_v19  ;;  %v1212_v24 = vmul.f32 %v7233_v55, %v12454_v5  ;;  %v1213_v37 = vmul.f32 %v7237_v31, %v12454_v5  ;;  %12457 = vst [vmem:[#allocation101_spill] sm:$0xff] %v7572_v59  ;;  %v12459_v12 = vld [vmem:[#allocation61_spill] sm:$0xff] }
 0x16b   : > { %5945 = vset.pattern.permute.xlu1 %v12455_v1  ;;  %v1214_v42 = vmul.f32 %v7241_v33, %v12454_v5  ;;  %v1215_v18 = vmul.f32 %v7245_v62, %v12454_v5  ;;  %v1276_v22 = vmul.f32 %v6794_v14, %v12456_v30  ;;  %v1277_v20 = vmul.f32 %v6798_v46, %v12456_v30 }
 0x16c   : > { %2369 = vperm.xlu1 %5945, %v7315_v51   ;;  %v1278_v60 = vmul.f32 %v12458_v48, %v12456_v30  ;;  %v1279_v19 = vmul.f32 %v12459_v12, %v12456_v30  ;;  %v1284_v23 = vmul.f32 %v6794_v14, %v12460_v13  ;;  %3441 = vperm.xlu0 %5972, %v7156_v10   ;;  %v11755_v59 = vmov 19  }
 0x16d   : > { %v1285_v61 = vmul.f32 %v6798_v46, %v12460_v13  ;;  %v1286_v7 = vmul.f32 %v12458_v48, %v12460_v13  ;;  %v1287_v0 = vmul.f32 %v12459_v12, %v12460_v13  ;;  %12461 = vst [vmem:[#allocation52_spill] sm:$0xff] %v7589_v54  ;;  %v1204_v27 = vmul.f32 %v7233_v55, %v12462_v57 }
 0x16e   : > { %v1205_v52 = vmul.f32 %v7237_v31, %v12462_v57  ;;  %v1206_v43 = vmul.f32 %v7241_v33, %v12462_v57  ;;  %v1207_v39 = vmul.f32 %v7245_v62, %v12462_v57  ;;  %v1232_v3 = vadd.f32 %v1212_v24, %v7507_v17  ;;  %v7602_v31 = vpop.permute.xlu0 %1473  ;;  %v7604_v57 = vpop.permute.xlu1 %1633  ;;  %v12470_v24 = vld [vmem:[#allocation65_spill] sm:$0xff] }
 0x16f   : > { %v1233_v58 = vadd.f32 %v1213_v37, %v1157_v38  ;;  %v1234_v5 = vadd.f32 %v1214_v42, %v1158_v29  ;;  %v1235_v30 = vadd.f32 %v1215_v18, %v1159_v28  ;;  %v1296_v13 = vadd.f32 %v1276_v22, %v1220_v34  ;;  %12463 = vst [vmem:[#allocation54_spill] sm:$0xff] %v7602_v31  ;;  %v12465_v29 = vld [vmem:[#allocation4_spill] sm:$0xff]  ;;  %v12471_v18 = vld [vmem:[#allocation86_spill] sm:$0xff] }
 0x170   : > { %2373 = vperm.xlu1 %5945, %v7112_v63   ;;  %v1297_v47 = vadd.f32 %v1277_v20, %v1221_v26  ;;  %v1298_v1 = vadd.f32 %v1278_v60, %v1222_v2  ;;  %v1299_v55 = vadd.f32 %v1279_v19, %v1223_v16  ;;  %5974 = vset.pattern.permute.xlu0 %v11755_v59  ;;  %v12472_v20 = vld [vmem:[#allocation87_spill] sm:$0xff] }
 0x171   : > { %v1304_v33 = vadd.f32 %v1284_v23, %v1228_v4  ;;  %v1305_v36 = vadd.f32 %v1285_v61, %v1229_v50  ;;  %v1306_v54 = vadd.f32 %v1286_v7, %v1230_v25  ;;  %v1307_v62 = vadd.f32 %v1287_v0, %v1231_v45  ;;  %12464 = vst [vmem:[#allocation57_spill] sm:$0xff] %v7604_v57  ;;  %v12469_v25 = vld [vmem:[#allocation64_spill] sm:$0xff]  ;;  %v12473_v19 = vld [vmem:[#allocation35_spill] sm:$0xff]  ;;  %v12475_v0 = vld [vmem:[#allocation29_spill] sm:$0xff] }
 0x172   : > { %3505 = vperm.xlu0 %5974, %v7279_v49   ;;  %v7607_v38 = vadd.f32 %v1204_v27, %v1148_v32  ;;  %v7609_v28 = vadd.f32 %v1205_v52, %v1149_v21  ;;  %v7611_v34 = vadd.f32 %v1206_v43, %v1150_v41  ;;  %v7613_v17 = vadd.f32 %v1207_v39, %v1151_v35  ;;  %v12466_v32 = vld [vmem:[#allocation12_spill] sm:$0xff]  ;;  %v12467_v21 = vld [vmem:[#allocation62_spill] sm:$0xff]  ;;  %v12468_v35 = vld [vmem:[#allocation63_spill] sm:$0xff]  ;;  %v1486_v42 = vpop.permute.xlu0 %1485  ;;  %v7643_v39 = vpop.permute.xlu1 %1697 }
 0x173   : > { %v1288_v26 = vmul.f32 %v6794_v14, %v12465_v29  ;;  %v1289_v2 = vmul.f32 %v6798_v46, %v12465_v29  ;;  %v1290_v16 = vmul.f32 %v12458_v48, %v12465_v29  ;;  %v1291_v4 = vmul.f32 %v12459_v12, %v12465_v29  ;;  %v12474_v61 = vld [vmem:[#allocation88_spill] sm:$0xff]  ;;  %12476 = vst [vmem:[#allocation56_spill] sm:$0xff] %v7643_v39 }
 0x174   : > { %2381 = vperm.xlu1 %5945, %v7387_v8   ;;  %v1352_v41 = vmul.f32 %v12467_v21, %v12466_v32  ;;  %v1353_v50 = vmul.f32 %v12468_v35, %v12466_v32  ;;  %v1354_v45 = vmul.f32 %v12469_v25, %v12466_v32  ;;  %v1355_v37 = vmul.f32 %v12470_v24, %v12466_v32 }
 0x175   : > { %v1520_v22 = vmul.f32 %v12471_v18, %v1486_v42  ;;  %v1521_v60 = vmul.f32 %v12472_v20, %v1486_v42  ;;  %v1522_v23 = vmul.f32 %v12473_v19, %v1486_v42  ;;  %v1523_v7 = vmul.f32 %v12474_v61, %v1486_v42 }
 0x176   : > { %3517 = vperm.xlu0 %5974, %v7156_v10   ;;  %v1360_v27 = vmul.f32 %v12467_v21, %v12475_v0  ;;  %v1361_v52 = vmul.f32 %v12468_v35, %v12475_v0  ;;  %v1362_v43 = vmul.f32 %v12469_v25, %v12475_v0  ;;  %v12477_v57 = vmov 5  }
 0x177   : > { %v7646_v29 = vadd.f32 %v1520_v22, %v7542_v40  ;;  %v7649_v32 = vadd.f32 %v1521_v60, %v7545_v56  ;;  %v7652_v42 = vadd.f32 %v1522_v23, %v7548_v15  ;;  %v7655_v59 = vadd.f32 %v1523_v7, %v7551_v11  ;;  %v7661_v40 = vpop.permute.xlu0 %2897  ;;  %v12479_v15 = vld [vmem:[#allocation5_spill] sm:$0xff] }
 0x178   : > { %5948 = vset.pattern.permute.xlu1 %v12477_v57  ;;  %v1308_v31 = vadd.f32 %v1288_v26, %v1232_v3  ;;  %v1309_v53 = vadd.f32 %v1289_v2, %v1233_v58  ;;  %v1310_v61 = vadd.f32 %v1290_v16, %v1234_v5  ;;  %v1363_v39 = vmul.f32 %v12470_v24, %v12475_v0  ;;  %v7670_v26 = vpop.permute.xlu1 %1705 }
 0x179   : > { %2445 = vperm.xlu1 %5948, %v7315_v51   ;;  %12478 = vst [vmem:[#allocation13_spill] sm:$0xff] %v7661_v40  ;;  %v1311_v56 = vadd.f32 %v1291_v4, %v1235_v30  ;;  %v1372_v22 = vadd.f32 %v1352_v41, %v1296_v13  ;;  %v1373_v60 = vadd.f32 %v1353_v50, %v1297_v47  ;;  %v11761_v11 = vmov 20   ;;  %12480 = vst [vmem:[#allocation28_spill] sm:$0xff] %v7670_v26  ;;  %v12481_v4 = vld [vmem:[#allocation14_spill] sm:$0xff] }
 0x17a   : > { %v1364_v23 = vmul.f32 %v12467_v21, %v12479_v15  ;;  %5976 = vset.pattern.permute.xlu0 %v11761_v11  ;;  %v1374_v7 = vadd.f32 %v1354_v45, %v1298_v1  ;;  %v1375_v3 = vadd.f32 %v1355_v37, %v1299_v55  ;;  %v1365_v58 = vmul.f32 %v12468_v35, %v12479_v15 }
 0x17b   : > { %v1366_v5 = vmul.f32 %v12469_v25, %v12479_v15  ;;  %3581 = vperm.xlu0 %5976, %v7279_v49   ;;  %v1380_v30 = vadd.f32 %v1360_v27, %v1304_v33  ;;  %v1381_v47 = vadd.f32 %v1361_v52, %v1305_v36  ;;  %v1382_v13 = vadd.f32 %v1362_v43, %v1306_v54  ;;  %v7682_v50 = vpop.permute.xlu0 %2909  ;;  %v12483_v54 = vld [vmem:[#allocation24_spill] sm:$0xff] }
 0x17c   : > { %v1367_v2 = vmul.f32 %v12470_v24, %v12479_v15  ;;  %v1383_v16 = vadd.f32 %v1363_v39, %v1307_v62  ;;  %v1280_v1 = vmul.f32 %v6794_v14, %v12481_v4  ;;  %v1281_v55 = vmul.f32 %v6798_v46, %v12481_v4  ;;  %12482 = vst [vmem:[#allocation103_spill] sm:$0xff] %v7682_v50  ;;  %v7694_v27 = vpop.permute.xlu1 %1709 }
 0x17d   : > { %v1282_v41 = vmul.f32 %v12458_v48, %v12481_v4  ;;  %2449 = vperm.xlu1 %5948, %v7112_v63   ;;  %v1384_v33 = vadd.f32 %v1364_v23, %v1308_v31  ;;  %v1283_v36 = vmul.f32 %v12459_v12, %v12481_v4  ;;  %v1428_v62 = vmul.f32 %v12446_v9, %v12483_v54  ;;  %v12484_v48 = vld [vmem:[#allocation77_spill] sm:$0xff]  ;;  %v12486_v12 = vld [vmem:[#allocation32_spill] sm:$0xff] }
 0x17e   : > { %v1429_v14 = vmul.f32 %v12447_v6, %v12483_v54  ;;  %v1385_v45 = vadd.f32 %v1365_v58, %v1309_v53  ;;  %v1386_v37 = vadd.f32 %v1366_v5, %v1310_v61  ;;  %v1430_v46 = vmul.f32 %v12448_v44, %v12483_v54  ;;  %12485 = vst [vmem:[#allocation104_spill] sm:$0xff] %v7694_v27 }
 0x17f   : > { %v1431_v0 = vmul.f32 %v12484_v48, %v12483_v54  ;;  %3593 = vperm.xlu0 %5976, %v7156_v10   ;;  %v1387_v31 = vadd.f32 %v1367_v2, %v1311_v56  ;;  %v1436_v52 = vmul.f32 %v12446_v9, %v12486_v12  ;;  %v1437_v43 = vmul.f32 %v12447_v6, %v12486_v12  ;;  %v7710_v2 = vpop.permute.xlu0 %1549 }
 0x180   : > { %v1300_v53 = vadd.f32 %v1280_v1, %v7607_v38  ;;  %v1301_v61 = vadd.f32 %v1281_v55, %v7609_v28  ;;  %v1438_v39 = vmul.f32 %v12448_v44, %v12486_v12  ;;  %v1439_v15 = vmul.f32 %v12484_v48, %v12486_v12  ;;  %12487 = vst [vmem:[#allocation58_spill] sm:$0xff] %v7710_v2  ;;  %v12488_v1 = vld [vmem:[#allocation34_spill] sm:$0xff] }
 0x181   : > { %2457 = vperm.xlu1 %5948, %v7387_v8   ;;  %v1302_v56 = vadd.f32 %v1282_v41, %v7611_v34  ;;  %v1303_v23 = vadd.f32 %v1283_v36, %v7613_v17  ;;  %v1448_v58 = vadd.f32 %v1428_v62, %v1372_v22  ;;  %v1449_v5 = vadd.f32 %v1429_v14, %v1373_v60  ;;  %v7721_v22 = vpop.permute.xlu1 %1773  ;;  %v12492_v14 = vld [vmem:[#allocation66_spill] sm:$0xff] }
 0x182   : > { %v1450_v4 = vadd.f32 %v1430_v46, %v1374_v7  ;;  %v1451_v38 = vadd.f32 %v1431_v0, %v1375_v3  ;;  %v1440_v28 = vmul.f32 %v12446_v9, %v12488_v1  ;;  %v1441_v55 = vmul.f32 %v12447_v6, %v12488_v1  ;;  %12489 = vst [vmem:[#allocation70_spill] sm:$0xff] %v7721_v22  ;;  %v12490_v3 = vld [vmem:[#allocation41_spill] sm:$0xff] }
 0x183   : > { %v11763_v54 = vmov 21   ;;  %v1456_v12 = vadd.f32 %v1436_v52, %v1380_v30  ;;  %v1457_v11 = vadd.f32 %v1437_v43, %v1381_v47  ;;  %v1442_v34 = vmul.f32 %v12448_v44, %v12488_v1  ;;  %v12495_v43 = vld [vmem:[#allocation91_spill] sm:$0xff] }
 0x184   : > { %5978 = vset.pattern.permute.xlu0 %v11763_v54  ;;  %v1443_v17 = vmul.f32 %v12484_v48, %v12488_v1  ;;  %v1458_v60 = vadd.f32 %v1438_v39, %v1382_v13  ;;  %v1459_v7 = vadd.f32 %v1439_v15, %v1383_v16  ;;  %v1356_v41 = vmul.f32 %v12467_v21, %v12490_v3  ;;  %v1562_v21 = vpop.permute.xlu0 %1561  ;;  %v12493_v16 = vld [vmem:[#allocation89_spill] sm:$0xff]  ;;  %v12496_v15 = vld [vmem:[#allocation92_spill] sm:$0xff]  ;;  %v12498_v54 = vld [vmem:[#allocation67_spill] sm:$0xff] }
 0x185   : > { %3657 = vperm.xlu0 %5978, %v7279_v49   ;;  %v1357_v36 = vmul.f32 %v12468_v35, %v12490_v3  ;;  %v12491_v30 = vmov 6   ;;  %v1358_v47 = vmul.f32 %v12469_v25, %v12490_v3  ;;  %v1359_v62 = vmul.f32 %v12470_v24, %v12490_v3  ;;  %v12494_v35 = vld [vmem:[#allocation90_spill] sm:$0xff]  ;;  %v12497_v1 = vld [vmem:[#allocation88_spill] sm:$0xff]  ;;  %v7748_v50 = vpop.permute.xlu1 %1781 }
 0x186   : > { %5949 = vset.pattern.permute.xlu1 %v12491_v30  ;;  %v1504_v46 = vmul.f32 %v12471_v18, %v12492_v14  ;;  %v1505_v13 = vmul.f32 %v12472_v20, %v12492_v14  ;;  %v1596_v0 = vmul.f32 %v12493_v16, %v1562_v21  ;;  %v1597_v52 = vmul.f32 %v12494_v35, %v1562_v21 }
 0x187   : > { %2521 = vperm.xlu1 %5949, %v7315_v51   ;;  %v1598_v39 = vmul.f32 %v12495_v43, %v1562_v21  ;;  %v1599_v25 = vmul.f32 %v12496_v15, %v1562_v21  ;;  %v1506_v24 = vmul.f32 %v12473_v19, %v12492_v14  ;;  %v1507_v3 = vmul.f32 %v12497_v1, %v12492_v14 }
 0x188   : > { %v1512_v30 = vmul.f32 %v12471_v18, %v12498_v54  ;;  %12499 = vst [vmem:[#allocation82_spill] sm:$0xff] %v7748_v50  ;;  %v7752_v57 = vadd.f32 %v1596_v0, %v7646_v29  ;;  %v7755_v40 = vadd.f32 %v1597_v52, %v7649_v32  ;;  %v1460_v14 = vadd.f32 %v1440_v28, %v1384_v33  ;;  %v7770_v32 = vpop.permute.xlu0 %2973 }
 0x189   : > { %3669 = vperm.xlu0 %5978, %v7156_v10   ;;  %v7758_v21 = vadd.f32 %v1598_v39, %v7652_v42  ;;  %v7761_v22 = vadd.f32 %v1599_v25, %v7655_v59  ;;  %v1513_v2 = vmul.f32 %v12472_v20, %v12498_v54  ;;  %v1514_v50 = vmul.f32 %v12473_v19, %v12498_v54  ;;  %v7772_v27 = vpop.permute.xlu1 %1785 }
 0x18a   : > { %12500 = vst [vmem:[#allocation85_spill] sm:$0xff] %v7755_v40  ;;  %v1515_v29 = vmul.f32 %v12497_v1, %v12498_v54  ;;  %12503 = vst [vmem:[#allocation76_spill] sm:$0xff] %v7770_v32  ;;  %v1461_v0 = vadd.f32 %v1441_v55, %v1385_v45  ;;  %v1462_v42 = vadd.f32 %v1442_v34, %v1386_v37  ;;  %v11772_v26 = vmov 22   ;;  %v12507_v55 = vld [vmem:[#allocation49_spill] sm:$0xff] }
 0x18b   : > { %12501 = vst [vmem:[#allocation72_spill] sm:$0xff] %v7758_v21  ;;  %12502 = vst [vmem:[#allocation73_spill] sm:$0xff] %v7761_v22  ;;  %2525 = vperm.xlu1 %5949, %v7112_v63   ;;  %v1463_v52 = vadd.f32 %v1443_v17, %v1387_v31  ;;  %v1376_v39 = vadd.f32 %v1356_v41, %v1300_v53  ;;  %v1377_v59 = vadd.f32 %v1357_v36, %v1301_v61  ;;  %v12505_v53 = vld [vmem:[#allocation69_spill] sm:$0xff]  ;;  %v12509_v36 = vld [vmem:[#allocation50_spill] sm:$0xff] }
 0x18c   : > { %v1378_v25 = vadd.f32 %v1358_v47, %v1302_v56  ;;  %v1379_v33 = vadd.f32 %v1359_v62, %v1303_v23  ;;  %v1524_v28 = vadd.f32 %v1504_v46, %v1448_v58  ;;  %v1525_v22 = vadd.f32 %v1505_v13, %v1449_v5  ;;  %v7781_v31 = vpop.permute.xlu0 %2985 }
 0x18d   : > { %5980 = vset.pattern.permute.xlu0 %v11772_v26  ;;  %v1526_v21 = vadd.f32 %v1506_v24, %v1450_v4  ;;  %v1527_v54 = vadd.f32 %v1507_v3, %v1451_v38  ;;  %v1532_v40 = vadd.f32 %v1512_v30, %v1456_v12  ;;  %v1533_v63 = vadd.f32 %v1513_v2, %v1457_v11  ;;  %v7799_v38 = vpop.permute.xlu1 %1849 }
 0x18e   : > { %3733 = vperm.xlu0 %5980, %v7279_v49   ;;  %v7776_v45 = vadd.f32 %v1514_v50, %v1458_v60  ;;  %v7778_v37 = vadd.f32 %v1515_v29, %v1459_v7  ;;  %12504 = vst [vmem:[#allocation36_spill] sm:$0xff] %v7781_v31  ;;  %v1516_v61 = vmul.f32 %v12471_v18, %v12505_v53  ;;  %v12506_v50 = vld [vmem:[#allocation48_spill] sm:$0xff]  ;;  %v12508_v60 = vmov 7  }
 0x18f   : > { %2533 = vperm.xlu1 %5949, %v7387_v8   ;;  %v1517_v56 = vmul.f32 %v12472_v20, %v12505_v53  ;;  %v1518_v23 = vmul.f32 %v12473_v19, %v12505_v53  ;;  %v1519_v11 = vmul.f32 %v12497_v1, %v12505_v53  ;;  %v1580_v58 = vmul.f32 %v12493_v16, %v12506_v50 }
 0x190   : > { %v1581_v5 = vmul.f32 %v12494_v35, %v12506_v50  ;;  %v1582_v2 = vmul.f32 %v12495_v43, %v12506_v50  ;;  %v1583_v4 = vmul.f32 %v12496_v15, %v12506_v50  ;;  %v1432_v12 = vmul.f32 %v12446_v9, %v12507_v55  ;;  %v7816_v9 = vpop.permute.xlu0 %1625 }
 0x191   : > { %v1433_v34 = vmul.f32 %v12447_v6, %v12507_v55  ;;  %v1434_v17 = vmul.f32 %v12448_v44, %v12507_v55  ;;  %v1536_v7 = vadd.f32 %v1516_v61, %v1460_v14  ;;  %v1435_v41 = vmul.f32 %v12484_v48, %v12507_v55  ;;  %v7820_v3 = vpop.permute.xlu1 %1857 }
 0x192   : > { %3745 = vperm.xlu0 %5980, %v7156_v10   ;;  %v1588_v30 = vmul.f32 %v12493_v16, %v12509_v36  ;;  %v1589_v10 = vmul.f32 %v12494_v35, %v12509_v36  ;;  %v1537_v6 = vadd.f32 %v1517_v56, %v1461_v0  ;;  %v1538_v47 = vadd.f32 %v1518_v23, %v1462_v42  ;;  %v12520_v26 = vld [vmem:[#allocation72_spill] sm:$0xff] }
 0x193   : > { %5951 = vset.pattern.permute.xlu1 %v12508_v60  ;;  %v1539_v62 = vadd.f32 %v1519_v11, %v1463_v52  ;;  %v1600_v44 = vadd.f32 %v1580_v58, %v1524_v28  ;;  %v1601_v46 = vadd.f32 %v1581_v5, %v1525_v22  ;;  %v1602_v13 = vadd.f32 %v1582_v2, %v1526_v21  ;;  %v12511_v52 = vld [vmem:[#allocation39_spill] sm:$0xff]  ;;  %v12514_v11 = vld [vmem:[#allocation94_spill] sm:$0xff]  ;;  %v12516_v2 = vld [vmem:[#allocation96_spill] sm:$0xff] }
 0x194   : > { %2597 = vperm.xlu1 %5951, %v7315_v51   ;;  %v1603_v24 = vadd.f32 %v1583_v4, %v1527_v54  ;;  %v1590_v48 = vmul.f32 %v12495_v43, %v12509_v36  ;;  %12510 = vst [vmem:[#allocation38_spill] sm:$0xff] %v7820_v3  ;;  %v11774_v14 = vmov 23   ;;  %v7823_v29 = vadd.f32 %v1432_v12, %v1376_v39  ;;  %v7839_v39 = vld [vmem:[%s11535_s5 + $0x10] sm:$0xff]  ;;  %v12515_v58 = vld [vmem:[#allocation95_spill] sm:$0xff] }
 0x195   : > { %v7825_v53 = vadd.f32 %v1433_v34, %v1377_v59  ;;  %v7827_v61 = vadd.f32 %v1434_v17, %v1378_v25  ;;  %v1591_v0 = vmul.f32 %v12496_v15, %v12509_v36  ;;  %v7832_v22 = vadd.f32 %v1435_v41, %v1379_v33  ;;  %v1638_v59 = vpop.permute.xlu0 %1637  ;;  %v12512_v54 = vld [vmem:[#allocation100_spill] sm:$0xff]  ;;  %v7854_v55 = vpop.permute.xlu1 %1861 }
 0x196   : > { %5982 = vset.pattern.permute.xlu0 %v11774_v14  ;;  %v1608_v21 = vadd.f32 %v1588_v30, %v1532_v40  ;;  %v1609_v42 = vadd.f32 %v1589_v10, %v1533_v63  ;;  %v1592_v28 = vmul.f32 %v12493_v16, %v12511_v52  ;;  %v1593_v25 = vmul.f32 %v12494_v35, %v12511_v52  ;;  %v12513_v63 = vld [vmem:[#allocation93_spill] sm:$0xff]  ;;  %v12518_v41 = vld [vmem:[#allocation52_spill] sm:$0xff] }
 0x197   : > { %3809 = vperm.xlu0 %5982, %v7279_v49   ;;  %v1594_v33 = vmul.f32 %v12495_v43, %v12511_v52  ;;  %v1595_v40 = vmul.f32 %v12496_v15, %v12511_v52  ;;  %v1656_v56 = vmul.f32 %v12513_v63, %v12512_v54  ;;  %v1672_v23 = vmul.f32 %v12513_v63, %v1638_v59  ;;  %v7867_v30 = vld [vmem:[%s11535_s5 + $0x18] sm:$0xff] }
 0x198   : > { %2601 = vperm.xlu1 %5951, %v7839_v39   ;;  %v1673_v50 = vmul.f32 %v12514_v11, %v1638_v59  ;;  %v1674_v5 = vmul.f32 %v12515_v58, %v1638_v59  ;;  %v1675_v4 = vmul.f32 %v12516_v2, %v1638_v59  ;;  %12517 = vst [vmem:[#allocation27_spill] sm:$0xff] %v7854_v55  ;;  %v12519_v52 = vld [vmem:[#allocation85_spill] sm:$0xff] }
 0x199   : > { %v1657_v12 = vmul.f32 %v12514_v11, %v12512_v54  ;;  %v1658_v34 = vmul.f32 %v12515_v58, %v12512_v54  ;;  %v1659_v17 = vmul.f32 %v12516_v2, %v12512_v54  ;;  %v1664_v36 = vmul.f32 %v12513_v63, %v12518_v41  ;;  %v12521_v54 = vld [vmem:[#allocation73_spill] sm:$0xff]  ;;  %v7883_v31 = vpop.permute.xlu0 %3049 }
 0x19a   : > { %v7871_v10 = vadd.f32 %v1672_v23, %v7752_v57  ;;  %v7874_v59 = vadd.f32 %v1673_v50, %v12519_v52  ;;  %v7877_v14 = vadd.f32 %v1674_v5, %v12520_v26  ;;  %v7880_v60 = vadd.f32 %v1675_v4, %v12521_v54  ;;  %12522 = vst [vmem:[#allocation60_spill] sm:$0xff] %v7883_v31  ;;  %v12523_v54 = vld [vmem:[#allocation54_spill] sm:$0xff] }
 0x19b   : > { %3821 = vperm.xlu0 %5982, %v7867_v30   ;;  %v1610_v32 = vadd.f32 %v1590_v48, %v7776_v45  ;;  %v1611_v55 = vadd.f32 %v1591_v0, %v7778_v37  ;;  %v1612_v3 = vadd.f32 %v1592_v28, %v1536_v7  ;;  %v1665_v57 = vmul.f32 %v12514_v11, %v12518_v41  ;;  %v7897_v37 = vpop.permute.xlu1 %1925 }
 0x19c   : > { %2609 = vperm.xlu1 %5951, %v7387_v8   ;;  %v1613_v23 = vadd.f32 %v1593_v25, %v1537_v6  ;;  %v1614_v50 = vadd.f32 %v1594_v33, %v1538_v47  ;;  %v1666_v26 = vmul.f32 %v12515_v58, %v12518_v41  ;;  %v1667_v5 = vmul.f32 %v12516_v2, %v12518_v41  ;;  %v12529_v33 = vld [vmem:[#allocation97_spill] sm:$0xff]  ;;  %v12533_v41 = vld [vmem:[#allocation28_spill] sm:$0xff] }
 0x19d   : > { %v1615_v4 = vadd.f32 %v1595_v40, %v1539_v62  ;;  %v1676_v52 = vadd.f32 %v1656_v56, %v1600_v44  ;;  %v1508_v31 = vmul.f32 %v12471_v18, %v12523_v54  ;;  %v1509_v45 = vmul.f32 %v12472_v20, %v12523_v54  ;;  %v7901_v25 = vpop.permute.xlu0 %3061  ;;  %v12530_v56 = vld [vmem:[#allocation98_spill] sm:$0xff] }
 0x19e   : > { %v11781_v7 = vmov 24   ;;  %v1677_v6 = vadd.f32 %v1657_v12, %v1601_v46  ;;  %v1678_v47 = vadd.f32 %v1658_v34, %v1602_v13  ;;  %v1679_v48 = vadd.f32 %v1659_v17, %v1603_v24  ;;  %12525 = vst [vmem:[#allocation61_spill] sm:$0xff] %v7901_v25  ;;  %v12526_v13 = vld [vmem:[#allocation57_spill] sm:$0xff] }
 0x19f   : > { %5984 = vset.pattern.permute.xlu0 %v11781_v7  ;;  %v1684_v0 = vadd.f32 %v1664_v36, %v1608_v21  ;;  %v12524_v28 = vmov 8   ;;  %v1685_v62 = vadd.f32 %v1665_v57, %v1609_v42  ;;  %v1510_v18 = vmul.f32 %v12473_v19, %v12523_v54 }
 0x1a0   : > { %5953 = vset.pattern.permute.xlu1 %v12524_v28  ;;  %v1511_v20 = vmul.f32 %v12497_v1, %v12523_v54  ;;  %3885 = vperm.xlu0 %5984, %v7279_v49   ;;  %v1686_v44 = vadd.f32 %v1666_v26, %v1610_v32  ;;  %v1687_v46 = vadd.f32 %v1667_v5, %v1611_v55  ;;  %v12528_v32 = vld [vmem:[#allocation56_spill] sm:$0xff] }
 0x1a1   : > { %2673 = vperm.xlu1 %5953, %v7315_v51   ;;  %v1668_v24 = vmul.f32 %v12513_v63, %v12526_v13  ;;  %v1669_v21 = vmul.f32 %v12514_v11, %v12526_v13  ;;  %v7914_v42 = vadd.f32 %v1508_v31, %v7823_v29  ;;  %v7917_v19 = vadd.f32 %v1509_v45, %v7825_v53  ;;  %v7923_v51 = vpop.permute.xlu1 %1933  ;;  %v12531_v31 = vld [vmem:[#allocation6_spill] sm:$0xff]  ;;  %v12532_v53 = vld [vmem:[#allocation99_spill] sm:$0xff]  ;;  %v7940_v26 = vpop.permute.xlu0 %1701  ;;  %v12535_v45 = vld [vmem:[#allocation104_spill] sm:$0xff] }
 0x1a2   : > { %v1670_v1 = vmul.f32 %v12515_v58, %v12526_v13  ;;  %v1671_v49 = vmul.f32 %v12516_v2, %v12526_v13  ;;  %12527 = vst [vmem:[#allocation45_spill] sm:$0xff] %v7923_v51  ;;  %v1732_v40 = vmul.f32 %v12529_v33, %v12528_v32  ;;  %v1733_v55 = vmul.f32 %v12530_v56, %v12528_v32 }
 0x1a3   : > { %v1734_v29 = vmul.f32 %v12531_v31, %v12528_v32  ;;  %v1735_v12 = vmul.f32 %v12532_v53, %v12528_v32  ;;  %v1530_v34 = vadd.f32 %v1510_v18, %v7827_v61  ;;  %v1531_v17 = vadd.f32 %v1511_v20, %v7832_v22  ;;  %12534 = vst [vmem:[#allocation11_spill] sm:$0xff] %v7940_v26 }
 0x1a4   : > { %v1740_v36 = vmul.f32 %v12529_v33, %v12533_v41  ;;  %v1741_v57 = vmul.f32 %v12530_v56, %v12533_v41  ;;  %3897 = vperm.xlu0 %5984, %v7867_v30   ;;  %v1742_v5 = vmul.f32 %v12531_v31, %v12533_v41  ;;  %v1743_v54 = vmul.f32 %v12532_v53, %v12533_v41 }
 0x1a5   : > { %v1744_v61 = vmul.f32 %v12529_v33, %v12535_v45  ;;  %v1745_v22 = vmul.f32 %v12530_v56, %v12535_v45  ;;  %2677 = vperm.xlu1 %5953, %v7839_v39   ;;  %v1688_v18 = vadd.f32 %v1668_v24, %v1612_v3  ;;  %v1689_v20 = vadd.f32 %v1669_v21, %v1613_v23  ;;  %v7951_v7 = vpop.permute.xlu1 %1937  ;;  %v1714_v3 = vpop.permute.xlu0 %1713 }
 0x1a6   : > { %v1690_v13 = vadd.f32 %v1670_v1, %v1614_v50  ;;  %v1691_v32 = vadd.f32 %v1671_v49, %v1615_v4  ;;  %12536 = vst [vmem:[#allocation4_spill] sm:$0xff] %v7951_v7  ;;  %v1752_v25 = vadd.f32 %v1732_v40, %v1676_v52  ;;  %v1753_v28 = vadd.f32 %v1733_v55, %v1677_v6  ;;  %v12537_v6 = vld [vmem:[#allocation58_spill] sm:$0xff]  ;;  %v12539_v1 = vld [vmem:[#allocation15_spill] sm:$0xff]  ;;  %v12540_v40 = vld [vmem:[#allocation37_spill] sm:$0xff] }
 0x1a7   : > { %v1754_v26 = vadd.f32 %v1734_v29, %v1678_v47  ;;  %v1755_v51 = vadd.f32 %v1735_v12, %v1679_v48  ;;  %v1760_v2 = vadd.f32 %v1740_v36, %v1684_v0  ;;  %v7953_v41 = vadd.f32 %v1741_v57, %v1685_v62 }
 0x1a8   : > { %v1746_v58 = vmul.f32 %v12531_v31, %v12535_v45  ;;  %v1747_v11 = vmul.f32 %v12532_v53, %v12535_v45  ;;  %v11790_v63 = vmov 25   ;;  %v1762_v23 = vadd.f32 %v1742_v5, %v1686_v44  ;;  %v7972_v44 = vld [vmem:[%s11535_s5] sm:$0xff]  ;;  %v12545_v45 = vld [vmem:[#allocation44_spill] sm:$0xff] }
 0x1a9   : > { %5986 = vset.pattern.permute.xlu0 %v11790_v63  ;;  %v1763_v50 = vadd.f32 %v1743_v54, %v1687_v46  ;;  %v1764_v4 = vadd.f32 %v1744_v61, %v1688_v18  ;;  %v1765_v52 = vadd.f32 %v1745_v22, %v1689_v20  ;;  %2685 = vperm.xlu1 %5953, %v7387_v8   ;;  %v7979_v24 = vpop.permute.xlu1 %2032  ;;  %v7985_v29 = vpop.permute.xlu0 %3125  ;;  %v12544_v5 = vld [vmem:[#allocation43_spill] sm:$0xff]  ;;  %v12546_v22 = vld [vmem:[#allocation82_spill] sm:$0xff] }
 0x1aa   : > { %v1584_v47 = vmul.f32 %v12493_v16, %v12537_v6  ;;  %v1585_v48 = vmul.f32 %v12494_v35, %v12537_v6  ;;  %v1586_v0 = vmul.f32 %v12495_v43, %v12537_v6  ;;  %v1587_v62 = vmul.f32 %v12496_v15, %v12537_v6  ;;  %3961 = vperm.xlu0 %5986, %v7972_v44   ;;  %v12538_v15 = vld [vmem:[#allocation70_spill] sm:$0xff] }
 0x1ab   : > { %v1748_v8 = vmul.f32 %v12529_v33, %v1714_v3  ;;  %v1749_v16 = vmul.f32 %v12530_v56, %v1714_v3  ;;  %v1750_v46 = vmul.f32 %v12531_v31, %v1714_v3  ;;  %v1751_v35 = vmul.f32 %v12532_v53, %v1714_v3  ;;  %12541 = vst [vmem:[#allocation12_spill] sm:$0xff] %v7985_v29  ;;  %v12555_v29 = vld [vmem:[#allocation81_spill] sm:$0xff] }
 0x1ac   : > { %v1766_v43 = vadd.f32 %v1746_v58, %v1690_v13  ;;  %v1767_v21 = vadd.f32 %v1747_v11, %v1691_v32  ;;  %v1808_v49 = vmul.f32 %v12539_v1, %v12538_v15  ;;  %v1809_v55 = vmul.f32 %v12540_v40, %v12538_v15 }
 0x1ad   : > { %v7988_v12 = vadd.f32 %v1748_v8, %v7871_v10  ;;  %v7991_v36 = vadd.f32 %v1749_v16, %v7874_v59  ;;  %v7994_v57 = vadd.f32 %v1750_v46, %v7877_v14  ;;  %v7997_v58 = vadd.f32 %v1751_v35, %v7880_v60  ;;  %v8010_v14 = vld [vmem:[%s11535_s5 + $0x8] sm:$0xff]  ;;  %v8023_v13 = vpop.permute.xlu1 %2042  ;;  %v12549_v46 = vld [vmem:[#allocation74_spill] sm:$0xff] }
 0x1ae   : > { %v12543_v11 = vmov 9   ;;  %v1810_v54 = vmul.f32 %v12544_v5, %v12538_v15  ;;  %v1811_v61 = vmul.f32 %v12545_v45, %v12538_v15  ;;  %v1816_v10 = vmul.f32 %v12539_v1, %v12546_v22  ;;  %3973 = vperm.xlu0 %5986, %v7867_v30   ;;  %12547 = vst [vmem:[#allocation63_spill] sm:$0xff] %v8023_v13  ;;  %v12550_v15 = vld [vmem:[#allocation75_spill] sm:$0xff] }
 0x1af   : > { %12542 = vst [vmem:[#allocation62_spill] sm:$0xff] %v7997_v58  ;;  %5955 = vset.pattern.permute.xlu1 %v12543_v11  ;;  %v8014_v60 = vadd.f32 %v1584_v47, %v7914_v42  ;;  %v8017_v59 = vadd.f32 %v1585_v48, %v7917_v19  ;;  %v8019_v18 = vadd.f32 %v1586_v0, %v1530_v34  ;;  %v8031_v47 = vpop.permute.xlu0 %3137  ;;  %v11792_v16 = vmov 26  }
 0x1b0   : > { %2749 = vperm.xlu1 %5955, %v8010_v14   ;;  %v8021_v20 = vadd.f32 %v1587_v62, %v1531_v17  ;;  %v1828_v32 = vadd.f32 %v1808_v49, %v1752_v25  ;;  %v1817_v3 = vmul.f32 %v12540_v40, %v12546_v22  ;;  %v1818_v6 = vmul.f32 %v12544_v5, %v12546_v22 }
 0x1b1   : > { %v1819_v42 = vmul.f32 %v12545_v45, %v12546_v22  ;;  %12548 = vst [vmem:[#allocation64_spill] sm:$0xff] %v8031_v47  ;;  %v1820_v19 = vmul.f32 %v12539_v1, %v7772_v27  ;;  %v1821_v34 = vmul.f32 %v12540_v40, %v7772_v27  ;;  %v1822_v25 = vmul.f32 %v12544_v5, %v7772_v27  ;;  %v12551_v22 = vld [vmem:[#allocation78_spill] sm:$0xff]  ;;  %v12554_v47 = vld [vmem:[#allocation80_spill] sm:$0xff] }
 0x1b2   : > { %v1823_v17 = vmul.f32 %v12545_v45, %v7772_v27  ;;  %v1829_v48 = vadd.f32 %v1809_v55, %v1753_v28  ;;  %v1830_v0 = vadd.f32 %v1810_v54, %v1754_v26  ;;  %v1831_v62 = vadd.f32 %v1811_v61, %v1755_v51  ;;  %5988 = vset.pattern.permute.xlu0 %v11792_v16  ;;  %v8050_v27 = vpop.permute.xlu1 %2047  ;;  %v12553_v26 = vld [vmem:[#allocation79_spill] sm:$0xff] }
 0x1b3   : > { %v1836_v8 = vadd.f32 %v1816_v10, %v1760_v2  ;;  %v1884_v35 = vmul.f32 %v12549_v46, %v7799_v38  ;;  %v1885_v49 = vmul.f32 %v12550_v15, %v7799_v38  ;;  %v1886_v63 = vmul.f32 %v12551_v22, %v7799_v38  ;;  %4037 = vperm.xlu0 %5988, %v7972_v44   ;;  %v8055_v11 = vpop.permute.xlu0 %1777 }
 0x1b4   : > { %2753 = vperm.xlu1 %5955, %v7839_v39   ;;  %12552 = vst [vmem:[#allocation65_spill] sm:$0xff] %v8050_v27  ;;  %v1837_v2 = vadd.f32 %v1817_v3, %v7953_v41  ;;  %v1838_v28 = vadd.f32 %v1818_v6, %v1762_v23  ;;  %v1839_v51 = vadd.f32 %v1819_v42, %v1763_v50  ;;  %v12556_v27 = vld [vmem:[#allocation83_spill] sm:$0xff]  ;;  %v12557_v23 = vld [vmem:[#allocation84_spill] sm:$0xff]  ;;  %v12558_v6 = vld [vmem:[#allocation93_spill] sm:$0xff] }
 0x1b5   : > { %v1887_v55 = vmul.f32 %v12553_v26, %v7799_v38  ;;  %v1840_v54 = vadd.f32 %v1820_v19, %v1764_v4  ;;  %v1841_v61 = vadd.f32 %v1821_v34, %v1765_v52  ;;  %v1842_v10 = vadd.f32 %v1822_v25, %v1766_v43  ;;  %v8068_v52 = vld [vmem:[%s11535_s5 + $0x20] sm:$0xf]  ;;  %v12561_v34 = vld [vmem:[#allocation96_spill] sm:$0xff] }
 0x1b6   : > { %v1843_v16 = vadd.f32 %v1823_v17, %v1767_v21  ;;  %v1960_v13 = vmul.f32 %v12554_v47, %v7897_v37  ;;  %v1961_v7 = vmul.f32 %v12555_v29, %v7897_v37  ;;  %v1962_v41 = vmul.f32 %v12556_v27, %v7897_v37  ;;  %v8072_v43 = vpop.permute.xlu1 %2093  ;;  %v12562_v17 = vld [vmem:[#allocation38_spill] sm:$0xff] }
 0x1b7   : > { %v1963_v50 = vmul.f32 %v12557_v23, %v7897_v37  ;;  %v1904_v3 = vadd.f32 %v1884_v35, %v1828_v32  ;;  %v1905_v38 = vadd.f32 %v1885_v49, %v1829_v48  ;;  %v1906_v4 = vadd.f32 %v1886_v63, %v1830_v0  ;;  %4049 = vperm.xlu0 %5988, %v7867_v30   ;;  %v12559_v37 = vld [vmem:[#allocation94_spill] sm:$0xff]  ;;  %v12560_v63 = vld [vmem:[#allocation95_spill] sm:$0xff]  ;;  %v8088_v35 = vpop.permute.xlu0 %1789 }
 0x1b8   : > { %2761 = vperm.xlu1 %5955, %v8068_v52   ;;  %v1907_v21 = vadd.f32 %v1887_v55, %v1831_v62  ;;  %v1660_v42 = vmul.f32 %v12558_v6, %v7816_v9  ;;  %v1661_v32 = vmul.f32 %v12559_v37, %v7816_v9  ;;  %v1662_v19 = vmul.f32 %v12560_v63, %v7816_v9  ;;  %v12563_v23 = vld [vmem:[#allocation27_spill] sm:$0xff] }
 0x1b9   : > { %v1663_v25 = vmul.f32 %v12561_v34, %v7816_v9  ;;  %v1892_v48 = vmul.f32 %v12549_v46, %v12562_v17  ;;  %v1893_v0 = vmul.f32 %v12550_v15, %v12562_v17  ;;  %v1894_v62 = vmul.f32 %v12551_v22, %v12562_v17 }
 0x1ba   : > { %v1980_v49 = vadd.f32 %v1960_v13, %v1904_v3  ;;  %v1981_v55 = vadd.f32 %v1961_v7, %v1905_v38  ;;  %v1982_v6 = vadd.f32 %v1962_v41, %v1906_v4  ;;  %v1983_v37 = vadd.f32 %v1963_v50, %v1907_v21  ;;  %v8099_v58 = vpop.permute.xlu1 %2103 }
 0x1bb   : > { %v1895_v63 = vmul.f32 %v12553_v26, %v12562_v17  ;;  %v1896_v9 = vmul.f32 %v12549_v46, %v12563_v23  ;;  %v1897_v34 = vmul.f32 %v12550_v15, %v12563_v23  ;;  %v1898_v27 = vmul.f32 %v12551_v22, %v12563_v23  ;;  %12565 = vst [vmem:[#allocation86_spill] sm:$0xff] %v8099_v58 }
 0x1bc   : > { %v12564_v29 = vmov 10   ;;  %v1680_v7 = vadd.f32 %v1660_v42, %v8014_v60  ;;  %v1681_v13 = vadd.f32 %v1661_v32, %v8017_v59  ;;  %v1682_v41 = vadd.f32 %v1662_v19, %v8019_v18  ;;  %v8115_v60 = vpop.permute.xlu0 %3201 }
 0x1bd   : > { %5957 = vset.pattern.permute.xlu1 %v12564_v29  ;;  %v1899_v50 = vmul.f32 %v12553_v26, %v12563_v23  ;;  %v11799_v3 = vmov 27   ;;  %v1683_v38 = vadd.f32 %v1663_v25, %v8021_v20  ;;  %v8108_v4 = vadd.f32 %v1892_v48, %v1836_v8  ;;  %12569 = vst [vmem:[#allocation5_spill] sm:$0xff] %v8115_v60  ;;  %v12575_v25 = vld [vmem:[#allocation45_spill] sm:$0xff] }
 0x1be   : > { %5990 = vset.pattern.permute.xlu0 %v11799_v3  ;;  %v8110_v21 = vadd.f32 %v1893_v0, %v1837_v2  ;;  %v8112_v17 = vadd.f32 %v1894_v62, %v1838_v28  ;;  %2825 = vperm.xlu1 %5957, %v8010_v14   ;;  %v8117_v59 = vmax.f32 %v1980_v49, 0.0  ;;  %v8119_v18 = vmax.f32 %v1981_v55, 0.0  ;;  %v8134_v32 = vpop.permute.xlu1 %2113  ;;  %v12577_v0 = vld [vmem:[#allocation11_spill] sm:$0xff] }
 0x1bf   : > { %12566 = vst [vmem:[#allocation87_spill] sm:$0xff] %v8108_v4  ;;  %v8121_v23 = vmax.f32 %v1982_v6, 0.0  ;;  %v8123_v42 = vmax.f32 %v1983_v37, 0.0  ;;  %4113 = vperm.xlu0 %5990, %v7972_v44   ;;  %v8126_v20 = vadd.f32 %v1895_v63, %v1839_v51  ;;  %v8128_v8 = vadd.f32 %v1896_v9, %v1840_v54  ;;  %v12589_v63 = vld [vmem:[#allocation19_spill] sm:$0xff] }
 0x1c0   : > { %12567 = vst [vmem:[#allocation35_spill] sm:$0xff] %v8110_v21  ;;  %12568 = vst [vmem:[#allocation29_spill] sm:$0xff] %v8112_v17  ;;  %v8130_v2 = vadd.f32 %v1897_v34, %v1841_v61  ;;  %v8132_v28 = vadd.f32 %v1898_v27, %v1842_v10  ;;  %v8136_v19 = vadd.f32 %v1899_v50, %v1843_v16  ;;  %v8151_v16 = vpop.permute.xlu0 %3213  ;;  %v12579_v61 = vld [vmem:[#allocation23_spill] sm:$0xff]  ;;  %v12601_v21 = vmov 11  }
 0x1c1   : > { %12570 = vst [vmem:[#allocation14_spill] sm:$0xff] %v8126_v20  ;;  %12571 = vst [vmem:[#allocation24_spill] sm:$0xff] %v8128_v8  ;;  %v8140_v48 = vmul.f32 %v12554_v47, %v12575_v25  ;;  %v1736_v62 = vmul.f32 %v12529_v33, %v12577_v0  ;;  %v1737_v51 = vmul.f32 %v12530_v56, %v12577_v0  ;;  %v12598_v20 = vld [vmem:[#allocation25_spill] sm:$0xff] }
 0x1c2   : > { %12572 = vst [vmem:[#allocation77_spill] sm:$0xff] %v8130_v2  ;;  %12573 = vst [vmem:[#allocation32_spill] sm:$0xff] %v8132_v28  ;;  %v1738_v54 = vmul.f32 %v12531_v31, %v12577_v0  ;;  %v1739_v27 = vmul.f32 %v12532_v53, %v12577_v0  ;;  %2829 = vperm.xlu1 %5957, %v7839_v39   ;;  %v8155_v10 = vrot.slane %v8117_v59, %v12579_v61  ;;  %v12584_v53 = vld [vmem:[#allocation22_spill] sm:$0xff]  ;;  %v8202_v3 = vpop.permute.xlu1 %2141 }
 0x1c3   : > { %12574 = vst [vmem:[#allocation34_spill] sm:$0xff] %v8136_v19  ;;  %12576 = vst [vmem:[#allocation41_spill] sm:$0xff] %v8140_v48  ;;  %v8159_v33 = vrot.slane %v8119_v18, %v12579_v61  ;;  %v8163_v56 = vrot.slane %v8121_v23, %v12579_v61  ;;  %v8167_v31 = vrot.slane %v8123_v42, %v12579_v61  ;;  %4125 = vperm.xlu0 %5990, %v7867_v30  }
 0x1c4   : > { %12578 = vst [vmem:[#allocation66_spill] sm:$0xff] %v8151_v16  ;;  %12580 = vst [vmem:[#allocation89_spill] sm:$0xff] %v8155_v10  ;;  %v8172_v49 = vrot.slane %v8117_v59, %v12584_v53  ;;  %v8176_v55 = vrot.slane %v8119_v18, %v12584_v53  ;;  %v8180_v6 = vrot.slane %v8121_v23, %v12584_v53 }
 0x1c5   : > { %12581 = vst [vmem:[#allocation90_spill] sm:$0xff] %v8159_v33  ;;  %12582 = vst [vmem:[#allocation91_spill] sm:$0xff] %v8163_v56  ;;  %v8184_v37 = vrot.slane %v8123_v42, %v12584_v53  ;;  %v8188_v9 = vrot.slane %v8117_v59, %v12589_v63  ;;  %v8192_v34 = vrot.slane %v8119_v18, %v12589_v63 }
 0x1c6   : > { %12583 = vst [vmem:[#allocation92_spill] sm:$0xff] %v8167_v31  ;;  %12585 = vst [vmem:[#allocation88_spill] sm:$0xff] %v8172_v49  ;;  %v8196_v50 = vrot.slane %v8121_v23, %v12589_v63  ;;  %v8200_v0 = vrot.slane %v8123_v42, %v12589_v63  ;;  %v1756_v29 = vadd.f32 %v1736_v62, %v1680_v7  ;;  %2837 = vperm.xlu1 %5957, %v8068_v52   ;;  %v8237_v8 = vpop.permute.xlu1 %2145  ;;  %v12612_v31 = vld [vmem:[#allocation20_spill] sm:$0xff] }
 0x1c7   : > { %12586 = vst [vmem:[#allocation67_spill] sm:$0xff] %v8176_v55  ;;  %12587 = vst [vmem:[#allocation69_spill] sm:$0xff] %v8180_v6  ;;  %v8204_v16 = vadd.f32 %v1737_v51, %v1681_v13  ;;  %v8206_v58 = vadd.f32 %v1738_v54, %v1682_v41  ;;  %v8208_v60 = vadd.f32 %v1739_v27, %v1683_v38  ;;  %v11804_v13 = vmov 28   ;;  %v8220_v41 = vpop.permute.xlu0 %1853  ;;  %v12596_v38 = vld [vmem:[#allocation17_spill] sm:$0xff] }
 0x1c8   : > { %12588 = vst [vmem:[#allocation48_spill] sm:$0xff] %v8184_v37  ;;  %12590 = vst [vmem:[#allocation49_spill] sm:$0xff] %v8188_v9  ;;  %v2071_v19 = vmul.f32 %v8188_v9, %v7979_v24  ;;  %v2072_v28 = vmul.f32 %v8192_v34, %v7979_v24  ;;  %v2073_v2 = vmul.f32 %v8196_v50, %v7979_v24  ;;  %5992 = vset.pattern.permute.xlu0 %v11804_v13 }
 0x1c9   : > { %12591 = vst [vmem:[#allocation50_spill] sm:$0xff] %v8192_v34  ;;  %12592 = vst [vmem:[#allocation39_spill] sm:$0xff] %v8196_v50  ;;  %v2074_v7 = vmul.f32 %v8200_v0, %v7979_v24  ;;  %v2172_v62 = vmul.f32 %v8172_v49, %v12596_v38  ;;  %v2173_v51 = vmul.f32 %v8176_v55, %v12596_v38  ;;  %4189 = vperm.xlu0 %5992, %v7972_v44  }
 0x1ca   : > { %12593 = vst [vmem:[#allocation100_spill] sm:$0xff] %v8200_v0  ;;  %12594 = vst [vmem:[#allocation52_spill] sm:$0xff] %v8202_v3  ;;  %v2174_v54 = vmul.f32 %v8180_v6, %v12596_v38  ;;  %v2175_v27 = vmul.f32 %v8184_v37, %v12596_v38  ;;  %v2116_v24 = vadd.f32 %v8072_v43, %v2071_v19  ;;  %5959 = vset.pattern.permute.xlu1 %v12601_v21 }
 0x1cb   : > { %12595 = vst [vmem:[#allocation85_spill] sm:$0xff] %v8220_v41  ;;  %v2117_v13 = vadd.f32 %v8072_v43, %v2072_v28  ;;  %v1824_v3 = vmul.f32 %v12539_v1, %v8088_v35  ;;  %v1825_v61 = vmul.f32 %v12540_v40, %v8088_v35  ;;  %12597 = vst [vmem:[#allocation72_spill] sm:$0xff] %v8237_v8  ;;  %2901 = vperm.xlu1 %5959, %v8010_v14   ;;  %v1866_v53 = vpop.permute.xlu0 %1865 }
 0x1cc   : > { %v8241_v17 = vrot.slane %v8117_v59, %v12598_v20  ;;  %v8245_v38 = vrot.slane %v8119_v18, %v12598_v20  ;;  %v1826_v19 = vmul.f32 %v12544_v5, %v8088_v35  ;;  %v1827_v28 = vmul.f32 %v12545_v45, %v8088_v35 }
 0x1cd   : > { %v1812_v48 = vmul.f32 %v12539_v1, %v8055_v11  ;;  %v8256_v8 = vrot.slane %v8121_v23, %v12598_v20  ;;  %v8259_v4 = vadd.f32 %v1824_v3, %v7988_v12  ;;  %v8262_v25 = vadd.f32 %v1825_v61, %v7991_v36  ;;  %v12603_v1 = vld [vmem:[#allocation62_spill] sm:$0xff]  ;;  %4201 = vperm.xlu0 %5992, %v7867_v30   ;;  %v12605_v61 = vld [vmem:[#allocation51_spill] sm:$0xff] }
 0x1ce   : > { %12599 = vst [vmem:[#allocation73_spill] sm:$0xff] %v8241_v17  ;;  %12600 = vst [vmem:[#allocation54_spill] sm:$0xff] %v8245_v38  ;;  %v2118_v35 = vadd.f32 %v8072_v43, %v2073_v2  ;;  %v2119_v21 = vadd.f32 %v8072_v43, %v2074_v7  ;;  %v8268_v63 = vadd.f32 %v1826_v19, %v7994_v57  ;;  %v8282_v2 = vpop.permute.xlu1 %2153 }
 0x1cf   : > { %12602 = vst [vmem:[#allocation57_spill] sm:$0xff] %v8256_v8  ;;  %v8271_v47 = vadd.f32 %v1827_v28, %v12603_v1  ;;  %v2192_v12 = vadd.f32 %v2172_v62, %v2116_v24  ;;  %v2193_v3 = vadd.f32 %v2173_v51, %v2117_v13  ;;  %v8276_v36 = vrot.slane %v8123_v42, %v12598_v20  ;;  %v12608_v62 = vld [vmem:[#allocation31_spill] sm:$0xff] }
 0x1d0   : > { %v8280_v41 = vrot.slane %v8117_v59, %v12605_v61  ;;  %v1813_v57 = vmul.f32 %v12540_v40, %v8055_v11  ;;  %v1814_v43 = vmul.f32 %v12544_v5, %v8055_v11  ;;  %v1815_v7 = vmul.f32 %v12545_v45, %v8055_v11  ;;  %2905 = vperm.xlu1 %5959, %v7839_v39   ;;  %v8307_v11 = vpop.permute.xlu0 %3277 }
 0x1d1   : > { %12604 = vst [vmem:[#allocation56_spill] sm:$0xff] %v8276_v36  ;;  %v8292_v13 = vrot.slane %v8119_v18, %v12605_v61  ;;  %v2248_v51 = vmul.f32 %v8241_v17, %v12608_v62  ;;  %v2249_v24 = vmul.f32 %v8245_v38, %v12608_v62  ;;  %v8300_v19 = vrot.slane %v8121_v23, %v12605_v61 }
 0x1d2   : > { %12606 = vst [vmem:[#allocation97_spill] sm:$0xff] %v8280_v41  ;;  %v8304_v40 = vrot.slane %v8123_v42, %v12605_v61  ;;  %12611 = vst [vmem:[#allocation28_spill] sm:$0xff] %v8307_v11  ;;  %v8309_v5 = vadd.f32 %v1812_v48, %v1756_v29  ;;  %v2194_v45 = vadd.f32 %v2174_v54, %v2118_v35  ;;  %v11821_v20 = vmov 29   ;;  %v12616_v35 = vld [vmem:[#allocation42_spill] sm:$0xff] }
 0x1d3   : > { %12607 = vst [vmem:[#allocation98_spill] sm:$0xff] %v8292_v13  ;;  %12609 = vst [vmem:[#allocation6_spill] sm:$0xff] %v8300_v19  ;;  %v2195_v28 = vadd.f32 %v2175_v27, %v2119_v21  ;;  %v2250_v1 = vmul.f32 %v8256_v8, %v12608_v62  ;;  %5994 = vset.pattern.permute.xlu0 %v11821_v20  ;;  %v2268_v38 = vadd.f32 %v2248_v51, %v2192_v12  ;;  %v8334_v27 = vpop.permute.xlu1 %2217  ;;  %v12620_v20 = vld [vmem:[#allocation53_spill] sm:$0xff] }
 0x1d4   : > { %12610 = vst [vmem:[#allocation99_spill] sm:$0xff] %v8304_v40  ;;  %v2269_v17 = vadd.f32 %v2249_v24, %v2193_v3  ;;  %v8316_v61 = vrot.slane %v8117_v59, %v12612_v31  ;;  %v8320_v56 = vrot.slane %v8119_v18, %v12612_v31  ;;  %4265 = vperm.xlu0 %5994, %v7972_v44   ;;  %12615 = vst [vmem:[#allocation70_spill] sm:$0xff] %v8334_v27 }
 0x1d5   : > { %v8324_v29 = vadd.f32 %v1813_v57, %v8204_v16  ;;  %v8327_v21 = vadd.f32 %v1814_v43, %v8206_v58  ;;  %v8330_v48 = vadd.f32 %v1815_v7, %v8208_v60  ;;  %v2251_v54 = vmul.f32 %v8276_v36, %v12608_v62  ;;  %2913 = vperm.xlu1 %5959, %v8068_v52   ;;  %v8345_v60 = vpop.permute.xlu0 %3289 }
 0x1d6   : > { %12613 = vst [vmem:[#allocation104_spill] sm:$0xff] %v8316_v61  ;;  %12614 = vst [vmem:[#allocation58_spill] sm:$0xff] %v8320_v56  ;;  %v2324_v12 = vmul.f32 %v8280_v41, %v12616_v35  ;;  %v2325_v3 = vmul.f32 %v8292_v13, %v12616_v35  ;;  %v2326_v16 = vmul.f32 %v8300_v19, %v12616_v35 }
 0x1d7   : > { %v2327_v58 = vmul.f32 %v8304_v40, %v12616_v35  ;;  %12617 = vst [vmem:[#allocation15_spill] sm:$0xff] %v8345_v60  ;;  %v2270_v57 = vadd.f32 %v2250_v1, %v2194_v45  ;;  %v2271_v43 = vadd.f32 %v2251_v54, %v2195_v28  ;;  %v8349_v7 = vrot.slane %v8121_v23, %v12612_v31  ;;  %v12621_v45 = vld [vmem:[#allocation9_spill] sm:$0xff] }
 0x1d8   : > { %v8353_v62 = vrot.slane %v8123_v42, %v12612_v31  ;;  %v2344_v51 = vadd.f32 %v2324_v12, %v2268_v38  ;;  %v2345_v24 = vadd.f32 %v2325_v3, %v2269_v17  ;;  %v2400_v27 = vmul.f32 %v8316_v61, %v12620_v20  ;;  %4277 = vperm.xlu0 %5994, %v7867_v30   ;;  %v8366_v38 = vpop.permute.xlu1 %2221 }
 0x1d9   : > { %12618 = vst [vmem:[#allocation37_spill] sm:$0xff] %v8349_v7  ;;  %v2401_v35 = vmul.f32 %v8320_v56, %v12620_v20  ;;  %v2087_v28 = vmul.f32 %v8188_v9, %v12621_v45  ;;  %v2088_v1 = vmul.f32 %v8192_v34, %v12621_v45  ;;  %v1900_v54 = vmul.f32 %v12549_v46, %v1866_v53 }
 0x1da   : > { %12619 = vst [vmem:[#allocation43_spill] sm:$0xff] %v8353_v62  ;;  %v1901_v60 = vmul.f32 %v12550_v15, %v1866_v53  ;;  %12622 = vst [vmem:[#allocation44_spill] sm:$0xff] %v8366_v38  ;;  %v2089_v17 = vmul.f32 %v8196_v50, %v12621_v45  ;;  %v2090_v12 = vmul.f32 %v8200_v0, %v12621_v45  ;;  %v12623_v61 = vmov 12   ;;  %v1930_v50 = vpop.permute.xlu0 %1929 }
 0x1db   : > { %v1902_v3 = vmul.f32 %v12551_v22, %v1866_v53  ;;  %v1903_v56 = vmul.f32 %v12553_v26, %v1866_v53  ;;  %5961 = vset.pattern.permute.xlu1 %v12623_v61  ;;  %v2132_v11 = vadd.f32 %v8134_v32, %v2087_v28  ;;  %v2133_v34 = vadd.f32 %v8134_v32, %v2088_v1 }
 0x1dc   : > { %v8378_v9 = vadd.f32 %v1900_v54, %v8259_v4  ;;  %v8381_v38 = vadd.f32 %v1901_v60, %v8262_v25  ;;  %2977 = vperm.xlu1 %5961, %v8010_v14   ;;  %v2188_v28 = vmul.f32 %v8172_v49, %v8282_v2  ;;  %v2189_v1 = vmul.f32 %v8176_v55, %v8282_v2 }
 0x1dd   : > { %v8385_v45 = vadd.f32 %v1902_v3, %v8268_v63  ;;  %v8388_v53 = vadd.f32 %v1903_v56, %v8271_v47  ;;  %v11843_v4 = vmov 30   ;;  %v2134_v25 = vadd.f32 %v8134_v32, %v2089_v17  ;;  %v2230_v56 = vpop.permute.xlu1 %2229 }
 0x1de   : > { %5996 = vset.pattern.permute.xlu0 %v11843_v4  ;;  %v2135_v60 = vadd.f32 %v8134_v32, %v2090_v12  ;;  %v2190_v63 = vmul.f32 %v8180_v6, %v8282_v2  ;;  %v2191_v47 = vmul.f32 %v8184_v37, %v8282_v2  ;;  %v2346_v54 = vadd.f32 %v2326_v16, %v2270_v57  ;;  %v1942_v32 = vpop.permute.xlu0 %1941  ;;  %v12624_v12 = vld [vmem:[#allocation71_spill] sm:$0xff]  ;;  %v12626_v16 = vld [vmem:[#allocation92_spill] sm:$0xff]  ;;  %v12627_v57 = vld [vmem:[#allocation85_spill] sm:$0xff] }
 0x1df   : > { %4341 = vperm.xlu0 %5996, %v7972_v44   ;;  %v2347_v3 = vadd.f32 %v2327_v58, %v2271_v43  ;;  %v2208_v61 = vadd.f32 %v2188_v28, %v2132_v11  ;;  %v2209_v55 = vadd.f32 %v2189_v1, %v2133_v34  ;;  %v2420_v49 = vadd.f32 %v2400_v27, %v2344_v51  ;;  %v12625_v34 = vld [vmem:[#allocation91_spill] sm:$0xff] }
 0x1e0   : > { %v2421_v0 = vadd.f32 %v2401_v35, %v2345_v24  ;;  %v2210_v4 = vadd.f32 %v2190_v63, %v2134_v25  ;;  %v2211_v40 = vadd.f32 %v2191_v47, %v2135_v60  ;;  %2981 = vperm.xlu1 %5961, %v7839_v39   ;;  %v2402_v17 = vmul.f32 %v8349_v7, %v12620_v20  ;;  %v12636_v47 = vld [vmem:[#allocation81_spill] sm:$0xff] }
 0x1e1   : > { %v2403_v2 = vmul.f32 %v8353_v62, %v12620_v20  ;;  %v2476_v37 = vmul.f32 %v8155_v10, %v12624_v12  ;;  %v2477_v11 = vmul.f32 %v8159_v33, %v12624_v12  ;;  %v2478_v27 = vmul.f32 %v12625_v34, %v12624_v12  ;;  %v8424_v1 = vpop.permute.xlu1 %2293  ;;  %v12641_v62 = vld [vmem:[#allocation54_spill] sm:$0xff] }
 0x1e2   : > { %v2479_v58 = vmul.f32 %v12626_v16, %v12624_v12  ;;  %v1888_v43 = vmul.f32 %v12549_v46, %v12627_v57  ;;  %v1889_v51 = vmul.f32 %v12550_v15, %v12627_v57  ;;  %v2422_v20 = vadd.f32 %v2402_v17, %v2346_v54  ;;  %12628 = vst [vmem:[#allocation82_spill] sm:$0xff] %v8424_v1  ;;  %v12629_v46 = vld [vmem:[#allocation26_spill] sm:$0xff] }
 0x1e3   : > { %4353 = vperm.xlu0 %5996, %v7867_v30   ;;  %v2423_v24 = vadd.f32 %v2403_v2, %v2347_v3  ;;  %v1890_v35 = vmul.f32 %v12551_v22, %v12627_v57  ;;  %v1891_v28 = vmul.f32 %v12553_v26, %v12627_v57  ;;  %v8426_v25 = vadd.f32 %v2476_v37, %v2420_v49  ;;  %v8439_v22 = vpop.permute.xlu0 %3353  ;;  %v12635_v37 = vld [vmem:[#allocation80_spill] sm:$0xff]  ;;  %v12637_v2 = vld [vmem:[#allocation83_spill] sm:$0xff] }
 0x1e4   : > { %v8428_v60 = vadd.f32 %v2477_v11, %v2421_v0  ;;  %v8432_v63 = vrot.slane %v8117_v59, %v12629_v46  ;;  %v8436_v15 = vrot.slane %v8119_v18, %v12629_v46  ;;  %2989 = vperm.xlu1 %5961, %v8068_v52   ;;  %12632 = vst [vmem:[#allocation78_spill] sm:$0xff] %v8439_v22  ;;  %v12638_v11 = vld [vmem:[#allocation84_spill] sm:$0xff]  ;;  %v11861_v1 = vmov 31  }
 0x1e5   : > { %v8443_v26 = vrot.slane %v8121_v23, %v12629_v46  ;;  %v8447_v49 = vrot.slane %v8123_v42, %v12629_v46  ;;  %v1964_v0 = vmul.f32 %v12635_v37, %v1930_v50  ;;  %v1965_v54 = vmul.f32 %v12636_v47, %v1930_v50  ;;  %v8459_v6 = vpop.permute.xlu1 %2297 }
 0x1e6   : > { %12630 = vst [vmem:[#allocation74_spill] sm:$0xff] %v8432_v63  ;;  %12631 = vst [vmem:[#allocation75_spill] sm:$0xff] %v8436_v15  ;;  %v1908_v3 = vadd.f32 %v1888_v43, %v8309_v5  ;;  %v1909_v17 = vadd.f32 %v1889_v51, %v8324_v29  ;;  %v1966_v12 = vmul.f32 %v12637_v2, %v1930_v50  ;;  %v12640_v29 = vld [vmem:[#allocation73_spill] sm:$0xff] }
 0x1e7   : > { %12633 = vst [vmem:[#allocation79_spill] sm:$0xff] %v8443_v26  ;;  %12634 = vst [vmem:[#allocation93_spill] sm:$0xff] %v8447_v49  ;;  %v1967_v57 = vmul.f32 %v12638_v11, %v1930_v50  ;;  %5998 = vset.pattern.permute.xlu0 %v11861_v1  ;;  %v2498_v16 = vadd.f32 %v2478_v27, %v2422_v20  ;;  %v2499_v34 = vadd.f32 %v2479_v58, %v2423_v24  ;;  %v12642_v50 = vmov 13   ;;  %v8464_v22 = vpop.permute.xlu0 %3365  ;;  %v12644_v20 = vld [vmem:[#allocation102_spill] sm:$0xff] }
 0x1e8   : > { %v1910_v33 = vadd.f32 %v1890_v35, %v8327_v21  ;;  %v1911_v10 = vadd.f32 %v1891_v28, %v8330_v48  ;;  %4417 = vperm.xlu0 %5998, %v7972_v44   ;;  %12639 = vst [vmem:[#allocation94_spill] sm:$0xff] %v8459_v6  ;;  %v1984_v5 = vadd.f32 %v1964_v0, %v1908_v3  ;;  %12643 = vst [vmem:[#allocation95_spill] sm:$0xff] %v8464_v22  ;;  %v12663_v22 = vld [vmem:[#allocation22_spill] sm:$0xff] }
 0x1e9   : > { %v1985_v43 = vadd.f32 %v1965_v54, %v1909_v17  ;;  %v2264_v51 = vmul.f32 %v12640_v29, %v2230_v56  ;;  %v2265_v7 = vmul.f32 %v12641_v62, %v2230_v56  ;;  %5963 = vset.pattern.permute.xlu1 %v12642_v50  ;;  %v2266_v21 = vmul.f32 %v8256_v8, %v2230_v56  ;;  %v8484_v3 = vpop.permute.xlu1 %2305 }
 0x1ea   : > { %v1986_v27 = vadd.f32 %v1966_v12, %v1910_v33  ;;  %v1987_v58 = vadd.f32 %v1967_v57, %v1911_v10  ;;  %v2267_v48 = vmul.f32 %v8276_v36, %v2230_v56  ;;  %3053 = vperm.xlu1 %5963, %v8010_v14   ;;  %v2552_v24 = vmul.f32 %v8432_v63, %v12644_v20  ;;  %v12719_v63 = vld [vmem:[#allocation12_spill] sm:$0xff] }
 0x1eb   : > { %v2553_v35 = vmul.f32 %v8436_v15, %v12644_v20  ;;  %v8473_v28 = vadd.f32 %v2264_v51, %v2208_v61  ;;  %v8475_v0 = vadd.f32 %v2265_v7, %v2209_v55  ;;  %v8477_v54 = vadd.f32 %v2266_v21, %v2210_v4 }
 0x1ec   : > { %v8479_v33 = vadd.f32 %v2267_v48, %v2211_v40  ;;  %v1976_v10 = vmul.f32 %v12635_v37, %v1942_v32  ;;  %v1977_v56 = vmul.f32 %v12636_v47, %v1942_v32  ;;  %4429 = vperm.xlu0 %5998, %v7867_v30   ;;  %v8486_v17 = vmax.f32 %v1984_v5, 0.0  ;;  %v8503_v5 = vpop.permute.xlu0 %3429  ;;  %v12654_v48 = vld [vmem:[#allocation19_spill] sm:$0xff] }
 0x1ed   : > { %v8488_v12 = vmax.f32 %v1985_v43, 0.0  ;;  %v1978_v61 = vmul.f32 %v12637_v2, %v1942_v32  ;;  %v1979_v55 = vmul.f32 %v12638_v11, %v1942_v32  ;;  %v8492_v7 = vmax.f32 %v1986_v27, 0.0  ;;  %v12647_v43 = vld [vmem:[#allocation59_spill] sm:$0xff] }
 0x1ee   : > { %v8494_v40 = vmax.f32 %v1987_v58, 0.0  ;;  %v8497_v4 = vadd.f32 %v1976_v10, %v8378_v9  ;;  %v8500_v57 = vadd.f32 %v1977_v56, %v8381_v38  ;;  %3057 = vperm.xlu1 %5963, %v7839_v39   ;;  %v8507_v51 = vrot.slane %v8117_v59, %v12647_v43 }
 0x1ef   : > { %v8511_v32 = vrot.slane %v8119_v18, %v12647_v43  ;;  %v8514_v27 = vadd.f32 %v1978_v61, %v8385_v45  ;;  %v8517_v9 = vadd.f32 %v1979_v55, %v8388_v53  ;;  %v2554_v38 = vmul.f32 %v8443_v26, %v12644_v20 }
 0x1f0   : > { %12645 = vst [vmem:[#allocation96_spill] sm:$0xff] %v8497_v4  ;;  %12646 = vst [vmem:[#allocation38_spill] sm:$0xff] %v8500_v57  ;;  %v2555_v58 = vmul.f32 %v8447_v49, %v12644_v20  ;;  %v8525_v59 = vrot.slane %v8121_v23, %v12647_v43  ;;  %v8529_v18 = vrot.slane %v8123_v42, %v12647_v43  ;;  %v11863_v21 = vmov 32   ;;  %v8543_v23 = vpop.permute.xlu1 %2369  ;;  %v12683_v49 = vld [vmem:[#allocation40_spill] sm:$0xff] }
 0x1f1   : > { %12648 = vst [vmem:[#allocation27_spill] sm:$0xff] %v8507_v51  ;;  %12649 = vst [vmem:[#allocation11_spill] sm:$0xff] %v8511_v32  ;;  %6000 = vset.pattern.permute.xlu0 %v11863_v21  ;;  %v2572_v45 = vadd.f32 %v2552_v24, %v8426_v25  ;;  %v2573_v53 = vadd.f32 %v2553_v35, %v8428_v60  ;;  %v8536_v10 = vrot.slane %v8486_v17, %v12654_v48  ;;  %v8554_v60 = vpop.permute.xlu0 %3441  ;;  %v12661_v24 = vld [vmem:[#allocation3_spill] sm:$0xff] }
 0x1f2   : > { %12650 = vst [vmem:[#allocation17_spill] sm:$0xff] %v8514_v27  ;;  %12651 = vst [vmem:[#allocation62_spill] sm:$0xff] %v8517_v9  ;;  %v8540_v20 = vrot.slane %v8488_v12, %v12654_v48  ;;  %4493 = vperm.xlu0 %6000, %v7972_v44   ;;  %v2574_v42 = vadd.f32 %v2554_v38, %v2498_v16  ;;  %v2575_v56 = vadd.f32 %v2555_v58, %v2499_v34  ;;  %v12662_v16 = vld [vmem:[#allocation30_spill] sm:$0xff] }
 0x1f3   : > { %12652 = vst [vmem:[#allocation31_spill] sm:$0xff] %v8525_v59  ;;  %12653 = vst [vmem:[#allocation42_spill] sm:$0xff] %v8529_v18  ;;  %v8547_v61 = vrot.slane %v8492_v7, %v12654_v48  ;;  %v8551_v25 = vrot.slane %v8494_v40, %v12654_v48  ;;  %3065 = vperm.xlu1 %5963, %v8068_v52   ;;  %v2628_v35 = vmul.f32 %v8507_v51, %v12661_v24 }
 0x1f4   : > { %12655 = vst [vmem:[#allocation53_spill] sm:$0xff] %v8536_v10  ;;  %12656 = vst [vmem:[#allocation9_spill] sm:$0xff] %v8540_v20  ;;  %v2629_v55 = vmul.f32 %v8511_v32, %v12661_v24  ;;  %v2704_v34 = vmul.f32 %v8536_v10, %v12662_v16  ;;  %v2705_v38 = vmul.f32 %v8540_v20, %v12662_v16  ;;  %v8581_v9 = vpop.permute.xlu1 %2373 }
 0x1f5   : > { %12657 = vst [vmem:[#allocation71_spill] sm:$0xff] %v8543_v23  ;;  %12658 = vst [vmem:[#allocation85_spill] sm:$0xff] %v8547_v61  ;;  %v2630_v58 = vmul.f32 %v8525_v59, %v12661_v24  ;;  %v2631_v1 = vmul.f32 %v8529_v18, %v12661_v24  ;;  %v2706_v21 = vmul.f32 %v8547_v61, %v12662_v16  ;;  %v12673_v59 = vld [vmem:[#allocation68_spill] sm:$0xff] }
 0x1f6   : > { %12659 = vst [vmem:[#allocation80_spill] sm:$0xff] %v8551_v25  ;;  %12660 = vst [vmem:[#allocation81_spill] sm:$0xff] %v8554_v60  ;;  %v2707_v50 = vmul.f32 %v8551_v25, %v12662_v16  ;;  %v2648_v60 = vadd.f32 %v2628_v35, %v2572_v45  ;;  %v2649_v23 = vadd.f32 %v2629_v55, %v2573_v53  ;;  %4505 = vperm.xlu0 %6000, %v7867_v30   ;;  %v12669_v53 = vmov 14   ;;  %v12670_v35 = vld [vmem:[#allocation45_spill] sm:$0xff] }
 0x1f7   : > { %v8574_v10 = vrot.slane %v8486_v17, %v12663_v22  ;;  %v8578_v20 = vrot.slane %v8488_v12, %v12663_v22  ;;  %12666 = vst [vmem:[#allocation102_spill] sm:$0xff] %v8581_v9  ;;  %v2650_v24 = vadd.f32 %v2630_v58, %v2574_v42  ;;  %v2651_v27 = vadd.f32 %v2631_v1, %v2575_v56  ;;  %v8597_v1 = vpop.permute.xlu0 %3505  ;;  %v12671_v56 = vld [vmem:[#allocation87_spill] sm:$0xff]  ;;  %v12672_v58 = vld [vmem:[#allocation41_spill] sm:$0xff] }
 0x1f8   : > { %v8585_v61 = vrot.slane %v8492_v7, %v12663_v22  ;;  %v8589_v45 = vrot.slane %v8494_v40, %v12663_v22  ;;  %5965 = vset.pattern.permute.xlu1 %v12669_v53  ;;  %v1969_v55 = vmul.f32 %v12636_v47, %v12670_v35  ;;  %v1970_v16 = vmul.f32 %v12637_v2, %v12670_v35 }
 0x1f9   : > { %12664 = vst [vmem:[#allocation83_spill] sm:$0xff] %v8574_v10  ;;  %12665 = vst [vmem:[#allocation84_spill] sm:$0xff] %v8578_v20  ;;  %v2724_v25 = vadd.f32 %v2704_v34, %v2648_v60  ;;  %v2725_v9 = vadd.f32 %v2705_v38, %v2649_v23  ;;  %3129 = vperm.xlu1 %5965, %v8010_v14   ;;  %v1971_v42 = vmul.f32 %v12638_v11, %v12670_v35  ;;  %v12674_v60 = vld [vmem:[#allocation25_spill] sm:$0xff]  ;;  %v11885_v38 = vmov 33   ;;  %v8616_v35 = vpop.permute.xlu1 %2381 }
 0x1fa   : > { %12667 = vst [vmem:[#allocation3_spill] sm:$0xff] %v8585_v61  ;;  %12668 = vst [vmem:[#allocation30_spill] sm:$0xff] %v8589_v45  ;;  %v1988_v57 = vadd.f32 %v12672_v58, %v12671_v56  ;;  %v2726_v4 = vadd.f32 %v2706_v21, %v2650_v24  ;;  %v2727_v18 = vadd.f32 %v2707_v50, %v2651_v27  ;;  %6002 = vset.pattern.permute.xlu0 %v11885_v38  ;;  %v12679_v56 = vld [vmem:[#allocation35_spill] sm:$0xff]  ;;  %v12680_v38 = vld [vmem:[#allocation29_spill] sm:$0xff] }
 0x1fb   : > { %v2780_v32 = vmul.f32 %v8574_v10, %v12673_v59  ;;  %v2781_v51 = vmul.f32 %v8578_v20, %v12673_v59  ;;  %v8609_v23 = vrot.slane %v8486_v17, %v12674_v60  ;;  %v8613_v34 = vrot.slane %v8488_v12, %v12674_v60  ;;  %4569 = vperm.xlu0 %6002, %v7972_v44  }
 0x1fc   : > { %v2782_v50 = vmul.f32 %v8585_v61, %v12673_v59  ;;  %v2783_v27 = vmul.f32 %v8589_v45, %v12673_v59  ;;  %v8624_v21 = vrot.slane %v8492_v7, %v12674_v60  ;;  %v8628_v24 = vrot.slane %v8494_v40, %v12674_v60  ;;  %v8634_v61 = vpop.permute.xlu0 %3517  ;;  %v12682_v59 = vld [vmem:[#allocation14_spill] sm:$0xff] }
 0x1fd   : > { %12675 = vst [vmem:[#allocation45_spill] sm:$0xff] %v8609_v23  ;;  %12676 = vst [vmem:[#allocation87_spill] sm:$0xff] %v8613_v34  ;;  %v1989_v58 = vadd.f32 %v1969_v55, %v12679_v56  ;;  %v1990_v20 = vadd.f32 %v1970_v16, %v12680_v38  ;;  %v2800_v10 = vadd.f32 %v2780_v32, %v2724_v25  ;;  %3133 = vperm.xlu1 %5965, %v7839_v39   ;;  %v12684_v56 = vld [vmem:[#allocation51_spill] sm:$0xff] }
 0x1fe   : > { %12677 = vst [vmem:[#allocation41_spill] sm:$0xff] %v8624_v21  ;;  %12678 = vst [vmem:[#allocation68_spill] sm:$0xff] %v8628_v24  ;;  %v2801_v6 = vadd.f32 %v2781_v51, %v2725_v9  ;;  %v1991_v45 = vadd.f32 %v1971_v42, %v12682_v59  ;;  %v8637_v53 = vmax.f32 %v1988_v57, 0.0  ;;  %v2802_v36 = vadd.f32 %v2782_v50, %v2726_v4  ;;  %v12690_v50 = vld [vmem:[#allocation4_spill] sm:$0xff] }
 0x1ff   : > { %12681 = vst [vmem:[#allocation35_spill] sm:$0xff] %v8634_v61  ;;  %v2803_v8 = vadd.f32 %v2783_v27, %v2727_v18  ;;  %v2856_v26 = vmul.f32 %v8609_v23, %v12683_v49  ;;  %v2857_v55 = vmul.f32 %v8613_v34, %v12683_v49  ;;  %v8645_v32 = vrot.slane %v8486_v17, %v12684_v56  ;;  %v8664_v18 = vpop.permute.xlu1 %2445  ;;  %v12709_v61 = vld [vmem:[#allocation60_spill] sm:$0xff] }
 0x200   : > { %v8649_v39 = vrot.slane %v8488_v12, %v12684_v56  ;;  %v2858_v57 = vmul.f32 %v8624_v21, %v12683_v49  ;;  %v2859_v4 = vmul.f32 %v8628_v24, %v12683_v49  ;;  %v8657_v51 = vrot.slane %v8492_v7, %v12684_v56  ;;  %4581 = vperm.xlu0 %6002, %v7867_v30   ;;  %v8675_v21 = vpop.permute.xlu0 %3581  ;;  %v12691_v30 = vld [vmem:[#allocation13_spill] sm:$0xff] }
 0x201   : > { %12685 = vst [vmem:[#allocation29_spill] sm:$0xff] %v8645_v32  ;;  %v8661_v9 = vrot.slane %v8494_v40, %v12684_v56  ;;  %12689 = vst [vmem:[#allocation106_spill] sm:$0xff] %v8664_v18  ;;  %v8666_v25 = vmax.f32 %v1989_v58, 0.0  ;;  %v8668_v16 = vmax.f32 %v1990_v20, 0.0  ;;  %v2876_v42 = vadd.f32 %v2856_v26, %v2800_v10  ;;  %3141 = vperm.xlu1 %5965, %v8068_v52   ;;  %v12700_v18 = vld [vmem:[#allocation76_spill] sm:$0xff] }
 0x202   : > { %12686 = vst [vmem:[#allocation14_spill] sm:$0xff] %v8649_v39  ;;  %12687 = vst [vmem:[#allocation40_spill] sm:$0xff] %v8657_v51  ;;  %v2877_v38 = vadd.f32 %v2857_v55, %v2801_v6  ;;  %v8671_v49 = vmax.f32 %v1991_v45, 0.0  ;;  %v1972_v27 = vmul.f32 %v12635_v37, %v12690_v50  ;;  %v2878_v59 = vadd.f32 %v2858_v57, %v2802_v36 }
 0x203   : > { %12688 = vst [vmem:[#allocation105_spill] sm:$0xff] %v8661_v9  ;;  %v2879_v24 = vadd.f32 %v2859_v4, %v2803_v8  ;;  %v2932_v34 = vmul.f32 %v8645_v32, %v12691_v30  ;;  %v2933_v20 = vmul.f32 %v8649_v39, %v12691_v30  ;;  %v8683_v6 = vrot.slane %v8486_v17, %v12612_v31  ;;  %v8702_v58 = vpop.permute.xlu1 %2449 }
 0x204   : > { %v8687_v26 = vrot.slane %v8488_v12, %v12612_v31  ;;  %v2934_v36 = vmul.f32 %v8657_v51, %v12691_v30  ;;  %v2935_v8 = vmul.f32 %v8661_v9, %v12691_v30  ;;  %v8695_v37 = vrot.slane %v8492_v7, %v12612_v31  ;;  %12696 = vst [vmem:[#allocation109_spill] sm:$0xff] %v8702_v58  ;;  %v12697_v51 = vld [vmem:[#allocation24_spill] sm:$0xff]  ;;  %v8713_v58 = vpop.permute.xlu0 %3593 }
 0x205   : > { %12692 = vst [vmem:[#allocation4_spill] sm:$0xff] %v8683_v6  ;;  %v8699_v10 = vrot.slane %v8494_v40, %v12612_v31  ;;  %v11920_v45 = vmov 34   ;;  %v1973_v55 = vmul.f32 %v12636_v47, %v12690_v50  ;;  %v1974_v57 = vmul.f32 %v12637_v2, %v12690_v50  ;;  %12699 = vst [vmem:[#allocation24_spill] sm:$0xff] %v8713_v58 }
 0x206   : > { %12693 = vst [vmem:[#allocation13_spill] sm:$0xff] %v8687_v26  ;;  %12694 = vst [vmem:[#allocation107_spill] sm:$0xff] %v8695_v37  ;;  %6004 = vset.pattern.permute.xlu0 %v11920_v45  ;;  %v2952_v4 = vadd.f32 %v2932_v34, %v2876_v42  ;;  %v2953_v30 = vadd.f32 %v2933_v20, %v2877_v38  ;;  %v1975_v9 = vmul.f32 %v12638_v11, %v12690_v50  ;;  %v12698_v45 = vmov 15   ;;  %v12701_v34 = vld [vmem:[#allocation23_spill] sm:$0xff] }
 0x207   : > { %12695 = vst [vmem:[#allocation108_spill] sm:$0xff] %v8699_v10  ;;  %4645 = vperm.xlu0 %6004, %v7972_v44   ;;  %v1992_v39 = vadd.f32 %v1972_v27, %v12697_v51  ;;  %v2954_v32 = vadd.f32 %v2934_v36, %v2878_v59  ;;  %v2955_v23 = vadd.f32 %v2935_v8, %v2879_v24  ;;  %v8740_v27 = vpop.permute.xlu1 %2457  ;;  %v12706_v59 = vld [vmem:[#allocation77_spill] sm:$0xff]  ;;  %v12707_v36 = vld [vmem:[#allocation32_spill] sm:$0xff] }
 0x208   : > { %5967 = vset.pattern.permute.xlu1 %v12698_v45  ;;  %v3008_v47 = vmul.f32 %v8683_v6, %v12700_v18  ;;  %v3009_v2 = vmul.f32 %v8687_v26, %v12700_v18  ;;  %v8721_v42 = vrot.slane %v8486_v17, %v12701_v34  ;;  %v8725_v11 = vrot.slane %v8488_v12, %v12701_v34 }
 0x209   : > { %3205 = vperm.xlu1 %5967, %v8010_v14   ;;  %v3010_v24 = vmul.f32 %v8695_v37, %v12700_v18  ;;  %v3011_v51 = vmul.f32 %v8699_v10, %v12700_v18  ;;  %v8734_v38 = vrot.slane %v8492_v7, %v12701_v34  ;;  %v8738_v50 = vrot.slane %v8494_v40, %v12701_v34  ;;  %v8747_v18 = vld [vmem:[%s11535_s5 + $0x18] sm:$0xff] }
 0x20a   : > { %12702 = vst [vmem:[#allocation76_spill] sm:$0xff] %v8721_v42  ;;  %12703 = vst [vmem:[#allocation110_spill] sm:$0xff] %v8725_v11  ;;  %v1993_v20 = vadd.f32 %v1973_v55, %v12706_v59  ;;  %v1994_v8 = vadd.f32 %v1974_v57, %v12707_v36  ;;  %v3028_v45 = vadd.f32 %v3008_v47, %v2952_v4  ;;  %v12708_v10 = vld [vmem:[#allocation34_spill] sm:$0xff]  ;;  %v11946_v36 = vmov 35  }
 0x20b   : > { %12704 = vst [vmem:[#allocation111_spill] sm:$0xff] %v8734_v38  ;;  %12705 = vst [vmem:[#allocation112_spill] sm:$0xff] %v8738_v50  ;;  %v3029_v26 = vadd.f32 %v3009_v2, %v2953_v30  ;;  %4657 = vperm.xlu0 %6004, %v8747_v18   ;;  %v1995_v37 = vadd.f32 %v1975_v9, %v12708_v10  ;;  %v3030_v6 = vadd.f32 %v3010_v24, %v2954_v32  ;;  %v8766_v9 = vld [vmem:[%s11535_s5 + $0x10] sm:$0xff] }
 0x20c   : > { %v3031_v58 = vadd.f32 %v3011_v51, %v2955_v23  ;;  %v3084_v15 = vmul.f32 %v8721_v42, %v12709_v61  ;;  %v3085_v55 = vmul.f32 %v8725_v11, %v12709_v61  ;;  %v8757_v57 = vrot.slane %v8486_v17, %v12629_v46  ;;  %v8769_v23 = vpop.permute.xlu0 %3657 }
 0x20d   : > { %v8761_v4 = vrot.slane %v8488_v12, %v12629_v46  ;;  %3209 = vperm.xlu1 %5967, %v8766_v9   ;;  %v3086_v32 = vmul.f32 %v8734_v38, %v12709_v61  ;;  %v3087_v10 = vmul.f32 %v8738_v50, %v12709_v61  ;;  %v8777_v30 = vrot.slane %v8492_v7, %v12629_v46  ;;  %v8788_v38 = vpop.permute.xlu1 %2521 }
 0x20e   : > { %12710 = vst [vmem:[#allocation77_spill] sm:$0xff] %v8757_v57  ;;  %v8781_v47 = vrot.slane %v8494_v40, %v12629_v46  ;;  %v8783_v2 = vmax.f32 %v1992_v39, 0.0  ;;  %v8785_v24 = vmax.f32 %v1993_v20, 0.0  ;;  %v3104_v51 = vadd.f32 %v3084_v15, %v3028_v45  ;;  %12716 = vst [vmem:[#allocation115_spill] sm:$0xff] %v8788_v38 }
 0x20f   : > { %12711 = vst [vmem:[#allocation32_spill] sm:$0xff] %v8761_v4  ;;  %12712 = vst [vmem:[#allocation34_spill] sm:$0xff] %v8777_v30  ;;  %v3105_v59 = vadd.f32 %v3085_v55, %v3029_v26  ;;  %6006 = vset.pattern.permute.xlu0 %v11946_v36  ;;  %v8790_v61 = vmax.f32 %v1994_v8, 0.0  ;;  %v8792_v50 = vmax.f32 %v1995_v37, 0.0  ;;  %v3106_v11 = vadd.f32 %v3086_v32, %v3030_v6  ;;  %v12728_v36 = vld [vmem:[#allocation5_spill] sm:$0xff] }
 0x210   : > { %12713 = vst [vmem:[#allocation60_spill] sm:$0xff] %v8781_v47  ;;  %12714 = vst [vmem:[#allocation113_spill] sm:$0xff] %v8783_v2  ;;  %v3107_v42 = vadd.f32 %v3087_v10, %v3031_v58  ;;  %4721 = vperm.xlu0 %6006, %v7972_v44   ;;  %v3160_v39 = vmul.f32 %v8757_v57, %v12719_v63  ;;  %v3161_v15 = vmul.f32 %v8761_v4, %v12719_v63  ;;  %v8808_v6 = vpop.permute.xlu0 %3669  ;;  %v12738_v4 = vld [vmem:[#allocation8_spill] sm:$0xff] }
 0x211   : > { %12715 = vst [vmem:[#allocation114_spill] sm:$0xff] %v8785_v24  ;;  %12717 = vst [vmem:[#allocation116_spill] sm:$0xff] %v8790_v61  ;;  %v8801_v26 = vrot.slane %v8486_v17, %v12647_v43  ;;  %v8805_v45 = vrot.slane %v8488_v12, %v12647_v43  ;;  %3217 = vperm.xlu1 %5967, %v8068_v52   ;;  %v3162_v44 = vmul.f32 %v8777_v30, %v12719_v63  ;;  %v8830_v32 = vpop.permute.xlu1 %2525 }
 0x212   : > { %12718 = vst [vmem:[#allocation117_spill] sm:$0xff] %v8792_v50  ;;  %12722 = vst [vmem:[#allocation119_spill] sm:$0xff] %v8808_v6  ;;  %v3163_v37 = vmul.f32 %v8781_v47, %v12719_v63  ;;  %v8816_v58 = vrot.slane %v8492_v7, %v12647_v43  ;;  %v8820_v17 = vrot.slane %v8494_v40, %v12647_v43  ;;  %v12780_v43 = vld [vmem:[#allocation90_spill] sm:$0xff] }
 0x213   : > { %12720 = vst [vmem:[#allocation12_spill] sm:$0xff] %v8801_v26  ;;  %12721 = vst [vmem:[#allocation118_spill] sm:$0xff] %v8805_v45  ;;  %v8824_v12 = vrot.slane %v8637_v53, %v12654_v48  ;;  %v8828_v20 = vrot.slane %v8666_v25, %v12654_v48  ;;  %v3180_v8 = vadd.f32 %v3160_v39, %v3104_v51 }
 0x214   : > { %12723 = vst [vmem:[#allocation120_spill] sm:$0xff] %v8816_v58  ;;  %12724 = vst [vmem:[#allocation121_spill] sm:$0xff] %v8820_v17  ;;  %v3181_v55 = vadd.f32 %v3161_v15, %v3105_v59  ;;  %v3182_v63 = vadd.f32 %v3162_v44, %v3106_v11  ;;  %v3183_v10 = vadd.f32 %v3163_v37, %v3107_v42  ;;  %4733 = vperm.xlu0 %6006, %v8747_v18   ;;  %v12729_v11 = vld [vmem:[#allocation99_spill] sm:$0xff]  ;;  %v12730_v59 = vmov 16  }
 0x215   : > { %12725 = vst [vmem:[#allocation122_spill] sm:$0xff] %v8824_v12  ;;  %12726 = vst [vmem:[#allocation123_spill] sm:$0xff] %v8828_v20  ;;  %v2340_v7 = vmul.f32 %v8280_v41, %v8484_v3  ;;  %v2341_v40 = vmul.f32 %v8292_v13, %v8484_v3  ;;  %v3236_v47 = vmul.f32 %v8801_v26, %v12728_v36  ;;  %5969 = vset.pattern.permute.xlu1 %v12730_v59 }
 0x216   : > { %12727 = vst [vmem:[#allocation124_spill] sm:$0xff] %v8830_v32  ;;  %v3237_v30 = vmul.f32 %v8805_v45, %v12728_v36  ;;  %v2342_v51 = vmul.f32 %v8300_v19, %v8484_v3  ;;  %v2343_v42 = vmul.f32 %v12729_v11, %v8484_v3  ;;  %v3238_v39 = vmul.f32 %v8816_v58, %v12728_v36  ;;  %v2028_v3 = vld [vmem:[%s11536_s6 + $0x18] sm:$0xff]  ;;  %v8860_v45 = vpop.permute.xlu0 %3733 }
 0x217   : > { %v3239_v15 = vmul.f32 %v8820_v17, %v12728_v36  ;;  %v8851_v44 = vadd.f32 %v2340_v7, %v8473_v28  ;;  %v8854_v37 = vadd.f32 %v2341_v40, %v8475_v0  ;;  %3281 = vperm.xlu1 %5969, %v8010_v14   ;;  %v3256_v59 = vadd.f32 %v3236_v47, %v3180_v8  ;;  %v8864_v17 = vpop.permute.xlu1 %2533  ;;  %v12734_v47 = vld [vmem:[#allocation63_spill] sm:$0xff]  ;;  %v12751_v11 = vld [vmem:[#allocation58_spill] sm:$0xff] }
 0x218   : > { %v3257_v26 = vadd.f32 %v3237_v30, %v3181_v55  ;;  %v2362_v58 = vadd.f32 %v2342_v51, %v8477_v54  ;;  %v2363_v36 = vadd.f32 %v2343_v42, %v8479_v33  ;;  %v8868_v28 = vrot.slane %v8668_v16, %v12654_v48  ;;  %v12735_v30 = vld [vmem:[#allocation49_spill] sm:$0xff]  ;;  %v12736_v54 = vld [vmem:[#allocation50_spill] sm:$0xff]  ;;  %v12737_v55 = vld [vmem:[#allocation28_spill] sm:$0xff] }
 0x219   : > { %v8872_v14 = vrot.slane %v8671_v49, %v12654_v48  ;;  %v3258_v0 = vadd.f32 %v3238_v39, %v3182_v63  ;;  %v3259_v7 = vadd.f32 %v3239_v15, %v3183_v10  ;;  %v12733_v40 = vmov 0  }
 0x21a   : > { %12731 = vst [vmem:[#allocation5_spill] sm:$0xff] %v8868_v28  ;;  %6008 = vset.pattern.permute.xlu0 %v12733_v40  ;;  %v8877_v8 = vmul.f32 %v12735_v30, %v12734_v47  ;;  %v8881_v33 = vmul.f32 %v12736_v54, %v12734_v47  ;;  %v3312_v51 = vmul.f32 %v8824_v12, %v12737_v55  ;;  %v8899_v40 = vld [vmem:[%s11537_s7] sm:$0x1] }
 0x21b   : > { %12732 = vst [vmem:[#allocation125_spill] sm:$0xff] %v8872_v14  ;;  %v3313_v42 = vmul.f32 %v8828_v20, %v12737_v55  ;;  %2108 = vperm.xlu0 %6008, %v2028_v3   ;;  %v2075_v63 = vmul.f32 %v12735_v30, %v12738_v4  ;;  %v2076_v10 = vmul.f32 %v12736_v54, %v12738_v4  ;;  %v8901_v3 = vpop.permute.xlu0 %3745 }
 0x21c   : > { %v3314_v39 = vmul.f32 %v8868_v28, %v12737_v55  ;;  %v3315_v15 = vmul.f32 %v8872_v14, %v12737_v55  ;;  %3285 = vperm.xlu1 %5969, %v8766_v9   ;;  %12739 = vst [vmem:[#allocation63_spill] sm:$0xff] %v8901_v3  ;;  %v3332_v57 = vadd.f32 %v3312_v51, %v3256_v59  ;;  %v8919_v59 = vpop.permute.xlu1 %2597  ;;  %v12779_v14 = vld [vmem:[#allocation89_spill] sm:$0xff] }
 0x21d   : > { %v3333_v30 = vadd.f32 %v3313_v42, %v3257_v26  ;;  %v8905_v54 = vrot.slane %v8637_v53, %v12663_v22  ;;  %v8909_v6 = vrot.slane %v8666_v25, %v12663_v22  ;;  %v8913_v38 = vrot.slane %v8668_v16, %v12663_v22  ;;  %12744 = vst [vmem:[#allocation128_spill] sm:$0xff] %v8919_v59  ;;  %v12745_v26 = vld [vmem:[#allocation39_spill] sm:$0xff]  ;;  %v12746_v42 = vld [vmem:[#allocation100_spill] sm:$0xff] }
 0x21e   : > { %v3334_v55 = vadd.f32 %v3314_v39, %v3258_v0  ;;  %v3335_v32 = vadd.f32 %v3315_v15, %v3259_v7  ;;  %v8917_v50 = vrot.slane %v8671_v49, %v12663_v22  ;;  %v8923_v51 = vmul.f32 %v12745_v26, %v12734_v47  ;;  %v12747_v0 = vld [vmem:[#allocation78_spill] sm:$0xff] }
 0x21f   : > { %12740 = vst [vmem:[#allocation28_spill] sm:$0xff] %v8905_v54  ;;  %12741 = vst [vmem:[#allocation8_spill] sm:$0xff] %v8909_v6  ;;  %v8927_v3 = vmul.f32 %v12746_v42, %v12734_v47  ;;  %v3388_v7 = vmul.f32 %v8905_v54, %v12747_v0  ;;  %v3389_v39 = vmul.f32 %v8909_v6, %v12747_v0  ;;  %4820 = vperm.xlu0 %6008, %v8899_v40   ;;  %v12748_v54 = vld [vmem:[#allocation10_spill] sm:$0xff] }
 0x220   : > { %12742 = vst [vmem:[#allocation126_spill] sm:$0xff] %v8913_v38  ;;  %12743 = vst [vmem:[#allocation127_spill] sm:$0xff] %v8917_v50  ;;  %v2077_v15 = vmul.f32 %v12745_v26, %v12738_v4  ;;  %v2078_v59 = vmul.f32 %v12746_v42, %v12738_v4  ;;  %v3390_v22 = vmul.f32 %v8913_v38, %v12747_v0  ;;  %3293 = vperm.xlu1 %5969, %v8068_v52   ;;  %v8949_v26 = vpop.permute.xlu0 %3809  ;;  %v12750_v42 = vld [vmem:[#allocation104_spill] sm:$0xff] }
 0x221   : > { %v3391_v47 = vmul.f32 %v8917_v50, %v12747_v0  ;;  %v8944_v61 = vadd.f32 %v12748_v54, %v2075_v63  ;;  %v8947_v6 = vadd.f32 %v12748_v54, %v2076_v10  ;;  %v3408_v24 = vadd.f32 %v3388_v7, %v3332_v57  ;;  %12749 = vst [vmem:[#allocation78_spill] sm:$0xff] %v8949_v26  ;;  %v8955_v50 = vpop.permute.xlu1 %2601 }
 0x222   : > { %v3409_v2 = vadd.f32 %v3389_v39, %v3333_v30  ;;  %v3410_v48 = vadd.f32 %v3390_v22, %v3334_v55  ;;  %v2416_v38 = vmul.f32 %v12750_v42, %v8616_v35  ;;  %v2417_v0 = vmul.f32 %v12751_v11, %v8616_v35  ;;  %12752 = vst [vmem:[#allocation10_spill] sm:$0xff] %v8955_v50  ;;  %v12755_v30 = vld [vmem:[#allocation37_spill] sm:$0xff] }
 0x223   : > { %v3411_v4 = vadd.f32 %v3391_v47, %v3335_v32  ;;  %v8959_v52 = vrot.slane %v8637_v53, %v12674_v60  ;;  %v8963_v57 = vrot.slane %v8666_v25, %v12674_v60  ;;  %v2418_v22 = vmul.f32 %v12755_v30, %v8616_v35  ;;  %v12756_v32 = vld [vmem:[#allocation43_spill] sm:$0xff] }
 0x224   : > { %v2419_v63 = vmul.f32 %v12756_v32, %v8616_v35  ;;  %v12757_v10 = vmov 2   ;;  %v8972_v55 = vrot.slane %v8668_v16, %v12674_v60  ;;  %v8976_v7 = vrot.slane %v8671_v49, %v12674_v60  ;;  %v8986_v11 = vpop.permute.xlu0 %3821 }
 0x225   : > { %12753 = vst [vmem:[#allocation129_spill] sm:$0xff] %v8959_v52  ;;  %12754 = vst [vmem:[#allocation130_spill] sm:$0xff] %v8963_v57  ;;  %6009 = vset.pattern.permute.xlu0 %v12757_v10  ;;  %v2436_v39 = vadd.f32 %v2416_v38, %v8851_v44  ;;  %v2437_v47 = vadd.f32 %v2417_v0, %v8854_v37  ;;  %v12760_v50 = vmov 17   ;;  %v3464_v30 = vmul.f32 %v8959_v52, %v8503_v5  ;;  %v12762_v44 = vld [vmem:[#allocation52_spill] sm:$0xff]  ;;  %v12764_v52 = vld [vmem:[#allocation67_spill] sm:$0xff] }
 0x226   : > { %12758 = vst [vmem:[#allocation131_spill] sm:$0xff] %v8972_v55  ;;  %12759 = vst [vmem:[#allocation132_spill] sm:$0xff] %v8976_v7  ;;  %5971 = vset.pattern.permute.xlu1 %v12760_v50  ;;  %v3465_v35 = vmul.f32 %v8963_v57, %v8503_v5  ;;  %v2438_v10 = vadd.f32 %v2418_v22, %v2362_v58  ;;  %v2439_v32 = vadd.f32 %v2419_v63, %v2363_v36  ;;  %v12763_v37 = vld [vmem:[#allocation88_spill] sm:$0xff]  ;;  %v9008_v36 = vpop.permute.xlu1 %2609  ;;  %v12778_v26 = vmov 5  }
 0x227   : > { %2225 = vperm.xlu0 %6009, %v8747_v18   ;;  %12761 = vst [vmem:[#allocation133_spill] sm:$0xff] %v8986_v11  ;;  %v8989_v60 = vadd.f32 %v12748_v54, %v2077_v15  ;;  %v8992_v38 = vadd.f32 %v12748_v54, %v2078_v59  ;;  %v8996_v0 = vmul.f32 %v12763_v37, %v12762_v44  ;;  %v9005_v58 = vld [vmem:[%s11535_s5 + $0x8] sm:$0xff]  ;;  %12765 = vst [vmem:[#allocation52_spill] sm:$0xff] %v9008_v36 }
 0x228   : > { %v9000_v42 = vmul.f32 %v12764_v52, %v12762_v44  ;;  %3357 = vperm.xlu1 %5971, %v9005_v58   ;;  %v3466_v54 = vmul.f32 %v8972_v55, %v8503_v5  ;;  %v3467_v59 = vmul.f32 %v8976_v7, %v8503_v5  ;;  %v3484_v15 = vadd.f32 %v3464_v30, %v3408_v24 }
 0x229   : > { %v3485_v22 = vadd.f32 %v3465_v35, %v3409_v2  ;;  %v9016_v63 = vrot.slane %v8637_v53, %v12684_v56  ;;  %v9020_v11 = vrot.slane %v8666_v25, %v12684_v56  ;;  %v9024_v57 = vrot.slane %v8637_v53, %v12612_v31 }
 0x22a   : > { %v9028_v55 = vrot.slane %v8666_v25, %v12612_v31  ;;  %v3486_v50 = vadd.f32 %v3466_v54, %v3410_v48  ;;  %v3487_v5 = vadd.f32 %v3467_v59, %v3411_v4  ;;  %v9032_v2 = vrot.slane %v8668_v16, %v12684_v56 }
 0x22b   : > { %12766 = vst [vmem:[#allocation134_spill] sm:$0xff] %v9016_v63  ;;  %12767 = vst [vmem:[#allocation135_spill] sm:$0xff] %v9020_v11  ;;  %v9036_v24 = vrot.slane %v8671_v49, %v12684_v56  ;;  %4873 = vperm.xlu0 %6009, %v8899_v40   ;;  %v3540_v30 = vmul.f32 %v9016_v63, %v8597_v1  ;;  %v3541_v35 = vmul.f32 %v9020_v11, %v8597_v1  ;;  %v9062_v63 = vpop.permute.xlu1 %2673 }
 0x22c   : > { %12768 = vst [vmem:[#allocation136_spill] sm:$0xff] %v9024_v57  ;;  %12769 = vst [vmem:[#allocation137_spill] sm:$0xff] %v9028_v55  ;;  %v3616_v48 = vmul.f32 %v9024_v57, %v8675_v21  ;;  %v3617_v4 = vmul.f32 %v9028_v55, %v8675_v21  ;;  %3361 = vperm.xlu1 %5971, %v8766_v9   ;;  %v3542_v54 = vmul.f32 %v9032_v2, %v8597_v1  ;;  %v9060_v57 = vpop.permute.xlu0 %3885  ;;  %v12776_v55 = vld [vmem:[#allocation69_spill] sm:$0xff] }
 0x22d   : > { %12770 = vst [vmem:[#allocation138_spill] sm:$0xff] %v9032_v2  ;;  %12771 = vst [vmem:[#allocation139_spill] sm:$0xff] %v9036_v24  ;;  %v3543_v59 = vmul.f32 %v9036_v24, %v8597_v1  ;;  %v9054_v56 = vrot.slane %v8668_v16, %v12612_v31  ;;  %v9058_v11 = vrot.slane %v8671_v49, %v12612_v31  ;;  %v12777_v2 = vld [vmem:[#allocation48_spill] sm:$0xff] }
 0x22e   : > { %12774 = vst [vmem:[#allocation142_spill] sm:$0xff] %v9060_v57  ;;  %12775 = vst [vmem:[#allocation143_spill] sm:$0xff] %v9062_v63  ;;  %v2178_v7 = vmul.f32 %v12776_v55, %v12762_v44  ;;  %v2179_v36 = vmul.f32 %v12777_v2, %v12762_v44  ;;  %v3560_v19 = vadd.f32 %v3540_v30, %v3484_v15  ;;  %v12781_v15 = vld [vmem:[#allocation91_spill] sm:$0xff] }
 0x22f   : > { %12772 = vst [vmem:[#allocation140_spill] sm:$0xff] %v9054_v56  ;;  %12773 = vst [vmem:[#allocation141_spill] sm:$0xff] %v9058_v11  ;;  %v3561_v1 = vadd.f32 %v3541_v35, %v3485_v22  ;;  %v3562_v24 = vadd.f32 %v3542_v54, %v3486_v50  ;;  %v3563_v13 = vadd.f32 %v3543_v59, %v3487_v5  ;;  %6012 = vset.pattern.permute.xlu0 %v12778_v26  ;;  %v9080_v50 = vld [vmem:[%s11535_s5 + $0x20] sm:$0xf]  ;;  %v12782_v26 = vld [vmem:[#allocation92_spill] sm:$0xff]  ;;  %v9106_v54 = vpop.permute.xlu1 %2677 }
 0x230   : > { %v3618_v41 = vmul.f32 %v9054_v56, %v8675_v21  ;;  %v3619_v31 = vmul.f32 %v9058_v11, %v8675_v21  ;;  %v3636_v57 = vadd.f32 %v3616_v48, %v3560_v19  ;;  %v2492_v28 = vmul.f32 %v12779_v14, %v8740_v27  ;;  %3369 = vperm.xlu1 %5971, %v9080_v50   ;;  %v9096_v30 = vpop.permute.xlu0 %3897  ;;  %v12854_v56 = vld [vmem:[#allocation17_spill] sm:$0xff] }
 0x231   : > { %v3637_v63 = vadd.f32 %v3617_v4, %v3561_v1  ;;  %v2493_v44 = vmul.f32 %v12780_v43, %v8740_v27  ;;  %v2494_v21 = vmul.f32 %v12781_v15, %v8740_v27  ;;  %v2495_v19 = vmul.f32 %v12782_v26, %v8740_v27  ;;  %2453 = vperm.xlu0 %6012, %v8747_v18  }
 0x232   : > { %v9089_v22 = vrot.slane %v8637_v53, %v12701_v34  ;;  %v9093_v5 = vrot.slane %v8666_v25, %v12701_v34  ;;  %12785 = vst [vmem:[#allocation146_spill] sm:$0xff] %v9096_v30  ;;  %v2512_v35 = vadd.f32 %v2492_v28, %v2436_v39  ;;  %v9100_v4 = vrot.slane %v8668_v16, %v12701_v34 }
 0x233   : > { %v2513_v48 = vadd.f32 %v2493_v44, %v2437_v47  ;;  %v9104_v27 = vrot.slane %v8671_v49, %v12701_v34  ;;  %12788 = vst [vmem:[#allocation149_spill] sm:$0xff] %v9106_v54  ;;  %v2514_v59 = vadd.f32 %v2494_v21, %v2438_v10  ;;  %v2515_v1 = vadd.f32 %v2495_v19, %v2439_v32  ;;  %v12790_v34 = vld [vmem:[#allocation72_spill] sm:$0xff] }
 0x234   : > { %12783 = vst [vmem:[#allocation144_spill] sm:$0xff] %v9089_v22  ;;  %12784 = vst [vmem:[#allocation145_spill] sm:$0xff] %v9093_v5  ;;  %v3692_v11 = vmul.f32 %v9089_v22, %v8769_v23  ;;  %v3693_v18 = vmul.f32 %v9093_v5, %v8769_v23  ;;  %v3638_v28 = vadd.f32 %v3618_v41, %v3562_v24  ;;  %v12789_v30 = vmov 18   ;;  %v9127_v24 = vpop.permute.xlu1 %2685 }
 0x235   : > { %12786 = vst [vmem:[#allocation147_spill] sm:$0xff] %v9100_v4  ;;  %12787 = vst [vmem:[#allocation148_spill] sm:$0xff] %v9104_v27  ;;  %v3639_v39 = vadd.f32 %v3619_v31, %v3563_v13  ;;  %v3694_v47 = vmul.f32 %v9100_v4, %v8769_v23  ;;  %v3695_v44 = vmul.f32 %v9104_v27, %v8769_v23  ;;  %5973 = vset.pattern.permute.xlu1 %v12789_v30  ;;  %v12791_v30 = vld [vmem:[#allocation86_spill] sm:$0xff] }
 0x236   : > { %v2180_v10 = vmul.f32 %v12763_v37, %v12790_v34  ;;  %v2181_v32 = vmul.f32 %v12764_v52, %v12790_v34  ;;  %v3712_v21 = vadd.f32 %v3692_v11, %v3636_v57  ;;  %v3713_v19 = vadd.f32 %v3693_v18, %v3637_v63  ;;  %4957 = vperm.xlu0 %6012, %v8899_v40   ;;  %v9137_v18 = vpop.permute.xlu0 %3961 }
 0x237   : > { %v2182_v31 = vmul.f32 %v12776_v55, %v12790_v34  ;;  %v2183_v41 = vmul.f32 %v12777_v2, %v12790_v34  ;;  %v3714_v13 = vadd.f32 %v3694_v47, %v3638_v28  ;;  %v3715_v23 = vadd.f32 %v3695_v44, %v3639_v39  ;;  %3433 = vperm.xlu1 %5973, %v9005_v58   ;;  %v12802_v55 = vld [vmem:[#allocation79_spill] sm:$0xff] }
 0x238   : > { %v2124_v37 = vadd.f32 %v12791_v30, %v8877_v8  ;;  %v2125_v11 = vadd.f32 %v12791_v30, %v8881_v33  ;;  %v2126_v57 = vadd.f32 %v12791_v30, %v8923_v51  ;;  %v2127_v63 = vadd.f32 %v12791_v30, %v8927_v3 }
 0x239   : > { %v2196_v34 = vadd.f32 %v8996_v0, %v8944_v61  ;;  %v2197_v28 = vadd.f32 %v9000_v42, %v8947_v6  ;;  %v2198_v39 = vadd.f32 %v2178_v7, %v8989_v60  ;;  %v2199_v8 = vadd.f32 %v2179_v36, %v8992_v38  ;;  %v12797_v42 = vld [vmem:[#allocation70_spill] sm:$0xff] }
 0x23a   : > { %v2200_v47 = vadd.f32 %v2180_v10, %v2124_v37  ;;  %v2201_v33 = vadd.f32 %v2181_v32, %v2125_v11  ;;  %v9147_v51 = vrot.slane %v8637_v53, %v12629_v46  ;;  %v9151_v3 = vrot.slane %v8666_v25, %v12629_v46  ;;  %v9175_v44 = vpop.permute.xlu0 %3973  ;;  %v9177_v10 = vpop.permute.xlu1 %2749 }
 0x23b   : > { %v12794_v30 = vmov 8   ;;  %v9154_v61 = vadd.f32 %v2182_v31, %v2126_v57  ;;  %v9156_v0 = vadd.f32 %v2183_v41, %v2127_v63  ;;  %v9160_v60 = vrot.slane %v8668_v16, %v12629_v46  ;;  %3437 = vperm.xlu1 %5973, %v8766_v9   ;;  %12798 = vst [vmem:[#allocation70_spill] sm:$0xff] %v9175_v44  ;;  %12799 = vst [vmem:[#allocation152_spill] sm:$0xff] %v9177_v10  ;;  %v12800_v41 = vld [vmem:[#allocation74_spill] sm:$0xff]  ;;  %v12801_v57 = vld [vmem:[#allocation75_spill] sm:$0xff] }
 0x23c   : > { %12792 = vst [vmem:[#allocation72_spill] sm:$0xff] %v9147_v51  ;;  %12793 = vst [vmem:[#allocation86_spill] sm:$0xff] %v9151_v3  ;;  %6017 = vset.pattern.permute.xlu0 %v12794_v30  ;;  %v9164_v6 = vrot.slane %v8671_v49, %v12629_v46  ;;  %v2252_v7 = vmul.f32 %v12640_v29, %v12797_v42  ;;  %v2253_v38 = vmul.f32 %v12641_v62, %v12797_v42  ;;  %v12803_v44 = vld [vmem:[#allocation93_spill] sm:$0xff] }
 0x23d   : > { %12795 = vst [vmem:[#allocation150_spill] sm:$0xff] %v9160_v60  ;;  %v3768_v37 = vmul.f32 %v9147_v51, %v8860_v45  ;;  %v3769_v36 = vmul.f32 %v9151_v3, %v8860_v45  ;;  %5041 = vperm.xlu0 %6017, %v8899_v40   ;;  %v3770_v32 = vmul.f32 %v9160_v60, %v8860_v45  ;;  %v12805_v51 = vld [vmem:[#allocation56_spill] sm:$0xff] }
 0x23e   : > { %12796 = vst [vmem:[#allocation151_spill] sm:$0xff] %v9164_v6  ;;  %v3771_v31 = vmul.f32 %v9164_v6, %v8860_v45  ;;  %v2568_v11 = vmul.f32 %v12800_v41, %v8864_v17  ;;  %v2569_v63 = vmul.f32 %v12801_v57, %v8864_v17  ;;  %v2570_v52 = vmul.f32 %v12802_v55, %v8864_v17  ;;  %v12804_v45 = vld [vmem:[#allocation57_spill] sm:$0xff] }
 0x23f   : > { %v3788_v30 = vadd.f32 %v3768_v37, %v3712_v21  ;;  %v3789_v2 = vadd.f32 %v3769_v36, %v3713_v19  ;;  %v2571_v10 = vmul.f32 %v12803_v44, %v8864_v17  ;;  %v3790_v54 = vadd.f32 %v3770_v32, %v3714_v13  ;;  %3445 = vperm.xlu1 %5973, %v9080_v50   ;;  %v12807_v17 = vld [vmem:[#allocation15_spill] sm:$0xff]  ;;  %v9210_v13 = vpop.permute.xlu1 %2753 }
 0x240   : > { %v3791_v46 = vadd.f32 %v3771_v31, %v3715_v23  ;;  %v2588_v60 = vadd.f32 %v2568_v11, %v2512_v35  ;;  %v2589_v3 = vadd.f32 %v2569_v63, %v2513_v48  ;;  %v2254_v6 = vmul.f32 %v12804_v45, %v12797_v42  ;;  %12810 = vst [vmem:[#allocation154_spill] sm:$0xff] %v9210_v13  ;;  %v9212_v23 = vpop.permute.xlu0 %4037  ;;  %v12818_v31 = vld [vmem:[#allocation5_spill] sm:$0xff] }
 0x241   : > { %v2255_v27 = vmul.f32 %v12805_v51, %v12797_v42  ;;  %v2590_v21 = vadd.f32 %v2570_v52, %v2514_v59  ;;  %v2591_v19 = vadd.f32 %v2571_v10, %v2515_v1  ;;  %v12806_v37 = vmov 11   ;;  %v12811_v52 = vld [vmem:[#allocation44_spill] sm:$0xff]  ;;  %v12820_v11 = vld [vmem:[#allocation125_spill] sm:$0xff] }
 0x242   : > { %6020 = vset.pattern.permute.xlu0 %v12806_v37  ;;  %v9198_v36 = vadd.f32 %v2252_v7, %v2196_v34  ;;  %v9200_v4 = vadd.f32 %v2253_v38, %v2197_v28  ;;  %v9204_v35 = vmul.f32 %v8824_v12, %v12807_v17  ;;  %v9208_v48 = vmul.f32 %v8828_v20, %v12807_v17  ;;  %v12812_v34 = vld [vmem:[#allocation59_spill] sm:$0xff]  ;;  %v12822_v37 = vld [vmem:[#allocation78_spill] sm:$0xff]  ;;  %v12837_v12 = vld [vmem:[#allocation113_spill] sm:$0xff] }
 0x243   : > { %5113 = vperm.xlu0 %6020, %v8899_v40   ;;  %v2256_v59 = vmul.f32 %v12640_v29, %v12811_v52  ;;  %v2257_v1 = vmul.f32 %v12641_v62, %v12811_v52  ;;  %v9221_v28 = vrot.slane %v8637_v53, %v12812_v34  ;;  %v9225_v42 = vrot.slane %v8666_v25, %v12812_v34  ;;  %v12827_v20 = vld [vmem:[#allocation98_spill] sm:$0xff] }
 0x244   : > { %12808 = vst [vmem:[#allocation15_spill] sm:$0xff] %v9204_v35  ;;  %12809 = vst [vmem:[#allocation153_spill] sm:$0xff] %v9208_v48  ;;  %v2258_v7 = vmul.f32 %v12804_v45, %v12811_v52  ;;  %v2259_v38 = vmul.f32 %v12805_v51, %v12811_v52  ;;  %v9233_v10 = vrot.slane %v8668_v16, %v12812_v34  ;;  %v12817_v53 = vmov 19   ;;  %v9257_v35 = vpop.permute.xlu1 %2761  ;;  %v9260_v29 = vpop.permute.xlu0 %4049 }
 0x245   : > { %12813 = vst [vmem:[#allocation44_spill] sm:$0xff] %v9221_v28  ;;  %12814 = vst [vmem:[#allocation155_spill] sm:$0xff] %v9225_v42  ;;  %v9237_v32 = vrot.slane %v8671_v49, %v12812_v34  ;;  %5975 = vset.pattern.permute.xlu1 %v12817_v53  ;;  %v9242_v25 = vmul.f32 %v12818_v31, %v12807_v17  ;;  %v9246_v63 = vmul.f32 %v12820_v11, %v12807_v17  ;;  %v12823_v17 = vmov 14   ;;  %v12825_v11 = vld [vmem:[#allocation82_spill] sm:$0xff] }
 0x246   : > { %12815 = vst [vmem:[#allocation156_spill] sm:$0xff] %v9233_v10  ;;  %v3844_v52 = vmul.f32 %v9221_v28, %v12822_v37  ;;  %v3845_v16 = vmul.f32 %v9225_v42, %v12822_v37  ;;  %3509 = vperm.xlu1 %5975, %v9005_v58   ;;  %v2274_v49 = vadd.f32 %v2254_v6, %v2198_v39  ;;  %12824 = vst [vmem:[#allocation78_spill] sm:$0xff] %v9260_v29  ;;  %v12844_v28 = vld [vmem:[#allocation117_spill] sm:$0xff] }
 0x247   : > { %12816 = vst [vmem:[#allocation157_spill] sm:$0xff] %v9237_v32  ;;  %12819 = vst [vmem:[#allocation158_spill] sm:$0xff] %v9242_v25  ;;  %v2275_v48 = vadd.f32 %v2255_v27, %v2199_v8  ;;  %v3846_v53 = vmul.f32 %v9233_v10, %v12822_v37  ;;  %v3847_v25 = vmul.f32 %v9237_v32, %v12822_v37  ;;  %6023 = vset.pattern.permute.xlu0 %v12823_v17  ;;  %v12826_v37 = vld [vmem:[#allocation97_spill] sm:$0xff]  ;;  %v12842_v10 = vld [vmem:[#allocation116_spill] sm:$0xff] }
 0x248   : > { %12821 = vst [vmem:[#allocation159_spill] sm:$0xff] %v9246_v63  ;;  %v2276_v63 = vadd.f32 %v2256_v59, %v2200_v47  ;;  %v2277_v51 = vadd.f32 %v2257_v1, %v2201_v33  ;;  %v3864_v45 = vadd.f32 %v3844_v52, %v3788_v30  ;;  %v3865_v62 = vadd.f32 %v3845_v16, %v3789_v2  ;;  %v12828_v47 = vld [vmem:[#allocation6_spill] sm:$0xff]  ;;  %v12829_v2 = vld [vmem:[#allocation99_spill] sm:$0xff] }
 0x249   : > { %5197 = vperm.xlu0 %6023, %v8899_v40   ;;  %v2278_v27 = vadd.f32 %v2258_v7, %v9154_v61  ;;  %v2279_v39 = vadd.f32 %v2259_v38, %v9156_v0  ;;  %v3866_v8 = vadd.f32 %v3846_v53, %v3790_v54  ;;  %v3867_v6 = vadd.f32 %v3847_v25, %v3791_v46  ;;  %v12830_v59 = vld [vmem:[#allocation94_spill] sm:$0xff]  ;;  %v12831_v54 = vld [vmem:[#allocation52_spill] sm:$0xff]  ;;  %v12832_v0 = vld [vmem:[#allocation27_spill] sm:$0xff] }
 0x24a   : > { %v2328_v31 = vmul.f32 %v12826_v37, %v12825_v11  ;;  %v2329_v17 = vmul.f32 %v12827_v20, %v12825_v11  ;;  %v2330_v33 = vmul.f32 %v12828_v47, %v12825_v11  ;;  %v2331_v30 = vmul.f32 %v12829_v2, %v12825_v11  ;;  %3513 = vperm.xlu1 %5975, %v8766_v9   ;;  %v12833_v7 = vld [vmem:[#allocation11_spill] sm:$0xff]  ;;  %v12835_v52 = vld [vmem:[#allocation42_spill] sm:$0xff] }
 0x24b   : > { %v2332_v61 = vmul.f32 %v12826_v37, %v12830_v59  ;;  %v2333_v46 = vmul.f32 %v12827_v20, %v12830_v59  ;;  %v2644_v1 = vmul.f32 %v12832_v0, %v12831_v54  ;;  %v2645_v38 = vmul.f32 %v12833_v7, %v12831_v54  ;;  %v12834_v53 = vld [vmem:[#allocation31_spill] sm:$0xff]  ;;  %v12839_v37 = vld [vmem:[#allocation114_spill] sm:$0xff] }
 0x24c   : > { %v2646_v25 = vmul.f32 %v12834_v53, %v12831_v54  ;;  %v2647_v11 = vmul.f32 %v12835_v52, %v12831_v54  ;;  %v12836_v16 = vld [vmem:[#allocation19_spill] sm:$0xff]  ;;  %v12841_v20 = vmov 17   ;;  %v9303_v54 = vpop.permute.xlu1 %2825  ;;  %v12847_v0 = vld [vmem:[#allocation142_spill] sm:$0xff] }
 0x24d   : > { %v9288_v29 = vrot.slane %v12837_v12, %v12836_v16  ;;  %v9292_v13 = vrot.slane %v12839_v37, %v12836_v16  ;;  %6026 = vset.pattern.permute.xlu0 %v12841_v20  ;;  %v2664_v34 = vadd.f32 %v2644_v1, %v2588_v60  ;;  %v2665_v32 = vadd.f32 %v2645_v38, %v2589_v3  ;;  %v9311_v3 = vpop.permute.xlu0 %4113 }
 0x24e   : > { %v9297_v42 = vrot.slane %v12842_v10, %v12836_v16  ;;  %v9301_v53 = vrot.slane %v12844_v28, %v12836_v16  ;;  %12846 = vst [vmem:[#allocation114_spill] sm:$0xff] %v9303_v54  ;;  %5269 = vperm.xlu0 %6026, %v8899_v40   ;;  %v2666_v52 = vadd.f32 %v2646_v25, %v2590_v21  ;;  %v12848_v16 = vld [vmem:[#allocation96_spill] sm:$0xff] }
 0x24f   : > { %12838 = vst [vmem:[#allocation82_spill] sm:$0xff] %v9288_v29  ;;  %12840 = vst [vmem:[#allocation94_spill] sm:$0xff] %v9292_v13  ;;  %v2667_v7 = vadd.f32 %v2647_v11, %v2591_v19  ;;  %v3920_v5 = vmul.f32 %v9288_v29, %v12847_v0  ;;  %v3921_v20 = vmul.f32 %v9292_v13, %v12847_v0  ;;  %3521 = vperm.xlu1 %5975, %v9080_v50   ;;  %v12850_v29 = vld [vmem:[#allocation38_spill] sm:$0xff] }
 0x250   : > { %12843 = vst [vmem:[#allocation52_spill] sm:$0xff] %v9297_v42  ;;  %12845 = vst [vmem:[#allocation113_spill] sm:$0xff] %v9301_v53  ;;  %v2334_v60 = vmul.f32 %v12828_v47, %v12830_v59  ;;  %v2335_v1 = vmul.f32 %v12829_v2, %v12830_v59  ;;  %v3922_v21 = vmul.f32 %v9297_v42, %v12847_v0  ;;  %v9324_v13 = vmax.f32 %v12848_v16, 0.0  ;;  %v9329_v2 = vpop.permute.xlu1 %2829  ;;  %v12860_v16 = vld [vmem:[#allocation28_spill] sm:$0xff] }
 0x251   : > { %v3923_v19 = vmul.f32 %v9301_v53, %v12847_v0  ;;  %v2348_v38 = vadd.f32 %v2328_v31, %v9198_v36  ;;  %v2349_v25 = vadd.f32 %v2329_v17, %v9200_v4  ;;  %v3940_v11 = vadd.f32 %v3920_v5, %v3864_v45  ;;  %12852 = vst [vmem:[#allocation142_spill] sm:$0xff] %v9329_v2  ;;  %v12856_v36 = vld [vmem:[#allocation62_spill] sm:$0xff]  ;;  %v9339_v4 = vpop.permute.xlu0 %4125  ;;  %v12859_v17 = vld [vmem:[#allocation95_spill] sm:$0xff] }
 0x252   : > { %v3941_v54 = vadd.f32 %v3921_v20, %v3865_v62  ;;  %12849 = vst [vmem:[#allocation116_spill] sm:$0xff] %v9324_v13  ;;  %v9327_v47 = vmax.f32 %v12850_v29, 0.0  ;;  %v3942_v22 = vadd.f32 %v3922_v21, %v3866_v8  ;;  %v12853_v42 = vmov 20   ;;  %12858 = vst [vmem:[#allocation17_spill] sm:$0xff] %v9339_v4 }
 0x253   : > { %v3943_v59 = vadd.f32 %v3923_v19, %v3867_v6  ;;  %6029 = vset.pattern.permute.xlu0 %v12853_v42  ;;  %v9333_v0 = vmax.f32 %v12854_v56, 0.0  ;;  %v9336_v31 = vmax.f32 %v12856_v36, 0.0  ;;  %v2350_v5 = vadd.f32 %v2330_v33, %v2274_v49  ;;  %5977 = vset.pattern.permute.xlu1 %v12853_v42  ;;  %v12862_v56 = vld [vmem:[#allocation8_spill] sm:$0xff]  ;;  %v12865_v42 = vld [vmem:[#allocation9_spill] sm:$0xff]  ;;  %v12871_v36 = vld [vmem:[#allocation126_spill] sm:$0xff] }
 0x254   : > { %12851 = vst [vmem:[#allocation117_spill] sm:$0xff] %v9327_v47  ;;  %v2351_v62 = vadd.f32 %v2331_v30, %v2275_v48  ;;  %v2352_v29 = vadd.f32 %v2332_v61, %v2276_v63  ;;  %v2353_v45 = vadd.f32 %v2333_v46, %v2277_v51  ;;  %v2354_v8 = vadd.f32 %v2334_v60, %v2278_v27  ;;  %v12864_v48 = vld [vmem:[#allocation53_spill] sm:$0xff]  ;;  %v12866_v51 = vld [vmem:[#allocation71_spill] sm:$0xff]  ;;  %v12867_v63 = vld [vmem:[#allocation104_spill] sm:$0xff]  ;;  %v9363_v19 = vpop.permute.xlu1 %2837 }
 0x255   : > { %12855 = vst [vmem:[#allocation96_spill] sm:$0xff] %v9333_v0  ;;  %12857 = vst [vmem:[#allocation38_spill] sm:$0xff] %v9336_v31  ;;  %v2355_v6 = vadd.f32 %v2335_v1, %v2279_v39  ;;  %3585 = vperm.xlu1 %5977, %v9005_v58   ;;  %v9344_v20 = vmul.f32 %v12860_v16, %v12859_v17  ;;  %v9348_v21 = vmul.f32 %v12862_v56, %v12859_v17  ;;  %v12868_v39 = vld [vmem:[#allocation58_spill] sm:$0xff]  ;;  %v12869_v61 = vld [vmem:[#allocation85_spill] sm:$0xff] }
 0x256   : > { %v2720_v49 = vmul.f32 %v12864_v48, %v9127_v24  ;;  %v2721_v33 = vmul.f32 %v12865_v42, %v9127_v24  ;;  %5353 = vperm.xlu0 %6029, %v8899_v40   ;;  %v2404_v27 = vmul.f32 %v12867_v63, %v12866_v51  ;;  %v2405_v30 = vmul.f32 %v12868_v39, %v12866_v51  ;;  %v12870_v60 = vld [vmem:[#allocation80_spill] sm:$0xff]  ;;  %v12875_v0 = vld [vmem:[#allocation22_spill] sm:$0xff] }
 0x257   : > { %12861 = vst [vmem:[#allocation62_spill] sm:$0xff] %v9344_v20  ;;  %12863 = vst [vmem:[#allocation95_spill] sm:$0xff] %v9348_v21  ;;  %v2722_v46 = vmul.f32 %v12869_v61, %v9127_v24  ;;  %v2723_v1 = vmul.f32 %v12870_v60, %v9127_v24  ;;  %v9367_v21 = vmul.f32 %v12871_v36, %v12859_v17  ;;  %v12873_v20 = vld [vmem:[#allocation127_spill] sm:$0xff] }
 0x258   : > { %v9371_v56 = vmul.f32 %v12873_v20, %v12859_v17  ;;  %v9373_v16 = vadd.f32 %v2720_v49, %v2664_v34  ;;  %v9375_v4 = vadd.f32 %v2721_v33, %v2665_v32  ;;  %v9383_v24 = vrot.slane %v12837_v12, %v12875_v0  ;;  %v9390_v17 = vpop.permute.xlu0 %4189  ;;  %v12878_v34 = vld [vmem:[#allocation37_spill] sm:$0xff]  ;;  %v12883_v20 = vld [vmem:[#allocation102_spill] sm:$0xff] }
 0x259   : > { %12872 = vst [vmem:[#allocation71_spill] sm:$0xff] %v9367_v21  ;;  %v9377_v2 = vadd.f32 %v2722_v46, %v2666_v52  ;;  %v9379_v31 = vadd.f32 %v2723_v1, %v2667_v7  ;;  %v9387_v36 = vrot.slane %v12839_v37, %v12875_v0  ;;  %3589 = vperm.xlu1 %5977, %v8766_v9   ;;  %v12879_v52 = vld [vmem:[#allocation43_spill] sm:$0xff]  ;;  %v12882_v46 = vmov 23  }
 0x25a   : > { %12874 = vst [vmem:[#allocation160_spill] sm:$0xff] %v9371_v56  ;;  %12876 = vst [vmem:[#allocation161_spill] sm:$0xff] %v9383_v24  ;;  %v2406_v32 = vmul.f32 %v12878_v34, %v12866_v51  ;;  %v2407_v49 = vmul.f32 %v12879_v52, %v12866_v51  ;;  %v9398_v7 = vrot.slane %v12842_v10, %v12875_v0  ;;  %6032 = vset.pattern.permute.xlu0 %v12882_v46 }
 0x25b   : > { %12877 = vst [vmem:[#allocation162_spill] sm:$0xff] %v9387_v36  ;;  %v9402_v33 = vrot.slane %v12844_v28, %v12875_v0  ;;  %v9405_v1 = vadd.f32 %v2404_v27, %v2348_v38  ;;  %v9407_v56 = vadd.f32 %v2405_v30, %v2349_v25  ;;  %v3996_v21 = vmul.f32 %v9383_v24, %v9137_v18  ;;  %v9422_v27 = vpop.permute.xlu1 %2901 }
 0x25c   : > { %12880 = vst [vmem:[#allocation163_spill] sm:$0xff] %v9398_v7  ;;  %v3997_v51 = vmul.f32 %v9387_v36, %v9137_v18  ;;  %5437 = vperm.xlu0 %6032, %v8899_v40   ;;  %v2408_v47 = vmul.f32 %v12867_v63, %v12883_v20  ;;  %v2409_v0 = vmul.f32 %v12868_v39, %v12883_v20  ;;  %12884 = vst [vmem:[#allocation102_spill] sm:$0xff] %v9422_v27  ;;  %v9429_v63 = vpop.permute.xlu0 %4201  ;;  %v12887_v27 = vld [vmem:[#allocation129_spill] sm:$0xff] }
 0x25d   : > { %12881 = vst [vmem:[#allocation164_spill] sm:$0xff] %v9402_v33  ;;  %v3998_v38 = vmul.f32 %v9398_v7, %v9137_v18  ;;  %v3999_v25 = vmul.f32 %v9402_v33, %v9137_v18  ;;  %v2410_v30 = vmul.f32 %v12878_v34, %v12883_v20  ;;  %v2411_v36 = vmul.f32 %v12879_v52, %v12883_v20  ;;  %v12886_v33 = vld [vmem:[#allocation81_spill] sm:$0xff]  ;;  %v12889_v34 = vld [vmem:[#allocation130_spill] sm:$0xff]  ;;  %v12893_v20 = vld [vmem:[#allocation132_spill] sm:$0xff] }
 0x25e   : > { %v4016_v24 = vadd.f32 %v3996_v21, %v3940_v11  ;;  %v4017_v13 = vadd.f32 %v3997_v51, %v3941_v54  ;;  %3597 = vperm.xlu1 %5977, %v9080_v50   ;;  %12885 = vst [vmem:[#allocation165_spill] sm:$0xff] %v9429_v63  ;;  %v9431_v39 = vadd.f32 %v2406_v32, %v2350_v5  ;;  %v12891_v54 = vld [vmem:[#allocation131_spill] sm:$0xff]  ;;  %v12896_v21 = vld [vmem:[#allocation25_spill] sm:$0xff] }
 0x25f   : > { %v9433_v7 = vadd.f32 %v2407_v49, %v2351_v62  ;;  %v4018_v53 = vadd.f32 %v3998_v38, %v3942_v22  ;;  %v4019_v18 = vadd.f32 %v3999_v25, %v3943_v59  ;;  %v9437_v60 = vmul.f32 %v12887_v27, %v12886_v33  ;;  %v9464_v51 = vpop.permute.xlu1 %2905  ;;  %v12904_v25 = vld [vmem:[#allocation134_spill] sm:$0xff]  ;;  %v12909_v27 = vld [vmem:[#allocation84_spill] sm:$0xff] }
 0x260   : > { %v9441_v61 = vmul.f32 %v12889_v34, %v12886_v33  ;;  %v9445_v11 = vmul.f32 %v12891_v54, %v12886_v33  ;;  %v9449_v5 = vmul.f32 %v12893_v20, %v12886_v33  ;;  %v12895_v62 = vmov 26   ;;  %12899 = vst [vmem:[#allocation170_spill] sm:$0xff] %v9464_v51  ;;  %v12906_v54 = vld [vmem:[#allocation135_spill] sm:$0xff] }
 0x261   : > { %12888 = vst [vmem:[#allocation81_spill] sm:$0xff] %v9437_v60  ;;  %6035 = vset.pattern.permute.xlu0 %v12895_v62  ;;  %v9452_v22 = vadd.f32 %v2408_v47, %v2352_v29  ;;  %v9454_v59 = vadd.f32 %v2409_v0, %v2353_v45  ;;  %v9458_v32 = vrot.slane %v12837_v12, %v12896_v21  ;;  %v12902_v29 = vmov 21   ;;  %v12903_v45 = vld [vmem:[#allocation35_spill] sm:$0xff]  ;;  %v12911_v60 = vld [vmem:[#allocation30_spill] sm:$0xff] }
 0x262   : > { %12890 = vst [vmem:[#allocation166_spill] sm:$0xff] %v9441_v61  ;;  %12892 = vst [vmem:[#allocation167_spill] sm:$0xff] %v9445_v11  ;;  %v9462_v49 = vrot.slane %v12839_v37, %v12896_v21  ;;  %5509 = vperm.xlu0 %6035, %v8899_v40   ;;  %v2430_v33 = vadd.f32 %v2410_v30, %v2354_v8  ;;  %v2431_v38 = vadd.f32 %v2411_v36, %v2355_v6  ;;  %v9489_v36 = vpop.permute.xlu0 %4265  ;;  %v12910_v11 = vld [vmem:[#allocation3_spill] sm:$0xff]  ;;  %v12912_v51 = vmov 29  }
 0x263   : > { %12894 = vst [vmem:[#allocation168_spill] sm:$0xff] %v9449_v5  ;;  %12897 = vst [vmem:[#allocation25_spill] sm:$0xff] %v9458_v32  ;;  %v9469_v47 = vrot.slane %v12842_v10, %v12896_v21  ;;  %v9473_v0 = vrot.slane %v12844_v28, %v12896_v21  ;;  %5979 = vset.pattern.permute.xlu1 %v12902_v29  ;;  %v9478_v20 = vmul.f32 %v12904_v25, %v12903_v45  ;;  %v12908_v25 = vld [vmem:[#allocation83_spill] sm:$0xff]  ;;  %v9503_v63 = vpop.permute.xlu1 %2913 }
 0x264   : > { %12898 = vst [vmem:[#allocation169_spill] sm:$0xff] %v9462_v49  ;;  %v9482_v34 = vmul.f32 %v12906_v54, %v12903_v45  ;;  %v4072_v8 = vmul.f32 %v9458_v32, %v9212_v23  ;;  %v4073_v6 = vmul.f32 %v9462_v49, %v9212_v23  ;;  %3661 = vperm.xlu1 %5979, %v9005_v58   ;;  %v12933_v62 = vld [vmem:[#allocation115_spill] sm:$0xff] }
 0x265   : > { %12900 = vst [vmem:[#allocation171_spill] sm:$0xff] %v9469_v47  ;;  %12901 = vst [vmem:[#allocation172_spill] sm:$0xff] %v9473_v0  ;;  %v4074_v30 = vmul.f32 %v9469_v47, %v9212_v23  ;;  %v4075_v29 = vmul.f32 %v9473_v0, %v9212_v23  ;;  %v2796_v54 = vmul.f32 %v12908_v25, %v9257_v35 }
 0x266   : > { %12905 = vst [vmem:[#allocation35_spill] sm:$0xff] %v9478_v20  ;;  %12907 = vst [vmem:[#allocation173_spill] sm:$0xff] %v9482_v34  ;;  %v2797_v34 = vmul.f32 %v12909_v27, %v9257_v35  ;;  %v4092_v20 = vadd.f32 %v4072_v8, %v4016_v24  ;;  %v4093_v5 = vadd.f32 %v4073_v6, %v4017_v13  ;;  %6038 = vset.pattern.permute.xlu0 %v12912_v51  ;;  %v12913_v24 = vld [vmem:[#allocation106_spill] sm:$0xff] }
 0x267   : > { %v2798_v61 = vmul.f32 %v12910_v11, %v9257_v35  ;;  %v2799_v52 = vmul.f32 %v12911_v60, %v9257_v35  ;;  %v4094_v47 = vadd.f32 %v4074_v30, %v4018_v53  ;;  %v4095_v23 = vadd.f32 %v4075_v29, %v4019_v18  ;;  %5593 = vperm.xlu0 %6038, %v8899_v40   ;;  %v9516_v53 = vpop.permute.xlu0 %4277  ;;  %v12920_v29 = vld [vmem:[#allocation51_spill] sm:$0xff] }
 0x268   : > { %v2816_v0 = vadd.f32 %v2796_v54, %v9373_v16  ;;  %v2817_v49 = vadd.f32 %v2797_v34, %v9375_v4  ;;  %v2480_v13 = vmul.f32 %v12779_v14, %v12913_v24  ;;  %v2481_v8 = vmul.f32 %v12780_v43, %v12913_v24  ;;  %3665 = vperm.xlu1 %5979, %v8766_v9   ;;  %v12915_v16 = vld [vmem:[#allocation138_spill] sm:$0xff]  ;;  %v12917_v4 = vld [vmem:[#allocation139_spill] sm:$0xff] }
 0x269   : > { %v2818_v35 = vadd.f32 %v2798_v61, %v9377_v2  ;;  %v2819_v6 = vadd.f32 %v2799_v52, %v9379_v31  ;;  %12914 = vst [vmem:[#allocation83_spill] sm:$0xff] %v9516_v53  ;;  %v9520_v18 = vmul.f32 %v12915_v16, %v12903_v45  ;;  %v9524_v34 = vmul.f32 %v12917_v4, %v12903_v45  ;;  %v12919_v61 = vld [vmem:[#allocation109_spill] sm:$0xff] }
 0x26a   : > { %v2482_v54 = vmul.f32 %v12781_v15, %v12913_v24  ;;  %v2483_v2 = vmul.f32 %v12782_v26, %v12913_v24  ;;  %v2484_v31 = vmul.f32 %v12779_v14, %v12919_v61  ;;  %v2485_v52 = vmul.f32 %v12780_v43, %v12919_v61 }
 0x26b   : > { %12916 = vst [vmem:[#allocation84_spill] sm:$0xff] %v9520_v18  ;;  %12918 = vst [vmem:[#allocation3_spill] sm:$0xff] %v9524_v34  ;;  %v9536_v30 = vrot.slane %v12837_v12, %v12920_v29  ;;  %v9540_v45 = vrot.slane %v12839_v37, %v12920_v29  ;;  %v2486_v4 = vmul.f32 %v12781_v15, %v12919_v61  ;;  %v9554_v18 = vpop.permute.xlu1 %2977  ;;  %v12926_v43 = vmov 32  }
 0x26c   : > { %v2487_v24 = vmul.f32 %v12782_v26, %v12919_v61  ;;  %v9548_v16 = vrot.slane %v12842_v10, %v12920_v29  ;;  %v9552_v34 = vrot.slane %v12844_v28, %v12920_v29  ;;  %12925 = vst [vmem:[#allocation175_spill] sm:$0xff] %v9554_v18  ;;  %6041 = vset.pattern.permute.xlu0 %v12926_v43  ;;  %v12929_v29 = vld [vmem:[#allocation136_spill] sm:$0xff] }
 0x26d   : > { %12921 = vst [vmem:[#allocation30_spill] sm:$0xff] %v9536_v30  ;;  %12922 = vst [vmem:[#allocation106_spill] sm:$0xff] %v9540_v45  ;;  %v2500_v14 = vadd.f32 %v2480_v13, %v9405_v1  ;;  %v2501_v51 = vadd.f32 %v2481_v8, %v9407_v56  ;;  %v4148_v15 = vmul.f32 %v9536_v30, %v9311_v3  ;;  %3673 = vperm.xlu1 %5979, %v9080_v50   ;;  %v9570_v13 = vpop.permute.xlu0 %4341 }
 0x26e   : > { %12923 = vst [vmem:[#allocation109_spill] sm:$0xff] %v9548_v16  ;;  %12924 = vst [vmem:[#allocation174_spill] sm:$0xff] %v9552_v34  ;;  %v4149_v61 = vmul.f32 %v9540_v45, %v9311_v3  ;;  %v2502_v26 = vadd.f32 %v2482_v54, %v9431_v39  ;;  %v2503_v53 = vadd.f32 %v2483_v2, %v9433_v7  ;;  %5677 = vperm.xlu0 %6041, %v8899_v40  }
 0x26f   : > { %v4150_v18 = vmul.f32 %v9548_v16, %v9311_v3  ;;  %v4151_v1 = vmul.f32 %v9552_v34, %v9311_v3  ;;  %v2504_v56 = vadd.f32 %v2484_v31, %v9452_v22  ;;  %v2505_v8 = vadd.f32 %v2485_v52, %v9454_v59  ;;  %v9575_v2 = vpop.permute.xlu1 %2981  ;;  %v12928_v16 = vld [vmem:[#allocation24_spill] sm:$0xff]  ;;  %v12931_v3 = vld [vmem:[#allocation137_spill] sm:$0xff] }
 0x270   : > { %v4168_v43 = vadd.f32 %v4148_v15, %v4092_v20  ;;  %v4169_v45 = vadd.f32 %v4149_v61, %v4093_v5  ;;  %v2506_v30 = vadd.f32 %v2486_v4, %v2430_v33  ;;  %v2507_v39 = vadd.f32 %v2487_v24, %v2431_v38  ;;  %12927 = vst [vmem:[#allocation176_spill] sm:$0xff] %v9575_v2  ;;  %v12935_v33 = vld [vmem:[#allocation45_spill] sm:$0xff]  ;;  %v12939_v52 = vld [vmem:[#allocation68_spill] sm:$0xff] }
 0x271   : > { %v4170_v54 = vadd.f32 %v4150_v18, %v4094_v47  ;;  %v4171_v7 = vadd.f32 %v4151_v1, %v4095_v23  ;;  %v9579_v32 = vmul.f32 %v12929_v29, %v12928_v16  ;;  %v9583_v34 = vmul.f32 %v12931_v3, %v12928_v16  ;;  %v12936_v47 = vld [vmem:[#allocation87_spill] sm:$0xff]  ;;  %v9599_v18 = vpop.permute.xlu0 %4353  ;;  %v12938_v4 = vld [vmem:[#allocation41_spill] sm:$0xff]  ;;  %v12940_v61 = vld [vmem:[#allocation20_spill] sm:$0xff] }
 0x272   : > { %v2556_v22 = vmul.f32 %v12800_v41, %v12933_v62  ;;  %v2557_v15 = vmul.f32 %v12801_v57, %v12933_v62  ;;  %v12934_v20 = vmov 22   ;;  %v2558_v5 = vmul.f32 %v12802_v55, %v12933_v62  ;;  %12937 = vst [vmem:[#allocation115_spill] sm:$0xff] %v9599_v18 }
 0x273   : > { %12930 = vst [vmem:[#allocation24_spill] sm:$0xff] %v9579_v32  ;;  %12932 = vst [vmem:[#allocation177_spill] sm:$0xff] %v9583_v34  ;;  %5981 = vset.pattern.permute.xlu1 %v12934_v20  ;;  %v2559_v59 = vmul.f32 %v12803_v44, %v12933_v62  ;;  %v2872_v38 = vmul.f32 %v12935_v33, %v9363_v19  ;;  %v2873_v23 = vmul.f32 %v12936_v47, %v9363_v19  ;;  %v12943_v20 = vmov 35  }
 0x274   : > { %3737 = vperm.xlu1 %5981, %v9005_v58   ;;  %v2874_v31 = vmul.f32 %v12938_v4, %v9363_v19  ;;  %v2875_v24 = vmul.f32 %v12939_v52, %v9363_v19  ;;  %v9607_v1 = vrot.slane %v12837_v12, %v12940_v61  ;;  %v9611_v62 = vrot.slane %v12839_v37, %v12940_v61  ;;  %v9622_v19 = vpop.permute.xlu1 %2989 }
 0x275   : > { %6044 = vset.pattern.permute.xlu0 %v12943_v20  ;;  %v2892_v3 = vadd.f32 %v2872_v38, %v2816_v0  ;;  %v2893_v29 = vadd.f32 %v2873_v23, %v2817_v49  ;;  %v9616_v34 = vrot.slane %v12842_v10, %v12940_v61  ;;  %v9620_v32 = vrot.slane %v12844_v28, %v12940_v61  ;;  %v12946_v0 = vld [vmem:[#allocation140_spill] sm:$0xff]  ;;  %v12948_v23 = vld [vmem:[#allocation141_spill] sm:$0xff] }
 0x276   : > { %12941 = vst [vmem:[#allocation45_spill] sm:$0xff] %v9607_v1  ;;  %12942 = vst [vmem:[#allocation87_spill] sm:$0xff] %v9611_v62  ;;  %5749 = vperm.xlu0 %6044, %v8899_v40   ;;  %v2894_v18 = vadd.f32 %v2874_v31, %v2818_v35  ;;  %v2895_v2 = vadd.f32 %v2875_v24, %v2819_v6  ;;  %v4224_v52 = vmul.f32 %v9607_v1, %v9390_v17  ;;  %v12950_v35 = vld [vmem:[#allocation124_spill] sm:$0xff]  ;;  %v12952_v1 = vld [vmem:[#allocation119_spill] sm:$0xff] }
 0x277   : > { %12944 = vst [vmem:[#allocation41_spill] sm:$0xff] %v9616_v34  ;;  %12945 = vst [vmem:[#allocation20_spill] sm:$0xff] %v9620_v32  ;;  %v4225_v49 = vmul.f32 %v9611_v62, %v9390_v17  ;;  %v9631_v38 = vmul.f32 %v12946_v0, %v12928_v16  ;;  %v9635_v61 = vmul.f32 %v12948_v23, %v12928_v16 }
 0x278   : > { %v4226_v20 = vmul.f32 %v9616_v34, %v9390_v17  ;;  %v4227_v40 = vmul.f32 %v9620_v32, %v9390_v17  ;;  %3741 = vperm.xlu1 %5981, %v8766_v9   ;;  %v2560_v6 = vmul.f32 %v12800_v41, %v12950_v35  ;;  %v2561_v31 = vmul.f32 %v12801_v57, %v12950_v35  ;;  %v9652_v41 = vpop.permute.xlu1 %3053  ;;  %v12953_v57 = vld [vmem:[#allocation144_spill] sm:$0xff] }
 0x279   : > { %12947 = vst [vmem:[#allocation178_spill] sm:$0xff] %v9631_v38  ;;  %12949 = vst [vmem:[#allocation179_spill] sm:$0xff] %v9635_v61  ;;  %v4244_v24 = vadd.f32 %v4224_v52, %v4168_v43  ;;  %v4245_v0 = vadd.f32 %v4225_v49, %v4169_v45  ;;  %v9646_v38 = vpop.permute.xlu0 %4417  ;;  %v2562_v16 = vmul.f32 %v12802_v55, %v12950_v35  ;;  %v12955_v45 = vld [vmem:[#allocation145_spill] sm:$0xff]  ;;  %v12957_v49 = vld [vmem:[#allocation147_spill] sm:$0xff] }
 0x27a   : > { %v2563_v23 = vmul.f32 %v12803_v44, %v12950_v35  ;;  %v4246_v61 = vadd.f32 %v4226_v20, %v4170_v54  ;;  %v4247_v17 = vadd.f32 %v4227_v40, %v4171_v7  ;;  %v2576_v32 = vadd.f32 %v2556_v22, %v2500_v14  ;;  %12951 = vst [vmem:[#allocation124_spill] sm:$0xff] %v9652_v41  ;;  %v12959_v54 = vld [vmem:[#allocation148_spill] sm:$0xff]  ;;  %v12969_v35 = vld [vmem:[#allocation11_spill] sm:$0xff] }
 0x27b   : > { %v2577_v9 = vadd.f32 %v2557_v15, %v2501_v51  ;;  %v2578_v34 = vadd.f32 %v2558_v5, %v2502_v26  ;;  %v2579_v62 = vadd.f32 %v2559_v59, %v2503_v53  ;;  %v9656_v43 = vmul.f32 %v12953_v57, %v12952_v1  ;;  %v12961_v53 = vld [vmem:[#allocation23_spill] sm:$0xff] }
 0x27c   : > { %v9660_v52 = vmul.f32 %v12955_v45, %v12952_v1  ;;  %v9664_v55 = vmul.f32 %v12957_v49, %v12952_v1  ;;  %v9668_v14 = vmul.f32 %v12959_v54, %v12952_v1  ;;  %3749 = vperm.xlu1 %5981, %v9080_v50   ;;  %v2580_v26 = vadd.f32 %v2560_v6, %v2504_v56  ;;  %v12968_v1 = vld [vmem:[#allocation27_spill] sm:$0xff]  ;;  %v12972_v49 = vld [vmem:[#allocation14_spill] sm:$0xff] }
 0x27d   : > { %12954 = vst [vmem:[#allocation119_spill] sm:$0xff] %v9656_v43  ;;  %v2581_v51 = vadd.f32 %v2561_v31, %v2505_v8  ;;  %v9673_v7 = vrot.slane %v12837_v12, %v12961_v53  ;;  %v9677_v22 = vrot.slane %v12839_v37, %v12961_v53  ;;  %v9679_v15 = vpop.permute.xlu0 %4429  ;;  %v2582_v20 = vadd.f32 %v2562_v16, %v2506_v30  ;;  %v12967_v8 = vld [vmem:[#allocation128_spill] sm:$0xff]  ;;  %v12974_v43 = vld [vmem:[#allocation105_spill] sm:$0xff] }
 0x27e   : > { %12956 = vst [vmem:[#allocation180_spill] sm:$0xff] %v9660_v52  ;;  %12958 = vst [vmem:[#allocation181_spill] sm:$0xff] %v9664_v55  ;;  %v2583_v5 = vadd.f32 %v2563_v23, %v2507_v39  ;;  %v9683_v59 = vrot.slane %v12842_v10, %v12961_v53  ;;  %v9687_v56 = vrot.slane %v12844_v28, %v12961_v53  ;;  %v9697_v39 = vpop.permute.xlu1 %3057  ;;  %v12971_v53 = vld [vmem:[#allocation29_spill] sm:$0xff]  ;;  %v12973_v55 = vld [vmem:[#allocation40_spill] sm:$0xff] }
 0x27f   : > { %12960 = vst [vmem:[#allocation182_spill] sm:$0xff] %v9668_v14  ;;  %12962 = vst [vmem:[#allocation23_spill] sm:$0xff] %v9673_v7  ;;  %v2632_v40 = vmul.f32 %v12968_v1, %v12967_v8  ;;  %v2633_v6 = vmul.f32 %v12969_v35, %v12967_v8  ;;  %v4300_v31 = vmul.f32 %v9673_v7, %v9489_v36 }
 0x280   : > { %12963 = vst [vmem:[#allocation183_spill] sm:$0xff] %v9677_v22  ;;  %12964 = vst [vmem:[#allocation184_spill] sm:$0xff] %v9679_v15  ;;  %v4301_v30 = vmul.f32 %v9677_v22, %v9489_v36  ;;  %v4302_v23 = vmul.f32 %v9683_v59, %v9489_v36  ;;  %v4303_v16 = vmul.f32 %v9687_v56, %v9489_v36  ;;  %5983 = vset.pattern.permute.xlu1 %v12882_v46  ;;  %v12978_v46 = vld [vmem:[#allocation86_spill] sm:$0xff] }
 0x281   : > { %12965 = vst [vmem:[#allocation185_spill] sm:$0xff] %v9683_v59  ;;  %12966 = vst [vmem:[#allocation186_spill] sm:$0xff] %v9687_v56  ;;  %v2948_v54 = vmul.f32 %v12971_v53, %v9503_v63  ;;  %v2949_v45 = vmul.f32 %v12972_v49, %v9503_v63  ;;  %v4320_v57 = vadd.f32 %v4300_v31, %v4244_v24  ;;  %3813 = vperm.xlu1 %5983, %v9005_v58   ;;  %v12975_v56 = vld [vmem:[#allocation63_spill] sm:$0xff]  ;;  %v12976_v59 = vld [vmem:[#allocation72_spill] sm:$0xff] }
 0x282   : > { %12970 = vst [vmem:[#allocation128_spill] sm:$0xff] %v9697_v39  ;;  %v4321_v14 = vadd.f32 %v4301_v30, %v4245_v0  ;;  %v2950_v52 = vmul.f32 %v12973_v55, %v9503_v63  ;;  %v2951_v39 = vmul.f32 %v12974_v43, %v9503_v63  ;;  %v4322_v15 = vadd.f32 %v4302_v23, %v4246_v61  ;;  %v9721_v30 = vpop.permute.xlu0 %4493  ;;  %v9723_v7 = vpop.permute.xlu1 %3065  ;;  %v12980_v63 = vld [vmem:[#allocation150_spill] sm:$0xff] }
 0x283   : > { %v4323_v36 = vadd.f32 %v4303_v16, %v4247_v17  ;;  %v2968_v41 = vadd.f32 %v2948_v54, %v2892_v3  ;;  %v2969_v44 = vadd.f32 %v2949_v45, %v2893_v29  ;;  %v9715_v22 = vmul.f32 %v12976_v59, %v12975_v56  ;;  %v12982_v29 = vld [vmem:[#allocation151_spill] sm:$0xff]  ;;  %v12985_v54 = vld [vmem:[#allocation42_spill] sm:$0xff] }
 0x284   : > { %v9719_v24 = vmul.f32 %v12978_v46, %v12975_v56  ;;  %v2970_v0 = vadd.f32 %v2950_v52, %v2894_v18  ;;  %v2971_v31 = vadd.f32 %v2951_v39, %v2895_v2  ;;  %v9727_v61 = vmul.f32 %v12980_v63, %v12975_v56  ;;  %v12984_v17 = vld [vmem:[#allocation31_spill] sm:$0xff]  ;;  %v12986_v18 = vld [vmem:[#allocation10_spill] sm:$0xff] }
 0x285   : > { %12977 = vst [vmem:[#allocation29_spill] sm:$0xff] %v9715_v22  ;;  %v9731_v3 = vmul.f32 %v12982_v29, %v12975_v56  ;;  %v2634_v45 = vmul.f32 %v12984_v17, %v12967_v8  ;;  %v2635_v23 = vmul.f32 %v12985_v54, %v12967_v8  ;;  %v2636_v2 = vmul.f32 %v12968_v1, %v12986_v18  ;;  %v12987_v39 = vld [vmem:[#allocation26_spill] sm:$0xff]  ;;  %v9752_v29 = vld [vmem:[%s11535_s5 + $0x10] sm:$0xff] }
 0x286   : > { %12979 = vst [vmem:[#allocation14_spill] sm:$0xff] %v9719_v24  ;;  %12981 = vst [vmem:[#allocation63_spill] sm:$0xff] %v9727_v61  ;;  %v2637_v52 = vmul.f32 %v12969_v35, %v12986_v18  ;;  %v9743_v16 = vrot.slane %v12837_v12, %v12987_v39  ;;  %v9747_v56 = vrot.slane %v12839_v37, %v12987_v39  ;;  %3817 = vperm.xlu1 %5983, %v9752_v29   ;;  %v9775_v22 = vpop.permute.xlu1 %3129  ;;  %v13041_v43 = vmov 25  }
 0x287   : > { %12983 = vst [vmem:[#allocation187_spill] sm:$0xff] %v9731_v3  ;;  %v2652_v8 = vadd.f32 %v2632_v40, %v2576_v32  ;;  %v2653_v63 = vadd.f32 %v2633_v6, %v2577_v9  ;;  %v9757_v46 = vrot.slane %v12842_v10, %v12987_v39  ;;  %v9761_v59 = vrot.slane %v12844_v28, %v12987_v39 }
 0x288   : > { %12988 = vst [vmem:[#allocation10_spill] sm:$0xff] %v9743_v16  ;;  %12989 = vst [vmem:[#allocation26_spill] sm:$0xff] %v9747_v56  ;;  %v2638_v3 = vmul.f32 %v12984_v17, %v12986_v18  ;;  %v2639_v61 = vmul.f32 %v12985_v54, %v12986_v18  ;;  %v4376_v24 = vmul.f32 %v9743_v16, %v9570_v13  ;;  %v9777_v54 = vpop.permute.xlu0 %4505  ;;  %v12993_v16 = vld [vmem:[#allocation143_spill] sm:$0xff] }
 0x289   : > { %12990 = vst [vmem:[#allocation188_spill] sm:$0xff] %v9757_v46  ;;  %12991 = vst [vmem:[#allocation189_spill] sm:$0xff] %v9761_v59  ;;  %v4377_v32 = vmul.f32 %v9747_v56, %v9570_v13  ;;  %v2654_v9 = vadd.f32 %v2634_v45, %v2578_v34  ;;  %v2655_v40 = vadd.f32 %v2635_v23, %v2579_v62 }
 0x28a   : > { %v4378_v6 = vmul.f32 %v9757_v46, %v9570_v13  ;;  %v4379_v39 = vmul.f32 %v9761_v59, %v9570_v13  ;;  %12992 = vst [vmem:[#allocation190_spill] sm:$0xff] %v9775_v22  ;;  %v2656_v17 = vadd.f32 %v2636_v2, %v2580_v26  ;;  %v2657_v35 = vadd.f32 %v2637_v52, %v2581_v51  ;;  %v12994_v59 = vld [vmem:[#allocation133_spill] sm:$0xff]  ;;  %v12995_v22 = vld [vmem:[#allocation44_spill] sm:$0xff] }
 0x28b   : > { %v4396_v1 = vadd.f32 %v4376_v24, %v4320_v57  ;;  %v4397_v18 = vadd.f32 %v4377_v32, %v4321_v14  ;;  %3825 = vperm.xlu1 %5983, %v9080_v50   ;;  %v2708_v34 = vmul.f32 %v12864_v48, %v12993_v16  ;;  %v2709_v62 = vmul.f32 %v12865_v42, %v12993_v16  ;;  %v12997_v57 = vld [vmem:[#allocation155_spill] sm:$0xff]  ;;  %v12999_v51 = vld [vmem:[#allocation156_spill] sm:$0xff]  ;;  %v13001_v2 = vld [vmem:[#allocation157_spill] sm:$0xff] }
 0x28c   : > { %v4398_v45 = vadd.f32 %v4378_v6, %v4322_v15  ;;  %v4399_v23 = vadd.f32 %v4379_v39, %v4323_v36  ;;  %v2658_v46 = vadd.f32 %v2638_v3, %v2582_v20  ;;  %v2659_v13 = vadd.f32 %v2639_v61, %v2583_v5  ;;  %v13003_v15 = vld [vmem:[#allocation4_spill] sm:$0xff]  ;;  %v13004_v5 = vld [vmem:[#allocation13_spill] sm:$0xff]  ;;  %v9804_v61 = vpop.permute.xlu1 %3133 }
 0x28d   : > { %v9786_v26 = vmul.f32 %v12995_v22, %v12994_v59  ;;  %v9790_v14 = vmul.f32 %v12997_v57, %v12994_v59  ;;  %v9794_v24 = vmul.f32 %v12999_v51, %v12994_v59  ;;  %v9798_v52 = vmul.f32 %v13001_v2, %v12994_v59  ;;  %13005 = vst [vmem:[#allocation193_spill] sm:$0xff] %v9804_v61  ;;  %v13006_v3 = vld [vmem:[#allocation85_spill] sm:$0xff]  ;;  %v13007_v6 = vld [vmem:[#allocation80_spill] sm:$0xff]  ;;  %v13008_v51 = vld [vmem:[#allocation107_spill] sm:$0xff] }
 0x28e   : > { %v3024_v20 = vmul.f32 %v13003_v15, %v9622_v19  ;;  %v3025_v36 = vmul.f32 %v13004_v5, %v9622_v19  ;;  %v2710_v32 = vmul.f32 %v13006_v3, %v12993_v16  ;;  %v2711_v39 = vmul.f32 %v13007_v6, %v12993_v16  ;;  %v13009_v59 = vld [vmem:[#allocation108_spill] sm:$0xff]  ;;  %v9824_v15 = vpop.permute.xlu0 %4569 }
 0x28f   : > { %12996 = vst [vmem:[#allocation143_spill] sm:$0xff] %v9786_v26  ;;  %12998 = vst [vmem:[#allocation133_spill] sm:$0xff] %v9790_v14  ;;  %v3026_v57 = vmul.f32 %v13008_v51, %v9622_v19  ;;  %v3027_v2 = vmul.f32 %v13009_v59, %v9622_v19  ;;  %v13010_v22 = vmov 24   ;;  %v13011_v26 = vld [vmem:[#allocation149_spill] sm:$0xff] }
 0x290   : > { %13000 = vst [vmem:[#allocation191_spill] sm:$0xff] %v9794_v24  ;;  %13002 = vst [vmem:[#allocation192_spill] sm:$0xff] %v9798_v52  ;;  %5985 = vset.pattern.permute.xlu1 %v13010_v22  ;;  %v9815_v52 = vadd.f32 %v2708_v34, %v2652_v8  ;;  %v9817_v24 = vadd.f32 %v2709_v62, %v2653_v63  ;;  %v3044_v14 = vadd.f32 %v3024_v20, %v2968_v41  ;;  %v13012_v41 = vld [vmem:[#allocation59_spill] sm:$0xff]  ;;  %v9838_v8 = vpop.permute.xlu1 %3141  ;;  %v13024_v20 = vld [vmem:[#allocation113_spill] sm:$0xff] }
 0x291   : > { %v3045_v61 = vadd.f32 %v3025_v36, %v2969_v44  ;;  %3889 = vperm.xlu1 %5985, %v9005_v58   ;;  %v2712_v56 = vmul.f32 %v12864_v48, %v13011_v26  ;;  %v2713_v16 = vmul.f32 %v12865_v42, %v13011_v26  ;;  %v3046_v51 = vadd.f32 %v3026_v57, %v2970_v0 }
 0x292   : > { %v3047_v5 = vadd.f32 %v3027_v2, %v2971_v31  ;;  %v2714_v19 = vmul.f32 %v13006_v3, %v13011_v26  ;;  %v2715_v63 = vmul.f32 %v13007_v6, %v13011_v26  ;;  %v9832_v44 = vrot.slane %v12837_v12, %v13012_v41  ;;  %v13017_v12 = vld [vmem:[#allocation146_spill] sm:$0xff] }
 0x293   : > { %v9836_v58 = vrot.slane %v12839_v37, %v13012_v41  ;;  %v9840_v0 = vadd.f32 %v2710_v32, %v2654_v9  ;;  %v9842_v31 = vadd.f32 %v2711_v39, %v2655_v40  ;;  %v9846_v34 = vrot.slane %v12842_v10, %v13012_v41  ;;  %v13018_v26 = vld [vmem:[#allocation82_spill] sm:$0xff]  ;;  %v13022_v10 = vld [vmem:[#allocation52_spill] sm:$0xff] }
 0x294   : > { %13013 = vst [vmem:[#allocation149_spill] sm:$0xff] %v9832_v44  ;;  %v9850_v62 = vrot.slane %v12844_v28, %v13012_v41  ;;  %v9854_v57 = vmul.f32 %v13018_v26, %v13017_v12  ;;  %v13020_v37 = vld [vmem:[#allocation94_spill] sm:$0xff]  ;;  %v4452_v9 = vmul.f32 %v9832_v44, %v9646_v38  ;;  %v9867_v28 = vmul.f32 %v13022_v10, %v13017_v12  ;;  %v13026_v10 = vld [vmem:[#allocation152_spill] sm:$0xff] }
 0x295   : > { %13014 = vst [vmem:[#allocation59_spill] sm:$0xff] %v9836_v58  ;;  %13015 = vst [vmem:[#allocation194_spill] sm:$0xff] %v9846_v34  ;;  %v9858_v2 = vmul.f32 %v13020_v37, %v13017_v12  ;;  %v4453_v40 = vmul.f32 %v9836_v58, %v9646_v38  ;;  %3893 = vperm.xlu1 %5985, %v9752_v29   ;;  %v9871_v36 = vmul.f32 %v13024_v20, %v13017_v12  ;;  %v13027_v20 = vld [vmem:[#allocation19_spill] sm:$0xff]  ;;  %v13040_v44 = vld [vmem:[#allocation112_spill] sm:$0xff] }
 0x296   : > { %13016 = vst [vmem:[#allocation195_spill] sm:$0xff] %v9850_v62  ;;  %13019 = vst [vmem:[#allocation146_spill] sm:$0xff] %v9854_v57  ;;  %v4454_v32 = vmul.f32 %v9846_v34, %v9646_v38  ;;  %v4455_v39 = vmul.f32 %v9850_v62, %v9646_v38  ;;  %v9877_v41 = vadd.f32 %v2712_v56, %v2656_v17  ;;  %v13030_v38 = vld [vmem:[#allocation117_spill] sm:$0xff]  ;;  %v9908_v57 = vpop.permute.xlu1 %3205 }
 0x297   : > { %13021 = vst [vmem:[#allocation196_spill] sm:$0xff] %v9858_v2  ;;  %13023 = vst [vmem:[#allocation197_spill] sm:$0xff] %v9867_v28  ;;  %v9879_v22 = vadd.f32 %v2713_v16, %v2657_v35  ;;  %v9881_v37 = vadd.f32 %v2714_v19, %v2658_v46  ;;  %v9883_v26 = vadd.f32 %v2715_v63, %v2659_v13  ;;  %v9897_v35 = vpop.permute.xlu0 %4581  ;;  %v13032_v13 = vld [vmem:[#allocation96_spill] sm:$0xff]  ;;  %v13034_v19 = vld [vmem:[#allocation38_spill] sm:$0xff] }
 0x298   : > { %13025 = vst [vmem:[#allocation198_spill] sm:$0xff] %v9871_v36  ;;  %v2784_v28 = vmul.f32 %v12908_v25, %v13026_v10  ;;  %v2785_v12 = vmul.f32 %v12909_v27, %v13026_v10  ;;  %v13028_v36 = vld [vmem:[#allocation116_spill] sm:$0xff]  ;;  %v9895_v17 = vrot.slane %v13030_v38, %v13027_v20  ;;  %v4472_v46 = vadd.f32 %v4452_v9, %v4396_v1 }
 0x299   : > { %v9891_v2 = vrot.slane %v13028_v36, %v13027_v20  ;;  %v4473_v56 = vadd.f32 %v4453_v40, %v4397_v18  ;;  %v9901_v16 = vrot.slane %v13032_v13, %v13027_v20  ;;  %v9905_v63 = vrot.slane %v13034_v19, %v13027_v20  ;;  %3901 = vperm.xlu1 %5985, %v9080_v50   ;;  %v13037_v40 = vld [vmem:[#allocation76_spill] sm:$0xff]  ;;  %v13038_v50 = vld [vmem:[#allocation110_spill] sm:$0xff] }
 0x29a   : > { %13031 = vst [vmem:[#allocation116_spill] sm:$0xff] %v9895_v17  ;;  %13036 = vst [vmem:[#allocation38_spill] sm:$0xff] %v9908_v57  ;;  %v4474_v62 = vadd.f32 %v4454_v32, %v4398_v45  ;;  %v4475_v34 = vadd.f32 %v4455_v39, %v4399_v23  ;;  %v4529_v1 = vmul.f32 %v9895_v17, %v9721_v30  ;;  %v13039_v32 = vld [vmem:[#allocation111_spill] sm:$0xff] }
 0x29b   : > { %13029 = vst [vmem:[#allocation152_spill] sm:$0xff] %v9891_v2  ;;  %13033 = vst [vmem:[#allocation117_spill] sm:$0xff] %v9901_v16  ;;  %v4528_v58 = vmul.f32 %v9891_v2, %v9721_v30  ;;  %v4530_v18 = vmul.f32 %v9901_v16, %v9721_v30  ;;  %v4531_v9 = vmul.f32 %v9905_v63, %v9721_v30  ;;  %v9927_v30 = vpop.permute.xlu1 %3209 }
 0x29c   : > { %13035 = vst [vmem:[#allocation96_spill] sm:$0xff] %v9905_v63  ;;  %v3100_v20 = vmul.f32 %v13037_v40, %v9723_v7  ;;  %v3101_v57 = vmul.f32 %v13038_v50, %v9723_v7  ;;  %v4549_v23 = vadd.f32 %v4529_v1, %v4473_v56  ;;  %v3102_v39 = vmul.f32 %v13039_v32, %v9723_v7  ;;  %v9937_v56 = vpop.permute.xlu0 %4645  ;;  %v13052_v1 = vld [vmem:[#allocation22_spill] sm:$0xff] }
 0x29d   : > { %v4548_v45 = vadd.f32 %v4528_v58, %v4472_v46  ;;  %v3103_v6 = vmul.f32 %v13040_v44, %v9723_v7  ;;  %v4550_v3 = vadd.f32 %v4530_v18, %v4474_v62  ;;  %v4551_v42 = vadd.f32 %v4531_v9, %v4475_v34  ;;  %5987 = vset.pattern.permute.xlu1 %v13041_v43  ;;  %v9942_v7 = vld [vmem:[%s11535_s5 + $0x8] sm:$0xff] }
 0x29e   : > { %v3120_v48 = vadd.f32 %v3100_v20, %v3044_v14  ;;  %v3121_v59 = vadd.f32 %v3101_v57, %v3045_v61  ;;  %13042 = vst [vmem:[#allocation110_spill] sm:$0xff] %v9927_v30  ;;  %v3122_v40 = vadd.f32 %v3102_v39, %v3046_v51  ;;  %v9931_v58 = vmul.f32 %v9891_v2, %v9777_v54  ;;  %v13045_v14 = vld [vmem:[#allocation70_spill] sm:$0xff]  ;;  %v13046_v51 = vld [vmem:[#allocation161_spill] sm:$0xff]  ;;  %v13055_v39 = vld [vmem:[#allocation163_spill] sm:$0xff] }
 0x29f   : > { %v3123_v55 = vadd.f32 %v3103_v6, %v3047_v5  ;;  %v9935_v46 = vmul.f32 %v9895_v17, %v9777_v54  ;;  %3965 = vperm.xlu1 %5987, %v9942_v7   ;;  %v9947_v5 = vmul.f32 %v13046_v51, %v13045_v14  ;;  %v13048_v61 = vld [vmem:[#allocation162_spill] sm:$0xff]  ;;  %v9955_v34 = vmul.f32 %v9901_v16, %v9777_v54  ;;  %v9989_v17 = vpop.permute.xlu1 %3217 }
 0x2a0   : > { %13043 = vst [vmem:[#allocation111_spill] sm:$0xff] %v9931_v58  ;;  %v9951_v6 = vmul.f32 %v13048_v61, %v13045_v14  ;;  %v9959_v62 = vmul.f32 %v9905_v63, %v9777_v54  ;;  %v2786_v57 = vmul.f32 %v12910_v11, %v13026_v10  ;;  %v2787_v20 = vmul.f32 %v12911_v60, %v13026_v10  ;;  %v13057_v54 = vld [vmem:[#allocation164_spill] sm:$0xff]  ;;  %v13061_v2 = vld [vmem:[#allocation154_spill] sm:$0xff] }
 0x2a1   : > { %13044 = vst [vmem:[#allocation112_spill] sm:$0xff] %v9935_v46  ;;  %13047 = vst [vmem:[#allocation70_spill] sm:$0xff] %v9947_v5  ;;  %v9967_v18 = vrot.slane %v13028_v36, %v13052_v1  ;;  %v9971_v9 = vrot.slane %v13030_v38, %v13052_v1  ;;  %v9975_v43 = vmul.f32 %v13055_v39, %v13045_v14 }
 0x2a2   : > { %13049 = vst [vmem:[#allocation199_spill] sm:$0xff] %v9951_v6  ;;  %13050 = vst [vmem:[#allocation200_spill] sm:$0xff] %v9955_v34  ;;  %v9979_v63 = vmul.f32 %v13057_v54, %v13045_v14  ;;  %v9983_v16 = vrot.slane %v13032_v13, %v13052_v1  ;;  %v9987_v10 = vrot.slane %v13034_v19, %v13052_v1 }
 0x2a3   : > { %13051 = vst [vmem:[#allocation201_spill] sm:$0xff] %v9959_v62  ;;  %13053 = vst [vmem:[#allocation22_spill] sm:$0xff] %v9967_v18  ;;  %v2788_v61 = vmul.f32 %v12908_v25, %v13061_v2  ;;  %v2789_v39 = vmul.f32 %v12909_v27, %v13061_v2  ;;  %v4604_v14 = vmul.f32 %v9967_v18, %v9824_v15  ;;  %3969 = vperm.xlu1 %5987, %v9752_v29  }
 0x2a4   : > { %13054 = vst [vmem:[#allocation202_spill] sm:$0xff] %v9971_v9  ;;  %13056 = vst [vmem:[#allocation203_spill] sm:$0xff] %v9975_v43  ;;  %v4605_v54 = vmul.f32 %v9971_v9, %v9824_v15  ;;  %v2804_v51 = vadd.f32 %v2784_v28, %v9815_v52  ;;  %v2805_v1 = vadd.f32 %v2785_v12, %v9817_v24  ;;  %v4658_v43 = vpop.permute.xlu0 %4657 }
 0x2a5   : > { %13058 = vst [vmem:[#allocation204_spill] sm:$0xff] %v9979_v63  ;;  %13059 = vst [vmem:[#allocation205_spill] sm:$0xff] %v9983_v16  ;;  %v4606_v62 = vmul.f32 %v9983_v16, %v9824_v15  ;;  %v4607_v34 = vmul.f32 %v9987_v10, %v9824_v15  ;;  %v10007_v46 = vadd.f32 %v2786_v57, %v9840_v0  ;;  %v13070_v57 = vld [vmem:[#allocation60_spill] sm:$0xff] }
 0x2a6   : > { %13060 = vst [vmem:[#allocation206_spill] sm:$0xff] %v9987_v10  ;;  %v10010_v58 = vadd.f32 %v2787_v20, %v9842_v31  ;;  %v4624_v30 = vadd.f32 %v4604_v14, %v4548_v45  ;;  %v4625_v63 = vadd.f32 %v4605_v54, %v4549_v23  ;;  %v2790_v52 = vmul.f32 %v12910_v11, %v13061_v2  ;;  %v13068_v23 = vld [vmem:[#allocation32_spill] sm:$0xff] }
 0x2a7   : > { %v2791_v24 = vmul.f32 %v12911_v60, %v13061_v2  ;;  %v4626_v28 = vadd.f32 %v4606_v62, %v4550_v3  ;;  %v4627_v12 = vadd.f32 %v4607_v34, %v4551_v42  ;;  %v10017_v6 = vadd.f32 %v2788_v61, %v9877_v41  ;;  %v10033_v2 = vld [vmem:[%s11535_s5 + $0x20] sm:$0xf]  ;;  %v10036_v42 = vpop.permute.xlu1 %3281  ;;  %v13067_v41 = vld [vmem:[#allocation77_spill] sm:$0xff] }
 0x2a8   : > { %v10020_v15 = vadd.f32 %v2789_v39, %v9879_v22  ;;  %v10024_v0 = vmul.f32 %v9967_v18, %v9897_v35  ;;  %v10028_v31 = vmul.f32 %v9971_v9, %v9897_v35  ;;  %3977 = vperm.xlu1 %5987, %v10033_v2   ;;  %13064 = vst [vmem:[#allocation208_spill] sm:$0xff] %v10036_v42  ;;  %v13069_v34 = vld [vmem:[#allocation34_spill] sm:$0xff]  ;;  %v13083_v42 = vld [vmem:[#allocation171_spill] sm:$0xff] }
 0x2a9   : > { %v10040_v22 = vmul.f32 %v9983_v16, %v9897_v35  ;;  %v10044_v3 = vmul.f32 %v9987_v10, %v9897_v35  ;;  %v3176_v45 = vmul.f32 %v13067_v41, %v9838_v8  ;;  %v3177_v61 = vmul.f32 %v13068_v23, %v9838_v8 }
 0x2aa   : > { %13062 = vst [vmem:[#allocation154_spill] sm:$0xff] %v10024_v0  ;;  %13063 = vst [vmem:[#allocation207_spill] sm:$0xff] %v10028_v31  ;;  %v3178_v62 = vmul.f32 %v13069_v34, %v9838_v8  ;;  %v3179_v20 = vmul.f32 %v13070_v57, %v9838_v8  ;;  %v10056_v39 = vrot.slane %v13028_v36, %v12896_v21  ;;  %v13075_v31 = vmov 26   ;;  %v13085_v57 = vld [vmem:[#allocation172_spill] sm:$0xff] }
 0x2ab   : > { %13065 = vst [vmem:[#allocation209_spill] sm:$0xff] %v10040_v22  ;;  %13066 = vst [vmem:[#allocation210_spill] sm:$0xff] %v10044_v3  ;;  %v10060_v35 = vrot.slane %v13030_v38, %v12896_v21  ;;  %v3196_v54 = vadd.f32 %v3176_v45, %v3120_v48  ;;  %v3197_v14 = vadd.f32 %v3177_v61, %v3121_v59  ;;  %v4722_v22 = vpop.permute.xlu0 %4721  ;;  %v10075_v48 = vpop.permute.xlu1 %3285 }
 0x2ac   : > { %13071 = vst [vmem:[#allocation211_spill] sm:$0xff] %v10056_v39  ;;  %v10064_v10 = vrot.slane %v13032_v13, %v12896_v21  ;;  %v10068_v16 = vrot.slane %v13034_v19, %v12896_v21  ;;  %v3198_v9 = vadd.f32 %v3178_v62, %v3122_v40  ;;  %v3199_v8 = vadd.f32 %v3179_v20, %v3123_v55  ;;  %v13077_v40 = vld [vmem:[#allocation114_spill] sm:$0xff]  ;;  %v13079_v20 = vld [vmem:[#allocation25_spill] sm:$0xff] }
 0x2ad   : > { %13072 = vst [vmem:[#allocation212_spill] sm:$0xff] %v10060_v35  ;;  %v4680_v18 = vmul.f32 %v10056_v39, %v9937_v56  ;;  %v4681_v3 = vmul.f32 %v10060_v35, %v9937_v56  ;;  %5989 = vset.pattern.permute.xlu1 %v13075_v31  ;;  %13076 = vst [vmem:[#allocation215_spill] sm:$0xff] %v10075_v48  ;;  %v10078_v59 = vadd.f32 %v2790_v52, %v9881_v37  ;;  %v13078_v52 = vld [vmem:[#allocation78_spill] sm:$0xff] }
 0x2ae   : > { %13073 = vst [vmem:[#allocation213_spill] sm:$0xff] %v10064_v10  ;;  %13074 = vst [vmem:[#allocation214_spill] sm:$0xff] %v10068_v16  ;;  %v10081_v45 = vadd.f32 %v2791_v24, %v9883_v26  ;;  %v4682_v55 = vmul.f32 %v10064_v10, %v9937_v56  ;;  %v4683_v21 = vmul.f32 %v10068_v16, %v9937_v56  ;;  %4041 = vperm.xlu1 %5989, %v9942_v7   ;;  %v13081_v24 = vld [vmem:[#allocation169_spill] sm:$0xff] }
 0x2af   : > { %v2860_v61 = vmul.f32 %v12935_v33, %v13077_v40  ;;  %v2861_v31 = vmul.f32 %v12936_v47, %v13077_v40  ;;  %v4700_v62 = vadd.f32 %v4680_v18, %v4624_v30  ;;  %v4701_v37 = vadd.f32 %v4681_v3, %v4625_v63  ;;  %v10114_v18 = vpop.permute.xlu1 %3293 }
 0x2b0   : > { %v10094_v26 = vmul.f32 %v13079_v20, %v13078_v52  ;;  %v10098_v0 = vmul.f32 %v13081_v24, %v13078_v52  ;;  %v4702_v48 = vadd.f32 %v4682_v55, %v4626_v28  ;;  %v4703_v56 = vadd.f32 %v4683_v21, %v4627_v12  ;;  %v13089_v12 = vld [vmem:[#allocation68_spill] sm:$0xff]  ;;  %v4734_v24 = vpop.permute.xlu0 %4733 }
 0x2b1   : > { %v10102_v5 = vmul.f32 %v13083_v42, %v13078_v52  ;;  %v10106_v34 = vmul.f32 %v13085_v57, %v13078_v52  ;;  %v10109_v63 = vmul.f32 %v10056_v39, %v4658_v43  ;;  %v10112_v30 = vmul.f32 %v10060_v35, %v4658_v43  ;;  %v13092_v35 = vld [vmem:[#allocation51_spill] sm:$0xff] }
 0x2b2   : > { %13080 = vst [vmem:[#allocation114_spill] sm:$0xff] %v10094_v26  ;;  %13082 = vst [vmem:[#allocation78_spill] sm:$0xff] %v10098_v0  ;;  %v2862_v28 = vmul.f32 %v12938_v4, %v13077_v40  ;;  %v2863_v3 = vmul.f32 %v13089_v12, %v13077_v40  ;;  %v10121_v55 = vmul.f32 %v10064_v10, %v4658_v43  ;;  %4045 = vperm.xlu1 %5989, %v9752_v29   ;;  %v13095_v40 = vld [vmem:[#allocation142_spill] sm:$0xff] }
 0x2b3   : > { %13084 = vst [vmem:[#allocation216_spill] sm:$0xff] %v10102_v5  ;;  %13086 = vst [vmem:[#allocation217_spill] sm:$0xff] %v10106_v34  ;;  %v10124_v21 = vmul.f32 %v10068_v16, %v4658_v43  ;;  %v2880_v52 = vadd.f32 %v2860_v61, %v2804_v51  ;;  %v2881_v39 = vadd.f32 %v2861_v31, %v2805_v1  ;;  %v13103_v34 = vld [vmem:[#allocation121_spill] sm:$0xff]  ;;  %v10168_v0 = vpop.permute.xlu1 %3357 }
 0x2b4   : > { %13087 = vst [vmem:[#allocation218_spill] sm:$0xff] %v10109_v63  ;;  %13088 = vst [vmem:[#allocation219_spill] sm:$0xff] %v10112_v30  ;;  %v10129_v57 = vrot.slane %v13028_v36, %v13092_v35  ;;  %v10133_v42 = vrot.slane %v13030_v38, %v13092_v35  ;;  %v2864_v10 = vmul.f32 %v12935_v33, %v13095_v40 }
 0x2b5   : > { %13090 = vst [vmem:[#allocation68_spill] sm:$0xff] %v10121_v55  ;;  %13091 = vst [vmem:[#allocation220_spill] sm:$0xff] %v10124_v21  ;;  %v2865_v43 = vmul.f32 %v12936_v47, %v13095_v40  ;;  %v10141_v16 = vrot.slane %v13032_v13, %v13092_v35  ;;  %v10145_v51 = vrot.slane %v13034_v19, %v13092_v35  ;;  %v13098_v13 = vld [vmem:[#allocation12_spill] sm:$0xff]  ;;  %v13099_v19 = vld [vmem:[#allocation118_spill] sm:$0xff] }
 0x2b6   : > { %13093 = vst [vmem:[#allocation51_spill] sm:$0xff] %v10129_v57  ;;  %13094 = vst [vmem:[#allocation221_spill] sm:$0xff] %v10133_v42  ;;  %v2866_v36 = vmul.f32 %v12938_v4, %v13095_v40  ;;  %v2867_v38 = vmul.f32 %v13089_v12, %v13095_v40  ;;  %v4756_v1 = vmul.f32 %v10129_v57, %v4722_v22  ;;  %4053 = vperm.xlu1 %5989, %v10033_v2   ;;  %v13102_v40 = vld [vmem:[#allocation120_spill] sm:$0xff] }
 0x2b7   : > { %13096 = vst [vmem:[#allocation142_spill] sm:$0xff] %v10141_v16  ;;  %13097 = vst [vmem:[#allocation222_spill] sm:$0xff] %v10145_v51  ;;  %v4757_v61 = vmul.f32 %v10133_v42, %v4722_v22  ;;  %v4758_v31 = vmul.f32 %v10141_v16, %v4722_v22  ;;  %v4759_v20 = vmul.f32 %v10145_v51, %v4722_v22 }
 0x2b8   : > { %v3252_v21 = vmul.f32 %v13098_v13, %v9989_v17  ;;  %v3253_v35 = vmul.f32 %v13099_v19, %v9989_v17  ;;  %v10160_v55 = vadd.f32 %v4756_v1, %v4700_v62  ;;  %v3254_v63 = vmul.f32 %v13102_v40, %v9989_v17  ;;  %13104 = vst [vmem:[#allocation225_spill] sm:$0xff] %v10168_v0 }
 0x2b9   : > { %v10162_v30 = vadd.f32 %v4757_v61, %v4701_v37  ;;  %v3255_v5 = vmul.f32 %v13103_v34, %v9989_v17  ;;  %v10170_v22 = vadd.f32 %v4758_v31, %v4702_v48  ;;  %v10172_v26 = vadd.f32 %v4759_v20, %v4703_v56 }
 0x2ba   : > { %13100 = vst [vmem:[#allocation223_spill] sm:$0xff] %v10160_v55  ;;  %v10174_v13 = vadd.f32 %v3252_v21, %v3196_v54  ;;  %v10176_v19 = vadd.f32 %v3253_v35, %v3197_v14  ;;  %v2882_v62 = vadd.f32 %v2862_v28, %v10007_v46  ;;  %v2883_v37 = vadd.f32 %v2863_v3, %v10010_v58  ;;  %v13107_v55 = vld [vmem:[#allocation102_spill] sm:$0xff]  ;;  %v13111_v46 = vld [vmem:[#allocation40_spill] sm:$0xff] }
 0x2bb   : > { %13101 = vst [vmem:[#allocation224_spill] sm:$0xff] %v10162_v30  ;;  %13105 = vst [vmem:[#allocation226_spill] sm:$0xff] %v10170_v22  ;;  %v3274_v1 = vadd.f32 %v3254_v63, %v3198_v9  ;;  %v3275_v61 = vadd.f32 %v3255_v5, %v3199_v8  ;;  %v2109_v30 = vpop.permute.xlu0 %2108  ;;  %v2936_v17 = vmul.f32 %v12971_v53, %v13107_v55  ;;  %v13110_v14 = vmov 27   ;;  %v13112_v5 = vld [vmem:[#allocation105_spill] sm:$0xff]  ;;  %v10202_v63 = vpop.permute.xlu1 %3361  ;;  %v13116_v35 = vld [vmem:[#allocation170_spill] sm:$0xff] }
 0x2bc   : > { %13106 = vst [vmem:[#allocation227_spill] sm:$0xff] %v10172_v26  ;;  %v2937_v48 = vmul.f32 %v12972_v49, %v13107_v55  ;;  %v10185_v20 = vmul.f32 %v10129_v57, %v4734_v24  ;;  %v10188_v54 = vmul.f32 %v10133_v42, %v4734_v24  ;;  %5991 = vset.pattern.permute.xlu1 %v13110_v14  ;;  %13115 = vst [vmem:[#allocation229_spill] sm:$0xff] %v10202_v63 }
 0x2bd   : > { %v2938_v58 = vmul.f32 %v13111_v46, %v13107_v55  ;;  %v2939_v9 = vmul.f32 %v13112_v5, %v13107_v55  ;;  %v10196_v8 = vmul.f32 %v10141_v16, %v4734_v24  ;;  %v10199_v56 = vmul.f32 %v10145_v51, %v4734_v24  ;;  %4117 = vperm.xlu1 %5991, %v9942_v7   ;;  %v13117_v51 = vld [vmem:[#allocation17_spill] sm:$0xff] }
 0x2be   : > { %13108 = vst [vmem:[#allocation102_spill] sm:$0xff] %v10185_v20  ;;  %13109 = vst [vmem:[#allocation228_spill] sm:$0xff] %v10188_v54  ;;  %v2884_v28 = vadd.f32 %v2864_v10, %v10017_v6  ;;  %v2885_v3 = vadd.f32 %v2865_v43, %v10020_v15  ;;  %v2886_v21 = vadd.f32 %v2866_v36, %v10078_v59  ;;  %v13118_v6 = vld [vmem:[#allocation30_spill] sm:$0xff]  ;;  %v13141_v54 = vld [vmem:[#allocation185_spill] sm:$0xff] }
 0x2bf   : > { %13113 = vst [vmem:[#allocation40_spill] sm:$0xff] %v10196_v8  ;;  %13114 = vst [vmem:[#allocation105_spill] sm:$0xff] %v10199_v56  ;;  %v2887_v31 = vadd.f32 %v2867_v38, %v10081_v45  ;;  %v2940_v55 = vmul.f32 %v12971_v53, %v13116_v35  ;;  %v2941_v26 = vmul.f32 %v12972_v49, %v13116_v35  ;;  %v13120_v15 = vld [vmem:[#allocation106_spill] sm:$0xff]  ;;  %v13122_v45 = vld [vmem:[#allocation109_spill] sm:$0xff]  ;;  %v10240_v14 = vpop.permute.xlu0 %4820 }
 0x2c0   : > { %v2942_v24 = vmul.f32 %v13111_v46, %v13116_v35  ;;  %v2943_v22 = vmul.f32 %v13112_v5, %v13116_v35  ;;  %v10218_v10 = vmul.f32 %v13118_v6, %v13117_v51  ;;  %v10222_v59 = vmul.f32 %v13120_v15, %v13117_v51  ;;  %v13124_v36 = vld [vmem:[#allocation174_spill] sm:$0xff]  ;;  %13126 = vst [vmem:[#allocation232_spill] sm:$0xff] %v10240_v14  ;;  %v10243_v15 = vpop.permute.xlu1 %3369  ;;  %v13128_v6 = vld [vmem:[#allocation45_spill] sm:$0xff]  ;;  %v13139_v8 = vld [vmem:[#allocation183_spill] sm:$0xff] }
 0x2c1   : > { %v10226_v43 = vmul.f32 %v13122_v45, %v13117_v51  ;;  %v10230_v38 = vmul.f32 %v13124_v36, %v13117_v51  ;;  %v10232_v16 = vadd.f32 %v2936_v17, %v2880_v52  ;;  %v10234_v42 = vadd.f32 %v2937_v48, %v2881_v39  ;;  %4121 = vperm.xlu1 %5991, %v9752_v29   ;;  %v13127_v45 = vld [vmem:[#allocation165_spill] sm:$0xff]  ;;  %v13130_v51 = vld [vmem:[#allocation87_spill] sm:$0xff] }
 0x2c2   : > { %13119 = vst [vmem:[#allocation170_spill] sm:$0xff] %v10218_v10  ;;  %13121 = vst [vmem:[#allocation17_spill] sm:$0xff] %v10222_v59  ;;  %v10236_v35 = vadd.f32 %v2938_v58, %v2882_v62  ;;  %v10238_v57 = vadd.f32 %v2939_v9, %v2883_v37  ;;  %v10247_v56 = vmul.f32 %v13128_v6, %v13127_v45  ;;  %v13132_v39 = vld [vmem:[#allocation41_spill] sm:$0xff]  ;;  %v13134_v37 = vld [vmem:[#allocation20_spill] sm:$0xff] }
 0x2c3   : > { %13123 = vst [vmem:[#allocation230_spill] sm:$0xff] %v10226_v43  ;;  %13125 = vst [vmem:[#allocation231_spill] sm:$0xff] %v10230_v38  ;;  %v10251_v52 = vmul.f32 %v13130_v51, %v13127_v45  ;;  %v10255_v62 = vmul.f32 %v13132_v39, %v13127_v45  ;;  %v10259_v17 = vmul.f32 %v13134_v37, %v13127_v45  ;;  %v13136_v6 = vld [vmem:[#allocation83_spill] sm:$0xff]  ;;  %v13148_v37 = vld [vmem:[#allocation122_spill] sm:$0xff] }
 0x2c4   : > { %13129 = vst [vmem:[#allocation165_spill] sm:$0xff] %v10247_v56  ;;  %v10261_v48 = vadd.f32 %v2940_v55, %v2884_v28  ;;  %v10263_v58 = vadd.f32 %v2941_v26, %v2885_v3  ;;  %v10265_v9 = vadd.f32 %v2942_v24, %v2886_v21  ;;  %v10267_v14 = vadd.f32 %v2943_v22, %v2887_v31  ;;  %v13137_v36 = vld [vmem:[#allocation23_spill] sm:$0xff]  ;;  %v13143_v28 = vld [vmem:[#allocation65_spill] sm:$0xff]  ;;  %v13145_v3 = vld [vmem:[#allocation50_spill] sm:$0xff] }
 0x2c5   : > { %13131 = vst [vmem:[#allocation233_spill] sm:$0xff] %v10251_v52  ;;  %13133 = vst [vmem:[#allocation234_spill] sm:$0xff] %v10255_v62  ;;  %v10271_v51 = vmul.f32 %v13137_v36, %v13136_v6  ;;  %v10275_v39 = vmul.f32 %v13139_v8, %v13136_v6  ;;  %v10279_v45 = vmul.f32 %v13141_v54, %v13136_v6  ;;  %v13144_v55 = vld [vmem:[#allocation49_spill] sm:$0xff]  ;;  %v13146_v22 = vld [vmem:[#allocation39_spill] sm:$0xff]  ;;  %4129 = vperm.xlu1 %5991, %v10033_v2  }
 0x2c6   : > { %13135 = vst [vmem:[#allocation235_spill] sm:$0xff] %v10259_v17  ;;  %v2083_v26 = vmul.f32 %v13144_v55, %v13143_v28  ;;  %v2084_v21 = vmul.f32 %v13145_v3, %v13143_v28  ;;  %v2085_v31 = vmul.f32 %v13146_v22, %v13143_v28  ;;  %v13147_v24 = vld [vmem:[#allocation100_spill] sm:$0xff]  ;;  %v3328_v8 = vmul.f32 %v13148_v37, %v10114_v18  ;;  %v13149_v54 = vld [vmem:[#allocation186_spill] sm:$0xff]  ;;  %v13151_v55 = vld [vmem:[#allocation123_spill] sm:$0xff]  ;;  %v2226_v37 = vpop.permute.xlu0 %2225  ;;  %v10302_v17 = vpop.permute.xlu1 %3433 }
 0x2c7   : > { %13138 = vst [vmem:[#allocation83_spill] sm:$0xff] %v10271_v51  ;;  %13140 = vst [vmem:[#allocation236_spill] sm:$0xff] %v10275_v39  ;;  %v2086_v36 = vmul.f32 %v13147_v24, %v13143_v28  ;;  %v10294_v20 = vmul.f32 %v13149_v54, %v13136_v6  ;;  %v13152_v3 = vld [vmem:[#allocation5_spill] sm:$0xff]  ;;  %v13156_v52 = vld [vmem:[#allocation88_spill] sm:$0xff] }
 0x2c8   : > { %13142 = vst [vmem:[#allocation237_spill] sm:$0xff] %v10279_v45  ;;  %v3329_v45 = vmul.f32 %v13151_v55, %v10114_v18  ;;  %v3330_v39 = vmul.f32 %v13152_v3, %v10114_v18  ;;  %v13153_v22 = vld [vmem:[#allocation125_spill] sm:$0xff]  ;;  %v2128_v63 = vadd.f32 %v2109_v30, %v2083_v26  ;;  %v2129_v28 = vadd.f32 %v2109_v30, %v2084_v21  ;;  %v13157_v3 = vld [vmem:[#allocation67_spill] sm:$0xff] }
 0x2c9   : > { %13150 = vst [vmem:[#allocation65_spill] sm:$0xff] %v10294_v20  ;;  %v3331_v51 = vmul.f32 %v13153_v22, %v10114_v18  ;;  %v2130_v24 = vadd.f32 %v2109_v30, %v2085_v31  ;;  %v2131_v0 = vadd.f32 %v2109_v30, %v2086_v36  ;;  %13154 = vst [vmem:[#allocation49_spill] sm:$0xff] %v10302_v17  ;;  %v13155_v55 = vld [vmem:[#allocation21_spill] sm:$0xff]  ;;  %v13159_v30 = vld [vmem:[#allocation48_spill] sm:$0xff]  ;;  %v13160_v21 = vmov 28  }
 0x2ca   : > { %v3348_v62 = vadd.f32 %v3328_v8, %v10174_v13  ;;  %v3349_v6 = vadd.f32 %v3329_v45, %v10176_v19  ;;  %v3350_v54 = vadd.f32 %v3330_v39, %v3274_v1  ;;  %v2184_v56 = vmul.f32 %v13156_v52, %v13155_v55  ;;  %v13158_v18 = vld [vmem:[#allocation69_spill] sm:$0xff]  ;;  %5993 = vset.pattern.permute.xlu1 %v13160_v21  ;;  %v13162_v8 = vld [vmem:[#allocation54_spill] sm:$0xff]  ;;  %v13165_v52 = vld [vmem:[#allocation175_spill] sm:$0xff]  ;;  %v10328_v22 = vpop.permute.xlu1 %3437 }
 0x2cb   : > { %v3351_v20 = vadd.f32 %v3331_v51, %v3275_v61  ;;  %v2185_v38 = vmul.f32 %v13157_v3, %v13155_v55  ;;  %v2186_v26 = vmul.f32 %v13158_v18, %v13155_v55  ;;  %v2187_v36 = vmul.f32 %v13159_v30, %v13155_v55  ;;  %v13161_v31 = vld [vmem:[#allocation73_spill] sm:$0xff]  ;;  %v13164_v51 = vld [vmem:[#allocation56_spill] sm:$0xff]  ;;  %4193 = vperm.xlu1 %5993, %v9942_v7   ;;  %v13168_v55 = vld [vmem:[#allocation107_spill] sm:$0xff] }
 0x2cc   : > { %v2260_v13 = vmul.f32 %v13161_v31, %v2226_v37  ;;  %v2261_v19 = vmul.f32 %v13162_v8, %v2226_v37  ;;  %v13163_v1 = vld [vmem:[#allocation57_spill] sm:$0xff]  ;;  %v2263_v39 = vmul.f32 %v13164_v51, %v2226_v37  ;;  %v13166_v45 = vld [vmem:[#allocation4_spill] sm:$0xff]  ;;  %v3014_v30 = vmul.f32 %v13168_v55, %v13165_v52  ;;  %13170 = vst [vmem:[#allocation50_spill] sm:$0xff] %v10328_v22 }
 0x2cd   : > { %v2262_v61 = vmul.f32 %v13163_v1, %v2226_v37  ;;  %v3012_v3 = vmul.f32 %v13166_v45, %v13165_v52  ;;  %v13167_v18 = vld [vmem:[#allocation13_spill] sm:$0xff]  ;;  %v13169_v21 = vld [vmem:[#allocation108_spill] sm:$0xff]  ;;  %v2204_v8 = vadd.f32 %v2184_v56, %v2128_v63  ;;  %v2205_v1 = vadd.f32 %v2185_v38, %v2129_v28  ;;  %v10338_v56 = vpop.permute.xlu0 %4873 }
 0x2ce   : > { %v3013_v17 = vmul.f32 %v13167_v18, %v13165_v52  ;;  %v3015_v31 = vmul.f32 %v13169_v21, %v13165_v52  ;;  %v2206_v43 = vadd.f32 %v2186_v26, %v2130_v24  ;;  %v2207_v37 = vadd.f32 %v2187_v36, %v2131_v0  ;;  %v13171_v51 = vld [vmem:[#allocation176_spill] sm:$0xff]  ;;  %13172 = vst [vmem:[#allocation39_spill] sm:$0xff] %v10338_v56  ;;  %v10353_v24 = vpop.permute.xlu1 %3445  ;;  %v13174_v26 = vld [vmem:[#allocation97_spill] sm:$0xff] }
 0x2cf   : > { %v3016_v59 = vmul.f32 %v13166_v45, %v13171_v51  ;;  %v3017_v10 = vmul.f32 %v13167_v18, %v13171_v51  ;;  %v3018_v34 = vmul.f32 %v13168_v55, %v13171_v51  ;;  %v3019_v40 = vmul.f32 %v13169_v21, %v13171_v51  ;;  %4197 = vperm.xlu1 %5993, %v9752_v29  }
 0x2d0   : > { %v2280_v23 = vadd.f32 %v2260_v13, %v2204_v8  ;;  %v2281_v52 = vadd.f32 %v2261_v19, %v2205_v1  ;;  %v2282_v41 = vadd.f32 %v2262_v61, %v2206_v43  ;;  %v2283_v22 = vadd.f32 %v2263_v39, %v2207_v37  ;;  %v13173_v43 = vld [vmem:[#allocation47_spill] sm:$0xff]  ;;  %v13175_v13 = vld [vmem:[#allocation98_spill] sm:$0xff]  ;;  %v13178_v37 = vld [vmem:[#allocation28_spill] sm:$0xff] }
 0x2d1   : > { %v10342_v0 = vadd.f32 %v3012_v3, %v10232_v16  ;;  %v10345_v63 = vadd.f32 %v3013_v17, %v10234_v42  ;;  %v10348_v38 = vadd.f32 %v3014_v30, %v10236_v35  ;;  %v10351_v28 = vadd.f32 %v3015_v31, %v10238_v57  ;;  %v13176_v16 = vld [vmem:[#allocation6_spill] sm:$0xff]  ;;  %v13177_v42 = vld [vmem:[#allocation99_spill] sm:$0xff] }
 0x2d2   : > { %v2336_v36 = vmul.f32 %v13174_v26, %v13173_v43  ;;  %v2337_v19 = vmul.f32 %v13175_v13, %v13173_v43  ;;  %v2338_v61 = vmul.f32 %v13176_v16, %v13173_v43  ;;  %v2339_v17 = vmul.f32 %v13177_v42, %v13173_v43  ;;  %v13185_v43 = vld [vmem:[#allocation37_spill] sm:$0xff] }
 0x2d3   : > { %v10364_v35 = vadd.f32 %v3016_v59, %v10261_v48  ;;  %v10367_v57 = vadd.f32 %v3017_v10, %v10263_v58  ;;  %v10370_v39 = vadd.f32 %v3018_v34, %v10265_v9  ;;  %v10373_v3 = vadd.f32 %v3019_v40, %v10267_v14  ;;  %4205 = vperm.xlu1 %5993, %v10033_v2   ;;  %v13179_v59 = vld [vmem:[#allocation8_spill] sm:$0xff]  ;;  %v13180_v10 = vld [vmem:[#allocation126_spill] sm:$0xff]  ;;  %v13181_v34 = vld [vmem:[#allocation127_spill] sm:$0xff]  ;;  %v2454_v40 = vpop.permute.xlu0 %2453 }
 0x2d4   : > { %v2356_v30 = vadd.f32 %v2336_v36, %v2280_v23  ;;  %v2357_v31 = vadd.f32 %v2337_v19, %v2281_v52  ;;  %v2358_v8 = vadd.f32 %v2338_v61, %v2282_v41  ;;  %v2359_v1 = vadd.f32 %v2339_v17, %v2283_v22  ;;  %v13182_v14 = vld [vmem:[#allocation55_spill] sm:$0xff]  ;;  %v13183_v23 = vld [vmem:[#allocation104_spill] sm:$0xff]  ;;  %v13184_v41 = vld [vmem:[#allocation58_spill] sm:$0xff]  ;;  %v10392_v19 = vpop.permute.xlu1 %3509 }
 0x2d5   : > { %v3404_v51 = vmul.f32 %v13178_v37, %v10243_v15  ;;  %v3405_v48 = vmul.f32 %v13179_v59, %v10243_v15  ;;  %v3406_v58 = vmul.f32 %v13180_v10, %v10243_v15  ;;  %v3407_v9 = vmul.f32 %v13181_v34, %v10243_v15  ;;  %v13186_v36 = vld [vmem:[#allocation43_spill] sm:$0xff]  ;;  %13187 = vst [vmem:[#allocation100_spill] sm:$0xff] %v10392_v19  ;;  %v13190_v59 = vld [vmem:[#allocation90_spill] sm:$0xff] }
 0x2d6   : > { %v2412_v52 = vmul.f32 %v13183_v23, %v13182_v14  ;;  %v2413_v22 = vmul.f32 %v13184_v41, %v13182_v14  ;;  %v2414_v26 = vmul.f32 %v13185_v43, %v13182_v14  ;;  %v2415_v13 = vmul.f32 %v13186_v36, %v13182_v14  ;;  %v13189_v43 = vld [vmem:[#allocation89_spill] sm:$0xff]  ;;  %v13191_v36 = vld [vmem:[#allocation91_spill] sm:$0xff] }
 0x2d7   : > { %v10394_v16 = vadd.f32 %v3404_v51, %v3348_v62  ;;  %v10396_v61 = vadd.f32 %v3405_v48, %v3349_v6  ;;  %v10398_v15 = vadd.f32 %v3406_v58, %v3350_v54  ;;  %v10400_v42 = vadd.f32 %v3407_v9, %v3351_v20  ;;  %v13192_v62 = vld [vmem:[#allocation92_spill] sm:$0xff]  ;;  %v13193_v54 = vld [vmem:[#allocation7_spill] sm:$0xff]  ;;  %v13194_v6 = vld [vmem:[#allocation74_spill] sm:$0xff] }
 0x2d8   : > { %v2432_v17 = vadd.f32 %v2412_v52, %v2356_v30  ;;  %v2433_v23 = vadd.f32 %v2413_v22, %v2357_v31  ;;  %v2434_v56 = vadd.f32 %v2414_v26, %v2358_v8  ;;  %v2435_v41 = vadd.f32 %v2415_v13, %v2359_v1  ;;  %v13195_v30 = vld [vmem:[#allocation75_spill] sm:$0xff]  ;;  %v13197_v48 = vld [vmem:[#allocation93_spill] sm:$0xff]  ;;  %v13199_v22 = vld [vmem:[#allocation18_spill] sm:$0xff] }
 0x2d9   : > { %v13188_v34 = vmov 29   ;;  %v2488_v10 = vmul.f32 %v13189_v43, %v2454_v40  ;;  %v2489_v14 = vmul.f32 %v13190_v59, %v2454_v40  ;;  %v2490_v19 = vmul.f32 %v13191_v36, %v2454_v40  ;;  %v13196_v8 = vld [vmem:[#allocation79_spill] sm:$0xff] }
 0x2da   : > { %5995 = vset.pattern.permute.xlu1 %v13188_v34  ;;  %v2491_v51 = vmul.f32 %v13192_v62, %v2454_v40  ;;  %v2564_v20 = vmul.f32 %v13194_v6, %v13193_v54  ;;  %v2565_v31 = vmul.f32 %v13195_v30, %v13193_v54  ;;  %v2566_v1 = vmul.f32 %v13196_v8, %v13193_v54  ;;  %v10416_v34 = vpop.permute.xlu1 %3513  ;;  %v13200_v26 = vld [vmem:[#allocation27_spill] sm:$0xff]  ;;  %v13203_v30 = vld [vmem:[#allocation42_spill] sm:$0xff] }
 0x2db   : > { %4269 = vperm.xlu1 %5995, %v9942_v7   ;;  %v2567_v58 = vmul.f32 %v13197_v48, %v13193_v54  ;;  %13198 = vst [vmem:[#allocation21_spill] sm:$0xff] %v10416_v34  ;;  %v2508_v59 = vadd.f32 %v2488_v10, %v2432_v17  ;;  %v2509_v9 = vadd.f32 %v2489_v14, %v2433_v23  ;;  %v13201_v43 = vld [vmem:[#allocation11_spill] sm:$0xff]  ;;  %v13205_v10 = vld [vmem:[#allocation53_spill] sm:$0xff] }
 0x2dc   : > { %v2510_v52 = vadd.f32 %v2490_v19, %v2434_v56  ;;  %v2511_v40 = vadd.f32 %v2491_v51, %v2435_v41  ;;  %v2640_v13 = vmul.f32 %v13200_v26, %v13199_v22  ;;  %v2641_v36 = vmul.f32 %v13201_v43, %v13199_v22  ;;  %v13202_v62 = vld [vmem:[#allocation31_spill] sm:$0xff]  ;;  %v13204_v56 = vld [vmem:[#allocation33_spill] sm:$0xff]  ;;  %v13208_v51 = vld [vmem:[#allocation80_spill] sm:$0xff] }
 0x2dd   : > { %v2642_v6 = vmul.f32 %v13202_v62, %v13199_v22  ;;  %v2643_v8 = vmul.f32 %v13203_v30, %v13199_v22  ;;  %v2584_v37 = vadd.f32 %v2564_v20, %v2508_v59  ;;  %v2585_v54 = vadd.f32 %v2565_v31, %v2509_v9  ;;  %v13206_v17 = vld [vmem:[#allocation9_spill] sm:$0xff]  ;;  %v13209_v59 = vld [vmem:[#allocation46_spill] sm:$0xff] }
 0x2de   : > { %v2586_v48 = vadd.f32 %v2566_v1, %v2510_v52  ;;  %v2587_v34 = vadd.f32 %v2567_v58, %v2511_v40  ;;  %v2716_v19 = vmul.f32 %v13205_v10, %v13204_v56  ;;  %v2717_v23 = vmul.f32 %v13206_v17, %v13204_v56  ;;  %v13207_v41 = vld [vmem:[#allocation85_spill] sm:$0xff]  ;;  %v10435_v43 = vpop.permute.xlu1 %3521 }
 0x2df   : > { %4273 = vperm.xlu1 %5995, %v9752_v29   ;;  %v2718_v14 = vmul.f32 %v13207_v41, %v13204_v56  ;;  %v2719_v26 = vmul.f32 %v13208_v51, %v13204_v56  ;;  %v2660_v20 = vadd.f32 %v2640_v13, %v2584_v37  ;;  %v2661_v31 = vadd.f32 %v2641_v36, %v2585_v54  ;;  %v13210_v37 = vld [vmem:[#allocation101_spill] sm:$0xff]  ;;  %v13212_v54 = vld [vmem:[#allocation103_spill] sm:$0xff] }
 0x2e0   : > { %v2662_v1 = vadd.f32 %v2642_v6, %v2586_v48  ;;  %v2663_v58 = vadd.f32 %v2643_v8, %v2587_v34  ;;  %v2792_v9 = vmul.f32 %v12908_v25, %v13209_v59  ;;  %v2793_v52 = vmul.f32 %v12909_v27, %v13209_v59 }
 0x2e1   : > { %v2794_v40 = vmul.f32 %v12910_v11, %v13209_v59  ;;  %v2795_v22 = vmul.f32 %v12911_v60, %v13209_v59  ;;  %v2736_v62 = vadd.f32 %v2716_v19, %v2660_v20  ;;  %v2737_v30 = vadd.f32 %v2717_v23, %v2661_v31  ;;  %v13217_v59 = vld [vmem:[#allocation76_spill] sm:$0xff] }
 0x2e2   : > { %v2738_v56 = vadd.f32 %v2718_v14, %v2662_v1  ;;  %v2739_v10 = vadd.f32 %v2719_v26, %v2663_v58  ;;  %v2868_v34 = vmul.f32 %v12935_v33, %v13210_v37  ;;  %v2869_v25 = vmul.f32 %v12936_v47, %v13210_v37  ;;  %v10454_v8 = vpop.permute.xlu1 %3585  ;;  %v13214_v14 = vld [vmem:[#allocation36_spill] sm:$0xff]  ;;  %v13216_v58 = vld [vmem:[#allocation61_spill] sm:$0xff] }
 0x2e3   : > { %4281 = vperm.xlu1 %5995, %v10033_v2   ;;  %v2870_v27 = vmul.f32 %v12938_v4, %v13210_v37  ;;  %v2871_v11 = vmul.f32 %v13089_v12, %v13210_v37  ;;  %v2812_v13 = vadd.f32 %v2792_v9, %v2736_v62  ;;  %v2813_v60 = vadd.f32 %v2793_v52, %v2737_v30  ;;  %v13218_v62 = vld [vmem:[#allocation64_spill] sm:$0xff]  ;;  %v13219_v30 = vld [vmem:[#allocation77_spill] sm:$0xff] }
 0x2e4   : > { %v2814_v36 = vadd.f32 %v2794_v40, %v2738_v56  ;;  %v2815_v6 = vadd.f32 %v2795_v22, %v2739_v10  ;;  %13211 = vst [vmem:[#allocation88_spill] sm:$0xff] %v10454_v8  ;;  %v2944_v48 = vmul.f32 %v12971_v53, %v13212_v54  ;;  %v2945_v33 = vmul.f32 %v12972_v49, %v13212_v54  ;;  %v13220_v10 = vld [vmem:[#allocation32_spill] sm:$0xff]  ;;  %v13275_v8 = vld [vmem:[#allocation29_spill] sm:$0xff] }
 0x2e5   : > { %v2946_v47 = vmul.f32 %v13111_v46, %v13212_v54  ;;  %v2947_v4 = vmul.f32 %v13112_v5, %v13212_v54  ;;  %v2888_v19 = vadd.f32 %v2868_v34, %v2812_v13  ;;  %v2889_v12 = vadd.f32 %v2869_v25, %v2813_v60  ;;  %v13221_v34 = vld [vmem:[#allocation34_spill] sm:$0xff] }
 0x2e6   : > { %v2890_v17 = vadd.f32 %v2870_v27, %v2814_v36  ;;  %v2891_v23 = vadd.f32 %v2871_v11, %v2815_v6  ;;  %v13213_v41 = vmov 30   ;;  %v3020_v51 = vmul.f32 %v13166_v45, %v13214_v14  ;;  %v10474_v1 = vpop.permute.xlu1 %3589  ;;  %v13222_v27 = vld [vmem:[#allocation60_spill] sm:$0xff] }
 0x2e7   : > { %5997 = vset.pattern.permute.xlu1 %v13213_v41  ;;  %v3021_v53 = vmul.f32 %v13167_v18, %v13214_v14  ;;  %v3022_v49 = vmul.f32 %v13168_v55, %v13214_v14  ;;  %v3023_v46 = vmul.f32 %v13169_v21, %v13214_v14  ;;  %v2964_v5 = vadd.f32 %v2944_v48, %v2888_v19  ;;  %v13223_v48 = vld [vmem:[#allocation66_spill] sm:$0xff] }
 0x2e8   : > { %4345 = vperm.xlu1 %5997, %v9942_v7   ;;  %v2965_v26 = vadd.f32 %v2945_v33, %v2889_v12  ;;  %v2966_v20 = vadd.f32 %v2946_v47, %v2890_v17  ;;  %v2967_v31 = vadd.f32 %v2947_v4, %v2891_v23  ;;  %13215 = vst [vmem:[#allocation67_spill] sm:$0xff] %v10474_v1  ;;  %v13224_v33 = vld [vmem:[#allocation12_spill] sm:$0xff]  ;;  %v13225_v4 = vld [vmem:[#allocation118_spill] sm:$0xff]  ;;  %v13227_v23 = vld [vmem:[#allocation121_spill] sm:$0xff] }
 0x2e9   : > { %v3096_v45 = vmul.f32 %v13217_v59, %v13216_v58  ;;  %v3097_v18 = vmul.f32 %v13038_v50, %v13216_v58  ;;  %v3098_v55 = vmul.f32 %v13039_v32, %v13216_v58  ;;  %v3099_v21 = vmul.f32 %v13040_v44, %v13216_v58  ;;  %v13226_v12 = vld [vmem:[#allocation120_spill] sm:$0xff] }
 0x2ea   : > { %v3040_v9 = vadd.f32 %v3020_v51, %v2964_v5  ;;  %v3041_v52 = vadd.f32 %v3021_v53, %v2965_v26  ;;  %v3042_v40 = vadd.f32 %v3022_v49, %v2966_v20  ;;  %v3043_v22 = vadd.f32 %v3023_v46, %v2967_v31  ;;  %v10493_v54 = vpop.permute.xlu1 %3597  ;;  %v13228_v5 = vld [vmem:[#allocation124_spill] sm:$0xff] }
 0x2eb   : > { %v3172_v56 = vmul.f32 %v13219_v30, %v13218_v62  ;;  %v3173_v37 = vmul.f32 %v13220_v10, %v13218_v62  ;;  %v3174_v25 = vmul.f32 %v13221_v34, %v13218_v62  ;;  %v3175_v11 = vmul.f32 %v13222_v27, %v13218_v62 }
 0x2ec   : > { %4349 = vperm.xlu1 %5997, %v9752_v29   ;;  %v3116_v13 = vadd.f32 %v3096_v45, %v3040_v9  ;;  %v3117_v60 = vadd.f32 %v3097_v18, %v3041_v52  ;;  %v3118_v36 = vadd.f32 %v3098_v55, %v3042_v40  ;;  %v3119_v6 = vadd.f32 %v3099_v21, %v3043_v22  ;;  %v13229_v9 = vld [vmem:[#allocation115_spill] sm:$0xff]  ;;  %v13230_v52 = vld [vmem:[#allocation10_spill] sm:$0xff] }
 0x2ed   : > { %v3248_v47 = vmul.f32 %v13224_v33, %v13223_v48  ;;  %v3249_v19 = vmul.f32 %v13225_v4, %v13223_v48  ;;  %v3250_v17 = vmul.f32 %v13226_v12, %v13223_v48  ;;  %v3251_v14 = vmul.f32 %v13227_v23, %v13223_v48  ;;  %v13231_v22 = vld [vmem:[#allocation26_spill] sm:$0xff] }
 0x2ee   : > { %v3192_v51 = vadd.f32 %v3172_v56, %v3116_v13  ;;  %v3193_v53 = vadd.f32 %v3173_v37, %v3117_v60  ;;  %v3194_v49 = vadd.f32 %v3174_v25, %v3118_v36  ;;  %v3195_v46 = vadd.f32 %v3175_v11, %v3119_v6  ;;  %v13232_v56 = vld [vmem:[#allocation188_spill] sm:$0xff]  ;;  %v13233_v25 = vld [vmem:[#allocation189_spill] sm:$0xff]  ;;  %v10528_v13 = vpop.permute.xlu1 %3661  ;;  %v13235_v60 = vld [vmem:[#allocation15_spill] sm:$0xff] }
 0x2ef   : > { %v3088_v26 = vmul.f32 %v13217_v59, %v13228_v5  ;;  %v3089_v20 = vmul.f32 %v13038_v50, %v13228_v5  ;;  %v3090_v31 = vmul.f32 %v13039_v32, %v13228_v5  ;;  %v3091_v58 = vmul.f32 %v13040_v44, %v13228_v5  ;;  %13234 = vst [vmem:[#allocation69_spill] sm:$0xff] %v10528_v13  ;;  %v13236_v6 = vld [vmem:[#allocation153_spill] sm:$0xff] }
 0x2f0   : > { %4357 = vperm.xlu1 %5997, %v10033_v2   ;;  %v3268_v45 = vadd.f32 %v3248_v47, %v3192_v51  ;;  %v3269_v18 = vadd.f32 %v3249_v19, %v3193_v53  ;;  %v3270_v55 = vadd.f32 %v3250_v17, %v3194_v49  ;;  %v3271_v21 = vadd.f32 %v3251_v14, %v3195_v46  ;;  %v13237_v47 = vld [vmem:[#allocation158_spill] sm:$0xff]  ;;  %v13238_v17 = vld [vmem:[#allocation159_spill] sm:$0xff] }
 0x2f1   : > { %v10514_v40 = vmul.f32 %v13230_v52, %v13229_v9  ;;  %v10518_v62 = vmul.f32 %v13231_v22, %v13229_v9  ;;  %v10522_v37 = vmul.f32 %v13232_v56, %v13229_v9  ;;  %v10526_v11 = vmul.f32 %v13233_v25, %v13229_v9  ;;  %v13241_v9 = vld [vmem:[#allocation95_spill] sm:$0xff] }
 0x2f2   : > { %v3344_v36 = vadd.f32 %v13235_v60, %v3268_v45  ;;  %v3345_v48 = vadd.f32 %v13236_v6, %v3269_v18  ;;  %v3346_v19 = vadd.f32 %v13237_v47, %v3270_v55  ;;  %v3347_v14 = vadd.f32 %v13238_v17, %v3271_v21  ;;  %v13240_v45 = vld [vmem:[#allocation62_spill] sm:$0xff]  ;;  %v13242_v60 = vld [vmem:[#allocation71_spill] sm:$0xff]  ;;  %v13243_v6 = vld [vmem:[#allocation160_spill] sm:$0xff] }
 0x2f3   : > { %v10535_v51 = vadd.f32 %v3088_v26, %v10342_v0  ;;  %v10538_v53 = vadd.f32 %v3089_v20, %v10345_v63  ;;  %v10541_v49 = vadd.f32 %v3090_v31, %v10348_v38  ;;  %v10544_v46 = vadd.f32 %v3091_v58, %v10351_v28  ;;  %v13244_v63 = vld [vmem:[#allocation184_spill] sm:$0xff]  ;;  %v13245_v26 = vld [vmem:[#allocation149_spill] sm:$0xff]  ;;  %v13246_v38 = vld [vmem:[#allocation59_spill] sm:$0xff] }
 0x2f4   : > { %v13239_v5 = vmov 31   ;;  %v3420_v18 = vadd.f32 %v13240_v45, %v3344_v36  ;;  %v3421_v55 = vadd.f32 %v13241_v9, %v3345_v48  ;;  %v3422_v21 = vadd.f32 %v13242_v60, %v3346_v19  ;;  %v13248_v31 = vld [vmem:[#allocation128_spill] sm:$0xff]  ;;  %v10564_v48 = vpop.permute.xlu1 %3665  ;;  %v13250_v47 = vld [vmem:[#allocation81_spill] sm:$0xff]  ;;  %v13251_v17 = vld [vmem:[#allocation166_spill] sm:$0xff] }
 0x2f5   : > { %5999 = vset.pattern.permute.xlu1 %v13239_v5  ;;  %v3423_v0 = vadd.f32 %v13243_v6, %v3347_v14  ;;  %v10554_v20 = vmul.f32 %v13245_v26, %v13244_v63  ;;  %v10558_v28 = vmul.f32 %v13246_v38, %v13244_v63  ;;  %v3092_v58 = vmul.f32 %v13217_v59, %v13248_v31  ;;  %v13252_v45 = vld [vmem:[#allocation167_spill] sm:$0xff]  ;;  %v13253_v60 = vld [vmem:[#allocation168_spill] sm:$0xff]  ;;  %v13254_v5 = vld [vmem:[#allocation194_spill] sm:$0xff] }
 0x2f6   : > { %4421 = vperm.xlu1 %5999, %v9942_v7   ;;  %v3093_v36 = vmul.f32 %v13038_v50, %v13248_v31  ;;  %13249 = vst [vmem:[#allocation73_spill] sm:$0xff] %v10564_v48  ;;  %v3496_v19 = vadd.f32 %v13250_v47, %v3420_v18  ;;  %v3497_v14 = vadd.f32 %v13251_v17, %v3421_v55  ;;  %v13256_v38 = vld [vmem:[#allocation195_spill] sm:$0xff]  ;;  %v13259_v17 = vld [vmem:[#allocation173_spill] sm:$0xff] }
 0x2f7   : > { %13247 = vst [vmem:[#allocation48_spill] sm:$0xff] %v10558_v28  ;;  %v3498_v9 = vadd.f32 %v13252_v45, %v3422_v21  ;;  %v3499_v6 = vadd.f32 %v13253_v60, %v3423_v0  ;;  %v10572_v41 = vmul.f32 %v13254_v5, %v13244_v63  ;;  %v10576_v59 = vmul.f32 %v13256_v38, %v13244_v63  ;;  %v13258_v47 = vld [vmem:[#allocation35_spill] sm:$0xff]  ;;  %v13260_v45 = vld [vmem:[#allocation84_spill] sm:$0xff] }
 0x2f8   : > { %v3094_v50 = vmul.f32 %v13039_v32, %v13248_v31  ;;  %v3095_v18 = vmul.f32 %v13040_v44, %v13248_v31  ;;  %v3572_v55 = vadd.f32 %v13258_v47, %v3496_v19  ;;  %v3573_v21 = vadd.f32 %v13259_v17, %v3497_v14  ;;  %v13261_v60 = vld [vmem:[#allocation3_spill] sm:$0xff]  ;;  %v13262_v32 = vld [vmem:[#allocation190_spill] sm:$0xff]  ;;  %v10597_v31 = vpop.permute.xlu1 %3673  ;;  %v13263_v19 = vld [vmem:[#allocation24_spill] sm:$0xff] }
 0x2f9   : > { %13255 = vst [vmem:[#allocation54_spill] sm:$0xff] %v10572_v41  ;;  %13257 = vst [vmem:[#allocation57_spill] sm:$0xff] %v10576_v59  ;;  %v3574_v0 = vadd.f32 %v13260_v45, %v3498_v9  ;;  %v3575_v26 = vadd.f32 %v13261_v60, %v3499_v6  ;;  %v10588_v5 = vadd.f32 %v3092_v58, %v10364_v35  ;;  %v13264_v9 = vld [vmem:[#allocation177_spill] sm:$0xff]  ;;  %v13265_v47 = vld [vmem:[#allocation178_spill] sm:$0xff] }
 0x2fa   : > { %4425 = vperm.xlu1 %5999, %v9752_v29   ;;  %v10591_v63 = vadd.f32 %v3093_v36, %v10367_v57  ;;  %v3164_v38 = vmul.f32 %v13219_v30, %v13262_v32  ;;  %v3165_v44 = vmul.f32 %v13220_v10, %v13262_v32  ;;  %v3648_v14 = vadd.f32 %v13263_v19, %v3572_v55  ;;  %v13266_v17 = vld [vmem:[#allocation179_spill] sm:$0xff]  ;;  %v13267_v58 = vld [vmem:[#allocation129_spill] sm:$0xff]  ;;  %v13268_v45 = vld [vmem:[#allocation130_spill] sm:$0xff] }
 0x2fb   : > { %v3649_v6 = vadd.f32 %v13264_v9, %v3573_v21  ;;  %v3650_v29 = vadd.f32 %v13265_v47, %v3574_v0  ;;  %v3651_v35 = vadd.f32 %v13266_v17, %v3575_v26  ;;  %v3166_v57 = vmul.f32 %v13221_v34, %v13262_v32  ;;  %v13269_v25 = vld [vmem:[#allocation131_spill] sm:$0xff]  ;;  %v13271_v19 = vld [vmem:[#allocation180_spill] sm:$0xff]  ;;  %v13272_v9 = vld [vmem:[#allocation181_spill] sm:$0xff] }
 0x2fc   : > { %v3480_v36 = vmul.f32 %v13267_v58, %v10353_v24  ;;  %v3481_v60 = vmul.f32 %v13268_v45, %v10353_v24  ;;  %v3482_v56 = vmul.f32 %v13269_v25, %v10353_v24  ;;  %v13270_v22 = vld [vmem:[#allocation119_spill] sm:$0xff]  ;;  %v13273_v47 = vld [vmem:[#allocation182_spill] sm:$0xff]  ;;  %v13274_v17 = vld [vmem:[#allocation132_spill] sm:$0xff] }
 0x2fd   : > { %v3724_v55 = vadd.f32 %v13270_v22, %v3648_v14  ;;  %v3725_v21 = vadd.f32 %v13271_v19, %v3649_v6  ;;  %v3726_v0 = vadd.f32 %v13272_v9, %v3650_v29  ;;  %v3727_v26 = vadd.f32 %v13273_v47, %v3651_v35  ;;  %v13276_v22 = vld [vmem:[#allocation14_spill] sm:$0xff]  ;;  %v13277_v6 = vld [vmem:[#allocation63_spill] sm:$0xff]  ;;  %v10625_v35 = vpop.permute.xlu1 %3737 }
 0x2fe   : > { %4433 = vperm.xlu1 %5999, %v10033_v2   ;;  %v3483_v52 = vmul.f32 %v13274_v17, %v10353_v24  ;;  %v3500_v48 = vadd.f32 %v3480_v36, %v10394_v16  ;;  %v3501_v13 = vadd.f32 %v3481_v60, %v10396_v61  ;;  %v3502_v1 = vadd.f32 %v3482_v56, %v10398_v15  ;;  %v13278_v29 = vld [vmem:[#allocation187_spill] sm:$0xff] }
 0x2ff   : > { %v3800_v59 = vadd.f32 %v13275_v8, %v3724_v55  ;;  %v3801_v14 = vadd.f32 %v13276_v22, %v3725_v21  ;;  %v3802_v19 = vadd.f32 %v13277_v6, %v3726_v0  ;;  %v3803_v9 = vadd.f32 %v13278_v29, %v3727_v26  ;;  %13279 = vst [vmem:[#allocation56_spill] sm:$0xff] %v10625_v35  ;;  %v13280_v15 = vld [vmem:[#allocation143_spill] sm:$0xff]  ;;  %v13281_v8 = vld [vmem:[#allocation133_spill] sm:$0xff]  ;;  %v13283_v21 = vld [vmem:[#allocation192_spill] sm:$0xff] }
 0x300   : > { %v3114_v47 = vadd.f32 %v3094_v50, %v10370_v39  ;;  %v3115_v24 = vadd.f32 %v3095_v18, %v10373_v3  ;;  %v3167_v16 = vmul.f32 %v13222_v27, %v13262_v32  ;;  %v3503_v61 = vadd.f32 %v3483_v52, %v10400_v42  ;;  %v13282_v60 = vld [vmem:[#allocation191_spill] sm:$0xff]  ;;  %v13285_v50 = vld [vmem:[#allocation193_spill] sm:$0xff]  ;;  %v13286_v42 = vld [vmem:[#allocation146_spill] sm:$0xff] }
 0x301   : > { %v3876_v56 = vadd.f32 %v13280_v15, %v3800_v59  ;;  %v3877_v36 = vadd.f32 %v13281_v8, %v3801_v14  ;;  %v3878_v55 = vadd.f32 %v13282_v60, %v3802_v19  ;;  %v3879_v0 = vadd.f32 %v13283_v21, %v3803_v9  ;;  %v13287_v59 = vld [vmem:[#allocation196_spill] sm:$0xff]  ;;  %v13288_v14 = vld [vmem:[#allocation197_spill] sm:$0xff]  ;;  %v13289_v19 = vld [vmem:[#allocation198_spill] sm:$0xff]  ;;  %v10647_v9 = vpop.permute.xlu1 %3741 }
 0x302   : > { %v13284_v26 = vmov 32   ;;  %v3184_v22 = vadd.f32 %v3164_v38, %v10535_v51  ;;  %v3185_v39 = vadd.f32 %v3165_v44, %v10538_v53  ;;  %v3186_v3 = vadd.f32 %v3166_v57, %v10541_v49  ;;  %13290 = vst [vmem:[#allocation175_spill] sm:$0xff] %v10647_v9  ;;  %v13291_v49 = vld [vmem:[#allocation38_spill] sm:$0xff]  ;;  %v13293_v15 = vld [vmem:[#allocation199_spill] sm:$0xff]  ;;  %v13295_v60 = vld [vmem:[#allocation204_spill] sm:$0xff] }
 0x303   : > { %6001 = vset.pattern.permute.xlu1 %v13284_v26  ;;  %v3168_v18 = vmul.f32 %v13219_v30, %v13285_v50  ;;  %v3952_v52 = vadd.f32 %v13286_v42, %v3876_v56  ;;  %v3953_v32 = vadd.f32 %v13287_v59, %v3877_v36  ;;  %v3954_v6 = vadd.f32 %v13288_v14, %v3878_v55  ;;  %v13292_v44 = vld [vmem:[#allocation70_spill] sm:$0xff]  ;;  %v13294_v8 = vld [vmem:[#allocation203_spill] sm:$0xff]  ;;  %v10672_v26 = vld [vmem:[%s11535_s5 + $0x10] sm:$0xff] }
 0x304   : > { %4497 = vperm.xlu1 %6001, %v9942_v7   ;;  %v3955_v29 = vadd.f32 %v13289_v19, %v3879_v0  ;;  %v3169_v51 = vmul.f32 %v13220_v10, %v13285_v50  ;;  %v3170_v53 = vmul.f32 %v13221_v34, %v13285_v50  ;;  %v3171_v30 = vmul.f32 %v13222_v27, %v13285_v50  ;;  %v13296_v21 = vld [vmem:[#allocation110_spill] sm:$0xff]  ;;  %v13309_v35 = vld [vmem:[#allocation139_spill] sm:$0xff] }
 0x305   : > { %v3240_v38 = vmul.f32 %v13224_v33, %v13291_v49  ;;  %v4028_v57 = vadd.f32 %v13292_v44, %v3952_v52  ;;  %v4029_v56 = vadd.f32 %v13293_v15, %v3953_v32  ;;  %v4030_v36 = vadd.f32 %v13294_v8, %v3954_v6  ;;  %v13297_v50 = vld [vmem:[#allocation114_spill] sm:$0xff]  ;;  %v13299_v32 = vld [vmem:[#allocation216_spill] sm:$0xff]  ;;  %v13300_v6 = vld [vmem:[#allocation217_spill] sm:$0xff] }
 0x306   : > { %v4031_v55 = vadd.f32 %v13295_v60, %v3955_v29  ;;  %v3241_v10 = vmul.f32 %v13225_v4, %v13291_v49  ;;  %v3242_v34 = vmul.f32 %v13226_v12, %v13291_v49  ;;  %v3243_v27 = vmul.f32 %v13227_v23, %v13291_v49  ;;  %v13298_v52 = vld [vmem:[#allocation78_spill] sm:$0xff]  ;;  %v10679_v29 = vpop.permute.xlu1 %3749  ;;  %v13303_v15 = vld [vmem:[#allocation135_spill] sm:$0xff] }
 0x307   : > { %v3244_v0 = vmul.f32 %v13224_v33, %v13296_v21  ;;  %v4104_v42 = vadd.f32 %v13297_v50, %v4028_v57  ;;  %v4105_v59 = vadd.f32 %v13298_v52, %v4029_v56  ;;  %v4106_v14 = vadd.f32 %v13299_v32, %v4030_v36  ;;  %13301 = vst [vmem:[#allocation4_spill] sm:$0xff] %v10679_v29  ;;  %v13302_v49 = vld [vmem:[#allocation134_spill] sm:$0xff]  ;;  %v13306_v52 = vld [vmem:[#allocation17_spill] sm:$0xff] }
 0x308   : > { %4501 = vperm.xlu1 %6001, %v10672_v26   ;;  %v4107_v19 = vadd.f32 %v13300_v6, %v4031_v55  ;;  %v3245_v33 = vmul.f32 %v13225_v4, %v13296_v21  ;;  %v3556_v44 = vmul.f32 %v13302_v49, %v10435_v43  ;;  %v3557_v8 = vmul.f32 %v13303_v15, %v10435_v43  ;;  %v13304_v60 = vld [vmem:[#allocation138_spill] sm:$0xff]  ;;  %v13308_v6 = vld [vmem:[#allocation231_spill] sm:$0xff]  ;;  %v13310_v15 = vld [vmem:[#allocation165_spill] sm:$0xff] }
 0x309   : > { %v3558_v57 = vmul.f32 %v13304_v60, %v10435_v43  ;;  %v13305_v50 = vld [vmem:[#allocation170_spill] sm:$0xff]  ;;  %v4181_v36 = vadd.f32 %v13306_v52, %v4105_v59  ;;  %v3559_v4 = vmul.f32 %v13309_v35, %v10435_v43  ;;  %v13311_v60 = vld [vmem:[#allocation233_spill] sm:$0xff]  ;;  %v3188_v43 = vadd.f32 %v3168_v18, %v10588_v5 }
 0x30a   : > { %v4180_v56 = vadd.f32 %v13305_v50, %v4104_v42  ;;  %v13307_v32 = vld [vmem:[#allocation230_spill] sm:$0xff]  ;;  %v4183_v9 = vadd.f32 %v13308_v6, %v4107_v19  ;;  %v3576_v29 = vadd.f32 %v3556_v44, %v3500_v48  ;;  %v3577_v41 = vadd.f32 %v3557_v8, %v3501_v13  ;;  %v10711_v48 = vpop.permute.xlu1 %3813 }
 0x30b   : > { %v4182_v55 = vadd.f32 %v13307_v32, %v4106_v14  ;;  %v3578_v49 = vadd.f32 %v3558_v57, %v3502_v1  ;;  %v10700_v17 = vadd.f32 %v13311_v60, %v4181_v36  ;;  %v13312_v42 = vld [vmem:[#allocation234_spill] sm:$0xff]  ;;  %v13313_v14 = vld [vmem:[#allocation235_spill] sm:$0xff]  ;;  %v3187_v19 = vadd.f32 %v3167_v16, %v10544_v46 }
 0x30c   : > { %4509 = vperm.xlu1 %6001, %v10033_v2   ;;  %v10697_v28 = vadd.f32 %v13310_v15, %v4180_v56  ;;  %v10706_v50 = vadd.f32 %v13313_v14, %v4183_v9  ;;  %v3189_v1 = vadd.f32 %v3169_v51, %v10591_v63  ;;  %v3579_v13 = vadd.f32 %v3559_v4, %v3503_v61  ;;  %v13315_v63 = vld [vmem:[#allocation208_spill] sm:$0xff]  ;;  %v13316_v61 = vld [vmem:[#allocation122_spill] sm:$0xff] }
 0x30d   : > { %v10703_v59 = vadd.f32 %v13312_v42, %v4182_v55  ;;  %v3190_v44 = vadd.f32 %v3170_v53, %v3114_v47  ;;  %v3191_v15 = vadd.f32 %v3171_v30, %v3115_v24  ;;  %v3260_v8 = vadd.f32 %v3240_v38, %v3184_v22  ;;  %v13317_v47 = vld [vmem:[#allocation123_spill] sm:$0xff]  ;;  %v13318_v22 = vld [vmem:[#allocation5_spill] sm:$0xff]  ;;  %v13326_v14 = vld [vmem:[#allocation28_spill] sm:$0xff] }
 0x30e   : > { %v3261_v60 = vadd.f32 %v3241_v10, %v3185_v39  ;;  %v3262_v57 = vadd.f32 %v3242_v34, %v3186_v3  ;;  %v3263_v56 = vadd.f32 %v3243_v27, %v3187_v19  ;;  %v3246_v52 = vmul.f32 %v13226_v12, %v13296_v21  ;;  %v13319_v12 = vld [vmem:[#allocation125_spill] sm:$0xff]  ;;  %v10731_v38 = vpop.permute.xlu1 %3817  ;;  %v13322_v10 = vld [vmem:[#allocation215_spill] sm:$0xff]  ;;  %v13323_v27 = vld [vmem:[#allocation140_spill] sm:$0xff] }
 0x30f   : > { %v3247_v9 = vmul.f32 %v13227_v23, %v13296_v21  ;;  %v13314_v46 = vmov 33   ;;  %v3264_v5 = vadd.f32 %v3244_v0, %v3188_v43  ;;  %v3265_v16 = vadd.f32 %v3245_v33, %v3189_v1  ;;  %v13320_v23 = vld [vmem:[#allocation136_spill] sm:$0xff]  ;;  %v13321_v53 = vld [vmem:[#allocation137_spill] sm:$0xff] }
 0x310   : > { %6003 = vset.pattern.permute.xlu1 %v13314_v46  ;;  %v3316_v18 = vmul.f32 %v13316_v61, %v13315_v63  ;;  %v3317_v24 = vmul.f32 %v13317_v47, %v13315_v63  ;;  %v3318_v39 = vmul.f32 %v13318_v22, %v13315_v63  ;;  %v3319_v3 = vmul.f32 %v13319_v12, %v13315_v63  ;;  %v13324_v0 = vld [vmem:[#allocation141_spill] sm:$0xff] }
 0x311   : > { %4573 = vperm.xlu1 %6003, %v9942_v7   ;;  %v3632_v51 = vmul.f32 %v13320_v23, %v10493_v54  ;;  %v3633_v30 = vmul.f32 %v13321_v53, %v10493_v54  ;;  %v3320_v34 = vmul.f32 %v13316_v61, %v13322_v10  ;;  %v3321_v7 = vmul.f32 %v13317_v47, %v13322_v10  ;;  %v13325_v42 = vld [vmem:[#allocation225_spill] sm:$0xff] }
 0x312   : > { %v3634_v21 = vmul.f32 %v13323_v27, %v10493_v54  ;;  %v3635_v33 = vmul.f32 %v13324_v0, %v10493_v54  ;;  %v3266_v36 = vadd.f32 %v3246_v52, %v3190_v44  ;;  %v3322_v32 = vmul.f32 %v13318_v22, %v13322_v10  ;;  %v10748_v44 = vpop.permute.xlu1 %3825 }
 0x313   : > { %v3652_v55 = vadd.f32 %v3632_v51, %v3576_v29  ;;  %v3653_v6 = vadd.f32 %v3633_v30, %v3577_v41  ;;  %v3323_v4 = vmul.f32 %v13319_v12, %v13322_v10  ;;  %v3392_v19 = vmul.f32 %v13326_v14, %v13325_v42  ;;  %v13327_v41 = vld [vmem:[#allocation8_spill] sm:$0xff]  ;;  %v13328_v30 = vld [vmem:[#allocation126_spill] sm:$0xff] }
 0x314   : > { %v3654_v43 = vadd.f32 %v3634_v21, %v3578_v49  ;;  %v3655_v1 = vadd.f32 %v3635_v33, %v3579_v13  ;;  %v3267_v63 = vadd.f32 %v3247_v9, %v3191_v15  ;;  %v3336_v61 = vadd.f32 %v3316_v18, %v3260_v8  ;;  %v13329_v49 = vld [vmem:[#allocation144_spill] sm:$0xff]  ;;  %v13330_v15 = vld [vmem:[#allocation145_spill] sm:$0xff] }
 0x315   : > { %4577 = vperm.xlu1 %6003, %v10672_v26   ;;  %v3337_v47 = vadd.f32 %v3317_v24, %v3261_v60  ;;  %v3338_v54 = vadd.f32 %v3318_v39, %v3262_v57  ;;  %v3339_v52 = vadd.f32 %v3319_v3, %v3263_v56  ;;  %v3340_v22 = vadd.f32 %v3320_v34, %v3264_v5  ;;  %v13331_v57 = vld [vmem:[#allocation127_spill] sm:$0xff]  ;;  %v13333_v18 = vld [vmem:[#allocation229_spill] sm:$0xff]  ;;  %v13334_v39 = vld [vmem:[#allocation148_spill] sm:$0xff] }
 0x316   : > { %v3341_v29 = vadd.f32 %v3321_v7, %v3265_v16  ;;  %v3393_v51 = vmul.f32 %v13327_v41, %v13325_v42  ;;  %v3342_v12 = vadd.f32 %v3322_v32, %v3266_v36  ;;  %v3394_v10 = vmul.f32 %v13328_v30, %v13325_v42  ;;  %v13332_v5 = vld [vmem:[#allocation147_spill] sm:$0xff] }
 0x317   : > { %v3708_v13 = vmul.f32 %v13329_v49, %v10597_v31  ;;  %v3709_v8 = vmul.f32 %v13330_v15, %v10597_v31  ;;  %v3343_v60 = vadd.f32 %v3323_v4, %v3267_v63  ;;  %v3395_v9 = vmul.f32 %v13331_v57, %v13325_v42  ;;  %v10771_v4 = vpop.permute.xlu1 %3889 }
 0x318   : > { %v3412_v56 = vadd.f32 %v3392_v19, %v3336_v61  ;;  %v3710_v16 = vmul.f32 %v13332_v5, %v10597_v31  ;;  %v3396_v24 = vmul.f32 %v13326_v14, %v13333_v18  ;;  %v3711_v3 = vmul.f32 %v13334_v39, %v10597_v31  ;;  %v13335_v31 = vld [vmem:[#allocation83_spill] sm:$0xff]  ;;  %v13336_v19 = vld [vmem:[#allocation49_spill] sm:$0xff]  ;;  %v13337_v61 = vld [vmem:[#allocation236_spill] sm:$0xff] }
 0x319   : > { %4585 = vperm.xlu1 %6003, %v10033_v2   ;;  %v3728_v34 = vadd.f32 %v3708_v13, %v3652_v55  ;;  %v3729_v7 = vadd.f32 %v3709_v8, %v3653_v6  ;;  %v3413_v21 = vadd.f32 %v3393_v51, %v3337_v47  ;;  %v3397_v33 = vmul.f32 %v13327_v41, %v13333_v18 }
 0x31a   : > { %v3398_v36 = vmul.f32 %v13328_v30, %v13333_v18  ;;  %v3730_v32 = vadd.f32 %v3710_v16, %v3654_v43  ;;  %v10773_v42 = vadd.f32 %v3394_v10, %v3338_v54  ;;  %v3399_v2 = vmul.f32 %v13331_v57, %v13333_v18  ;;  %v13338_v43 = vld [vmem:[#allocation237_spill] sm:$0xff]  ;;  %v6064_v10 = vld [vmem:[%s11535_s5 + $0x8] sm:$0xff] }
 0x31b   : > { %v3731_v14 = vadd.f32 %v3711_v3, %v3655_v1  ;;  %v4332_v55 = vadd.f32 %v13335_v31, %v10697_v28  ;;  %v10779_v6 = vadd.f32 %v3395_v9, %v3339_v52  ;;  %v3468_v63 = vmul.f32 %v13267_v58, %v13336_v19  ;;  %v13340_v28 = vld [vmem:[#allocation65_spill] sm:$0xff]  ;;  %v10800_v8 = vpop.permute.xlu1 %3893  ;;  %v13341_v16 = vld [vmem:[#allocation132_spill] sm:$0xff]  ;;  %v13343_v3 = vld [vmem:[#allocation54_spill] sm:$0xff] }
 0x31c   : > { %v4333_v47 = vadd.f32 %v13337_v61, %v10700_v17  ;;  %v4334_v41 = vadd.f32 %v13338_v43, %v10703_v59  ;;  %v13339_v54 = vmov 34   ;;  %v10788_v51 = vadd.f32 %v3396_v24, %v3340_v22  ;;  %v13346_v31 = vld [vmem:[#allocation111_spill] sm:$0xff]  ;;  %v13350_v43 = vld [vmem:[#allocation154_spill] sm:$0xff] }
 0x31d   : > { %6005 = vset.pattern.permute.xlu1 %v13339_v54  ;;  %v3469_v1 = vmul.f32 %v13268_v45, %v13336_v19  ;;  %v4335_v52 = vadd.f32 %v13340_v28, %v10706_v50  ;;  %v4408_v30 = vadd.f32 %v10514_v40, %v4332_v55  ;;  %v3417_v17 = vadd.f32 %v3397_v33, %v3341_v29  ;;  %v13342_v29 = vld [vmem:[#allocation48_spill] sm:$0xff] }
 0x31e   : > { %4649 = vperm.xlu1 %6005, %v6064_v10   ;;  %v3418_v13 = vadd.f32 %v3398_v36, %v3342_v12  ;;  %v4409_v59 = vadd.f32 %v10518_v62, %v4333_v47  ;;  %v4410_v22 = vadd.f32 %v10522_v37, %v4334_v41  ;;  %v3419_v57 = vadd.f32 %v3399_v2, %v3343_v60  ;;  %v13344_v37 = vld [vmem:[#allocation50_spill] sm:$0xff]  ;;  %v13345_v60 = vld [vmem:[#allocation57_spill] sm:$0xff]  ;;  %v13352_v28 = vld [vmem:[#allocation72_spill] sm:$0xff] }
 0x31f   : > { %v3470_v9 = vmul.f32 %v13269_v25, %v13336_v19  ;;  %v4411_v50 = vadd.f32 %v10526_v11, %v4335_v52  ;;  %v4484_v40 = vadd.f32 %v10554_v20, %v4408_v30  ;;  %v3471_v18 = vmul.f32 %v13341_v16, %v13336_v19  ;;  %v13349_v47 = vld [vmem:[#allocation201_spill] sm:$0xff]  ;;  %v13353_v30 = vld [vmem:[#allocation86_spill] sm:$0xff]  ;;  %v13362_v54 = vld [vmem:[#allocation100_spill] sm:$0xff] }
 0x320   : > { %v3488_v24 = vadd.f32 %v3468_v63, %v3412_v56  ;;  %v4485_v12 = vadd.f32 %v13342_v29, %v4409_v59  ;;  %v4486_v62 = vadd.f32 %v13343_v3, %v4410_v22  ;;  %v3489_v33 = vadd.f32 %v3469_v1, %v3413_v21  ;;  %v13347_v56 = vld [vmem:[#allocation112_spill] sm:$0xff]  ;;  %v10821_v21 = vpop.permute.xlu1 %3901 }
 0x321   : > { %v3472_v36 = vmul.f32 %v13267_v58, %v13344_v37  ;;  %v4487_v2 = vadd.f32 %v13345_v60, %v4411_v50  ;;  %v4560_v55 = vadd.f32 %v13346_v31, %v4484_v40  ;;  %v3473_v11 = vmul.f32 %v13268_v45, %v13344_v37  ;;  %v13348_v63 = vld [vmem:[#allocation200_spill] sm:$0xff]  ;;  %v13354_v45 = vld [vmem:[#allocation207_spill] sm:$0xff]  ;;  %v13355_v50 = vld [vmem:[#allocation209_spill] sm:$0xff] }
 0x322   : > { %4653 = vperm.xlu1 %6005, %v10672_v26   ;;  %v3474_v20 = vmul.f32 %v13269_v25, %v13344_v37  ;;  %v4561_v19 = vadd.f32 %v13347_v56, %v4485_v12  ;;  %v4562_v61 = vadd.f32 %v13348_v63, %v4486_v62  ;;  %v13351_v1 = vld [vmem:[#allocation4_spill] sm:$0xff]  ;;  %v13356_v40 = vld [vmem:[#allocation150_spill] sm:$0xff]  ;;  %v13357_v12 = vld [vmem:[#allocation151_spill] sm:$0xff] }
 0x323   : > { %v4563_v58 = vadd.f32 %v13349_v47, %v4487_v2  ;;  %v4636_v41 = vadd.f32 %v13350_v43, %v4560_v55  ;;  %v3784_v52 = vmul.f32 %v13352_v28, %v13351_v1  ;;  %v3785_v59 = vmul.f32 %v13353_v30, %v13351_v1  ;;  %v13358_v62 = vld [vmem:[#allocation210_spill] sm:$0xff] }
 0x324   : > { %v4637_v22 = vadd.f32 %v13354_v45, %v4561_v19  ;;  %v4638_v25 = vadd.f32 %v13355_v50, %v4562_v61  ;;  %v3786_v29 = vmul.f32 %v13356_v40, %v13351_v1  ;;  %v3787_v3 = vmul.f32 %v13357_v12, %v13351_v1  ;;  %v13359_v2 = vld [vmem:[#allocation218_spill] sm:$0xff]  ;;  %v13360_v19 = vld [vmem:[#allocation219_spill] sm:$0xff]  ;;  %v13361_v61 = vld [vmem:[#allocation68_spill] sm:$0xff] }
 0x325   : > { %v4639_v60 = vadd.f32 %v13358_v62, %v4563_v58  ;;  %v4712_v31 = vadd.f32 %v13359_v2, %v4636_v41  ;;  %v3804_v55 = vadd.f32 %v3784_v52, %v3728_v34  ;;  %v3805_v56 = vadd.f32 %v3785_v59, %v3729_v7  ;;  %v6065_v63 = vld [vmem:[%s11535_s5 + $0x20] sm:$0xf]  ;;  %v13364_v41 = vld [vmem:[#allocation220_spill] sm:$0xff]  ;;  %v10850_v59 = vpop.permute.xlu1 %3965 }
 0x326   : > { %4661 = vperm.xlu1 %6005, %v6065_v63   ;;  %v4713_v47 = vadd.f32 %v13360_v19, %v4637_v22  ;;  %v4714_v43 = vadd.f32 %v13361_v61, %v4638_v25  ;;  %v3806_v45 = vadd.f32 %v3786_v29, %v3730_v32  ;;  %v3807_v50 = vadd.f32 %v3787_v3, %v3731_v14  ;;  %v13363_v58 = vld [vmem:[#allocation134_spill] sm:$0xff]  ;;  %v13367_v2 = vld [vmem:[#allocation135_spill] sm:$0xff]  ;;  %v13369_v14 = vld [vmem:[#allocation228_spill] sm:$0xff] }
 0x327   : > { %v3475_v1 = vmul.f32 %v13341_v16, %v13344_v37  ;;  %v3544_v62 = vmul.f32 %v13363_v58, %v13362_v54  ;;  %v4715_v34 = vadd.f32 %v13364_v41, %v4639_v60  ;;  %v13365_v7 = vld [vmem:[#allocation102_spill] sm:$0xff]  ;;  %v3545_v22 = vmul.f32 %v13367_v2, %v13362_v54  ;;  %v13371_v16 = vld [vmem:[#allocation40_spill] sm:$0xff]  ;;  %v13373_v60 = vld [vmem:[#allocation21_spill] sm:$0xff] }
 0x328   : > { %v10848_v52 = vadd.f32 %v13365_v7, %v4712_v31  ;;  %v13368_v25 = vld [vmem:[#allocation138_spill] sm:$0xff]  ;;  %v10857_v29 = vadd.f32 %v13369_v14, %v4713_v47  ;;  %v10860_v37 = vadd.f32 %v13371_v16, %v4714_v43  ;;  %v3547_v3 = vmul.f32 %v13309_v35, %v13362_v54  ;;  %v13374_v61 = vld [vmem:[#allocation105_spill] sm:$0xff] }
 0x329   : > { %v3546_v32 = vmul.f32 %v13368_v25, %v13362_v54  ;;  %v3548_v31 = vmul.f32 %v13363_v58, %v13373_v60  ;;  %v3549_v19 = vmul.f32 %v13367_v2, %v13373_v60  ;;  %v10869_v41 = vadd.f32 %v13374_v61, %v4715_v34  ;;  %v10881_v61 = vpop.permute.xlu1 %3969 }
 0x32a   : > { %13366 = vst [vmem:[#allocation13_spill] sm:$0xff] %v10848_v52  ;;  %13370 = vst [vmem:[#allocation107_spill] sm:$0xff] %v10857_v29  ;;  %v13376_v7 = vmov 35   ;;  %v3490_v47 = vadd.f32 %v3470_v9, %v10773_v42  ;;  %v3491_v14 = vadd.f32 %v3471_v18, %v10779_v6  ;;  %v3550_v43 = vmul.f32 %v13368_v25, %v13373_v60 }
 0x32b   : > { %13372 = vst [vmem:[#allocation108_spill] sm:$0xff] %v10860_v37  ;;  %13375 = vst [vmem:[#allocation176_spill] sm:$0xff] %v10869_v41  ;;  %6007 = vset.pattern.permute.xlu1 %v13376_v7  ;;  %v3551_v54 = vmul.f32 %v13309_v35, %v13373_v60  ;;  %v3492_v58 = vadd.f32 %v3472_v36, %v10788_v51  ;;  %v3493_v16 = vadd.f32 %v3473_v11, %v3417_v17  ;;  %v13377_v37 = vld [vmem:[#allocation88_spill] sm:$0xff] }
 0x32c   : > { %4725 = vperm.xlu1 %6007, %v6064_v10   ;;  %v3494_v2 = vadd.f32 %v3474_v20, %v3418_v13  ;;  %v3620_v34 = vmul.f32 %v13320_v23, %v13377_v37  ;;  %v3495_v7 = vadd.f32 %v3475_v1, %v3419_v57  ;;  %v3564_v42 = vadd.f32 %v3544_v62, %v3488_v24  ;;  %v13378_v57 = vld [vmem:[#allocation67_spill] sm:$0xff]  ;;  %v13379_v62 = vld [vmem:[#allocation44_spill] sm:$0xff] }
 0x32d   : > { %v3565_v9 = vadd.f32 %v3545_v22, %v3489_v33  ;;  %v3621_v6 = vmul.f32 %v13321_v53, %v13377_v37  ;;  %v3566_v18 = vadd.f32 %v3546_v32, %v3490_v47  ;;  %v3567_v25 = vadd.f32 %v3547_v3, %v3491_v14  ;;  %v10896_v11 = vpop.permute.xlu1 %3977 }
 0x32e   : > { %v3568_v41 = vadd.f32 %v3548_v31, %v3492_v58  ;;  %v3569_v35 = vadd.f32 %v3549_v19, %v3493_v16  ;;  %v3570_v10 = vadd.f32 %v3550_v43, %v3494_v2  ;;  %v3571_v60 = vadd.f32 %v3551_v54, %v3495_v7  ;;  %v13383_v31 = vld [vmem:[#allocation157_spill] sm:$0xff] }
 0x32f   : > { %v3622_v51 = vmul.f32 %v13323_v27, %v13377_v37  ;;  %v3623_v17 = vmul.f32 %v13324_v0, %v13377_v37  ;;  %v3640_v13 = vadd.f32 %v3620_v34, %v3564_v42  ;;  %v3624_v24 = vmul.f32 %v13320_v23, %v13378_v57  ;;  %v13381_v37 = vld [vmem:[#allocation69_spill] sm:$0xff] }
 0x330   : > { %4729 = vperm.xlu1 %6007, %v10672_v26   ;;  %v3625_v33 = vmul.f32 %v13321_v53, %v13378_v57  ;;  %v3626_v36 = vmul.f32 %v13323_v27, %v13378_v57  ;;  %v3641_v20 = vadd.f32 %v3621_v6, %v3565_v9  ;;  %v3627_v1 = vmul.f32 %v13324_v0, %v13378_v57  ;;  %v13380_v26 = vld [vmem:[#allocation155_spill] sm:$0xff]  ;;  %v13382_v27 = vld [vmem:[#allocation156_spill] sm:$0xff]  ;;  %v13384_v9 = vld [vmem:[#allocation73_spill] sm:$0xff] }
 0x331   : > { %v3860_v22 = vmul.f32 %v13379_v62, %v10748_v44  ;;  %v3861_v32 = vmul.f32 %v13380_v26, %v10748_v44  ;;  %v3696_v23 = vmul.f32 %v13329_v49, %v13381_v37  ;;  %v3697_v53 = vmul.f32 %v13330_v15, %v13381_v37 }
 0x332   : > { %v3862_v3 = vmul.f32 %v13382_v27, %v10748_v44  ;;  %v3863_v19 = vmul.f32 %v13383_v31, %v10748_v44  ;;  %v3698_v0 = vmul.f32 %v13332_v5, %v13381_v37  ;;  %v3699_v47 = vmul.f32 %v13334_v39, %v13381_v37  ;;  %v10918_v44 = vpop.permute.xlu1 %4041  ;;  %v4817_v37 = vld [vmem:[#allocation2] sm:$0x1] }
 0x333   : > { %v3880_v14 = vadd.f32 %v3860_v22, %v3804_v55  ;;  %v3881_v43 = vadd.f32 %v3861_v32, %v3805_v56  ;;  %v3642_v54 = vadd.f32 %v3622_v51, %v3566_v18  ;;  %v3643_v58 = vadd.f32 %v3623_v17, %v3567_v25  ;;  %v13387_v25 = vld [vmem:[#allocation56_spill] sm:$0xff] }
 0x334   : > { %4737 = vperm.xlu1 %6007, %v6065_v63   ;;  %v3882_v16 = vadd.f32 %v3862_v3, %v3806_v45  ;;  %v3883_v2 = vadd.f32 %v3863_v19, %v3807_v50  ;;  %v3644_v34 = vadd.f32 %v3624_v24, %v3568_v41  ;;  %v3645_v7 = vadd.f32 %v3625_v33, %v3569_v35  ;;  %v13385_v50 = vld [vmem:[#allocation82_spill] sm:$0xff]  ;;  %v13391_v3 = vld [vmem:[#allocation175_spill] sm:$0xff] }
 0x335   : > { %v3646_v42 = vadd.f32 %v3626_v36, %v3570_v10  ;;  %v3700_v6 = vmul.f32 %v13329_v49, %v13384_v9  ;;  %v3647_v57 = vadd.f32 %v3627_v1, %v3571_v60  ;;  %v3716_v29 = vadd.f32 %v3696_v23, %v3640_v13  ;;  %v13388_v10 = vld [vmem:[#allocation94_spill] sm:$0xff]  ;;  %v13390_v13 = vld [vmem:[#allocation113_spill] sm:$0xff] }
 0x336   : > { %v3717_v52 = vadd.f32 %v3697_v53, %v3641_v20  ;;  %v3701_v55 = vmul.f32 %v13330_v15, %v13384_v9  ;;  %v3718_v56 = vadd.f32 %v3698_v0, %v3642_v54  ;;  %v3719_v63 = vadd.f32 %v3699_v47, %v3643_v58  ;;  %v13389_v15 = vld [vmem:[#allocation52_spill] sm:$0xff]  ;;  %v10945_v36 = vpop.permute.xlu1 %4045 }
 0x337   : > { %v3702_v45 = vmul.f32 %v13332_v5, %v13384_v9  ;;  %v3936_v41 = vmul.f32 %v13385_v50, %v10821_v21  ;;  %v13386_v18 = vmov 1   ;;  %v3703_v49 = vmul.f32 %v13334_v39, %v13384_v9  ;;  %v10938_v5 = vld [vmem:[%s11537_s7] sm:$0x1] }
 0x338   : > { %6010 = vset.pattern.permute.xlu1 %v13386_v18  ;;  %v3772_v35 = vmul.f32 %v13352_v28, %v13387_v25  ;;  %v3937_v60 = vmul.f32 %v13388_v10, %v10821_v21  ;;  %v3938_v51 = vmul.f32 %v13389_v15, %v10821_v21  ;;  %v3720_v17 = vadd.f32 %v3700_v6, %v3644_v34  ;;  %v13393_v34 = vld [vmem:[#allocation161_spill] sm:$0xff] }
 0x339   : > { %4845 = vperm.xlu1 %6010, %v10938_v5   ;;  %v3773_v39 = vmul.f32 %v13353_v30, %v13387_v25  ;;  %v3939_v24 = vmul.f32 %v13390_v13, %v10821_v21  ;;  %v3956_v33 = vadd.f32 %v3936_v41, %v3880_v14  ;;  %v3721_v20 = vadd.f32 %v3701_v55, %v3645_v7 }
 0x33a   : > { %v3774_v1 = vmul.f32 %v13356_v40, %v13387_v25  ;;  %v3957_v22 = vadd.f32 %v3937_v60, %v3881_v43  ;;  %v3958_v32 = vadd.f32 %v3938_v51, %v3882_v16  ;;  %v3722_v23 = vadd.f32 %v3702_v45, %v3646_v42 }
 0x33b   : > { %v3775_v53 = vmul.f32 %v13357_v12, %v13387_v25  ;;  %v3776_v19 = vmul.f32 %v13352_v28, %v13391_v3  ;;  %v3959_v0 = vadd.f32 %v3939_v24, %v3883_v2  ;;  %v3723_v47 = vadd.f32 %v3703_v49, %v3647_v57  ;;  %v13394_v28 = vld [vmem:[#allocation162_spill] sm:$0xff] }
 0x33c   : > { %v3792_v21 = vadd.f32 %v3772_v35, %v3716_v29  ;;  %v3777_v14 = vmul.f32 %v13353_v30, %v13391_v3  ;;  %v3778_v54 = vmul.f32 %v13356_v40, %v13391_v3  ;;  %v13392_v58 = vmov 0   ;;  %v4054_v29 = vpop.permute.xlu1 %4053  ;;  %v13395_v40 = vld [vmem:[#allocation163_spill] sm:$0xff] }
 0x33d   : > { %6011 = vset.pattern.permute.xlu1 %v13392_v58  ;;  %v3793_v43 = vadd.f32 %v3773_v39, %v3717_v52  ;;  %v3779_v16 = vmul.f32 %v13357_v12, %v13391_v3  ;;  %v4012_v7 = vmul.f32 %v13393_v34, %v10896_v11  ;;  %v4013_v2 = vmul.f32 %v13394_v28, %v10896_v11  ;;  %v13396_v52 = vld [vmem:[#allocation164_spill] sm:$0xff] }
 0x33e   : > { %4833 = vperm.xlu1 %6011, %v4817_v37   ;;  %v3794_v42 = vadd.f32 %v3774_v1, %v3718_v56  ;;  %v3848_v30 = vmul.f32 %v13379_v62, %v10711_v48  ;;  %v4014_v9 = vmul.f32 %v13395_v40, %v10896_v11  ;;  %v4015_v6 = vmul.f32 %v13396_v52, %v10896_v11 }
 0x33f   : > { %v3795_v57 = vadd.f32 %v3775_v53, %v3719_v63  ;;  %v3796_v12 = vadd.f32 %v3776_v19, %v3720_v17  ;;  %v4032_v55 = vadd.f32 %v4012_v7, %v3956_v33  ;;  %v4033_v45 = vadd.f32 %v4013_v2, %v3957_v22  ;;  %v13401_v19 = vld [vmem:[#allocation172_spill] sm:$0xff] }
 0x340   : > { %v3797_v41 = vadd.f32 %v3777_v14, %v3721_v20  ;;  %v3798_v18 = vadd.f32 %v3778_v54, %v3722_v23  ;;  %v4034_v49 = vadd.f32 %v4014_v9, %v3958_v32  ;;  %v4035_v25 = vadd.f32 %v4015_v6, %v3959_v0  ;;  %v10984_v33 = vpop.permute.xlu1 %4117  ;;  %v13399_v32 = vld [vmem:[#allocation169_spill] sm:$0xff]  ;;  %v13400_v23 = vld [vmem:[#allocation171_spill] sm:$0xff] }
 0x341   : > { %v3799_v35 = vadd.f32 %v3779_v16, %v3723_v47  ;;  %v3849_v56 = vmul.f32 %v13380_v26, %v10711_v48  ;;  %v3850_v60 = vmul.f32 %v13382_v27, %v10711_v48  ;;  %v3851_v51 = vmul.f32 %v13383_v31, %v10711_v48 }
 0x342   : > { %v13397_v39 = vmov 3   ;;  %v3868_v11 = vadd.f32 %v3848_v30, %v3792_v21  ;;  %v3852_v63 = vmul.f32 %v13379_v62, %v10731_v38  ;;  %v3853_v17 = vmul.f32 %v13380_v26, %v10731_v38  ;;  %v13398_v62 = vld [vmem:[#allocation25_spill] sm:$0xff] }
 0x343   : > { %6013 = vset.pattern.permute.xlu1 %v13397_v39  ;;  %v3854_v24 = vmul.f32 %v13382_v27, %v10731_v38  ;;  %v3855_v20 = vmul.f32 %v13383_v31, %v10731_v38  ;;  %v3924_v48 = vmul.f32 %v13385_v50, %v10771_v4  ;;  %v3925_v1 = vmul.f32 %v13388_v10, %v10771_v4 }
 0x344   : > { %4901 = vperm.xlu1 %6013, %v10938_v5   ;;  %v4088_v22 = vmul.f32 %v13398_v62, %v4054_v29  ;;  %v3926_v26 = vmul.f32 %v13389_v15, %v10771_v4  ;;  %v3927_v27 = vmul.f32 %v13390_v13, %v10771_v4  ;;  %v4089_v37 = vmul.f32 %v13399_v32, %v4054_v29  ;;  %v11009_v4 = vpop.permute.xlu1 %4121 }
 0x345   : > { %v4090_v53 = vmul.f32 %v13400_v23, %v4054_v29  ;;  %v3928_v38 = vmul.f32 %v13385_v50, %v10800_v8  ;;  %v3929_v31 = vmul.f32 %v13388_v10, %v10800_v8  ;;  %v3930_v3 = vmul.f32 %v13389_v15, %v10800_v8 }
 0x346   : > { %v4091_v0 = vmul.f32 %v13401_v19, %v4054_v29  ;;  %v3931_v47 = vmul.f32 %v13390_v13, %v10800_v8  ;;  %v13402_v21 = vmov 4   ;;  %v4108_v14 = vadd.f32 %v4088_v22, %v4032_v55 }
 0x347   : > { %v4109_v54 = vadd.f32 %v4089_v37, %v4033_v45  ;;  %v4110_v58 = vadd.f32 %v4090_v53, %v4034_v49  ;;  %v3869_v16 = vadd.f32 %v3849_v56, %v3793_v43  ;;  %v3870_v50 = vadd.f32 %v3850_v60, %v3794_v42  ;;  %v13403_v49 = vld [vmem:[#allocation30_spill] sm:$0xff] }
 0x348   : > { %6014 = vset.pattern.permute.xlu1 %v13402_v21  ;;  %v3871_v7 = vadd.f32 %v3851_v51, %v3795_v57  ;;  %v3872_v2 = vadd.f32 %v3852_v63, %v3796_v12  ;;  %v3873_v10 = vadd.f32 %v3853_v17, %v3797_v41  ;;  %v3874_v15 = vadd.f32 %v3854_v24, %v3798_v18  ;;  %v4130_v45 = vpop.permute.xlu1 %4129  ;;  %v13404_v42 = vld [vmem:[#allocation106_spill] sm:$0xff]  ;;  %v13405_v12 = vld [vmem:[#allocation109_spill] sm:$0xff] }
 0x349   : > { %4929 = vperm.xlu1 %6014, %v10938_v5   ;;  %v3875_v30 = vadd.f32 %v3855_v20, %v3799_v35  ;;  %v4111_v29 = vadd.f32 %v4091_v0, %v4035_v25  ;;  %v3944_v9 = vadd.f32 %v3924_v48, %v3868_v11  ;;  %v3945_v6 = vadd.f32 %v3925_v1, %v3869_v16  ;;  %v13406_v60 = vld [vmem:[#allocation174_spill] sm:$0xff] }
 0x34a   : > { %v3946_v8 = vadd.f32 %v3926_v26, %v3870_v50  ;;  %v3947_v13 = vadd.f32 %v3927_v27, %v3871_v7  ;;  %v3948_v39 = vadd.f32 %v3928_v38, %v3872_v2  ;;  %v3949_v21 = vadd.f32 %v3929_v31, %v3873_v10 }
 0x34b   : > { %v3950_v46 = vadd.f32 %v3930_v3, %v3874_v15  ;;  %v3951_v55 = vadd.f32 %v3931_v47, %v3875_v30  ;;  %v4164_v43 = vmul.f32 %v13403_v49, %v4130_v45  ;;  %v4165_v57 = vmul.f32 %v13404_v42, %v4130_v45 }
 0x34c   : > { %v4166_v56 = vmul.f32 %v13405_v12, %v4130_v45  ;;  %v4167_v41 = vmul.f32 %v13406_v60, %v4130_v45  ;;  %v13407_v18 = vmov 6   ;;  %v4000_v25 = vmul.f32 %v13393_v34, %v10850_v59  ;;  %v4194_v53 = vpop.permute.xlu1 %4193  ;;  %v13412_v45 = vld [vmem:[#allocation41_spill] sm:$0xff] }
 0x34d   : > { %6015 = vset.pattern.permute.xlu1 %v13407_v18  ;;  %v4001_v35 = vmul.f32 %v13394_v28, %v10850_v59  ;;  %v4002_v51 = vmul.f32 %v13395_v40, %v10850_v59  ;;  %v4003_v11 = vmul.f32 %v13396_v52, %v10850_v59  ;;  %v4184_v63 = vadd.f32 %v4164_v43, %v4108_v14 }
 0x34e   : > { %4985 = vperm.xlu1 %6015, %v10938_v5   ;;  %v4185_v17 = vadd.f32 %v4165_v57, %v4109_v54  ;;  %v4186_v24 = vadd.f32 %v4166_v56, %v4110_v58  ;;  %v4187_v20 = vadd.f32 %v4167_v41, %v4111_v29  ;;  %v4004_v48 = vmul.f32 %v13393_v34, %v10881_v61  ;;  %v13413_v57 = vld [vmem:[#allocation20_spill] sm:$0xff] }
 0x34f   : > { %v4005_v1 = vmul.f32 %v13394_v28, %v10881_v61  ;;  %v4006_v22 = vmul.f32 %v13395_v40, %v10881_v61  ;;  %v4007_v26 = vmul.f32 %v13396_v52, %v10881_v61  ;;  %v4076_v59 = vmul.f32 %v13398_v62, %v10918_v44 }
 0x350   : > { %v4077_v27 = vmul.f32 %v13399_v32, %v10918_v44  ;;  %v4078_v37 = vmul.f32 %v13400_v23, %v10918_v44  ;;  %v4079_v34 = vmul.f32 %v13401_v19, %v10918_v44  ;;  %v4080_v28 = vmul.f32 %v13398_v62, %v10945_v36 }
 0x351   : > { %v4081_v40 = vmul.f32 %v13399_v32, %v10945_v36  ;;  %v4082_v61 = vmul.f32 %v13400_v23, %v10945_v36  ;;  %v4083_v52 = vmul.f32 %v13401_v19, %v10945_v36  ;;  %v13408_v38 = vmov 7   ;;  %v4198_v23 = vpop.permute.xlu1 %4197 }
 0x352   : > { %6016 = vset.pattern.permute.xlu1 %v13408_v38  ;;  %v4020_v31 = vadd.f32 %v4000_v25, %v3944_v9  ;;  %v4021_v3 = vadd.f32 %v4001_v35, %v3945_v6  ;;  %v4022_v0 = vadd.f32 %v4002_v51, %v3946_v8  ;;  %v4023_v47 = vadd.f32 %v4003_v11, %v3947_v13 }
 0x353   : > { %5013 = vperm.xlu1 %6016, %v10938_v5   ;;  %v4024_v44 = vadd.f32 %v4004_v48, %v3948_v39  ;;  %v4025_v14 = vadd.f32 %v4005_v1, %v3949_v21  ;;  %v4026_v62 = vadd.f32 %v4006_v22, %v3950_v46  ;;  %v4027_v54 = vadd.f32 %v4007_v26, %v3951_v55  ;;  %v13410_v39 = vld [vmem:[#allocation45_spill] sm:$0xff]  ;;  %v13411_v55 = vld [vmem:[#allocation87_spill] sm:$0xff] }
 0x354   : > { %v4096_v58 = vadd.f32 %v4076_v59, %v4020_v31  ;;  %v4097_v32 = vadd.f32 %v4077_v27, %v4021_v3  ;;  %v4098_v16 = vadd.f32 %v4078_v37, %v4022_v0  ;;  %v4099_v50 = vadd.f32 %v4079_v34, %v4023_v47  ;;  %v13418_v31 = vld [vmem:[#allocation186_spill] sm:$0xff] }
 0x355   : > { %v4100_v7 = vadd.f32 %v4080_v28, %v4024_v44  ;;  %v4101_v2 = vadd.f32 %v4081_v40, %v4025_v14  ;;  %v4102_v36 = vadd.f32 %v4082_v61, %v4026_v62  ;;  %v4103_v19 = vadd.f32 %v4083_v52, %v4027_v54  ;;  %v13417_v52 = vld [vmem:[#allocation185_spill] sm:$0xff] }
 0x356   : > { %v4152_v10 = vmul.f32 %v13403_v49, %v10984_v33  ;;  %v4153_v15 = vmul.f32 %v13404_v42, %v10984_v33  ;;  %v4154_v30 = vmul.f32 %v13405_v12, %v10984_v33  ;;  %v4155_v46 = vmul.f32 %v13406_v60, %v10984_v33 }
 0x357   : > { %v13409_v29 = vmov 9   ;;  %v4156_v9 = vmul.f32 %v13403_v49, %v11009_v4  ;;  %v4157_v6 = vmul.f32 %v13404_v42, %v11009_v4  ;;  %v4158_v8 = vmul.f32 %v13405_v12, %v11009_v4  ;;  %v4206_v49 = vpop.permute.xlu1 %4205 }
 0x358   : > { %6018 = vset.pattern.permute.xlu1 %v13409_v29  ;;  %v4159_v13 = vmul.f32 %v13406_v60, %v11009_v4  ;;  %v4228_v21 = vmul.f32 %v13410_v39, %v4194_v53  ;;  %v4229_v33 = vmul.f32 %v13411_v55, %v4194_v53  ;;  %v4230_v43 = vmul.f32 %v13412_v45, %v4194_v53 }
 0x359   : > { %5057 = vperm.xlu1 %6018, %v10938_v5   ;;  %v4231_v56 = vmul.f32 %v13413_v57, %v4194_v53  ;;  %v4240_v41 = vmul.f32 %v13410_v39, %v4206_v49  ;;  %v4241_v42 = vmul.f32 %v13411_v55, %v4206_v49  ;;  %v4242_v12 = vmul.f32 %v13412_v45, %v4206_v49 }
 0x35a   : > { %v4243_v18 = vmul.f32 %v13413_v57, %v4206_v49  ;;  %v4172_v4 = vadd.f32 %v4152_v10, %v4096_v58  ;;  %v4173_v60 = vadd.f32 %v4153_v15, %v4097_v32  ;;  %v4174_v25 = vadd.f32 %v4154_v30, %v4098_v16 }
 0x35b   : > { %v4175_v35 = vadd.f32 %v4155_v46, %v4099_v50  ;;  %v4260_v51 = vadd.f32 %v4240_v41, %v4184_v63  ;;  %v4261_v11 = vadd.f32 %v4241_v42, %v4185_v17  ;;  %v4262_v48 = vadd.f32 %v4242_v12, %v4186_v24  ;;  %v4270_v63 = vpop.permute.xlu1 %4269  ;;  %v13415_v17 = vld [vmem:[#allocation23_spill] sm:$0xff]  ;;  %v13422_v42 = vld [vmem:[#allocation10_spill] sm:$0xff] }
 0x35c   : > { %v4263_v1 = vadd.f32 %v4243_v18, %v4187_v20  ;;  %v13414_v22 = vmov 10   ;;  %v4248_v26 = vadd.f32 %v4228_v21, %v4172_v4  ;;  %v4249_v59 = vadd.f32 %v4229_v33, %v4173_v60  ;;  %v13416_v20 = vld [vmem:[#allocation183_spill] sm:$0xff]  ;;  %v13423_v18 = vld [vmem:[#allocation26_spill] sm:$0xff]  ;;  %v13424_v60 = vld [vmem:[#allocation188_spill] sm:$0xff] }
 0x35d   : > { %6019 = vset.pattern.permute.xlu1 %v13414_v22  ;;  %v4250_v27 = vadd.f32 %v4230_v43, %v4174_v25  ;;  %v4251_v37 = vadd.f32 %v4231_v56, %v4175_v35  ;;  %v4232_v34 = vmul.f32 %v13410_v39, %v4198_v23  ;;  %v4233_v53 = vmul.f32 %v13411_v55, %v4198_v23  ;;  %v13425_v35 = vld [vmem:[#allocation189_spill] sm:$0xff] }
 0x35e   : > { %5085 = vperm.xlu1 %6019, %v10938_v5   ;;  %v4234_v28 = vmul.f32 %v13412_v45, %v4198_v23  ;;  %v4235_v40 = vmul.f32 %v13413_v57, %v4198_v23  ;;  %v4304_v24 = vmul.f32 %v13415_v17, %v4270_v63  ;;  %v4305_v61 = vmul.f32 %v13416_v20, %v4270_v63 }
 0x35f   : > { %v4306_v38 = vmul.f32 %v13417_v52, %v4270_v63  ;;  %v4307_v3 = vmul.f32 %v13418_v31, %v4270_v63  ;;  %v4176_v0 = vadd.f32 %v4156_v9, %v4100_v7  ;;  %v4177_v47 = vadd.f32 %v4157_v6, %v4101_v2  ;;  %v4274_v30 = vpop.permute.xlu1 %4273 }
 0x360   : > { %v4178_v44 = vadd.f32 %v4158_v8, %v4102_v36  ;;  %v4179_v14 = vadd.f32 %v4159_v13, %v4103_v19  ;;  %v4324_v62 = vadd.f32 %v4304_v24, %v4248_v26  ;;  %v4325_v54 = vadd.f32 %v4305_v61, %v4249_v59 }
 0x361   : > { %v4326_v58 = vadd.f32 %v4306_v38, %v4250_v27  ;;  %v4327_v32 = vadd.f32 %v4307_v3, %v4251_v37  ;;  %v13419_v16 = vmov 12   ;;  %v4252_v50 = vadd.f32 %v4232_v34, %v4176_v0 }
 0x362   : > { %6021 = vset.pattern.permute.xlu1 %v13419_v16  ;;  %v4253_v23 = vadd.f32 %v4233_v53, %v4177_v47  ;;  %v4254_v10 = vadd.f32 %v4234_v28, %v4178_v44  ;;  %v4255_v15 = vadd.f32 %v4235_v40, %v4179_v14  ;;  %v4308_v46 = vmul.f32 %v13415_v17, %v4274_v30  ;;  %v13430_v16 = vld [vmem:[#allocation194_spill] sm:$0xff] }
 0x363   : > { %5141 = vperm.xlu1 %6021, %v10938_v5   ;;  %v4309_v7 = vmul.f32 %v13416_v20, %v4274_v30  ;;  %v4310_v2 = vmul.f32 %v13417_v52, %v4274_v30  ;;  %v4311_v36 = vmul.f32 %v13418_v31, %v4274_v30  ;;  %v13420_v8 = vmov 13   ;;  %v4282_v13 = vpop.permute.xlu1 %4281 }
 0x364   : > { %v4328_v19 = vadd.f32 %v4308_v46, %v4252_v50  ;;  %v4316_v39 = vmul.f32 %v13415_v17, %v4282_v13  ;;  %v4317_v21 = vmul.f32 %v13416_v20, %v4282_v13  ;;  %v4318_v55 = vmul.f32 %v13417_v52, %v4282_v13 }
 0x365   : > { %v4329_v29 = vadd.f32 %v4309_v7, %v4253_v23  ;;  %v4330_v9 = vadd.f32 %v4310_v2, %v4254_v10  ;;  %v4331_v6 = vadd.f32 %v4311_v36, %v4255_v15  ;;  %v4319_v33 = vmul.f32 %v13418_v31, %v4282_v13  ;;  %v13431_v23 = vld [vmem:[#allocation195_spill] sm:$0xff] }
 0x366   : > { %v4336_v45 = vadd.f32 %v4316_v39, %v4260_v51  ;;  %v4337_v43 = vadd.f32 %v4317_v21, %v4261_v11  ;;  %v4338_v57 = vadd.f32 %v4318_v55, %v4262_v48  ;;  %v13421_v49 = vmov 15  }
 0x367   : > { %6022 = vset.pattern.permute.xlu1 %v13420_v8  ;;  %v4339_v56 = vadd.f32 %v4319_v33, %v4263_v1  ;;  %v4346_v41 = vpop.permute.xlu1 %4345  ;;  %v13426_v53 = vmov 16   ;;  %v13427_v31 = vmov 18   ;;  %v13432_v15 = vmov 19  }
 0x368   : > { %5169 = vperm.xlu1 %6022, %v10938_v5   ;;  %v4380_v12 = vmul.f32 %v13422_v42, %v4346_v41  ;;  %v4381_v4 = vmul.f32 %v13423_v18, %v4346_v41  ;;  %v4382_v25 = vmul.f32 %v13424_v60, %v4346_v41  ;;  %v4383_v22 = vmul.f32 %v13425_v35, %v4346_v41 }
 0x369   : > { %v13433_v55 = vmov 21  }
 0x36a   : > { %v4400_v26 = vadd.f32 %v4380_v12, %v4324_v62  ;;  %v4401_v59 = vadd.f32 %v4381_v4, %v4325_v54  ;;  %v4402_v27 = vadd.f32 %v4382_v25, %v4326_v58  ;;  %v4403_v51 = vadd.f32 %v4383_v22, %v4327_v32  ;;  %v13428_v62 = vld [vmem:[#allocation149_spill] sm:$0xff]  ;;  %v13429_v58 = vld [vmem:[#allocation59_spill] sm:$0xff] }
 0x36b   : > { %v4350_v11 = vpop.permute.xlu1 %4349 }
 0x36c   : > { %6024 = vset.pattern.permute.xlu1 %v13421_v49  ;;  %v4384_v48 = vmul.f32 %v13422_v42, %v4350_v11  ;;  %v4385_v1 = vmul.f32 %v13423_v18, %v4350_v11  ;;  %v4386_v37 = vmul.f32 %v13424_v60, %v4350_v11  ;;  %v4387_v34 = vmul.f32 %v13425_v35, %v4350_v11 }
 0x36d   : > { %5225 = vperm.xlu1 %6024, %v10938_v5  }
 0x36e   : > { %v4404_v28 = vadd.f32 %v4384_v48, %v4328_v19  ;;  %v4405_v40 = vadd.f32 %v4385_v1, %v4329_v29  ;;  %v4406_v63 = vadd.f32 %v4386_v37, %v4330_v9  ;;  %v4407_v17 = vadd.f32 %v4387_v34, %v4331_v6 }
 0x36f   : > { %v4358_v24 = vpop.permute.xlu1 %4357  ;;  %v13439_v34 = vmov 24  }
 0x370   : > { %v4392_v20 = vmul.f32 %v13422_v42, %v4358_v24  ;;  %v4393_v61 = vmul.f32 %v13423_v18, %v4358_v24  ;;  %v4394_v52 = vmul.f32 %v13424_v60, %v4358_v24  ;;  %v4395_v38 = vmul.f32 %v13425_v35, %v4358_v24  ;;  %v13435_v60 = vld [vmem:[#allocation152_spill] sm:$0xff] }
 0x371   : > { %6025 = vset.pattern.permute.xlu1 %v13426_v53  ;;  %v13434_v18 = vmov 22   ;;  %v13436_v35 = vld [vmem:[#allocation116_spill] sm:$0xff] }
 0x372   : > { %5253 = vperm.xlu1 %6025, %v10938_v5   ;;  %v4412_v3 = vadd.f32 %v4392_v20, %v4336_v45  ;;  %v4413_v0 = vadd.f32 %v4393_v61, %v4337_v43  ;;  %v4414_v47 = vadd.f32 %v4394_v52, %v4338_v57  ;;  %v4415_v44 = vadd.f32 %v4395_v38, %v4339_v56 }
 0x375   : > { %v4422_v14 = vpop.permute.xlu1 %4421 }
 0x376   : > { %6027 = vset.pattern.permute.xlu1 %v13427_v31  ;;  %v4456_v54 = vmul.f32 %v13428_v62, %v4422_v14  ;;  %v4457_v32 = vmul.f32 %v13429_v58, %v4422_v14  ;;  %v4458_v50 = vmul.f32 %v13430_v16, %v4422_v14  ;;  %v4459_v10 = vmul.f32 %v13431_v23, %v4422_v14 }
 0x377   : > { %5297 = vperm.xlu1 %6027, %v10938_v5  }
 0x378   : > { %v4476_v30 = vadd.f32 %v4456_v54, %v4400_v26  ;;  %v4477_v46 = vadd.f32 %v4457_v32, %v4401_v59  ;;  %v4478_v7 = vadd.f32 %v4458_v50, %v4402_v27  ;;  %v4479_v2 = vadd.f32 %v4459_v10, %v4403_v51  ;;  %v13437_v26 = vld [vmem:[#allocation117_spill] sm:$0xff]  ;;  %v13438_v27 = vld [vmem:[#allocation96_spill] sm:$0xff] }
 0x379   : > { %v4426_v36 = vpop.permute.xlu1 %4425 }
 0x37a   : > { %v4460_v19 = vmul.f32 %v13428_v62, %v4426_v36  ;;  %v4461_v29 = vmul.f32 %v13429_v58, %v4426_v36  ;;  %v4462_v9 = vmul.f32 %v13430_v16, %v4426_v36  ;;  %v4463_v6 = vmul.f32 %v13431_v23, %v4426_v36 }
 0x37b   : > { %6028 = vset.pattern.permute.xlu1 %v13432_v15  ;;  %v13443_v15 = vld [vmem:[#allocation205_spill] sm:$0xff] }
 0x37c   : > { %5325 = vperm.xlu1 %6028, %v10938_v5   ;;  %v4480_v8 = vadd.f32 %v4460_v19, %v4404_v28  ;;  %v4481_v13 = vadd.f32 %v4461_v29, %v4405_v40  ;;  %v4482_v39 = vadd.f32 %v4462_v9, %v4406_v63  ;;  %v4483_v21 = vadd.f32 %v4463_v6, %v4407_v17 }
 0x37d   : > { %v4434_v33 = vpop.permute.xlu1 %4433 }
 0x37e   : > { %v4468_v45 = vmul.f32 %v13428_v62, %v4434_v33  ;;  %v4469_v43 = vmul.f32 %v13429_v58, %v4434_v33  ;;  %v4470_v57 = vmul.f32 %v13430_v16, %v4434_v33  ;;  %v4471_v56 = vmul.f32 %v13431_v23, %v4434_v33  ;;  %v13441_v16 = vld [vmem:[#allocation22_spill] sm:$0xff] }
 0x37f   : > { %v13442_v23 = vld [vmem:[#allocation202_spill] sm:$0xff] }
 0x380   : > { %6030 = vset.pattern.permute.xlu1 %v13433_v55  ;;  %v4488_v49 = vadd.f32 %v4468_v45, %v4412_v3  ;;  %v4489_v41 = vadd.f32 %v4469_v43, %v4413_v0  ;;  %v4490_v42 = vadd.f32 %v4470_v57, %v4414_v47  ;;  %v4491_v12 = vadd.f32 %v4471_v56, %v4415_v44 }
 0x381   : > { %5381 = vperm.xlu1 %6030, %v10938_v5   ;;  %v13440_v44 = vmov 25   ;;  %v13446_v55 = vmov 28  }
 0x383   : > { %v4498_v4 = vpop.permute.xlu1 %4497 }
 0x384   : > { %v4532_v25 = vmul.f32 %v13435_v60, %v4498_v4  ;;  %v4533_v22 = vmul.f32 %v13436_v35, %v4498_v4  ;;  %v4534_v59 = vmul.f32 %v13437_v26, %v4498_v4  ;;  %v4535_v51 = vmul.f32 %v13438_v27, %v4498_v4 }
 0x385   : > { %6031 = vset.pattern.permute.xlu1 %v13434_v18 }
 0x386   : > { %5409 = vperm.xlu1 %6031, %v10938_v5   ;;  %v4552_v11 = vadd.f32 %v4532_v25, %v4476_v30  ;;  %v4553_v48 = vadd.f32 %v4533_v22, %v4477_v46  ;;  %v4554_v1 = vadd.f32 %v4534_v59, %v4478_v7  ;;  %v4555_v37 = vadd.f32 %v4535_v51, %v4479_v2  ;;  %v13444_v46 = vld [vmem:[#allocation206_spill] sm:$0xff] }
 0x387   : > { %v4502_v53 = vpop.permute.xlu1 %4501  ;;  %v13445_v2 = vmov 27  }
 0x388   : > { %v4536_v28 = vmul.f32 %v13435_v60, %v4502_v53  ;;  %v4537_v40 = vmul.f32 %v13436_v35, %v4502_v53  ;;  %v4538_v63 = vmul.f32 %v13437_v26, %v4502_v53  ;;  %v4539_v17 = vmul.f32 %v13438_v27, %v4502_v53 }
 0x38a   : > { %6033 = vset.pattern.permute.xlu1 %v13439_v34  ;;  %v4556_v24 = vadd.f32 %v4536_v28, %v4480_v8  ;;  %v4557_v20 = vadd.f32 %v4537_v40, %v4481_v13  ;;  %v4558_v61 = vadd.f32 %v4538_v63, %v4482_v39  ;;  %v4559_v52 = vadd.f32 %v4539_v17, %v4483_v21 }
 0x38b   : > { %5465 = vperm.xlu1 %6033, %v10938_v5   ;;  %v4510_v38 = vpop.permute.xlu1 %4509  ;;  %v13452_v63 = vmov 31  }
 0x38c   : > { %v4544_v31 = vmul.f32 %v13435_v60, %v4510_v38  ;;  %v4545_v3 = vmul.f32 %v13436_v35, %v4510_v38  ;;  %v4546_v0 = vmul.f32 %v13437_v26, %v4510_v38  ;;  %v4547_v47 = vmul.f32 %v13438_v27, %v4510_v38  ;;  %v13448_v26 = vld [vmem:[#allocation211_spill] sm:$0xff]  ;;  %v13449_v27 = vld [vmem:[#allocation212_spill] sm:$0xff] }
 0x38d   : > { %v13447_v35 = vmov 30  }
 0x38e   : > { %v4564_v14 = vadd.f32 %v4544_v31, %v4488_v49  ;;  %v4565_v62 = vadd.f32 %v4545_v3, %v4489_v41  ;;  %v4566_v54 = vadd.f32 %v4546_v0, %v4490_v42  ;;  %v4567_v58 = vadd.f32 %v4547_v47, %v4491_v12 }
 0x38f   : > { %6034 = vset.pattern.permute.xlu1 %v13440_v44  ;;  %v13453_v47 = vmov 33  }
 0x390   : > { %5481 = vperm.xlu1 %6034, %v10938_v5   ;;  %v4574_v32 = vpop.permute.xlu1 %4573 }
 0x391   : > { %v4608_v50 = vmul.f32 %v13441_v16, %v4574_v32  ;;  %v4609_v10 = vmul.f32 %v13442_v23, %v4574_v32  ;;  %v4610_v30 = vmul.f32 %v13443_v15, %v4574_v32  ;;  %v4611_v7 = vmul.f32 %v13444_v46, %v4574_v32 }
 0x393   : > { %v4628_v36 = vadd.f32 %v4608_v50, %v4552_v11  ;;  %v4629_v19 = vadd.f32 %v4609_v10, %v4553_v48  ;;  %v4630_v29 = vadd.f32 %v4610_v30, %v4554_v1  ;;  %v4631_v9 = vadd.f32 %v4611_v7, %v4555_v37  ;;  %v13450_v11 = vld [vmem:[#allocation213_spill] sm:$0xff]  ;;  %v13451_v1 = vld [vmem:[#allocation214_spill] sm:$0xff]  ;;  %v13455_v30 = vld [vmem:[#allocation51_spill] sm:$0xff] }
 0x394   : > { %6036 = vset.pattern.permute.xlu1 %v13445_v2  ;;  %v4578_v6 = vpop.permute.xlu1 %4577  ;;  %v13454_v10 = vmov 34   ;;  %v13456_v7 = vld [vmem:[#allocation221_spill] sm:$0xff] }
 0x395   : > { %5537 = vperm.xlu1 %6036, %v10938_v5   ;;  %v4612_v8 = vmul.f32 %v13441_v16, %v4578_v6  ;;  %v4613_v13 = vmul.f32 %v13442_v23, %v4578_v6  ;;  %v4614_v39 = vmul.f32 %v13443_v15, %v4578_v6  ;;  %v4615_v21 = vmul.f32 %v13444_v46, %v4578_v6 }
 0x397   : > { %v4632_v33 = vadd.f32 %v4612_v8, %v4556_v24  ;;  %v4633_v45 = vadd.f32 %v4613_v13, %v4557_v20  ;;  %v4634_v43 = vadd.f32 %v4614_v39, %v4558_v61  ;;  %v4635_v57 = vadd.f32 %v4615_v21, %v4559_v52 }
 0x398   : > { %v4586_v56 = vpop.permute.xlu1 %4585 }
 0x399   : > { %6037 = vset.pattern.permute.xlu1 %v13446_v55  ;;  %v4620_v49 = vmul.f32 %v13441_v16, %v4586_v56  ;;  %v4621_v41 = vmul.f32 %v13442_v23, %v4586_v56  ;;  %v4622_v42 = vmul.f32 %v13443_v15, %v4586_v56  ;;  %v4623_v12 = vmul.f32 %v13444_v46, %v4586_v56 }
 0x39a   : > { %5565 = vperm.xlu1 %6037, %v10938_v5  }
 0x39b   : > { %v4640_v18 = vadd.f32 %v4620_v49, %v4564_v14  ;;  %v4641_v4 = vadd.f32 %v4621_v41, %v4565_v62  ;;  %v4642_v60 = vadd.f32 %v4622_v42, %v4566_v54  ;;  %v4643_v25 = vadd.f32 %v4623_v12, %v4567_v58 }
 0x39d   : > { %v4650_v22 = vpop.permute.xlu1 %4649 }
 0x39e   : > { %6039 = vset.pattern.permute.xlu1 %v13447_v35  ;;  %v4684_v59 = vmul.f32 %v13448_v26, %v4650_v22  ;;  %v4685_v51 = vmul.f32 %v13449_v27, %v4650_v22  ;;  %v4686_v48 = vmul.f32 %v13450_v11, %v4650_v22  ;;  %v4687_v37 = vmul.f32 %v13451_v1, %v4650_v22 }
 0x39f   : > { %5621 = vperm.xlu1 %6039, %v10938_v5  }
 0x3a0   : > { %v4704_v34 = vadd.f32 %v4684_v59, %v4628_v36  ;;  %v4705_v53 = vadd.f32 %v4685_v51, %v4629_v19  ;;  %v4706_v28 = vadd.f32 %v4686_v48, %v4630_v29  ;;  %v4707_v40 = vadd.f32 %v4687_v37, %v4631_v9  ;;  %v13457_v36 = vld [vmem:[#allocation142_spill] sm:$0xff]  ;;  %v13460_v59 = vld [vmem:[#allocation39_spill] sm:$0xff] }
 0x3a1   : > { %v4654_v17 = vpop.permute.xlu1 %4653  ;;  %v13458_v29 = vld [vmem:[#allocation222_spill] sm:$0xff] }
 0x3a2   : > { %v4688_v24 = vmul.f32 %v13448_v26, %v4654_v17  ;;  %v4689_v20 = vmul.f32 %v13449_v27, %v4654_v17  ;;  %v4690_v61 = vmul.f32 %v13450_v11, %v4654_v17  ;;  %v4691_v52 = vmul.f32 %v13451_v1, %v4654_v17 }
 0x3a3   : > { %6040 = vset.pattern.permute.xlu1 %v13452_v63  ;;  %v13464_v63 = vld [vmem:[#allocation226_spill] sm:$0xff] }
 0x3a4   : > { %5649 = vperm.xlu1 %6040, %v10938_v5   ;;  %v4708_v38 = vadd.f32 %v4688_v24, %v4632_v33  ;;  %v4709_v31 = vadd.f32 %v4689_v20, %v4633_v45  ;;  %v4710_v3 = vadd.f32 %v4690_v61, %v4634_v43  ;;  %v4711_v0 = vadd.f32 %v4691_v52, %v4635_v57  ;;  %v13465_v24 = vld [vmem:[#allocation227_spill] sm:$0xff] }
 0x3a5   : > { %v4662_v44 = vpop.permute.xlu1 %4661  ;;  %v11236_v17 = vmax.f32 %v13464_v63, 0.0  ;;  %v11239_v20 = vmax.f32 %v13465_v24, 0.0 }
 0x3a6   : > { %v4696_v14 = vmul.f32 %v13448_v26, %v4662_v44  ;;  %v4697_v62 = vmul.f32 %v13449_v27, %v4662_v44  ;;  %v4698_v54 = vmul.f32 %v13450_v11, %v4662_v44  ;;  %v4699_v58 = vmul.f32 %v13451_v1, %v4662_v44  ;;  %v13459_v26 = vld [vmem:[#allocation19_spill] sm:$0xff]  ;;  %v13461_v11 = vld [vmem:[#allocation232_spill] sm:$0xff] }
 0x3a7   : > { %v4879_v27 = vrot.slane %v13460_v59, %v13459_v26  ;;  %v4826_v48 = vrot.slane %v13461_v11, %v13459_v26  ;;  %v13462_v1 = vld [vmem:[#allocation223_spill] sm:$0xff] }
 0x3a8   : > { %6042 = vset.pattern.permute.xlu1 %v13453_v47  ;;  %v4716_v32 = vadd.f32 %v4696_v14, %v4640_v18  ;;  %v4717_v16 = vadd.f32 %v4697_v62, %v4641_v4  ;;  %v4718_v50 = vadd.f32 %v4698_v54, %v4642_v60  ;;  %v4719_v23 = vadd.f32 %v4699_v58, %v4643_v25 }
 0x3a9   : > { %5693 = vperm.xlu1 %6042, %v10938_v5   ;;  %v11229_v37 = vmax.f32 %v13462_v1, 0.0 }
 0x3ab   : > { %v4726_v15 = vpop.permute.xlu1 %4725  ;;  %v4880_v61 = vmul.f32 %v4879_v27, %v11229_v37  ;;  %v4827_v52 = vmul.f32 %v4826_v48, %v11229_v37 }
 0x3ac   : > { %v4760_v46 = vmul.f32 %v13455_v30, %v4726_v15  ;;  %v4761_v2 = vmul.f32 %v13456_v7, %v4726_v15  ;;  %v4762_v19 = vmul.f32 %v13457_v36, %v4726_v15  ;;  %v4763_v9 = vmul.f32 %v13458_v29, %v4726_v15 }
 0x3ad   : > { %6043 = vset.pattern.permute.xlu1 %v13454_v10 }
 0x3ae   : > { %5721 = vperm.xlu1 %6043, %v10938_v5   ;;  %v11192_v6 = vadd.f32 %v4760_v46, %v4704_v34  ;;  %v11194_v8 = vadd.f32 %v4761_v2, %v4705_v53  ;;  %v11196_v13 = vadd.f32 %v4762_v19, %v4706_v28  ;;  %v11198_v39 = vadd.f32 %v4763_v9, %v4707_v40  ;;  %v13463_v53 = vld [vmem:[#allocation224_spill] sm:$0xff]  ;;  %v4958_v40 = vpop.permute.xlu0 %4957 }
 0x3af   : > { %v4730_v21 = vpop.permute.xlu1 %4729  ;;  %v11233_v28 = vmax.f32 %v13463_v53, 0.0  ;;  %v4963_v47 = vrot.slane %v4958_v40, %v13459_v26 }
 0x3b0   : > { %v4764_v55 = vmul.f32 %v13455_v30, %v4730_v21  ;;  %v4765_v33 = vmul.f32 %v13456_v7, %v4730_v21  ;;  %v4766_v45 = vmul.f32 %v13457_v36, %v4730_v21  ;;  %v4767_v43 = vmul.f32 %v13458_v29, %v4730_v21 }
 0x3b1   : > { %v11256_v2 = vmul.f32 %v4963_v47, %v11229_v37  ;;  %v11262_v19 = vmul.f32 %v4963_v47, %v11236_v17 }
 0x3b2   : > { %v11204_v57 = vadd.f32 %v4764_v55, %v4708_v38  ;;  %v11206_v5 = vadd.f32 %v4765_v33, %v4709_v31  ;;  %v11208_v56 = vadd.f32 %v4766_v45, %v4710_v3  ;;  %v11210_v49 = vadd.f32 %v4767_v43, %v4711_v0  ;;  %v5042_v10 = vpop.permute.xlu0 %5041 }
 0x3b3   : > { %v4738_v41 = vpop.permute.xlu1 %4737  ;;  %v4828_v38 = vmul.f32 %v4826_v48, %v11233_v28  ;;  %v4829_v3 = vmul.f32 %v4826_v48, %v11236_v17  ;;  %v4830_v0 = vmul.f32 %v4826_v48, %v11239_v20  ;;  %v4972_v53 = vrot.slane %v11256_v2, 5 }
 0x3b4   : > { %v4772_v42 = vmul.f32 %v13455_v30, %v4738_v41  ;;  %v4773_v12 = vmul.f32 %v13456_v7, %v4738_v41  ;;  %v4774_v18 = vmul.f32 %v13457_v36, %v4738_v41  ;;  %v4775_v4 = vmul.f32 %v13458_v29, %v4738_v41 }
 0x3b5   : > { %v11259_v36 = vmul.f32 %v4963_v47, %v11233_v28  ;;  %v11265_v29 = vmul.f32 %v4963_v47, %v11239_v20  ;;  %v4974_v63 = vrot.slane %v11262_v19, 5 }
 0x3b6   : > { %v11216_v60 = vadd.f32 %v4772_v42, %v4716_v32  ;;  %v11218_v25 = vadd.f32 %v4773_v12, %v4717_v16  ;;  %v11220_v35 = vadd.f32 %v4774_v18, %v4718_v50  ;;  %v11222_v22 = vadd.f32 %v4775_v4, %v4719_v23 }
 0x3b7   : > { %v4881_v32 = vmul.f32 %v4879_v27, %v11233_v28  ;;  %v4882_v16 = vmul.f32 %v4879_v27, %v11236_v17  ;;  %v4883_v50 = vmul.f32 %v4879_v27, %v11239_v20  ;;  %v4888_v23 = vrot.slane %v4880_v61, 2 }
 0x3b8   : > { %v4846_v51 = vpop.permute.xlu1 %4845  ;;  %v4973_v40 = vrot.slane %v11259_v36, 5  ;;  %v4975_v24 = vrot.slane %v11265_v29, 5 }
 0x3b9   : > { %v4851_v34 = vrot.slane %v4846_v51, %v13459_v26  ;;  %v4889_v43 = vrot.slane %v4881_v32, 2  ;;  %v4890_v41 = vrot.slane %v4882_v16, 2  ;;  %v4891_v42 = vrot.slane %v4883_v50, 2  ;;  %v5114_v51 = vpop.permute.xlu0 %5113 }
 0x3ba   : > { %v11278_v47 = vrot.slane %v5114_v51, %v13459_v26 }
 0x3bb   : > { %v4852_v44 = vmul.f32 %v4851_v34, %v11229_v37  ;;  %v4853_v14 = vmul.f32 %v4851_v34, %v11233_v28  ;;  %v4854_v62 = vmul.f32 %v4851_v34, %v11236_v17  ;;  %v4855_v54 = vmul.f32 %v4851_v34, %v11239_v20 }
 0x3bd   : > { %v4834_v31 = vpop.permute.xlu1 %4833  ;;  %v4860_v21 = vrot.slane %v4852_v44, 1  ;;  %v4861_v55 = vrot.slane %v4853_v14, 1  ;;  %v4862_v33 = vrot.slane %v4854_v62, 1  ;;  %v4863_v45 = vrot.slane %v4855_v54, 1 }
 0x3be   : > { %v4839_v58 = vrot.slane %v4834_v31, %v13459_v26  ;;  %v11281_v44 = vmax.f32 %v11192_v6, 0.0 }
 0x3c0   : > { %v4840_v15 = vadd.f32 %v4839_v58, %v4827_v52  ;;  %v4841_v30 = vadd.f32 %v4839_v58, %v4828_v38  ;;  %v4842_v46 = vadd.f32 %v4839_v58, %v4829_v3  ;;  %v4843_v7 = vadd.f32 %v4839_v58, %v4830_v0 }
 0x3c1   : > { %v5047_v0 = vrot.slane %v5042_v10, %v13459_v26 }
 0x3c2   : > { %v4868_v18 = vadd.f32 %v4860_v21, %v4840_v15  ;;  %v4869_v4 = vadd.f32 %v4861_v55, %v4841_v30  ;;  %v4870_v59 = vadd.f32 %v4862_v33, %v4842_v46  ;;  %v4871_v27 = vadd.f32 %v4863_v45, %v4843_v7  ;;  %v5198_v30 = vpop.permute.xlu0 %5197 }
 0x3c3   : > { %v4902_v9 = vpop.permute.xlu1 %4901  ;;  %v11289_v21 = vmax.f32 %v11194_v8, 0.0  ;;  %v11292_v55 = vmax.f32 %v11196_v13, 0.0  ;;  %v11295_v33 = vmax.f32 %v11198_v39, 0.0 }
 0x3c4   : > { %v4907_v12 = vrot.slane %v4902_v9, %v13459_v26  ;;  %v4896_v62 = vadd.f32 %v4888_v23, %v4868_v18  ;;  %v4897_v54 = vadd.f32 %v4889_v43, %v4869_v4  ;;  %v4898_v58 = vadd.f32 %v4890_v41, %v4870_v59 }
 0x3c5   : > { %v4899_v32 = vadd.f32 %v4891_v42, %v4871_v27 }
 0x3c6   : > { %v4908_v11 = vmul.f32 %v4907_v12, %v11229_v37  ;;  %v4909_v48 = vmul.f32 %v4907_v12, %v11233_v28  ;;  %v4910_v1 = vmul.f32 %v4907_v12, %v11236_v17  ;;  %v4911_v34 = vmul.f32 %v4907_v12, %v11239_v20 }
 0x3c8   : > { %v4930_v61 = vpop.permute.xlu1 %4929  ;;  %v4916_v52 = vrot.slane %v4908_v11, 3  ;;  %v4917_v38 = vrot.slane %v4909_v48, 3  ;;  %v4918_v31 = vrot.slane %v4910_v1, 3  ;;  %v4919_v3 = vrot.slane %v4911_v34, 3  ;;  %v5270_v48 = vpop.permute.xlu0 %5269 }
 0x3c9   : > { %v4935_v14 = vrot.slane %v4930_v61, %v13459_v26 }
 0x3ca   : > { %v4924_v46 = vadd.f32 %v4916_v52, %v4896_v62  ;;  %v4925_v7 = vadd.f32 %v4917_v38, %v4897_v54  ;;  %v4926_v2 = vadd.f32 %v4918_v31, %v4898_v58  ;;  %v4927_v6 = vadd.f32 %v4919_v3, %v4899_v32 }
 0x3cb   : > { %v4936_v16 = vmul.f32 %v4935_v14, %v11229_v37  ;;  %v4937_v50 = vmul.f32 %v4935_v14, %v11233_v28  ;;  %v4938_v15 = vmul.f32 %v4935_v14, %v11236_v17  ;;  %v4939_v10 = vmul.f32 %v4935_v14, %v11239_v20 }
 0x3cc   : > { %v11303_v38 = vrot.slane %v5198_v30, %v13459_v26  ;;  %v11306_v31 = vrot.slane %v5270_v48, %v13459_v26  ;;  %v5048_v14 = vmul.f32 %v5047_v0, %v11281_v44 }
 0x3cd   : > { %v4986_v36 = vpop.permute.xlu1 %4985  ;;  %v4944_v19 = vrot.slane %v4936_v16, 4  ;;  %v4945_v29 = vrot.slane %v4937_v50, 4  ;;  %v4946_v23 = vrot.slane %v4938_v15, 4  ;;  %v4947_v9 = vrot.slane %v4939_v10, 4 }
 0x3ce   : > { %v4991_v45 = vrot.slane %v4986_v36, %v13459_v26 }
 0x3cf   : > { %v4952_v43 = vadd.f32 %v4944_v19, %v4924_v46  ;;  %v4953_v41 = vadd.f32 %v4945_v29, %v4925_v7  ;;  %v4954_v42 = vadd.f32 %v4946_v23, %v4926_v2  ;;  %v4955_v12 = vadd.f32 %v4947_v9, %v4927_v6 }
 0x3d0   : > { %v4992_v18 = vmul.f32 %v4991_v45, %v11229_v37  ;;  %v4993_v4 = vmul.f32 %v4991_v45, %v11233_v28  ;;  %v4994_v59 = vmul.f32 %v4991_v45, %v11236_v17  ;;  %v4995_v8 = vmul.f32 %v4991_v45, %v11239_v20 }
 0x3d1   : > { %v4980_v27 = vadd.f32 %v4972_v53, %v4952_v43  ;;  %v4981_v13 = vadd.f32 %v4973_v40, %v4953_v41  ;;  %v4982_v51 = vadd.f32 %v4974_v63, %v4954_v42  ;;  %v4983_v11 = vadd.f32 %v4975_v24, %v4955_v12 }
 0x3d2   : > { %v5014_v39 = vpop.permute.xlu1 %5013  ;;  %v5000_v1 = vrot.slane %v4992_v18, 6  ;;  %v5001_v34 = vrot.slane %v4993_v4, 6  ;;  %v5002_v61 = vrot.slane %v4994_v59, 6  ;;  %v5003_v52 = vrot.slane %v4995_v8, 6 }
 0x3d3   : > { %v5019_v3 = vrot.slane %v5014_v39, %v13459_v26  ;;  %v5049_v53 = vmul.f32 %v5047_v0, %v11289_v21  ;;  %v5050_v40 = vmul.f32 %v5047_v0, %v11292_v55  ;;  %v5051_v63 = vmul.f32 %v5047_v0, %v11295_v33 }
 0x3d4   : > { %v11315_v24 = vmul.f32 %v11278_v47, %v11281_v44  ;;  %v5008_v16 = vadd.f32 %v5000_v1, %v4980_v27  ;;  %v5009_v50 = vadd.f32 %v5001_v34, %v4981_v13  ;;  %v5010_v15 = vadd.f32 %v5002_v61, %v4982_v51 }
 0x3d5   : > { %v5020_v62 = vmul.f32 %v5019_v3, %v11229_v37  ;;  %v5021_v54 = vmul.f32 %v5019_v3, %v11233_v28  ;;  %v5022_v58 = vmul.f32 %v5019_v3, %v11236_v17  ;;  %v5023_v32 = vmul.f32 %v5019_v3, %v11239_v20 }
 0x3d6   : > { %v5011_v10 = vadd.f32 %v5003_v52, %v4983_v11  ;;  %v5121_v37 = vmul.f32 %v11278_v47, %v11289_v21  ;;  %v5122_v28 = vmul.f32 %v11278_v47, %v11292_v55  ;;  %v5123_v17 = vmul.f32 %v11278_v47, %v11295_v33 }
 0x3d7   : > { %v5028_v46 = vrot.slane %v5020_v62, 7  ;;  %v5029_v7 = vrot.slane %v5021_v54, 7  ;;  %v5030_v0 = vrot.slane %v5022_v58, 7  ;;  %v5031_v2 = vrot.slane %v5023_v32, 7 }
 0x3d8   : > { %v5058_v30 = vpop.permute.xlu1 %5057  ;;  %v11333_v13 = vmax.f32 %v11204_v57, 0.0  ;;  %v11336_v51 = vmax.f32 %v11206_v5, 0.0  ;;  %v11339_v11 = vmax.f32 %v11208_v56, 0.0  ;;  %v5128_v5 = vrot.slane %v11315_v24, 3 }
 0x3d9   : > { %v5063_v6 = vrot.slane %v5058_v30, %v13459_v26  ;;  %v5036_v20 = vadd.f32 %v5028_v46, %v5008_v16  ;;  %v5037_v36 = vadd.f32 %v5029_v7, %v5009_v50  ;;  %v5038_v19 = vadd.f32 %v5030_v0, %v5010_v15  ;;  %v5354_v0 = vpop.permute.xlu0 %5353 }
 0x3da   : > { %v5039_v29 = vadd.f32 %v5031_v2, %v5011_v10  ;;  %v5130_v56 = vrot.slane %v5122_v28, 3  ;;  %v5204_v50 = vmul.f32 %v11303_v38, %v11281_v44  ;;  %v5205_v15 = vmul.f32 %v11303_v38, %v11289_v21 }
 0x3db   : > { %v5064_v23 = vmul.f32 %v5063_v6, %v11281_v44  ;;  %v5065_v9 = vmul.f32 %v5063_v6, %v11289_v21  ;;  %v5066_v45 = vmul.f32 %v5063_v6, %v11292_v55  ;;  %v5067_v43 = vmul.f32 %v5063_v6, %v11295_v33 }
 0x3dc   : > { %v5052_v41 = vadd.f32 %v5048_v14, %v5036_v20  ;;  %v5053_v42 = vadd.f32 %v5049_v53, %v5037_v36  ;;  %v5054_v12 = vadd.f32 %v5050_v40, %v5038_v19  ;;  %v5055_v18 = vadd.f32 %v5051_v63, %v5039_v29 }
 0x3dd   : > { %v5086_v4 = vpop.permute.xlu1 %5085  ;;  %v5072_v59 = vrot.slane %v5064_v23, 1  ;;  %v5073_v8 = vrot.slane %v5065_v9, 1  ;;  %v5074_v47 = vrot.slane %v5066_v45, 1  ;;  %v5075_v27 = vrot.slane %v5067_v43, 1 }
 0x3de   : > { %v5091_v39 = vrot.slane %v5086_v4, %v13459_v26  ;;  %v5129_v40 = vrot.slane %v5121_v37, 3  ;;  %v5131_v63 = vrot.slane %v5123_v17, 3  ;;  %v5206_v10 = vmul.f32 %v11303_v38, %v11292_v55 }
 0x3df   : > { %v5080_v48 = vadd.f32 %v5072_v59, %v5052_v41  ;;  %v5081_v1 = vadd.f32 %v5073_v8, %v5053_v42  ;;  %v5082_v34 = vadd.f32 %v5074_v47, %v5054_v12  ;;  %v5083_v61 = vadd.f32 %v5075_v27, %v5055_v18 }
 0x3e0   : > { %v5092_v52 = vmul.f32 %v5091_v39, %v11281_v44  ;;  %v5093_v3 = vmul.f32 %v5091_v39, %v11289_v21  ;;  %v5094_v14 = vmul.f32 %v5091_v39, %v11292_v55  ;;  %v5095_v57 = vmul.f32 %v5091_v39, %v11295_v33 }
 0x3e1   : > { %v11359_v41 = vmax.f32 %v11210_v49, 0.0  ;;  %v5207_v12 = vmul.f32 %v11303_v38, %v11295_v33  ;;  %v11366_v18 = vmul.f32 %v11306_v31, %v11333_v13  ;;  %v5213_v38 = vrot.slane %v5205_v15, 6 }
 0x3e2   : > { %v5142_v53 = vpop.permute.xlu1 %5141  ;;  %v5100_v62 = vrot.slane %v5092_v52, 2  ;;  %v5101_v54 = vrot.slane %v5093_v3, 2  ;;  %v5102_v58 = vrot.slane %v5094_v14, 2  ;;  %v5103_v32 = vrot.slane %v5095_v57, 2 }
 0x3e3   : > { %v5147_v16 = vrot.slane %v5142_v53, %v13459_v26  ;;  %v5214_v52 = vrot.slane %v5206_v10, 6  ;;  %v5277_v3 = vmul.f32 %v11306_v31, %v11336_v51 }
 0x3e4   : > { %v5108_v30 = vadd.f32 %v5100_v62, %v5080_v48  ;;  %v5109_v24 = vadd.f32 %v5101_v54, %v5081_v1  ;;  %v5110_v46 = vadd.f32 %v5102_v58, %v5082_v34  ;;  %v5111_v7 = vadd.f32 %v5103_v32, %v5083_v61  ;;  %v5438_v1 = vpop.permute.xlu0 %5437 }
 0x3e5   : > { %v5148_v2 = vmul.f32 %v5147_v16, %v11281_v44  ;;  %v5149_v6 = vmul.f32 %v5147_v16, %v11289_v21  ;;  %v5150_v37 = vmul.f32 %v5147_v16, %v11292_v55  ;;  %v5151_v28 = vmul.f32 %v5147_v16, %v11295_v33 }
 0x3e6   : > { %v5136_v17 = vadd.f32 %v5128_v5, %v5108_v30  ;;  %v5137_v20 = vadd.f32 %v5129_v40, %v5109_v24  ;;  %v5138_v36 = vadd.f32 %v5130_v56, %v5110_v46  ;;  %v5139_v19 = vadd.f32 %v5131_v63, %v5111_v7 }
 0x3e7   : > { %v5170_v29 = vpop.permute.xlu1 %5169  ;;  %v5156_v23 = vrot.slane %v5148_v2, 4  ;;  %v5157_v9 = vrot.slane %v5149_v6, 4  ;;  %v5158_v45 = vrot.slane %v5150_v37, 4  ;;  %v5159_v43 = vrot.slane %v5151_v28, 4 }
 0x3e8   : > { %v5175_v42 = vrot.slane %v5170_v29, %v13459_v26  ;;  %v5212_v61 = vrot.slane %v5204_v50, 6  ;;  %v5215_v40 = vrot.slane %v5207_v12, 6  ;;  %v5278_v63 = vmul.f32 %v11306_v31, %v11339_v11  ;;  %v5510_v37 = vpop.permute.xlu0 %5509 }
 0x3e9   : > { %v5164_v4 = vadd.f32 %v5156_v23, %v5136_v17  ;;  %v5165_v59 = vadd.f32 %v5157_v9, %v5137_v20  ;;  %v5166_v8 = vadd.f32 %v5158_v45, %v5138_v36  ;;  %v5167_v47 = vadd.f32 %v5159_v43, %v5139_v19 }
 0x3ea   : > { %v5176_v27 = vmul.f32 %v5175_v42, %v11281_v44  ;;  %v5177_v39 = vmul.f32 %v5175_v42, %v11289_v21  ;;  %v5178_v49 = vmul.f32 %v5175_v42, %v11292_v55  ;;  %v5179_v48 = vmul.f32 %v5175_v42, %v11295_v33 }
 0x3eb   : > { %v5279_v62 = vmul.f32 %v11306_v31, %v11359_v41  ;;  %v5359_v36 = vrot.slane %v5354_v0, %v13459_v26  ;;  %v5284_v43 = vrot.slane %v11366_v18, 1  ;;  %v5285_v42 = vrot.slane %v5277_v3, 1 }
 0x3ec   : > { %v5226_v34 = vpop.permute.xlu1 %5225  ;;  %v5184_v14 = vrot.slane %v5176_v27, 5  ;;  %v5185_v57 = vrot.slane %v5177_v39, 5  ;;  %v5186_v53 = vrot.slane %v5178_v49, 5  ;;  %v5187_v5 = vrot.slane %v5179_v48, 5  ;;  %v5594_v49 = vpop.permute.xlu0 %5593 }
 0x3ed   : > { %v5231_v56 = vrot.slane %v5226_v34, %v13459_v26  ;;  %v5286_v12 = vrot.slane %v5278_v63, 1  ;;  %v11391_v39 = vrot.slane %v5438_v1, %v13459_v26  ;;  %v11402_v1 = vrot.slane %v5594_v49, %v13459_v26 }
 0x3ee   : > { %v5192_v54 = vadd.f32 %v5184_v14, %v5164_v4  ;;  %v5193_v58 = vadd.f32 %v5185_v57, %v5165_v59  ;;  %v5194_v32 = vadd.f32 %v5186_v53, %v5166_v8  ;;  %v5195_v16 = vadd.f32 %v5187_v5, %v5167_v47 }
 0x3ef   : > { %v5232_v50 = vmul.f32 %v5231_v56, %v11281_v44  ;;  %v5233_v15 = vmul.f32 %v5231_v56, %v11289_v21  ;;  %v5234_v10 = vmul.f32 %v5231_v56, %v11292_v55  ;;  %v5235_v30 = vmul.f32 %v5231_v56, %v11295_v33 }
 0x3f0   : > { %v5220_v24 = vadd.f32 %v5212_v61, %v5192_v54  ;;  %v5221_v46 = vadd.f32 %v5213_v38, %v5193_v58  ;;  %v5222_v7 = vadd.f32 %v5214_v52, %v5194_v32  ;;  %v5223_v2 = vadd.f32 %v5215_v40, %v5195_v16  ;;  %v13466_v32 = vld [vmem:[#allocation13_spill] sm:$0xff] }
 0x3f1   : > { %v5254_v6 = vpop.permute.xlu1 %5253  ;;  %v5240_v28 = vrot.slane %v5232_v50, 7  ;;  %v5241_v31 = vrot.slane %v5233_v15, 7  ;;  %v5242_v17 = vrot.slane %v5234_v10, 7  ;;  %v5243_v20 = vrot.slane %v5235_v30, 7 }
 0x3f2   : > { %v5259_v44 = vrot.slane %v5254_v6, %v13459_v26  ;;  %v5287_v4 = vrot.slane %v5279_v62, 1  ;;  %v11399_v53 = vrot.slane %v5510_v37, %v13459_v26  ;;  %v5360_v40 = vmul.f32 %v5359_v36, %v11333_v13 }
 0x3f3   : > { %v5248_v19 = vadd.f32 %v5240_v28, %v5220_v24  ;;  %v5249_v21 = vadd.f32 %v5241_v31, %v5221_v46  ;;  %v5250_v29 = vadd.f32 %v5242_v17, %v5222_v7  ;;  %v5251_v55 = vadd.f32 %v5243_v20, %v5223_v2  ;;  %v13467_v31 = vld [vmem:[#allocation107_spill] sm:$0xff]  ;;  %v13468_v20 = vld [vmem:[#allocation108_spill] sm:$0xff] }
 0x3f4   : > { %v5260_v33 = vmul.f32 %v5259_v44, %v11333_v13  ;;  %v5261_v23 = vmul.f32 %v5259_v44, %v11336_v51  ;;  %v5262_v9 = vmul.f32 %v5259_v44, %v11339_v11  ;;  %v5263_v45 = vmul.f32 %v5259_v44, %v11359_v41 }
 0x3f5   : > { %v5361_v56 = vmul.f32 %v5359_v36, %v11336_v51  ;;  %v11407_v16 = vmax.f32 %v13466_v32, 0.0  ;;  %v5362_v15 = vmul.f32 %v5359_v36, %v11339_v11  ;;  %v5363_v10 = vmul.f32 %v5359_v36, %v11359_v41 }
 0x3f6   : > { %v5298_v0 = vpop.permute.xlu1 %5297  ;;  %v5264_v59 = vadd.f32 %v5260_v33, %v5248_v19  ;;  %v5265_v8 = vadd.f32 %v5261_v23, %v5249_v21  ;;  %v5266_v47 = vadd.f32 %v5262_v9, %v5250_v29  ;;  %v5267_v27 = vadd.f32 %v5263_v45, %v5251_v55 }
 0x3f7   : > { %v5303_v48 = vrot.slane %v5298_v0, %v13459_v26  ;;  %v11417_v17 = vmax.f32 %v13467_v31, 0.0  ;;  %v11420_v44 = vmax.f32 %v13468_v20, 0.0  ;;  %v5368_v36 = vrot.slane %v5360_v40, 4 }
 0x3f8   : > { %v5292_v34 = vadd.f32 %v5284_v43, %v5264_v59  ;;  %v5293_v61 = vadd.f32 %v5285_v42, %v5265_v8  ;;  %v5294_v38 = vadd.f32 %v5286_v12, %v5266_v47  ;;  %v5295_v52 = vadd.f32 %v5287_v4, %v5267_v27 }
 0x3f9   : > { %v5304_v18 = vmul.f32 %v5303_v48, %v11333_v13  ;;  %v5305_v3 = vmul.f32 %v5303_v48, %v11336_v51  ;;  %v5306_v14 = vmul.f32 %v5303_v48, %v11339_v11  ;;  %v5307_v57 = vmul.f32 %v5303_v48, %v11359_v41 }
 0x3fa   : > { %v5369_v21 = vrot.slane %v5361_v56, 4  ;;  %v5370_v9 = vrot.slane %v5362_v15, 4  ;;  %v5371_v45 = vrot.slane %v5363_v10, 4  ;;  %v5444_v42 = vmul.f32 %v11391_v39, %v11333_v13 }
 0x3fb   : > { %v5326_v5 = vpop.permute.xlu1 %5325  ;;  %v5312_v63 = vrot.slane %v5304_v18, 2  ;;  %v5313_v62 = vrot.slane %v5305_v3, 2  ;;  %v5314_v54 = vrot.slane %v5306_v14, 2  ;;  %v5315_v58 = vrot.slane %v5307_v57, 2 }
 0x3fc   : > { %v5331_v50 = vrot.slane %v5326_v5, %v13459_v26  ;;  %v5445_v40 = vmul.f32 %v11391_v39, %v11336_v51  ;;  %v5446_v56 = vmul.f32 %v11391_v39, %v11339_v11 }
 0x3fd   : > { %v5320_v30 = vadd.f32 %v5312_v63, %v5292_v34  ;;  %v5321_v24 = vadd.f32 %v5313_v62, %v5293_v61  ;;  %v5322_v46 = vadd.f32 %v5314_v54, %v5294_v38  ;;  %v5323_v7 = vadd.f32 %v5315_v58, %v5295_v52 }
 0x3fe   : > { %v5332_v2 = vmul.f32 %v5331_v50, %v11333_v13  ;;  %v5333_v6 = vmul.f32 %v5331_v50, %v11336_v51  ;;  %v5334_v37 = vmul.f32 %v5331_v50, %v11339_v11  ;;  %v5335_v28 = vmul.f32 %v5331_v50, %v11359_v41 }
 0x3ff   : > { %v5447_v63 = vmul.f32 %v11391_v39, %v11359_v41  ;;  %v11447_v39 = vmul.f32 %v11402_v1, %v11407_v16  ;;  %v5453_v31 = vrot.slane %v5445_v40, 7 }
 0x400   : > { %v5382_v19 = vpop.permute.xlu1 %5381  ;;  %v5340_v29 = vrot.slane %v5332_v2, 3  ;;  %v5341_v55 = vrot.slane %v5333_v6, 3  ;;  %v5342_v33 = vrot.slane %v5334_v37, 3  ;;  %v5343_v23 = vrot.slane %v5335_v28, 3 }
 0x401   : > { %v5387_v43 = vrot.slane %v5382_v19, %v13459_v26  ;;  %v5452_v6 = vrot.slane %v5444_v42, 7  ;;  %v5455_v20 = vrot.slane %v5447_v63, 7 }
 0x402   : > { %v5348_v12 = vadd.f32 %v5340_v29, %v5320_v30  ;;  %v5349_v4 = vadd.f32 %v5341_v55, %v5321_v24  ;;  %v5350_v0 = vadd.f32 %v5342_v33, %v5322_v46  ;;  %v5351_v59 = vadd.f32 %v5343_v23, %v5323_v7  ;;  %v13469_v24 = vld [vmem:[#allocation176_spill] sm:$0xff] }
 0x403   : > { %v5388_v8 = vmul.f32 %v5387_v43, %v11333_v13  ;;  %v5389_v47 = vmul.f32 %v5387_v43, %v11336_v51  ;;  %v5390_v27 = vmul.f32 %v5387_v43, %v11339_v11  ;;  %v5391_v49 = vmul.f32 %v5387_v43, %v11359_v41 }
 0x404   : > { %v5376_v48 = vadd.f32 %v5368_v36, %v5348_v12  ;;  %v5377_v34 = vadd.f32 %v5369_v21, %v5349_v4  ;;  %v5378_v61 = vadd.f32 %v5370_v9, %v5350_v0  ;;  %v5379_v38 = vadd.f32 %v5371_v45, %v5351_v59 }
 0x405   : > { %v5410_v52 = vpop.permute.xlu1 %5409  ;;  %v5396_v18 = vrot.slane %v5388_v8, 5  ;;  %v5397_v3 = vrot.slane %v5389_v47, 5  ;;  %v5398_v14 = vrot.slane %v5390_v27, 5  ;;  %v5399_v57 = vrot.slane %v5391_v49, 5 }
 0x406   : > { %v5415_v5 = vrot.slane %v5410_v52, %v13459_v26  ;;  %v11441_v46 = vmax.f32 %v13469_v24, 0.0  ;;  %v5516_v7 = vmul.f32 %v11399_v53, %v11407_v16  ;;  %v5517_v0 = vmul.f32 %v11399_v53, %v11417_v17 }
 0x407   : > { %v5404_v62 = vadd.f32 %v5396_v18, %v5376_v48  ;;  %v5405_v54 = vadd.f32 %v5397_v3, %v5377_v34  ;;  %v5406_v58 = vadd.f32 %v5398_v14, %v5378_v61  ;;  %v5407_v32 = vadd.f32 %v5399_v57, %v5379_v38 }
 0x408   : > { %v5416_v50 = vmul.f32 %v5415_v5, %v11333_v13  ;;  %v5417_v15 = vmul.f32 %v5415_v5, %v11336_v51  ;;  %v5418_v10 = vmul.f32 %v5415_v5, %v11339_v11  ;;  %v5419_v30 = vmul.f32 %v5415_v5, %v11359_v41 }
 0x409   : > { %v5454_v11 = vrot.slane %v5446_v56, 7  ;;  %v5518_v59 = vmul.f32 %v11399_v53, %v11420_v44  ;;  %v5519_v8 = vmul.f32 %v11399_v53, %v11441_v46  ;;  %v5524_v3 = vrot.slane %v5516_v7, 2 }
 0x40a   : > { %v5466_v2 = vpop.permute.xlu1 %5465  ;;  %v5424_v37 = vrot.slane %v5416_v50, 6  ;;  %v5425_v13 = vrot.slane %v5417_v15, 6  ;;  %v5426_v28 = vrot.slane %v5418_v10, 6  ;;  %v5427_v51 = vrot.slane %v5419_v30, 6  ;;  %v5678_v15 = vpop.permute.xlu0 %5677 }
 0x40b   : > { %v5471_v41 = vrot.slane %v5466_v2, %v13459_v26  ;;  %v11467_v14 = vmul.f32 %v11402_v1, %v11417_v17  ;;  %v11471_v53 = vmul.f32 %v11402_v1, %v11420_v44  ;;  %v11475_v57 = vmul.f32 %v11402_v1, %v11441_v46 }
 0x40c   : > { %v5432_v19 = vadd.f32 %v5424_v37, %v5404_v62  ;;  %v5433_v36 = vadd.f32 %v5425_v13, %v5405_v54  ;;  %v5434_v21 = vadd.f32 %v5426_v28, %v5406_v58  ;;  %v5435_v29 = vadd.f32 %v5427_v51, %v5407_v32 }
 0x40d   : > { %v5472_v55 = vmul.f32 %v5471_v41, %v11407_v16  ;;  %v5473_v33 = vmul.f32 %v5471_v41, %v11417_v17  ;;  %v5474_v23 = vmul.f32 %v5471_v41, %v11420_v44  ;;  %v5475_v9 = vmul.f32 %v5471_v41, %v11441_v46 }
 0x40e   : > { %v5460_v45 = vadd.f32 %v5452_v6, %v5432_v19  ;;  %v5461_v43 = vadd.f32 %v5453_v31, %v5433_v36  ;;  %v5462_v42 = vadd.f32 %v5454_v11, %v5434_v21  ;;  %v5463_v12 = vadd.f32 %v5455_v20, %v5435_v29 }
 0x40f   : > { %v5482_v4 = vpop.permute.xlu1 %5481  ;;  %v5525_v54 = vrot.slane %v5517_v0, 2  ;;  %v5526_v58 = vrot.slane %v5518_v59, 2  ;;  %v5527_v32 = vrot.slane %v5519_v8, 2  ;;  %v5608_v21 = vrot.slane %v11447_v39, 5 }
 0x410   : > { %v5487_v47 = vrot.slane %v5482_v4, %v13459_v26  ;;  %v5476_v27 = vadd.f32 %v5472_v55, %v5460_v45  ;;  %v5477_v49 = vadd.f32 %v5473_v33, %v5461_v43  ;;  %v5478_v48 = vadd.f32 %v5474_v23, %v5462_v42  ;;  %v5750_v45 = vpop.permute.xlu0 %5749 }
 0x411   : > { %v5479_v34 = vadd.f32 %v5475_v9, %v5463_v12  ;;  %v5609_v0 = vrot.slane %v11467_v14, 5  ;;  %v5610_v59 = vrot.slane %v11471_v53, 5  ;;  %v5611_v39 = vrot.slane %v11475_v57, 5 }
 0x412   : > { %v5488_v61 = vmul.f32 %v5487_v47, %v11407_v16  ;;  %v5489_v38 = vmul.f32 %v5487_v47, %v11417_v17  ;;  %v5490_v52 = vmul.f32 %v5487_v47, %v11420_v44  ;;  %v5491_v18 = vmul.f32 %v5487_v47, %v11441_v46 }
 0x413   : > { %v5683_v8 = vrot.slane %v5678_v15, %v13459_v26 }
 0x414   : > { %v5496_v5 = vrot.slane %v5488_v61, 1  ;;  %v5497_v40 = vrot.slane %v5489_v38, 1  ;;  %v5498_v56 = vrot.slane %v5490_v52, 1  ;;  %v5499_v63 = vrot.slane %v5491_v18, 1  ;;  %v5538_v62 = vpop.permute.xlu1 %5537 }
 0x415   : > { %v5543_v50 = vrot.slane %v5538_v62, %v13459_v26  ;;  %v11493_v61 = vmax.f32 %v11216_v60, 0.0  ;;  %v11496_v38 = vmax.f32 %v11218_v25, 0.0  ;;  %v5755_v52 = vrot.slane %v5750_v45, %v13459_v26 }
 0x416   : > { %v5504_v10 = vadd.f32 %v5496_v5, %v5476_v27  ;;  %v5505_v30 = vadd.f32 %v5497_v40, %v5477_v49  ;;  %v5506_v24 = vadd.f32 %v5498_v56, %v5478_v48  ;;  %v5507_v7 = vadd.f32 %v5499_v63, %v5479_v34 }
 0x417   : > { %v5544_v2 = vmul.f32 %v5543_v50, %v11407_v16  ;;  %v5545_v1 = vmul.f32 %v5543_v50, %v11417_v17  ;;  %v5546_v6 = vmul.f32 %v5543_v50, %v11420_v44  ;;  %v5547_v37 = vmul.f32 %v5543_v50, %v11441_v46 }
 0x418   : > { %v5532_v13 = vadd.f32 %v5524_v3, %v5504_v10  ;;  %v5533_v28 = vadd.f32 %v5525_v54, %v5505_v30  ;;  %v5534_v51 = vadd.f32 %v5526_v58, %v5506_v24  ;;  %v5535_v31 = vadd.f32 %v5527_v32, %v5507_v7 }
 0x419   : > { %v5552_v11 = vrot.slane %v5544_v2, 3  ;;  %v5553_v20 = vrot.slane %v5545_v1, 3  ;;  %v5554_v41 = vrot.slane %v5546_v6, 3  ;;  %v5555_v19 = vrot.slane %v5547_v37, 3  ;;  %v5566_v36 = vpop.permute.xlu1 %5565 }
 0x41a   : > { %v5571_v29 = vrot.slane %v5566_v36, %v13459_v26  ;;  %v4814_v30 = vmax.f32 %v11220_v35, 0.0  ;;  %v4815_v24 = vmax.f32 %v11222_v22, 0.0  ;;  %v5685_v35 = vmul.f32 %v5683_v8, %v11496_v38 }
 0x41b   : > { %v5560_v55 = vadd.f32 %v5552_v11, %v5532_v13  ;;  %v5561_v33 = vadd.f32 %v5553_v20, %v5533_v28  ;;  %v5562_v23 = vadd.f32 %v5554_v41, %v5534_v51  ;;  %v5563_v9 = vadd.f32 %v5555_v19, %v5535_v31 }
 0x41c   : > { %v5572_v43 = vmul.f32 %v5571_v29, %v11407_v16  ;;  %v5573_v42 = vmul.f32 %v5571_v29, %v11417_v17  ;;  %v5574_v12 = vmul.f32 %v5571_v29, %v11420_v44  ;;  %v5575_v4 = vmul.f32 %v5571_v29, %v11441_v46 }
 0x41d   : > { %v5684_v11 = vmul.f32 %v5683_v8, %v11493_v61  ;;  %v6111_v20 = vmov 1966171168  }
 0x41e   : > { %v5580_v47 = vrot.slane %v5572_v43, 4  ;;  %v5581_v27 = vrot.slane %v5573_v42, 4  ;;  %v5582_v49 = vrot.slane %v5574_v12, 4  ;;  %v5583_v48 = vrot.slane %v5575_v4, 4  ;;  %v5622_v34 = vpop.permute.xlu1 %5621 }
 0x41f   : > { %v5627_v18 = vrot.slane %v5622_v34, %v13459_v26  ;;  %v5783_v22 = vunpack.c.l.s4 %v6111_v20  ;;  %v5757_v34 = vmul.f32 %v5755_v52, %v11496_v38  ;;  %v13471_v20 = vlaneseq }
 0x420   : > { %v5588_v3 = vadd.f32 %v5580_v47, %v5560_v55  ;;  %v5589_v14 = vadd.f32 %v5581_v27, %v5561_v33  ;;  %v5590_v53 = vadd.f32 %v5582_v49, %v5562_v23  ;;  %v5591_v57 = vadd.f32 %v5583_v48, %v5563_v9 }
 0x421   : > { %v5628_v5 = vmul.f32 %v5627_v18, %v11407_v16  ;;  %v5629_v40 = vmul.f32 %v5627_v18, %v11417_v17  ;;  %v5630_v56 = vmul.f32 %v5627_v18, %v11420_v44  ;;  %v5631_v60 = vmul.f32 %v5627_v18, %v11441_v46 }
 0x422   : > { %v5616_v63 = vadd.f32 %v5608_v21, %v5588_v3  ;;  %v5617_v62 = vadd.f32 %v5609_v0, %v5589_v14  ;;  %v5618_v25 = vadd.f32 %v5610_v59, %v5590_v53  ;;  %v5619_v54 = vadd.f32 %v5611_v39, %v5591_v57 }
 0x423   : > { %v5636_v58 = vrot.slane %v5628_v5, 6  ;;  %v5637_v32 = vrot.slane %v5629_v40, 6  ;;  %v5638_v50 = vrot.slane %v5630_v56, 6  ;;  %v5639_v15 = vrot.slane %v5631_v60, 6  ;;  %v5650_v10 = vpop.permute.xlu1 %5649 }
 0x424   : > { %v5655_v7 = vrot.slane %v5650_v10, %v13459_v26  ;;  %v5686_v55 = vmul.f32 %v5683_v8, %v4814_v30  ;;  %v5687_v33 = vmul.f32 %v5683_v8, %v4815_v24  ;;  %v5758_v18 = vmul.f32 %v5755_v52, %v4814_v30 }
 0x425   : > { %v5644_v2 = vadd.f32 %v5636_v58, %v5616_v63  ;;  %v5645_v1 = vadd.f32 %v5637_v32, %v5617_v62  ;;  %v5646_v6 = vadd.f32 %v5638_v50, %v5618_v25  ;;  %v5647_v37 = vadd.f32 %v5639_v15, %v5619_v54 }
 0x426   : > { %v5656_v13 = vmul.f32 %v5655_v7, %v11407_v16  ;;  %v5657_v28 = vmul.f32 %v5655_v7, %v11417_v17  ;;  %v5658_v51 = vmul.f32 %v5655_v7, %v11420_v44  ;;  %v5659_v31 = vmul.f32 %v5655_v7, %v11441_v46 }
 0x427   : > { %v5756_v16 = vmul.f32 %v5755_v52, %v11493_v61  ;;  %v5759_v3 = vmul.f32 %v5755_v52, %v4815_v24  ;;  %v5784_v25 = vunpack.c.0.s8 %v5783_v22  ;;  %v5765_v10 = vrot.slane %v5757_v34, 3 }
 0x428   : > { %v5664_v41 = vrot.slane %v5656_v13, 7  ;;  %v5665_v19 = vrot.slane %v5657_v28, 7  ;;  %v5666_v36 = vrot.slane %v5658_v51, 7  ;;  %v5667_v21 = vrot.slane %v5659_v31, 7  ;;  %v5694_v29 = vpop.permute.xlu1 %5693 }
 0x429   : > { %v5699_v17 = vrot.slane %v5694_v29, %v13459_v26  ;;  %v5764_v15 = vrot.slane %v5756_v16, 3  ;;  %v5766_v52 = vrot.slane %v5758_v18, 3  ;;  %v5767_v7 = vrot.slane %v5759_v3, 3 }
 0x42a   : > { %v5672_v44 = vadd.f32 %v5664_v41, %v5644_v2  ;;  %v5673_v23 = vadd.f32 %v5665_v19, %v5645_v1  ;;  %v5674_v46 = vadd.f32 %v5666_v36, %v5646_v6  ;;  %v5675_v9 = vadd.f32 %v5667_v21, %v5647_v37  ;;  %v13470_v37 = vld [vmem:[#allocation16_spill] sm:$0xff] }
 0x42b   : > { %v5700_v45 = vmul.f32 %v5699_v17, %v11493_v61  ;;  %v5701_v43 = vmul.f32 %v5699_v17, %v11496_v38  ;;  %v5702_v42 = vmul.f32 %v5699_v17, %v4814_v30  ;;  %v5703_v12 = vmul.f32 %v5699_v17, %v4815_v24 }
 0x42c   : > { %v5688_v4 = vadd.f32 %v5684_v11, %v5672_v44  ;;  %v5689_v0 = vadd.f32 %v5685_v35, %v5673_v23  ;;  %v5690_v59 = vadd.f32 %v5686_v55, %v5674_v46  ;;  %v5691_v39 = vadd.f32 %v5687_v33, %v5675_v9 }
 0x42d   : > { %v5708_v47 = vrot.slane %v5700_v45, 1  ;;  %v5709_v8 = vrot.slane %v5701_v43, 1  ;;  %v5710_v27 = vrot.slane %v5702_v42, 1  ;;  %v5711_v49 = vrot.slane %v5703_v12, 1  ;;  %v5722_v48 = vpop.permute.xlu1 %5721 }
 0x42e   : > { %v5727_v14 = vrot.slane %v5722_v48, %v13459_v26  ;;  %vm5807_vm0 = vcmp.lt.s32.totalorder %v13471_v20, 512 }
 0x42f   : > { %v5716_v53 = vadd.f32 %v5708_v47, %v5688_v4  ;;  %v5717_v57 = vadd.f32 %v5709_v8, %v5689_v0  ;;  %v5718_v5 = vadd.f32 %v5710_v27, %v5690_v59  ;;  %v5719_v40 = vadd.f32 %v5711_v49, %v5691_v39 }
 0x430   : > { %v5728_v56 = vmul.f32 %v5727_v14, %v11493_v61  ;;  %v5729_v60 = vmul.f32 %v5727_v14, %v11496_v38  ;;  %v5730_v63 = vmul.f32 %v5727_v14, %v4814_v30  ;;  %v5731_v62 = vmul.f32 %v5727_v14, %v4815_v24 }
 0x431   : > { %v5787_v61 = vsub.s32 %v5784_v25, %v13470_v37 }
 0x432   : > { %v5736_v54 = vrot.slane %v5728_v56, 2  ;;  %v5737_v58 = vrot.slane %v5729_v60, 2  ;;  %v5738_v32 = vrot.slane %v5730_v63, 2  ;;  %v5739_v50 = vrot.slane %v5731_v62, 2 }
 0x434   : > { %v5744_v26 = vadd.f32 %v5736_v54, %v5716_v53  ;;  %v5745_v2 = vadd.f32 %v5737_v58, %v5717_v57  ;;  %v5746_v1 = vadd.f32 %v5738_v32, %v5718_v5  ;;  %v5747_v6 = vadd.f32 %v5739_v50, %v5719_v40 }
 0x436   : > { %v5772_v13 = vadd.f32 %v5764_v15, %v5744_v26  ;;  %v5773_v38 = vadd.f32 %v5765_v10, %v5745_v2  ;;  %v5774_v30 = vadd.f32 %v5766_v52, %v5746_v1  ;;  %v5775_v24 = vadd.f32 %v5767_v7, %v5747_v6 }
 0x438   : > { %v5780_v28 = vcombine.low %v5772_v13, %v5773_v38  ;;  %v5781_v51 = vcombine.low %v5774_v30, %v5775_v24 }
 0x43a   : > { %v5788_v31 = vrot.slane %v5780_v28, %v5787_v61  ;;  %v5795_v11 = vrot.slane %v5781_v51, %v5787_v61 }
 0x43c   : > { %v5796_v35 = vcombine.low %v5788_v31, %v5795_v11 }
 0x43e   : > { %v5803_v22 = vrot.slane %v5796_v35, %v5787_v61 }
 0x440   : > { %5809 = vst.msk [vmem:[%s334_s16] sm:$0xf] %vm5807_vm0, %v5803_v22 }
 0x441 PF: > { %s21_s11 = sadd.s32 1, %s6073_s11  }
 0x442   : > { %p18_p4 = scmp.ge.s32.totalorder %s21_s11, 4  }
 0x444   :  { %20 = sbr.rel (!%p18_p4) target bundleno = 3 (0x3), region = 86 }

</bundles_post_ra>
